<compile_context>
chip_gen: v7x
topology: tpu7x:2x2x1
jax: 0.10.0
libtpu: 0.0.40
codegen_flags: <defaults>
</compile_context>

<pallas_src>
import functools

import jax
import jax.numpy as jnp
from jax.experimental import pallas as pl
from jax.experimental.pallas import tpu as pltpu

_LANE = 128
_VMEM_BUDGET = 24 * 1024 * 1024   # modeled VMEM working-set target


def _ceil_div(a, b):
    return -(-a // b)


def _pick_chunk(tt):
    for c in (512, 256, 128):
        if tt % c == 0:
            return c
    return _LANE


def _per_batch_elem_bytes(n, tt, itemsize):
    """Modeled VMEM bytes per batch element for a given time tile."""
    chunk = _pick_chunk(tt)
    if itemsize >= 4:
        deint = 2 * n * tt * 4            # per-tile de-interleaved f32 source copies
    else:
        deint = 4 * n * chunk * 4         # per-chunk staging scratch + f32 slices
    return (4 * n * tt * itemsize         # 2 inputs x 2 pipeline buffers
            + deint
            + 4 * chunk * 4               # d, d^2, partial temporaries
            + 2 * n * n * _LANE * 4       # accumulator scratch + live partials
            + 1024)                       # slack (finalize temporaries etc.)


def _choose_tiles(B, n, T, itemsize):
    """Pick (batch tile, time tile) against the VMEM working-set budget."""
    # Time tile: multiple of 128 lanes; bigger for narrower dtypes so the block
    # byte count stays roughly constant.
    tt_target = max(_LANE, (8192 // max(1, itemsize)) // _LANE * _LANE)
    tt = min(_ceil_div(T, _LANE) * _LANE, tt_target)
    want_bt = min(_ceil_div(B, 8) * 8, _LANE)
    while tt > _LANE and _VMEM_BUDGET // _per_batch_elem_bytes(n, tt, itemsize) < want_bt:
        tt = max(_LANE, (tt // 2) // _LANE * _LANE)
    cap = max(1, _VMEM_BUDGET // _per_batch_elem_bytes(n, tt, itemsize))

    if B <= cap and B < 2 * _LANE:
        bt = B            # whole batch in one tile (bt == padded B: always legal)
    else:
        # Split the batch: guarantees >= 2 steps on the 'parallel' grid axis
        # whenever B >= 256 (v7x has two TensorCores) and keeps bt a multiple
        # of 128 so the lane-dense output blocks stay legal.
        bt = max(_LANE, min(cap, _ceil_div(B, 2)) // _LANE * _LANE)
    return bt, tt


def _sinkpit_kernel(x_ref, y_ref, perm_ref, loss_ref, acc_ref, *stage_refs,
                    n, bt, tt, chunk, t_total, coldness, iteration):
    """One grid step = (batch tile b, time tile t).

    x_ref, y_ref : (bt*n, tt)     input-dtype tiles; rows are batch-major
                                  (b0s0, b0s1, ..., b0s{n-1}, b1s0, ...).
    perm_ref     : (n*n, bt)      f32 output block (lane-dense, batch minor).
    loss_ref     : (1,  bt)       f32 output block.
    acc_ref      : (n*n, bt, 128) f32 scratch: per-pair lane-wise partial sums.
    stage_refs   : optionally two (bt*n, chunk) f32 scratches for staging an
                   upcast copy of the current lane chunk (sub-32-bit inputs).
    """
    t_idx = pl.program_id(1)
    n_t = pl.num_programs(1)
    staged = len(stage_refs) == 2
    n_ck = tt // chunk
    n_lt = chunk // _LANE

    @pl.when(t_idx == 0)
    def _init():
        acc_ref[...] = jnp.zeros_like(acc_ref)

    if not staged:
        # 32-bit inputs: de-interleave each source once per tile with strided
        # sublane loads (rows i, i+n, i+2n, ... of the batch-major tile).
        xs_full = [x_ref[pl.ds(i, bt, stride=n)].astype(jnp.float32) for i in range(n)]
        ys_full = [y_ref[pl.ds(j, bt, stride=n)].astype(jnp.float32) for j in range(n)]

    # Per-pair lane-wise partial sums for this time tile.  All cross-lane work
    # is deferred to the finalize step; the only per-tile ops are VPU adds on
    # 128-lane-aligned slices.
    partials = [None] * (n * n)
    for c in range(n_ck):                 # lane-chunked pair loop: each chunk of
        lo = c * chunk                    # source data is reused by all n pairs.
        if staged:
            xst, yst = stage_refs
            xst[...] = x_ref[:, pl.ds(lo, chunk)].astype(jnp.float32)
            yst[...] = y_ref[:, pl.ds(lo, chunk)].astype(jnp.float32)
            xs = [xst[pl.ds(i, bt, stride=n), :] for i in range(n)]
            ys = [yst[pl.ds(j, bt, stride=n), :] for j in range(n)]
        else:
            xs = [v[:, lo:lo + chunk] for v in xs_full]
            ys = [v[:, lo:lo + chunk] for v in ys_full]
        for i in range(n):
            for j in range(n):
                d = xs[i] - ys[j]                          # (bt, chunk) f32
                d2 = d * d
                p = d2[:, 0:_LANE]                         # fold lane tiles -> (bt, 128)
                for lt in range(1, n_lt):
                    p = p + d2[:, lt * _LANE:(lt + 1) * _LANE]
                k = i * n + j
                partials[k] = p if partials[k] is None else partials[k] + p

    for k in range(n * n):
        acc_ref[k, :, :] = acc_ref[k, :, :] + partials[k]

    # ---- finalize: Sinkhorn + loss, batch on the lane axis ------------------
    @pl.when(t_idx == n_t - 1)
    def _finalize():
        inv_t = 1.0 / float(t_total)
        inv_cold = 1.0 / float(coldness)
        # The only cross-lane reductions in the kernel: n*n 128->1 sums, once
        # per batch tile.  Everything below is (1, bt) lane-vector work.
        L = [jnp.sum(acc_ref[k, :, :], axis=-1).reshape(1, bt) * inv_t
             for k in range(n * n)]
        Z = [(-float(coldness)) * L[k] for k in range(n * n)]

        def lse(vals):
            m = vals[0]
            for v in vals[1:]:
                m = jnp.maximum(m, v)
            s = jnp.exp(vals[0] - m)
            for v in vals[1:]:
                s = s + jnp.exp(v - m)
            return m + jnp.log(s)

        for _ in range(iteration):                         # static unroll
            for j in range(n):                             # normalize over i (torch dim=1)
                l = lse([Z[i * n + j] for i in range(n)])
                for i in range(n):
                    Z[i * n + j] = Z[i * n + j] - l
            for i in range(n):                             # normalize over j (torch dim=2)
                l = lse([Z[i * n + j] for j in range(n)])
                for j in range(n):
                    Z[i * n + j] = Z[i * n + j] - l

        loss = jnp.zeros((1, bt), jnp.float32)
        for k in range(n * n):
            perm_k = jnp.exp(Z[k])
            perm_ref[pl.ds(k, 1), :] = perm_k
            loss = loss + (L[k] + Z[k] * inv_cold) * perm_k
        loss_ref[...] = loss


def sinkpit_pallas(x, y, *, coldness=1.0, iteration=10, batch_mean=True,
                   block_b=None, block_t=None):
    """SinkPIT forward with an MSE-over-time criterion.

    Returns (loss, pattern, perm) like SinkPIT.forward (perm is the doubly
    stochastic permutation matrix, (B, n, n)).  Pass bf16 inputs to stream
    half the HBM bytes; the kernel upcasts in-register.
    """
    B, n, T = x.shape
    assert y.shape == (B, n, T), (x.shape, y.shape)
    if y.dtype != x.dtype:
        y = y.astype(x.dtype)
    itemsize = jnp.dtype(x.dtype).itemsize

    bt, tt = _choose_tiles(B, n, T, itemsize)
    if block_t is not None:
        block_t = int(block_t)
        if block_t <= 0 or block_t % _LANE != 0:
            raise ValueError("block_t must be a positive multiple of 128")
        tt = block_t
    if block_b is not None:
        block_b = int(block_b)
        if block_b <= 0 or (block_b % _LANE != 0 and block_b < B):
            raise ValueError("block_b must be a positive multiple of 128 or >= batch size")
        bt = block_b

    chunk = _pick_chunk(tt)
    Bp = _ceil_div(B, bt) * bt
    Tp = _ceil_div(T, tt) * tt
    if (Bp, Tp) != (B, T):
        pad = ((0, Bp - B), (0, 0), (0, Tp - T))
        x = jnp.pad(x, pad)
        y = jnp.pad(y, pad)

    # Free host-side reshape -> sublane-dense (Bp*n, Tp) batch-major rows.
    xr = x.reshape(Bp * n, Tp)
    yr = y.reshape(Bp * n, Tp)
    nb, nt = Bp // bt, Tp // tt

    staged = itemsize < 4
    scratch = [pltpu.VMEM((n * n, bt, _LANE), jnp.float32)]
    if staged:
        scratch += [pltpu.VMEM((bt * n, chunk), jnp.float32)] * 2

    kernel = functools.partial(
        _sinkpit_kernel, n=n, bt=bt, tt=tt, chunk=chunk, t_total=T,
        coldness=float(coldness), iteration=int(iteration))

    # vmem limit derived from the same working-set model used for tiling.
    modeled = bt * _per_batch_elem_bytes(n, tt, itemsize)
    vmem_limit = int(min(48 << 20, max(32 << 20, (modeled * 3) // 2)))

    cost = pl.CostEstimate(
        flops=int(3 * B * n * n * T + 40 * iteration * B * n * n),
        transcendentals=int(2 * iteration * B * n * n + B * n * n),
        bytes_accessed=int(2 * B * n * T * itemsize + 4 * B * (n * n + 1)),
    )

    perm_flat, loss_b = pl.pallas_call(
        kernel,
        out_shape=(
            jax.ShapeDtypeStruct((n * n, Bp), jnp.float32),
            jax.ShapeDtypeStruct((1, Bp), jnp.float32),
        ),
        grid_spec=pltpu.PrefetchScalarGridSpec(
            num_scalar_prefetch=0,
            grid=(nb, nt),
            in_specs=[
                pl.BlockSpec((bt * n, tt), lambda b, t: (b, t)),
                pl.BlockSpec((bt * n, tt), lambda b, t: (b, t)),
            ],
            out_specs=[
                pl.BlockSpec((n * n, bt), lambda b, t: (0, b)),
                pl.BlockSpec((1, bt), lambda b, t: (0, b)),
            ],
            scratch_shapes=scratch,
        ),
        compiler_params=pltpu.CompilerParams(
            dimension_semantics=("parallel", "arbitrary"),
            vmem_limit_bytes=vmem_limit,
        ),
        cost_estimate=cost,
    )(xr, yr)

    # Glue (plain JAX on tiny arrays): un-pad, restore (B, n, n), batch mean,
    # argmax pattern.
    perm = perm_flat[:, :B].reshape(n, n, B).transpose(2, 0, 1)   # (B, n, n)
    loss = loss_b[0, :B]
    if batch_mean:
        loss = jnp.mean(loss, axis=0)
    pattern = jnp.argmax(perm, axis=2)
    return loss, pattern, perm


def _sinkpit_reference(x, y, coldness=1.0, iteration=10, batch_mean=True):
    """Pure-JAX reference mirroring the PyTorch code (MSE criterion)."""
    B, n, T = x.shape
    xe = x[:, :, None, :]
    ye = y[:, None, :, :]
    possible_loss = jnp.mean((xe - ye) ** 2, axis=-1)   # (B, n, n)
    Z = -coldness * possible_loss
    for _ in range(iteration):
        Z = Z - jax.scipy.special.logsumexp(Z, axis=1, keepdims=True)
        Z = Z - jax.scipy.special.logsumexp(Z, axis=2, keepdims=True)
    perm = jnp.exp(Z)
    loss = jnp.sum((possible_loss + Z / coldness) * perm, axis=(1, 2))
    if batch_mean:
        loss = jnp.mean(loss, axis=0)
    pattern = jnp.argmax(perm, axis=2)
    return loss, pattern, perm


if __name__ == "__main__":
    def _make_pair(seed, B, n, T, dtype):
        kx, ky = jax.random.split(jax.random.PRNGKey(seed) if seed else jax.random.PRNGKey(0))
        x = jax.random.normal(kx, (B, n, T), dtype=jnp.float32)
        shuffle = jnp.stack([jnp.roll(jnp.arange(n), b % n) for b in range(B)])
        y = jnp.take_along_axis(x, jnp.broadcast_to(shuffle[:, :, None], x.shape), axis=1)
        y = y + 0.05 * jax.random.normal(ky, (B, n, T), dtype=jnp.float32)
        return x.astype(dtype), y.astype(dtype)

    def _check(got, want, tol):
        loss, pattern, perm = got
        loss_r, pattern_r, perm_r = want
        assert jnp.allclose(loss, loss_r, atol=tol, rtol=tol), (loss, loss_r)
        assert jnp.allclose(perm, perm_r, atol=tol, rtol=tol)
        assert bool(jnp.all(pattern == pattern_r))

    # 1) f32 baseline: single batch & time tile.
    x, y = _make_pair(0, 2, 4, 128, jnp.float32)
    out = sinkpit_pallas(x, y, coldness=1.0, iteration=10)
    jax.block_until_ready(out)
    _check(out, _sinkpit_reference(x, y, 1.0, 10), 1e-4)

    # 2) f32, odd B / ragged T: zero padding + accumulation over 3 time tiles.
    x, y = _make_pair(1, 3, 4, 300, jnp.float32)
    out = sinkpit_pallas(x, y, coldness=1.0, iteration=10, block_t=128)
    jax.block_until_ready(out)
    _check(out, _sinkpit_reference(x, y, 1.0, 10), 1e-4)

    # 3) bf16 streaming path: in-kernel upcast via staging scratch, chunked pair loop.
    x, y = _make_pair(2, 2, 4, 1024, jnp.bfloat16)
    out = sinkpit_pallas(x, y, coldness=1.0, iteration=10)
    jax.block_until_ready(out)
    ref = _sinkpit_reference(x.astype(jnp.float32), y.astype(jnp.float32), 1.0, 10)
    _check(out, ref, 2e-3)

    # 4) f32 chunked path (no staging): 2 lane chunks x 4 lane tiles each.
    x, y = _make_pair(3, 2, 4, 1024, jnp.float32)
    out = sinkpit_pallas(x, y, coldness=1.0, iteration=10)
    jax.block_until_ready(out)
    _check(out, _sinkpit_reference(x, y, 1.0, 10), 1e-4)

    # 5) batch-tiled path: B=256 -> two 'parallel' grid steps (v7x dual-TC split).
    x, y = _make_pair(4, 256, 4, 128, jnp.float32)
    out = sinkpit_pallas(x, y, coldness=1.0, iteration=10)
    jax.block_until_ready(out)
    _check(out, _sinkpit_reference(x, y, 1.0, 10), 1e-4)

    print("KERNEL_OK")
</pallas_src>

<mosaic_0001>
module attributes {stable_mosaic.version = 11 : i64} {
  func.func @_sinkpit_kernel(%arg0: i32, %arg1: i32, %arg2: memref<8x128xf32, #tpu.memory_space<vmem>>, %arg3: memref<8x128xf32, #tpu.memory_space<vmem>>, %arg4: memref<16x2xf32, #tpu.memory_space<vmem>>, %arg5: memref<1x2xf32, #tpu.memory_space<vmem>>, %arg6: memref<16x2x128xf32, #tpu.memory_space<vmem>>) attributes {dimension_semantics = [#tpu.dimension_semantics<parallel>, #tpu.dimension_semantics<arbitrary>], iteration_bounds = array<i64: 1, 1>, scalar_prefetch = 0 : i64, scratch_operands = 1 : i64, tpu.core_type = #tpu.core_type<tc>, window_params = [{transform_indices = @transform_0, window_bounds = array<i64: 8, 128>}, {transform_indices = @transform_1, window_bounds = array<i64: 8, 128>}, {transform_indices = @transform_2, window_bounds = array<i64: 16, 2>}, {transform_indices = @transform_3, window_bounds = array<i64: 1, 2>}]} {
    %c0_i32 = arith.constant 0 : i32
    %0 = arith.cmpi eq, %arg1, %c0_i32 : i32
    %1 = arith.extui %0 : i1 to i32
    %c0_i32_0 = arith.constant 0 : i32
    %2 = arith.cmpi ne, %1, %c0_i32_0 : i32
    scf.if %2 {
      %cst = arith.constant 0.000000e+00 : f32
      %142 = vector.broadcast %cst : f32 to vector<16x2x128xf32>
      %c0_99 = arith.constant 0 : index
      %c0_100 = arith.constant 0 : index
      %c0_101 = arith.constant 0 : index
      %143 = vector.load %arg6[%c0_99, %c0_100, %c0_101] : memref<16x2x128xf32, #tpu.memory_space<vmem>>, vector<16x2x128xf32>
      tpu.vector_store %arg6[%c0_99, %c0_100, %c0_101], %142 {strides = array<i32>} : memref<16x2x128xf32, #tpu.memory_space<vmem>>, vector<16x2x128xf32>,
    } else {
    }
    %c0 = arith.constant 0 : index
    %c0_1 = arith.constant 0 : index
    %3 = tpu.strided_load %arg2[%c0, %c0_1] {strides = array<i32: 4, 1>} : memref<8x128xf32, #tpu.memory_space<vmem>>, vector<2x128xf32>
    %c1 = arith.constant 1 : index
    %c0_2 = arith.constant 0 : index
    %4 = tpu.strided_load %arg2[%c1, %c0_2] {strides = array<i32: 4, 1>} : memref<8x128xf32, #tpu.memory_space<vmem>>, vector<2x128xf32>
    %c2 = arith.constant 2 : index
    %c0_3 = arith.constant 0 : index
    %5 = tpu.strided_load %arg2[%c2, %c0_3] {strides = array<i32: 4, 1>} : memref<8x128xf32, #tpu.memory_space<vmem>>, vector<2x128xf32>
    %c3 = arith.constant 3 : index
    %c0_4 = arith.constant 0 : index
    %6 = tpu.strided_load %arg2[%c3, %c0_4] {strides = array<i32: 4, 1>} : memref<8x128xf32, #tpu.memory_space<vmem>>, vector<2x128xf32>
    %c0_5 = arith.constant 0 : index
    %c0_6 = arith.constant 0 : index
    %7 = tpu.strided_load %arg3[%c0_5, %c0_6] {strides = array<i32: 4, 1>} : memref<8x128xf32, #tpu.memory_space<vmem>>, vector<2x128xf32>
    %c1_7 = arith.constant 1 : index
    %c0_8 = arith.constant 0 : index
    %8 = tpu.strided_load %arg3[%c1_7, %c0_8] {strides = array<i32: 4, 1>} : memref<8x128xf32, #tpu.memory_space<vmem>>, vector<2x128xf32>
    %c2_9 = arith.constant 2 : index
    %c0_10 = arith.constant 0 : index
    %9 = tpu.strided_load %arg3[%c2_9, %c0_10] {strides = array<i32: 4, 1>} : memref<8x128xf32, #tpu.memory_space<vmem>>, vector<2x128xf32>
    %c3_11 = arith.constant 3 : index
    %c0_12 = arith.constant 0 : index
    %10 = tpu.strided_load %arg3[%c3_11, %c0_12] {strides = array<i32: 4, 1>} : memref<8x128xf32, #tpu.memory_space<vmem>>, vector<2x128xf32>
    %11 = arith.subf %3, %7 : vector<2x128xf32>
    %12 = arith.mulf %11, %11 : vector<2x128xf32>
    %13 = arith.subf %3, %8 : vector<2x128xf32>
    %14 = arith.mulf %13, %13 : vector<2x128xf32>
    %15 = arith.subf %3, %9 : vector<2x128xf32>
    %16 = arith.mulf %15, %15 : vector<2x128xf32>
    %17 = arith.subf %3, %10 : vector<2x128xf32>
    %18 = arith.mulf %17, %17 : vector<2x128xf32>
    %19 = arith.subf %4, %7 : vector<2x128xf32>
    %20 = arith.mulf %19, %19 : vector<2x128xf32>
    %21 = arith.subf %4, %8 : vector<2x128xf32>
    %22 = arith.mulf %21, %21 : vector<2x128xf32>
    %23 = arith.subf %4, %9 : vector<2x128xf32>
    %24 = arith.mulf %23, %23 : vector<2x128xf32>
    %25 = arith.subf %4, %10 : vector<2x128xf32>
    %26 = arith.mulf %25, %25 : vector<2x128xf32>
    %27 = arith.subf %5, %7 : vector<2x128xf32>
    %28 = arith.mulf %27, %27 : vector<2x128xf32>
    %29 = arith.subf %5, %8 : vector<2x128xf32>
    %30 = arith.mulf %29, %29 : vector<2x128xf32>
    %31 = arith.subf %5, %9 : vector<2x128xf32>
    %32 = arith.mulf %31, %31 : vector<2x128xf32>
    %33 = arith.subf %5, %10 : vector<2x128xf32>
    %34 = arith.mulf %33, %33 : vector<2x128xf32>
    %35 = arith.subf %6, %7 : vector<2x128xf32>
    %36 = arith.mulf %35, %35 : vector<2x128xf32>
    %37 = arith.subf %6, %8 : vector<2x128xf32>
    %38 = arith.mulf %37, %37 : vector<2x128xf32>
    %39 = arith.subf %6, %9 : vector<2x128xf32>
    %40 = arith.mulf %39, %39 : vector<2x128xf32>
    %41 = arith.subf %6, %10 : vector<2x128xf32>
    %42 = arith.mulf %41, %41 : vector<2x128xf32>
    %c0_13 = arith.constant 0 : index
    %c0_14 = arith.constant 0 : index
    %c0_15 = arith.constant 0 : index
    %43 = vector.load %arg6[%c0_13, %c0_14, %c0_15] : memref<16x2x128xf32, #tpu.memory_space<vmem>>, vector<1x2x128xf32>
    %44 = vector.shape_cast %43 : vector<1x2x128xf32> to vector<2x128xf32>
    %45 = arith.addf %44, %12 : vector<2x128xf32>
    %c0_16 = arith.constant 0 : index
    %c0_17 = arith.constant 0 : index
    %c0_18 = arith.constant 0 : index
    %46 = vector.load %arg6[%c0_16, %c0_17, %c0_18] : memref<16x2x128xf32, #tpu.memory_space<vmem>>, vector<1x2x128xf32>
    %47 = vector.shape_cast %46 : vector<1x2x128xf32> to vector<2x128xf32>
    %48 = vector.shape_cast %45 : vector<2x128xf32> to vector<1x2x128xf32>
    tpu.vector_store %arg6[%c0_16, %c0_17, %c0_18], %48 {strides = array<i32>} : memref<16x2x128xf32, #tpu.memory_space<vmem>>, vector<1x2x128xf32>,
    %c1_19 = arith.constant 1 : index
    %c0_20 = arith.constant 0 : index
    %c0_21 = arith.constant 0 : index
    %49 = vector.load %arg6[%c1_19, %c0_20, %c0_21] : memref<16x2x128xf32, #tpu.memory_space<vmem>>, vector<1x2x128xf32>
    %50 = vector.shape_cast %49 : vector<1x2x128xf32> to vector<2x128xf32>
    %51 = arith.addf %50, %14 : vector<2x128xf32>
    %c1_22 = arith.constant 1 : index
    %c0_23 = arith.constant 0 : index
    %c0_24 = arith.constant 0 : index
    %52 = vector.load %arg6[%c1_22, %c0_23, %c0_24] : memref<16x2x128xf32, #tpu.memory_space<vmem>>, vector<1x2x128xf32>
    %53 = vector.shape_cast %52 : vector<1x2x128xf32> to vector<2x128xf32>
    %54 = vector.shape_cast %51 : vector<2x128xf32> to vector<1x2x128xf32>
    tpu.vector_store %arg6[%c1_22, %c0_23, %c0_24], %54 {strides = array<i32>} : memref<16x2x128xf32, #tpu.memory_space<vmem>>, vector<1x2x128xf32>,
    %c2_25 = arith.constant 2 : index
    %c0_26 = arith.constant 0 : index
    %c0_27 = arith.constant 0 : index
    %55 = vector.load %arg6[%c2_25, %c0_26, %c0_27] : memref<16x2x128xf32, #tpu.memory_space<vmem>>, vector<1x2x128xf32>
    %56 = vector.shape_cast %55 : vector<1x2x128xf32> to vector<2x128xf32>
    %57 = arith.addf %56, %16 : vector<2x128xf32>
    %c2_28 = arith.constant 2 : index
    %c0_29 = arith.constant 0 : index
    %c0_30 = arith.constant 0 : index
    %58 = vector.load %arg6[%c2_28, %c0_29, %c0_30] : memref<16x2x128xf32, #tpu.memory_space<vmem>>, vector<1x2x128xf32>
    %59 = vector.shape_cast %58 : vector<1x2x128xf32> to vector<2x128xf32>
    %60 = vector.shape_cast %57 : vector<2x128xf32> to vector<1x2x128xf32>
    tpu.vector_store %arg6[%c2_28, %c0_29, %c0_30], %60 {strides = array<i32>} : memref<16x2x128xf32, #tpu.memory_space<vmem>>, vector<1x2x128xf32>,
    %c3_31 = arith.constant 3 : index
    %c0_32 = arith.constant 0 : index
    %c0_33 = arith.constant 0 : index
    %61 = vector.load %arg6[%c3_31, %c0_32, %c0_33] : memref<16x2x128xf32, #tpu.memory_space<vmem>>, vector<1x2x128xf32>
    %62 = vector.shape_cast %61 : vector<1x2x128xf32> to vector<2x128xf32>
    %63 = arith.addf %62, %18 : vector<2x128xf32>
    %c3_34 = arith.constant 3 : index
    %c0_35 = arith.constant 0 : index
    %c0_36 = arith.constant 0 : index
    %64 = vector.load %arg6[%c3_34, %c0_35, %c0_36] : memref<16x2x128xf32, #tpu.memory_space<vmem>>, vector<1x2x128xf32>
    %65 = vector.shape_cast %64 : vector<1x2x128xf32> to vector<2x128xf32>
    %66 = vector.shape_cast %63 : vector<2x128xf32> to vector<1x2x128xf32>
    tpu.vector_store %arg6[%c3_34, %c0_35, %c0_36], %66 {strides = array<i32>} : memref<16x2x128xf32, #tpu.memory_space<vmem>>, vector<1x2x128xf32>,
    %c4 = arith.constant 4 : index
    %c0_37 = arith.constant 0 : index
    %c0_38 = arith.constant 0 : index
    %67 = vector.load %arg6[%c4, %c0_37, %c0_38] : memref<16x2x128xf32, #tpu.memory_space<vmem>>, vector<1x2x128xf32>
    %68 = vector.shape_cast %67 : vector<1x2x128xf32> to vector<2x128xf32>
    %69 = arith.addf %68, %20 : vector<2x128xf32>
    %c4_39 = arith.constant 4 : index
    %c0_40 = arith.constant 0 : index
    %c0_41 = arith.constant 0 : index
    %70 = vector.load %arg6[%c4_39, %c0_40, %c0_41] : memref<16x2x128xf32, #tpu.memory_space<vmem>>, vector<1x2x128xf32>
    %71 = vector.shape_cast %70 : vector<1x2x128xf32> to vector<2x128xf32>
    %72 = vector.shape_cast %69 : vector<2x128xf32> to vector<1x2x128xf32>
    tpu.vector_store %arg6[%c4_39, %c0_40, %c0_41], %72 {strides = array<i32>} : memref<16x2x128xf32, #tpu.memory_space<vmem>>, vector<1x2x128xf32>,
    %c5 = arith.constant 5 : index
    %c0_42 = arith.constant 0 : index
    %c0_43 = arith.constant 0 : index
    %73 = vector.load %arg6[%c5, %c0_42, %c0_43] : memref<16x2x128xf32, #tpu.memory_space<vmem>>, vector<1x2x128xf32>
    %74 = vector.shape_cast %73 : vector<1x2x128xf32> to vector<2x128xf32>
    %75 = arith.addf %74, %22 : vector<2x128xf32>
    %c5_44 = arith.constant 5 : index
    %c0_45 = arith.constant 0 : index
    %c0_46 = arith.constant 0 : index
    %76 = vector.load %arg6[%c5_44, %c0_45, %c0_46] : memref<16x2x128xf32, #tpu.memory_space<vmem>>, vector<1x2x128xf32>
    %77 = vector.shape_cast %76 : vector<1x2x128xf32> to vector<2x128xf32>
    %78 = vector.shape_cast %75 : vector<2x128xf32> to vector<1x2x128xf32>
    tpu.vector_store %arg6[%c5_44, %c0_45, %c0_46], %78 {strides = array<i32>} : memref<16x2x128xf32, #tpu.memory_space<vmem>>, vector<1x2x128xf32>,
    %c6 = arith.constant 6 : index
    %c0_47 = arith.constant 0 : index
    %c0_48 = arith.constant 0 : index
    %79 = vector.load %arg6[%c6, %c0_47, %c0_48] : memref<16x2x128xf32, #tpu.memory_space<vmem>>, vector<1x2x128xf32>
    %80 = vector.shape_cast %79 : vector<1x2x128xf32> to vector<2x128xf32>
    %81 = arith.addf %80, %24 : vector<2x128xf32>
    %c6_49 = arith.constant 6 : index
    %c0_50 = arith.constant 0 : index
    %c0_51 = arith.constant 0 : index
    %82 = vector.load %arg6[%c6_49, %c0_50, %c0_51] : memref<16x2x128xf32, #tpu.memory_space<vmem>>, vector<1x2x128xf32>
    %83 = vector.shape_cast %82 : vector<1x2x128xf32> to vector<2x128xf32>
    %84 = vector.shape_cast %81 : vector<2x128xf32> to vector<1x2x128xf32>
    tpu.vector_store %arg6[%c6_49, %c0_50, %c0_51], %84 {strides = array<i32>} : memref<16x2x128xf32, #tpu.memory_space<vmem>>, vector<1x2x128xf32>,
    %c7 = arith.constant 7 : index
    %c0_52 = arith.constant 0 : index
    %c0_53 = arith.constant 0 : index
    %85 = vector.load %arg6[%c7, %c0_52, %c0_53] : memref<16x2x128xf32, #tpu.memory_space<vmem>>, vector<1x2x128xf32>
    %86 = vector.shape_cast %85 : vector<1x2x128xf32> to vector<2x128xf32>
    %87 = arith.addf %86, %26 : vector<2x128xf32>
    %c7_54 = arith.constant 7 : index
    %c0_55 = arith.constant 0 : index
    %c0_56 = arith.constant 0 : index
    %88 = vector.load %arg6[%c7_54, %c0_55, %c0_56] : memref<16x2x128xf32, #tpu.memory_space<vmem>>, vector<1x2x128xf32>
    %89 = vector.shape_cast %88 : vector<1x2x128xf32> to vector<2x128xf32>
    %90 = vector.shape_cast %87 : vector<2x128xf32> to vector<1x2x128xf32>
    tpu.vector_store %arg6[%c7_54, %c0_55, %c0_56], %90 {strides = array<i32>} : memref<16x2x128xf32, #tpu.memory_space<vmem>>, vector<1x2x128xf32>,
    %c8 = arith.constant 8 : index
    %c0_57 = arith.constant 0 : index
    %c0_58 = arith.constant 0 : index
    %91 = vector.load %arg6[%c8, %c0_57, %c0_58] : memref<16x2x128xf32, #tpu.memory_space<vmem>>, vector<1x2x128xf32>
    %92 = vector.shape_cast %91 : vector<1x2x128xf32> to vector<2x128xf32>
    %93 = arith.addf %92, %28 : vector<2x128xf32>
    %c8_59 = arith.constant 8 : index
    %c0_60 = arith.constant 0 : index
    %c0_61 = arith.constant 0 : index
    %94 = vector.load %arg6[%c8_59, %c0_60, %c0_61] : memref<16x2x128xf32, #tpu.memory_space<vmem>>, vector<1x2x128xf32>
    %95 = vector.shape_cast %94 : vector<1x2x128xf32> to vector<2x128xf32>
    %96 = vector.shape_cast %93 : vector<2x128xf32> to vector<1x2x128xf32>
    tpu.vector_store %arg6[%c8_59, %c0_60, %c0_61], %96 {strides = array<i32>} : memref<16x2x128xf32, #tpu.memory_space<vmem>>, vector<1x2x128xf32>,
    %c9 = arith.constant 9 : index
    %c0_62 = arith.constant 0 : index
    %c0_63 = arith.constant 0 : index
    %97 = vector.load %arg6[%c9, %c0_62, %c0_63] : memref<16x2x128xf32, #tpu.memory_space<vmem>>, vector<1x2x128xf32>
    %98 = vector.shape_cast %97 : vector<1x2x128xf32> to vector<2x128xf32>
    %99 = arith.addf %98, %30 : vector<2x128xf32>
    %c9_64 = arith.constant 9 : index
    %c0_65 = arith.constant 0 : index
    %c0_66 = arith.constant 0 : index
    %100 = vector.load %arg6[%c9_64, %c0_65, %c0_66] : memref<16x2x128xf32, #tpu.memory_space<vmem>>, vector<1x2x128xf32>
    %101 = vector.shape_cast %100 : vector<1x2x128xf32> to vector<2x128xf32>
    %102 = vector.shape_cast %99 : vector<2x128xf32> to vector<1x2x128xf32>
    tpu.vector_store %arg6[%c9_64, %c0_65, %c0_66], %102 {strides = array<i32>} : memref<16x2x128xf32, #tpu.memory_space<vmem>>, vector<1x2x128xf32>,
    %c10 = arith.constant 10 : index
    %c0_67 = arith.constant 0 : index
    %c0_68 = arith.constant 0 : index
    %103 = vector.load %arg6[%c10, %c0_67, %c0_68] : memref<16x2x128xf32, #tpu.memory_space<vmem>>, vector<1x2x128xf32>
    %104 = vector.shape_cast %103 : vector<1x2x128xf32> to vector<2x128xf32>
    %105 = arith.addf %104, %32 : vector<2x128xf32>
    %c10_69 = arith.constant 10 : index
    %c0_70 = arith.constant 0 : index
    %c0_71 = arith.constant 0 : index
    %106 = vector.load %arg6[%c10_69, %c0_70, %c0_71] : memref<16x2x128xf32, #tpu.memory_space<vmem>>, vector<1x2x128xf32>
    %107 = vector.shape_cast %106 : vector<1x2x128xf32> to vector<2x128xf32>
    %108 = vector.shape_cast %105 : vector<2x128xf32> to vector<1x2x128xf32>
    tpu.vector_store %arg6[%c10_69, %c0_70, %c0_71], %108 {strides = array<i32>} : memref<16x2x128xf32, #tpu.memory_space<vmem>>, vector<1x2x128xf32>,
    %c11 = arith.constant 11 : index
    %c0_72 = arith.constant 0 : index
    %c0_73 = arith.constant 0 : index
    %109 = vector.load %arg6[%c11, %c0_72, %c0_73] : memref<16x2x128xf32, #tpu.memory_space<vmem>>, vector<1x2x128xf32>
    %110 = vector.shape_cast %109 : vector<1x2x128xf32> to vector<2x128xf32>
    %111 = arith.addf %110, %34 : vector<2x128xf32>
    %c11_74 = arith.constant 11 : index
    %c0_75 = arith.constant 0 : index
    %c0_76 = arith.constant 0 : index
    %112 = vector.load %arg6[%c11_74, %c0_75, %c0_76] : memref<16x2x128xf32, #tpu.memory_space<vmem>>, vector<1x2x128xf32>
    %113 = vector.shape_cast %112 : vector<1x2x128xf32> to vector<2x128xf32>
    %114 = vector.shape_cast %111 : vector<2x128xf32> to vector<1x2x128xf32>
    tpu.vector_store %arg6[%c11_74, %c0_75, %c0_76], %114 {strides = array<i32>} : memref<16x2x128xf32, #tpu.memory_space<vmem>>, vector<1x2x128xf32>,
    %c12 = arith.constant 12 : index
    %c0_77 = arith.constant 0 : index
    %c0_78 = arith.constant 0 : index
    %115 = vector.load %arg6[%c12, %c0_77, %c0_78] : memref<16x2x128xf32, #tpu.memory_space<vmem>>, vector<1x2x128xf32>
    %116 = vector.shape_cast %115 : vector<1x2x128xf32> to vector<2x128xf32>
    %117 = arith.addf %116, %36 : vector<2x128xf32>
    %c12_79 = arith.constant 12 : index
    %c0_80 = arith.constant 0 : index
    %c0_81 = arith.constant 0 : index
    %118 = vector.load %arg6[%c12_79, %c0_80, %c0_81] : memref<16x2x128xf32, #tpu.memory_space<vmem>>, vector<1x2x128xf32>
    %119 = vector.shape_cast %118 : vector<1x2x128xf32> to vector<2x128xf32>
    %120 = vector.shape_cast %117 : vector<2x128xf32> to vector<1x2x128xf32>
    tpu.vector_store %arg6[%c12_79, %c0_80, %c0_81], %120 {strides = array<i32>} : memref<16x2x128xf32, #tpu.memory_space<vmem>>, vector<1x2x128xf32>,
    %c13 = arith.constant 13 : index
    %c0_82 = arith.constant 0 : index
    %c0_83 = arith.constant 0 : index
    %121 = vector.load %arg6[%c13, %c0_82, %c0_83] : memref<16x2x128xf32, #tpu.memory_space<vmem>>, vector<1x2x128xf32>
    %122 = vector.shape_cast %121 : vector<1x2x128xf32> to vector<2x128xf32>
    %123 = arith.addf %122, %38 : vector<2x128xf32>
    %c13_84 = arith.constant 13 : index
    %c0_85 = arith.constant 0 : index
    %c0_86 = arith.constant 0 : index
    %124 = vector.load %arg6[%c13_84, %c0_85, %c0_86] : memref<16x2x128xf32, #tpu.memory_space<vmem>>, vector<1x2x128xf32>
    %125 = vector.shape_cast %124 : vector<1x2x128xf32> to vector<2x128xf32>
    %126 = vector.shape_cast %123 : vector<2x128xf32> to vector<1x2x128xf32>
    tpu.vector_store %arg6[%c13_84, %c0_85, %c0_86], %126 {strides = array<i32>} : memref<16x2x128xf32, #tpu.memory_space<vmem>>, vector<1x2x128xf32>,
    %c14 = arith.constant 14 : index
    %c0_87 = arith.constant 0 : index
    %c0_88 = arith.constant 0 : index
    %127 = vector.load %arg6[%c14, %c0_87, %c0_88] : memref<16x2x128xf32, #tpu.memory_space<vmem>>, vector<1x2x128xf32>
    %128 = vector.shape_cast %127 : vector<1x2x128xf32> to vector<2x128xf32>
    %129 = arith.addf %128, %40 : vector<2x128xf32>
    %c14_89 = arith.constant 14 : index
    %c0_90 = arith.constant 0 : index
    %c0_91 = arith.constant 0 : index
    %130 = vector.load %arg6[%c14_89, %c0_90, %c0_91] : memref<16x2x128xf32, #tpu.memory_space<vmem>>, vector<1x2x128xf32>
    %131 = vector.shape_cast %130 : vector<1x2x128xf32> to vector<2x128xf32>
    %132 = vector.shape_cast %129 : vector<2x128xf32> to vector<1x2x128xf32>
    tpu.vector_store %arg6[%c14_89, %c0_90, %c0_91], %132 {strides = array<i32>} : memref<16x2x128xf32, #tpu.memory_space<vmem>>, vector<1x2x128xf32>,
    %c15 = arith.constant 15 : index
    %c0_92 = arith.constant 0 : index
    %c0_93 = arith.constant 0 : index
    %133 = vector.load %arg6[%c15, %c0_92, %c0_93] : memref<16x2x128xf32, #tpu.memory_space<vmem>>, vector<1x2x128xf32>
    %134 = vector.shape_cast %133 : vector<1x2x128xf32> to vector<2x128xf32>
    %135 = arith.addf %134, %42 : vector<2x128xf32>
    %c15_94 = arith.constant 15 : index
    %c0_95 = arith.constant 0 : index
    %c0_96 = arith.constant 0 : index
    %136 = vector.load %arg6[%c15_94, %c0_95, %c0_96] : memref<16x2x128xf32, #tpu.memory_space<vmem>>, vector<1x2x128xf32>
    %137 = vector.shape_cast %136 : vector<1x2x128xf32> to vector<2x128xf32>
    %138 = vector.shape_cast %135 : vector<2x128xf32> to vector<1x2x128xf32>
    tpu.vector_store %arg6[%c15_94, %c0_95, %c0_96], %138 {strides = array<i32>} : memref<16x2x128xf32, #tpu.memory_space<vmem>>, vector<1x2x128xf32>,
    %c0_i32_97 = arith.constant 0 : i32
    %139 = arith.cmpi eq, %arg1, %c0_i32_97 : i32
    %140 = arith.extui %139 : i1 to i32
    %c0_i32_98 = arith.constant 0 : i32
    %141 = arith.cmpi ne, %140, %c0_i32_98 : i32
    scf.if %141 {
      %c0_99 = arith.constant 0 : index
      %c0_100 = arith.constant 0 : index
      %c0_101 = arith.constant 0 : index
      %142 = vector.load %arg6[%c0_99, %c0_100, %c0_101] : memref<16x2x128xf32, #tpu.memory_space<vmem>>, vector<1x2x128xf32>
      %143 = vector.shape_cast %142 : vector<1x2x128xf32> to vector<2x128xf32>
      %cst = arith.constant dense<0.000000e+00> : vector<2xf32>
      %144 = vector.multi_reduction <add>, %143, %cst [1] : vector<2x128xf32> to vector<2xf32>
      %145 = vector.shape_cast %144 : vector<2xf32> to vector<1x2xf32>
      %cst_102 = arith.constant 7.812500e-03 : f32
      %146 = vector.broadcast %cst_102 : f32 to vector<1x2xf32>
      %147 = arith.mulf %145, %146 : vector<1x2xf32>
      %c1_103 = arith.constant 1 : index
      %c0_104 = arith.constant 0 : index
      %c0_105 = arith.constant 0 : index
      %148 = vector.load %arg6[%c1_103, %c0_104, %c0_105] : memref<16x2x128xf32, #tpu.memory_space<vmem>>, vector<1x2x128xf32>
      %149 = vector.shape_cast %148 : vector<1x2x128xf32> to vector<2x128xf32>
      %cst_106 = arith.constant dense<0.000000e+00> : vector<2xf32>
      %150 = vector.multi_reduction <add>, %149, %cst_106 [1] : vector<2x128xf32> to vector<2xf32>
      %151 = vector.shape_cast %150 : vector<2xf32> to vector<1x2xf32>
      %cst_107 = arith.constant 7.812500e-03 : f32
      %152 = vector.broadcast %cst_107 : f32 to vector<1x2xf32>
      %153 = arith.mulf %151, %152 : vector<1x2xf32>
      %c2_108 = arith.constant 2 : index
      %c0_109 = arith.constant 0 : index
      %c0_110 = arith.constant 0 : index
      %154 = vector.load %arg6[%c2_108, %c0_109, %c0_110] : memref<16x2x128xf32, #tpu.memory_space<vmem>>, vector<1x2x128xf32>
      %155 = vector.shape_cast %154 : vector<1x2x128xf32> to vector<2x128xf32>
      %cst_111 = arith.constant dense<0.000000e+00> : vector<2xf32>
      %156 = vector.multi_reduction <add>, %155, %cst_111 [1] : vector<2x128xf32> to vector<2xf32>
      %157 = vector.shape_cast %156 : vector<2xf32> to vector<1x2xf32>
      %cst_112 = arith.constant 7.812500e-03 : f32
      %158 = vector.broadcast %cst_112 : f32 to vector<1x2xf32>
      %159 = arith.mulf %157, %158 : vector<1x2xf32>
      %c3_113 = arith.constant 3 : index
      %c0_114 = arith.constant 0 : index
      %c0_115 = arith.constant 0 : index
      %160 = vector.load %arg6[%c3_113, %c0_114, %c0_115] : memref<16x2x128xf32, #tpu.memory_space<vmem>>, vector<1x2x128xf32>
      %161 = vector.shape_cast %160 : vector<1x2x128xf32> to vector<2x128xf32>
      %cst_116 = arith.constant dense<0.000000e+00> : vector<2xf32>
      %162 = vector.multi_reduction <add>, %161, %cst_116 [1] : vector<2x128xf32> to vector<2xf32>
      %163 = vector.shape_cast %162 : vector<2xf32> to vector<1x2xf32>
      %cst_117 = arith.constant 7.812500e-03 : f32
      %164 = vector.broadcast %cst_117 : f32 to vector<1x2xf32>
      %165 = arith.mulf %163, %164 : vector<1x2xf32>
      %c4_118 = arith.constant 4 : index
      %c0_119 = arith.constant 0 : index
      %c0_120 = arith.constant 0 : index
      %166 = vector.load %arg6[%c4_118, %c0_119, %c0_120] : memref<16x2x128xf32, #tpu.memory_space<vmem>>, vector<1x2x128xf32>
      %167 = vector.shape_cast %166 : vector<1x2x128xf32> to vector<2x128xf32>
      %cst_121 = arith.constant dense<0.000000e+00> : vector<2xf32>
      %168 = vector.multi_reduction <add>, %167, %cst_121 [1] : vector<2x128xf32> to vector<2xf32>
      %169 = vector.shape_cast %168 : vector<2xf32> to vector<1x2xf32>
      %cst_122 = arith.constant 7.812500e-03 : f32
      %170 = vector.broadcast %cst_122 : f32 to vector<1x2xf32>
      %171 = arith.mulf %169, %170 : vector<1x2xf32>
      %c5_123 = arith.constant 5 : index
      %c0_124 = arith.constant 0 : index
      %c0_125 = arith.constant 0 : index
      %172 = vector.load %arg6[%c5_123, %c0_124, %c0_125] : memref<16x2x128xf32, #tpu.memory_space<vmem>>, vector<1x2x128xf32>
      %173 = vector.shape_cast %172 : vector<1x2x128xf32> to vector<2x128xf32>
      %cst_126 = arith.constant dense<0.000000e+00> : vector<2xf32>
      %174 = vector.multi_reduction <add>, %173, %cst_126 [1] : vector<2x128xf32> to vector<2xf32>
      %175 = vector.shape_cast %174 : vector<2xf32> to vector<1x2xf32>
      %cst_127 = arith.constant 7.812500e-03 : f32
      %176 = vector.broadcast %cst_127 : f32 to vector<1x2xf32>
      %177 = arith.mulf %175, %176 : vector<1x2xf32>
      %c6_128 = arith.constant 6 : index
      %c0_129 = arith.constant 0 : index
      %c0_130 = arith.constant 0 : index
      %178 = vector.load %arg6[%c6_128, %c0_129, %c0_130] : memref<16x2x128xf32, #tpu.memory_space<vmem>>, vector<1x2x128xf32>
      %179 = vector.shape_cast %178 : vector<1x2x128xf32> to vector<2x128xf32>
      %cst_131 = arith.constant dense<0.000000e+00> : vector<2xf32>
      %180 = vector.multi_reduction <add>, %179, %cst_131 [1] : vector<2x128xf32> to vector<2xf32>
      %181 = vector.shape_cast %180 : vector<2xf32> to vector<1x2xf32>
      %cst_132 = arith.constant 7.812500e-03 : f32
      %182 = vector.broadcast %cst_132 : f32 to vector<1x2xf32>
      %183 = arith.mulf %181, %182 : vector<1x2xf32>
      %c7_133 = arith.constant 7 : index
      %c0_134 = arith.constant 0 : index
      %c0_135 = arith.constant 0 : index
      %184 = vector.load %arg6[%c7_133, %c0_134, %c0_135] : memref<16x2x128xf32, #tpu.memory_space<vmem>>, vector<1x2x128xf32>
      %185 = vector.shape_cast %184 : vector<1x2x128xf32> to vector<2x128xf32>
      %cst_136 = arith.constant dense<0.000000e+00> : vector<2xf32>
      %186 = vector.multi_reduction <add>, %185, %cst_136 [1] : vector<2x128xf32> to vector<2xf32>
      %187 = vector.shape_cast %186 : vector<2xf32> to vector<1x2xf32>
      %cst_137 = arith.constant 7.812500e-03 : f32
      %188 = vector.broadcast %cst_137 : f32 to vector<1x2xf32>
      %189 = arith.mulf %187, %188 : vector<1x2xf32>
      %c8_138 = arith.constant 8 : index
      %c0_139 = arith.constant 0 : index
      %c0_140 = arith.constant 0 : index
      %190 = vector.load %arg6[%c8_138, %c0_139, %c0_140] : memref<16x2x128xf32, #tpu.memory_space<vmem>>, vector<1x2x128xf32>
      %191 = vector.shape_cast %190 : vector<1x2x128xf32> to vector<2x128xf32>
      %cst_141 = arith.constant dense<0.000000e+00> : vector<2xf32>
      %192 = vector.multi_reduction <add>, %191, %cst_141 [1] : vector<2x128xf32> to vector<2xf32>
      %193 = vector.shape_cast %192 : vector<2xf32> to vector<1x2xf32>
      %cst_142 = arith.constant 7.812500e-03 : f32
      %194 = vector.broadcast %cst_142 : f32 to vector<1x2xf32>
      %195 = arith.mulf %193, %194 : vector<1x2xf32>
      %c9_143 = arith.constant 9 : index
      %c0_144 = arith.constant 0 : index
      %c0_145 = arith.constant 0 : index
      %196 = vector.load %arg6[%c9_143, %c0_144, %c0_145] : memref<16x2x128xf32, #tpu.memory_space<vmem>>, vector<1x2x128xf32>
      %197 = vector.shape_cast %196 : vector<1x2x128xf32> to vector<2x128xf32>
      %cst_146 = arith.constant dense<0.000000e+00> : vector<2xf32>
      %198 = vector.multi_reduction <add>, %197, %cst_146 [1] : vector<2x128xf32> to vector<2xf32>
      %199 = vector.shape_cast %198 : vector<2xf32> to vector<1x2xf32>
      %cst_147 = arith.constant 7.812500e-03 : f32
      %200 = vector.broadcast %cst_147 : f32 to vector<1x2xf32>
      %201 = arith.mulf %199, %200 : vector<1x2xf32>
      %c10_148 = arith.constant 10 : index
      %c0_149 = arith.constant 0 : index
      %c0_150 = arith.constant 0 : index
      %202 = vector.load %arg6[%c10_148, %c0_149, %c0_150] : memref<16x2x128xf32, #tpu.memory_space<vmem>>, vector<1x2x128xf32>
      %203 = vector.shape_cast %202 : vector<1x2x128xf32> to vector<2x128xf32>
      %cst_151 = arith.constant dense<0.000000e+00> : vector<2xf32>
      %204 = vector.multi_reduction <add>, %203, %cst_151 [1] : vector<2x128xf32> to vector<2xf32>
      %205 = vector.shape_cast %204 : vector<2xf32> to vector<1x2xf32>
      %cst_152 = arith.constant 7.812500e-03 : f32
      %206 = vector.broadcast %cst_152 : f32 to vector<1x2xf32>
      %207 = arith.mulf %205, %206 : vector<1x2xf32>
      %c11_153 = arith.constant 11 : index
      %c0_154 = arith.constant 0 : index
      %c0_155 = arith.constant 0 : index
      %208 = vector.load %arg6[%c11_153, %c0_154, %c0_155] : memref<16x2x128xf32, #tpu.memory_space<vmem>>, vector<1x2x128xf32>
      %209 = vector.shape_cast %208 : vector<1x2x128xf32> to vector<2x128xf32>
      %cst_156 = arith.constant dense<0.000000e+00> : vector<2xf32>
      %210 = vector.multi_reduction <add>, %209, %cst_156 [1] : vector<2x128xf32> to vector<2xf32>
      %211 = vector.shape_cast %210 : vector<2xf32> to vector<1x2xf32>
      %cst_157 = arith.constant 7.812500e-03 : f32
      %212 = vector.broadcast %cst_157 : f32 to vector<1x2xf32>
      %213 = arith.mulf %211, %212 : vector<1x2xf32>
      %c12_158 = arith.constant 12 : index
      %c0_159 = arith.constant 0 : index
      %c0_160 = arith.constant 0 : index
      %214 = vector.load %arg6[%c12_158, %c0_159, %c0_160] : memref<16x2x128xf32, #tpu.memory_space<vmem>>, vector<1x2x128xf32>
      %215 = vector.shape_cast %214 : vector<1x2x128xf32> to vector<2x128xf32>
      %cst_161 = arith.constant dense<0.000000e+00> : vector<2xf32>
      %216 = vector.multi_reduction <add>, %215, %cst_161 [1] : vector<2x128xf32> to vector<2xf32>
      %217 = vector.shape_cast %216 : vector<2xf32> to vector<1x2xf32>
      %cst_162 = arith.constant 7.812500e-03 : f32
      %218 = vector.broadcast %cst_162 : f32 to vector<1x2xf32>
      %219 = arith.mulf %217, %218 : vector<1x2xf32>
      %c13_163 = arith.constant 13 : index
      %c0_164 = arith.constant 0 : index
      %c0_165 = arith.constant 0 : index
      %220 = vector.load %arg6[%c13_163, %c0_164, %c0_165] : memref<16x2x128xf32, #tpu.memory_space<vmem>>, vector<1x2x128xf32>
      %221 = vector.shape_cast %220 : vector<1x2x128xf32> to vector<2x128xf32>
      %cst_166 = arith.constant dense<0.000000e+00> : vector<2xf32>
      %222 = vector.multi_reduction <add>, %221, %cst_166 [1] : vector<2x128xf32> to vector<2xf32>
      %223 = vector.shape_cast %222 : vector<2xf32> to vector<1x2xf32>
      %cst_167 = arith.constant 7.812500e-03 : f32
      %224 = vector.broadcast %cst_167 : f32 to vector<1x2xf32>
      %225 = arith.mulf %223, %224 : vector<1x2xf32>
      %c14_168 = arith.constant 14 : index
      %c0_169 = arith.constant 0 : index
      %c0_170 = arith.constant 0 : index
      %226 = vector.load %arg6[%c14_168, %c0_169, %c0_170] : memref<16x2x128xf32, #tpu.memory_space<vmem>>, vector<1x2x128xf32>
      %227 = vector.shape_cast %226 : vector<1x2x128xf32> to vector<2x128xf32>
      %cst_171 = arith.constant dense<0.000000e+00> : vector<2xf32>
      %228 = vector.multi_reduction <add>, %227, %cst_171 [1] : vector<2x128xf32> to vector<2xf32>
      %229 = vector.shape_cast %228 : vector<2xf32> to vector<1x2xf32>
      %cst_172 = arith.constant 7.812500e-03 : f32
      %230 = vector.broadcast %cst_172 : f32 to vector<1x2xf32>
      %231 = arith.mulf %229, %230 : vector<1x2xf32>
      %c15_173 = arith.constant 15 : index
      %c0_174 = arith.constant 0 : index
      %c0_175 = arith.constant 0 : index
      %232 = vector.load %arg6[%c15_173, %c0_174, %c0_175] : memref<16x2x128xf32, #tpu.memory_space<vmem>>, vector<1x2x128xf32>
      %233 = vector.shape_cast %232 : vector<1x2x128xf32> to vector<2x128xf32>
      %cst_176 = arith.constant dense<0.000000e+00> : vector<2xf32>
      %234 = vector.multi_reduction <add>, %233, %cst_176 [1] : vector<2x128xf32> to vector<2xf32>
      %235 = vector.shape_cast %234 : vector<2xf32> to vector<1x2xf32>
      %cst_177 = arith.constant 7.812500e-03 : f32
      %236 = vector.broadcast %cst_177 : f32 to vector<1x2xf32>
      %237 = arith.mulf %235, %236 : vector<1x2xf32>
      %cst_178 = arith.constant -1.000000e+00 : f32
      %238 = vector.broadcast %cst_178 : f32 to vector<1x2xf32>
      %239 = arith.mulf %238, %147 : vector<1x2xf32>
      %cst_179 = arith.constant -1.000000e+00 : f32
      %240 = vector.broadcast %cst_179 : f32 to vector<1x2xf32>
      %241 = arith.mulf %240, %153 : vector<1x2xf32>
      %cst_180 = arith.constant -1.000000e+00 : f32
      %242 = vector.broadcast %cst_180 : f32 to vector<1x2xf32>
      %243 = arith.mulf %242, %159 : vector<1x2xf32>
      %cst_181 = arith.constant -1.000000e+00 : f32
      %244 = vector.broadcast %cst_181 : f32 to vector<1x2xf32>
      %245 = arith.mulf %244, %165 : vector<1x2xf32>
      %cst_182 = arith.constant -1.000000e+00 : f32
      %246 = vector.broadcast %cst_182 : f32 to vector<1x2xf32>
      %247 = arith.mulf %246, %171 : vector<1x2xf32>
      %cst_183 = arith.constant -1.000000e+00 : f32
      %248 = vector.broadcast %cst_183 : f32 to vector<1x2xf32>
      %249 = arith.mulf %248, %177 : vector<1x2xf32>
      %cst_184 = arith.constant -1.000000e+00 : f32
      %250 = vector.broadcast %cst_184 : f32 to vector<1x2xf32>
      %251 = arith.mulf %250, %183 : vector<1x2xf32>
      %cst_185 = arith.constant -1.000000e+00 : f32
      %252 = vector.broadcast %cst_185 : f32 to vector<1x2xf32>
      %253 = arith.mulf %252, %189 : vector<1x2xf32>
      %cst_186 = arith.constant -1.000000e+00 : f32
      %254 = vector.broadcast %cst_186 : f32 to vector<1x2xf32>
      %255 = arith.mulf %254, %195 : vector<1x2xf32>
      %cst_187 = arith.constant -1.000000e+00 : f32
      %256 = vector.broadcast %cst_187 : f32 to vector<1x2xf32>
      %257 = arith.mulf %256, %201 : vector<1x2xf32>
      %cst_188 = arith.constant -1.000000e+00 : f32
      %258 = vector.broadcast %cst_188 : f32 to vector<1x2xf32>
      %259 = arith.mulf %258, %207 : vector<1x2xf32>
      %cst_189 = arith.constant -1.000000e+00 : f32
      %260 = vector.broadcast %cst_189 : f32 to vector<1x2xf32>
      %261 = arith.mulf %260, %213 : vector<1x2xf32>
      %cst_190 = arith.constant -1.000000e+00 : f32
      %262 = vector.broadcast %cst_190 : f32 to vector<1x2xf32>
      %263 = arith.mulf %262, %219 : vector<1x2xf32>
      %cst_191 = arith.constant -1.000000e+00 : f32
      %264 = vector.broadcast %cst_191 : f32 to vector<1x2xf32>
      %265 = arith.mulf %264, %225 : vector<1x2xf32>
      %cst_192 = arith.constant -1.000000e+00 : f32
      %266 = vector.broadcast %cst_192 : f32 to vector<1x2xf32>
      %267 = arith.mulf %266, %231 : vector<1x2xf32>
      %cst_193 = arith.constant -1.000000e+00 : f32
      %268 = vector.broadcast %cst_193 : f32 to vector<1x2xf32>
      %269 = arith.mulf %268, %237 : vector<1x2xf32>
      %270 = arith.maximumf %239, %247 : vector<1x2xf32>
      %271 = arith.maximumf %270, %255 : vector<1x2xf32>
      %272 = arith.maximumf %271, %263 : vector<1x2xf32>
      %273 = arith.subf %239, %272 : vector<1x2xf32>
      %274 = math.exp %273 : vector<1x2xf32>
      %275 = arith.subf %247, %272 : vector<1x2xf32>
      %276 = math.exp %275 : vector<1x2xf32>
      %277 = arith.addf %274, %276 : vector<1x2xf32>
      %278 = arith.subf %255, %272 : vector<1x2xf32>
      %279 = math.exp %278 : vector<1x2xf32>
      %280 = arith.addf %277, %279 : vector<1x2xf32>
      %281 = arith.subf %263, %272 : vector<1x2xf32>
      %282 = math.exp %281 : vector<1x2xf32>
      %283 = arith.addf %280, %282 : vector<1x2xf32>
      %284 = math.log %283 : vector<1x2xf32>
      %285 = arith.addf %272, %284 : vector<1x2xf32>
      %286 = arith.subf %239, %285 : vector<1x2xf32>
      %287 = arith.subf %247, %285 : vector<1x2xf32>
      %288 = arith.subf %255, %285 : vector<1x2xf32>
      %289 = arith.subf %263, %285 : vector<1x2xf32>
      %290 = arith.maximumf %241, %249 : vector<1x2xf32>
      %291 = arith.maximumf %290, %257 : vector<1x2xf32>
      %292 = arith.maximumf %291, %265 : vector<1x2xf32>
      %293 = arith.subf %241, %292 : vector<1x2xf32>
      %294 = math.exp %293 : vector<1x2xf32>
      %295 = arith.subf %249, %292 : vector<1x2xf32>
      %296 = math.exp %295 : vector<1x2xf32>
      %297 = arith.addf %294, %296 : vector<1x2xf32>
      %298 = arith.subf %257, %292 : vector<1x2xf32>
      %299 = math.exp %298 : vector<1x2xf32>
      %300 = arith.addf %297, %299 : vector<1x2xf32>
      %301 = arith.subf %265, %292 : vector<1x2xf32>
      %302 = math.exp %301 : vector<1x2xf32>
      %303 = arith.addf %300, %302 : vector<1x2xf32>
      %304 = math.log %303 : vector<1x2xf32>
      %305 = arith.addf %292, %304 : vector<1x2xf32>
      %306 = arith.subf %241, %305 : vector<1x2xf32>
      %307 = arith.subf %249, %305 : vector<1x2xf32>
      %308 = arith.subf %257, %305 : vector<1x2xf32>
      %309 = arith.subf %265, %305 : vector<1x2xf32>
      %310 = arith.maximumf %243, %251 : vector<1x2xf32>
      %311 = arith.maximumf %310, %259 : vector<1x2xf32>
      %312 = arith.maximumf %311, %267 : vector<1x2xf32>
      %313 = arith.subf %243, %312 : vector<1x2xf32>
      %314 = math.exp %313 : vector<1x2xf32>
      %315 = arith.subf %251, %312 : vector<1x2xf32>
      %316 = math.exp %315 : vector<1x2xf32>
      %317 = arith.addf %314, %316 : vector<1x2xf32>
      %318 = arith.subf %259, %312 : vector<1x2xf32>
      %319 = math.exp %318 : vector<1x2xf32>
      %320 = arith.addf %317, %319 : vector<1x2xf32>
      %321 = arith.subf %267, %312 : vector<1x2xf32>
      %322 = math.exp %321 : vector<1x2xf32>
      %323 = arith.addf %320, %322 : vector<1x2xf32>
      %324 = math.log %323 : vector<1x2xf32>
      %325 = arith.addf %312, %324 : vector<1x2xf32>
      %326 = arith.subf %243, %325 : vector<1x2xf32>
      %327 = arith.subf %251, %325 : vector<1x2xf32>
      %328 = arith.subf %259, %325 : vector<1x2xf32>
      %329 = arith.subf %267, %325 : vector<1x2xf32>
      %330 = arith.maximumf %245, %253 : vector<1x2xf32>
      %331 = arith.maximumf %330, %261 : vector<1x2xf32>
      %332 = arith.maximumf %331, %269 : vector<1x2xf32>
      %333 = arith.subf %245, %332 : vector<1x2xf32>
      %334 = math.exp %333 : vector<1x2xf32>
      %335 = arith.subf %253, %332 : vector<1x2xf32>
      %336 = math.exp %335 : vector<1x2xf32>
      %337 = arith.addf %334, %336 : vector<1x2xf32>
      %338 = arith.subf %261, %332 : vector<1x2xf32>
      %339 = math.exp %338 : vector<1x2xf32>
      %340 = arith.addf %337, %339 : vector<1x2xf32>
      %341 = arith.subf %269, %332 : vector<1x2xf32>
      %342 = math.exp %341 : vector<1x2xf32>
      %343 = arith.addf %340, %342 : vector<1x2xf32>
      %344 = math.log %343 : vector<1x2xf32>
      %345 = arith.addf %332, %344 : vector<1x2xf32>
      %346 = arith.subf %245, %345 : vector<1x2xf32>
      %347 = arith.subf %253, %345 : vector<1x2xf32>
      %348 = arith.subf %261, %345 : vector<1x2xf32>
      %349 = arith.subf %269, %345 : vector<1x2xf32>
      %350 = arith.maximumf %286, %306 : vector<1x2xf32>
      %351 = arith.maximumf %350, %326 : vector<1x2xf32>
      %352 = arith.maximumf %351, %346 : vector<1x2xf32>
      %353 = arith.subf %286, %352 : vector<1x2xf32>
      %354 = math.exp %353 : vector<1x2xf32>
      %355 = arith.subf %306, %352 : vector<1x2xf32>
      %356 = math.exp %355 : vector<1x2xf32>
      %357 = arith.addf %354, %356 : vector<1x2xf32>
      %358 = arith.subf %326, %352 : vector<1x2xf32>
      %359 = math.exp %358 : vector<1x2xf32>
      %360 = arith.addf %357, %359 : vector<1x2xf32>
      %361 = arith.subf %346, %352 : vector<1x2xf32>
      %362 = math.exp %361 : vector<1x2xf32>
      %363 = arith.addf %360, %362 : vector<1x2xf32>
      %364 = math.log %363 : vector<1x2xf32>
      %365 = arith.addf %352, %364 : vector<1x2xf32>
      %366 = arith.subf %286, %365 : vector<1x2xf32>
      %367 = arith.subf %306, %365 : vector<1x2xf32>
      %368 = arith.subf %326, %365 : vector<1x2xf32>
      %369 = arith.subf %346, %365 : vector<1x2xf32>
      %370 = arith.maximumf %287, %307 : vector<1x2xf32>
      %371 = arith.maximumf %370, %327 : vector<1x2xf32>
      %372 = arith.maximumf %371, %347 : vector<1x2xf32>
      %373 = arith.subf %287, %372 : vector<1x2xf32>
      %374 = math.exp %373 : vector<1x2xf32>
      %375 = arith.subf %307, %372 : vector<1x2xf32>
      %376 = math.exp %375 : vector<1x2xf32>
      %377 = arith.addf %374, %376 : vector<1x2xf32>
      %378 = arith.subf %327, %372 : vector<1x2xf32>
      %379 = math.exp %378 : vector<1x2xf32>
      %380 = arith.addf %377, %379 : vector<1x2xf32>
      %381 = arith.subf %347, %372 : vector<1x2xf32>
      %382 = math.exp %381 : vector<1x2xf32>
      %383 = arith.addf %380, %382 : vector<1x2xf32>
      %384 = math.log %383 : vector<1x2xf32>
      %385 = arith.addf %372, %384 : vector<1x2xf32>
      %386 = arith.subf %287, %385 : vector<1x2xf32>
      %387 = arith.subf %307, %385 : vector<1x2xf32>
      %388 = arith.subf %327, %385 : vector<1x2xf32>
      %389 = arith.subf %347, %385 : vector<1x2xf32>
      %390 = arith.maximumf %288, %308 : vector<1x2xf32>
      %391 = arith.maximumf %390, %328 : vector<1x2xf32>
      %392 = arith.maximumf %391, %348 : vector<1x2xf32>
      %393 = arith.subf %288, %392 : vector<1x2xf32>
      %394 = math.exp %393 : vector<1x2xf32>
      %395 = arith.subf %308, %392 : vector<1x2xf32>
      %396 = math.exp %395 : vector<1x2xf32>
      %397 = arith.addf %394, %396 : vector<1x2xf32>
      %398 = arith.subf %328, %392 : vector<1x2xf32>
      %399 = math.exp %398 : vector<1x2xf32>
      %400 = arith.addf %397, %399 : vector<1x2xf32>
      %401 = arith.subf %348, %392 : vector<1x2xf32>
      %402 = math.exp %401 : vector<1x2xf32>
      %403 = arith.addf %400, %402 : vector<1x2xf32>
      %404 = math.log %403 : vector<1x2xf32>
      %405 = arith.addf %392, %404 : vector<1x2xf32>
      %406 = arith.subf %288, %405 : vector<1x2xf32>
      %407 = arith.subf %308, %405 : vector<1x2xf32>
      %408 = arith.subf %328, %405 : vector<1x2xf32>
      %409 = arith.subf %348, %405 : vector<1x2xf32>
      %410 = arith.maximumf %289, %309 : vector<1x2xf32>
      %411 = arith.maximumf %410, %329 : vector<1x2xf32>
      %412 = arith.maximumf %411, %349 : vector<1x2xf32>
      %413 = arith.subf %289, %412 : vector<1x2xf32>
      %414 = math.exp %413 : vector<1x2xf32>
      %415 = arith.subf %309, %412 : vector<1x2xf32>
      %416 = math.exp %415 : vector<1x2xf32>
      %417 = arith.addf %414, %416 : vector<1x2xf32>
      %418 = arith.subf %329, %412 : vector<1x2xf32>
      %419 = math.exp %418 : vector<1x2xf32>
      %420 = arith.addf %417, %419 : vector<1x2xf32>
      %421 = arith.subf %349, %412 : vector<1x2xf32>
      %422 = math.exp %421 : vector<1x2xf32>
      %423 = arith.addf %420, %422 : vector<1x2xf32>
      %424 = math.log %423 : vector<1x2xf32>
      %425 = arith.addf %412, %424 : vector<1x2xf32>
      %426 = arith.subf %289, %425 : vector<1x2xf32>
      %427 = arith.subf %309, %425 : vector<1x2xf32>
      %428 = arith.subf %329, %425 : vector<1x2xf32>
      %429 = arith.subf %349, %425 : vector<1x2xf32>
      %430 = arith.maximumf %366, %386 : vector<1x2xf32>
      %431 = arith.maximumf %430, %406 : vector<1x2xf32>
      %432 = arith.maximumf %431, %426 : vector<1x2xf32>
      %433 = arith.subf %366, %432 : vector<1x2xf32>
      %434 = math.exp %433 : vector<1x2xf32>
      %435 = arith.subf %386, %432 : vector<1x2xf32>
      %436 = math.exp %435 : vector<1x2xf32>
      %437 = arith.addf %434, %436 : vector<1x2xf32>
      %438 = arith.subf %406, %432 : vector<1x2xf32>
      %439 = math.exp %438 : vector<1x2xf32>
      %440 = arith.addf %437, %439 : vector<1x2xf32>
      %441 = arith.subf %426, %432 : vector<1x2xf32>
      %442 = math.exp %441 : vector<1x2xf32>
      %443 = arith.addf %440, %442 : vector<1x2xf32>
      %444 = math.log %443 : vector<1x2xf32>
      %445 = arith.addf %432, %444 : vector<1x2xf32>
      %446 = arith.subf %366, %445 : vector<1x2xf32>
      %447 = arith.subf %386, %445 : vector<1x2xf32>
      %448 = arith.subf %406, %445 : vector<1x2xf32>
      %449 = arith.subf %426, %445 : vector<1x2xf32>
      %450 = arith.maximumf %367, %387 : vector<1x2xf32>
      %451 = arith.maximumf %450, %407 : vector<1x2xf32>
      %452 = arith.maximumf %451, %427 : vector<1x2xf32>
      %453 = arith.subf %367, %452 : vector<1x2xf32>
      %454 = math.exp %453 : vector<1x2xf32>
      %455 = arith.subf %387, %452 : vector<1x2xf32>
      %456 = math.exp %455 : vector<1x2xf32>
      %457 = arith.addf %454, %456 : vector<1x2xf32>
      %458 = arith.subf %407, %452 : vector<1x2xf32>
      %459 = math.exp %458 : vector<1x2xf32>
      %460 = arith.addf %457, %459 : vector<1x2xf32>
      %461 = arith.subf %427, %452 : vector<1x2xf32>
      %462 = math.exp %461 : vector<1x2xf32>
      %463 = arith.addf %460, %462 : vector<1x2xf32>
      %464 = math.log %463 : vector<1x2xf32>
      %465 = arith.addf %452, %464 : vector<1x2xf32>
      %466 = arith.subf %367, %465 : vector<1x2xf32>
      %467 = arith.subf %387, %465 : vector<1x2xf32>
      %468 = arith.subf %407, %465 : vector<1x2xf32>
      %469 = arith.subf %427, %465 : vector<1x2xf32>
      %470 = arith.maximumf %368, %388 : vector<1x2xf32>
      %471 = arith.maximumf %470, %408 : vector<1x2xf32>
      %472 = arith.maximumf %471, %428 : vector<1x2xf32>
      %473 = arith.subf %368, %472 : vector<1x2xf32>
      %474 = math.exp %473 : vector<1x2xf32>
      %475 = arith.subf %388, %472 : vector<1x2xf32>
      %476 = math.exp %475 : vector<1x2xf32>
      %477 = arith.addf %474, %476 : vector<1x2xf32>
      %478 = arith.subf %408, %472 : vector<1x2xf32>
      %479 = math.exp %478 : vector<1x2xf32>
      %480 = arith.addf %477, %479 : vector<1x2xf32>
      %481 = arith.subf %428, %472 : vector<1x2xf32>
      %482 = math.exp %481 : vector<1x2xf32>
      %483 = arith.addf %480, %482 : vector<1x2xf32>
      %484 = math.log %483 : vector<1x2xf32>
      %485 = arith.addf %472, %484 : vector<1x2xf32>
      %486 = arith.subf %368, %485 : vector<1x2xf32>
      %487 = arith.subf %388, %485 : vector<1x2xf32>
      %488 = arith.subf %408, %485 : vector<1x2xf32>
      %489 = arith.subf %428, %485 : vector<1x2xf32>
      %490 = arith.maximumf %369, %389 : vector<1x2xf32>
      %491 = arith.maximumf %490, %409 : vector<1x2xf32>
      %492 = arith.maximumf %491, %429 : vector<1x2xf32>
      %493 = arith.subf %369, %492 : vector<1x2xf32>
      %494 = math.exp %493 : vector<1x2xf32>
      %495 = arith.subf %389, %492 : vector<1x2xf32>
      %496 = math.exp %495 : vector<1x2xf32>
      %497 = arith.addf %494, %496 : vector<1x2xf32>
      %498 = arith.subf %409, %492 : vector<1x2xf32>
      %499 = math.exp %498 : vector<1x2xf32>
      %500 = arith.addf %497, %499 : vector<1x2xf32>
      %501 = arith.subf %429, %492 : vector<1x2xf32>
      %502 = math.exp %501 : vector<1x2xf32>
      %503 = arith.addf %500, %502 : vector<1x2xf32>
      %504 = math.log %503 : vector<1x2xf32>
      %505 = arith.addf %492, %504 : vector<1x2xf32>
      %506 = arith.subf %369, %505 : vector<1x2xf32>
      %507 = arith.subf %389, %505 : vector<1x2xf32>
      %508 = arith.subf %409, %505 : vector<1x2xf32>
      %509 = arith.subf %429, %505 : vector<1x2xf32>
      %510 = arith.maximumf %446, %466 : vector<1x2xf32>
      %511 = arith.maximumf %510, %486 : vector<1x2xf32>
      %512 = arith.maximumf %511, %506 : vector<1x2xf32>
      %513 = arith.subf %446, %512 : vector<1x2xf32>
      %514 = math.exp %513 : vector<1x2xf32>
      %515 = arith.subf %466, %512 : vector<1x2xf32>
      %516 = math.exp %515 : vector<1x2xf32>
      %517 = arith.addf %514, %516 : vector<1x2xf32>
      %518 = arith.subf %486, %512 : vector<1x2xf32>
      %519 = math.exp %518 : vector<1x2xf32>
      %520 = arith.addf %517, %519 : vector<1x2xf32>
      %521 = arith.subf %506, %512 : vector<1x2xf32>
      %522 = math.exp %521 : vector<1x2xf32>
      %523 = arith.addf %520, %522 : vector<1x2xf32>
      %524 = math.log %523 : vector<1x2xf32>
      %525 = arith.addf %512, %524 : vector<1x2xf32>
      %526 = arith.subf %446, %525 : vector<1x2xf32>
      %527 = arith.subf %466, %525 : vector<1x2xf32>
      %528 = arith.subf %486, %525 : vector<1x2xf32>
      %529 = arith.subf %506, %525 : vector<1x2xf32>
      %530 = arith.maximumf %447, %467 : vector<1x2xf32>
      %531 = arith.maximumf %530, %487 : vector<1x2xf32>
      %532 = arith.maximumf %531, %507 : vector<1x2xf32>
      %533 = arith.subf %447, %532 : vector<1x2xf32>
      %534 = math.exp %533 : vector<1x2xf32>
      %535 = arith.subf %467, %532 : vector<1x2xf32>
      %536 = math.exp %535 : vector<1x2xf32>
      %537 = arith.addf %534, %536 : vector<1x2xf32>
      %538 = arith.subf %487, %532 : vector<1x2xf32>
      %539 = math.exp %538 : vector<1x2xf32>
      %540 = arith.addf %537, %539 : vector<1x2xf32>
      %541 = arith.subf %507, %532 : vector<1x2xf32>
      %542 = math.exp %541 : vector<1x2xf32>
      %543 = arith.addf %540, %542 : vector<1x2xf32>
      %544 = math.log %543 : vector<1x2xf32>
      %545 = arith.addf %532, %544 : vector<1x2xf32>
      %546 = arith.subf %447, %545 : vector<1x2xf32>
      %547 = arith.subf %467, %545 : vector<1x2xf32>
      %548 = arith.subf %487, %545 : vector<1x2xf32>
      %549 = arith.subf %507, %545 : vector<1x2xf32>
      %550 = arith.maximumf %448, %468 : vector<1x2xf32>
      %551 = arith.maximumf %550, %488 : vector<1x2xf32>
      %552 = arith.maximumf %551, %508 : vector<1x2xf32>
      %553 = arith.subf %448, %552 : vector<1x2xf32>
      %554 = math.exp %553 : vector<1x2xf32>
      %555 = arith.subf %468, %552 : vector<1x2xf32>
      %556 = math.exp %555 : vector<1x2xf32>
      %557 = arith.addf %554, %556 : vector<1x2xf32>
      %558 = arith.subf %488, %552 : vector<1x2xf32>
      %559 = math.exp %558 : vector<1x2xf32>
      %560 = arith.addf %557, %559 : vector<1x2xf32>
      %561 = arith.subf %508, %552 : vector<1x2xf32>
      %562 = math.exp %561 : vector<1x2xf32>
      %563 = arith.addf %560, %562 : vector<1x2xf32>
      %564 = math.log %563 : vector<1x2xf32>
      %565 = arith.addf %552, %564 : vector<1x2xf32>
      %566 = arith.subf %448, %565 : vector<1x2xf32>
      %567 = arith.subf %468, %565 : vector<1x2xf32>
      %568 = arith.subf %488, %565 : vector<1x2xf32>
      %569 = arith.subf %508, %565 : vector<1x2xf32>
      %570 = arith.maximumf %449, %469 : vector<1x2xf32>
      %571 = arith.maximumf %570, %489 : vector<1x2xf32>
      %572 = arith.maximumf %571, %509 : vector<1x2xf32>
      %573 = arith.subf %449, %572 : vector<1x2xf32>
      %574 = math.exp %573 : vector<1x2xf32>
      %575 = arith.subf %469, %572 : vector<1x2xf32>
      %576 = math.exp %575 : vector<1x2xf32>
      %577 = arith.addf %574, %576 : vector<1x2xf32>
      %578 = arith.subf %489, %572 : vector<1x2xf32>
      %579 = math.exp %578 : vector<1x2xf32>
      %580 = arith.addf %577, %579 : vector<1x2xf32>
      %581 = arith.subf %509, %572 : vector<1x2xf32>
      %582 = math.exp %581 : vector<1x2xf32>
      %583 = arith.addf %580, %582 : vector<1x2xf32>
      %584 = math.log %583 : vector<1x2xf32>
      %585 = arith.addf %572, %584 : vector<1x2xf32>
      %586 = arith.subf %449, %585 : vector<1x2xf32>
      %587 = arith.subf %469, %585 : vector<1x2xf32>
      %588 = arith.subf %489, %585 : vector<1x2xf32>
      %589 = arith.subf %509, %585 : vector<1x2xf32>
      %590 = arith.maximumf %526, %546 : vector<1x2xf32>
      %591 = arith.maximumf %590, %566 : vector<1x2xf32>
      %592 = arith.maximumf %591, %586 : vector<1x2xf32>
      %593 = arith.subf %526, %592 : vector<1x2xf32>
      %594 = math.exp %593 : vector<1x2xf32>
      %595 = arith.subf %546, %592 : vector<1x2xf32>
      %596 = math.exp %595 : vector<1x2xf32>
      %597 = arith.addf %594, %596 : vector<1x2xf32>
      %598 = arith.subf %566, %592 : vector<1x2xf32>
      %599 = math.exp %598 : vector<1x2xf32>
      %600 = arith.addf %597, %599 : vector<1x2xf32>
      %601 = arith.subf %586, %592 : vector<1x2xf32>
      %602 = math.exp %601 : vector<1x2xf32>
      %603 = arith.addf %600, %602 : vector<1x2xf32>
      %604 = math.log %603 : vector<1x2xf32>
      %605 = arith.addf %592, %604 : vector<1x2xf32>
      %606 = arith.subf %526, %605 : vector<1x2xf32>
      %607 = arith.subf %546, %605 : vector<1x2xf32>
      %608 = arith.subf %566, %605 : vector<1x2xf32>
      %609 = arith.subf %586, %605 : vector<1x2xf32>
      %610 = arith.maximumf %527, %547 : vector<1x2xf32>
      %611 = arith.maximumf %610, %567 : vector<1x2xf32>
      %612 = arith.maximumf %611, %587 : vector<1x2xf32>
      %613 = arith.subf %527, %612 : vector<1x2xf32>
      %614 = math.exp %613 : vector<1x2xf32>
      %615 = arith.subf %547, %612 : vector<1x2xf32>
      %616 = math.exp %615 : vector<1x2xf32>
      %617 = arith.addf %614, %616 : vector<1x2xf32>
      %618 = arith.subf %567, %612 : vector<1x2xf32>
      %619 = math.exp %618 : vector<1x2xf32>
      %620 = arith.addf %617, %619 : vector<1x2xf32>
      %621 = arith.subf %587, %612 : vector<1x2xf32>
      %622 = math.exp %621 : vector<1x2xf32>
      %623 = arith.addf %620, %622 : vector<1x2xf32>
      %624 = math.log %623 : vector<1x2xf32>
      %625 = arith.addf %612, %624 : vector<1x2xf32>
      %626 = arith.subf %527, %625 : vector<1x2xf32>
      %627 = arith.subf %547, %625 : vector<1x2xf32>
      %628 = arith.subf %567, %625 : vector<1x2xf32>
      %629 = arith.subf %587, %625 : vector<1x2xf32>
      %630 = arith.maximumf %528, %548 : vector<1x2xf32>
      %631 = arith.maximumf %630, %568 : vector<1x2xf32>
      %632 = arith.maximumf %631, %588 : vector<1x2xf32>
      %633 = arith.subf %528, %632 : vector<1x2xf32>
      %634 = math.exp %633 : vector<1x2xf32>
      %635 = arith.subf %548, %632 : vector<1x2xf32>
      %636 = math.exp %635 : vector<1x2xf32>
      %637 = arith.addf %634, %636 : vector<1x2xf32>
      %638 = arith.subf %568, %632 : vector<1x2xf32>
      %639 = math.exp %638 : vector<1x2xf32>
      %640 = arith.addf %637, %639 : vector<1x2xf32>
      %641 = arith.subf %588, %632 : vector<1x2xf32>
      %642 = math.exp %641 : vector<1x2xf32>
      %643 = arith.addf %640, %642 : vector<1x2xf32>
      %644 = math.log %643 : vector<1x2xf32>
      %645 = arith.addf %632, %644 : vector<1x2xf32>
      %646 = arith.subf %528, %645 : vector<1x2xf32>
      %647 = arith.subf %548, %645 : vector<1x2xf32>
      %648 = arith.subf %568, %645 : vector<1x2xf32>
      %649 = arith.subf %588, %645 : vector<1x2xf32>
      %650 = arith.maximumf %529, %549 : vector<1x2xf32>
      %651 = arith.maximumf %650, %569 : vector<1x2xf32>
      %652 = arith.maximumf %651, %589 : vector<1x2xf32>
      %653 = arith.subf %529, %652 : vector<1x2xf32>
      %654 = math.exp %653 : vector<1x2xf32>
      %655 = arith.subf %549, %652 : vector<1x2xf32>
      %656 = math.exp %655 : vector<1x2xf32>
      %657 = arith.addf %654, %656 : vector<1x2xf32>
      %658 = arith.subf %569, %652 : vector<1x2xf32>
      %659 = math.exp %658 : vector<1x2xf32>
      %660 = arith.addf %657, %659 : vector<1x2xf32>
      %661 = arith.subf %589, %652 : vector<1x2xf32>
      %662 = math.exp %661 : vector<1x2xf32>
      %663 = arith.addf %660, %662 : vector<1x2xf32>
      %664 = math.log %663 : vector<1x2xf32>
      %665 = arith.addf %652, %664 : vector<1x2xf32>
      %666 = arith.subf %529, %665 : vector<1x2xf32>
      %667 = arith.subf %549, %665 : vector<1x2xf32>
      %668 = arith.subf %569, %665 : vector<1x2xf32>
      %669 = arith.subf %589, %665 : vector<1x2xf32>
      %670 = arith.maximumf %606, %626 : vector<1x2xf32>
      %671 = arith.maximumf %670, %646 : vector<1x2xf32>
      %672 = arith.maximumf %671, %666 : vector<1x2xf32>
      %673 = arith.subf %606, %672 : vector<1x2xf32>
      %674 = math.exp %673 : vector<1x2xf32>
      %675 = arith.subf %626, %672 : vector<1x2xf32>
      %676 = math.exp %675 : vector<1x2xf32>
      %677 = arith.addf %674, %676 : vector<1x2xf32>
      %678 = arith.subf %646, %672 : vector<1x2xf32>
      %679 = math.exp %678 : vector<1x2xf32>
      %680 = arith.addf %677, %679 : vector<1x2xf32>
      %681 = arith.subf %666, %672 : vector<1x2xf32>
      %682 = math.exp %681 : vector<1x2xf32>
      %683 = arith.addf %680, %682 : vector<1x2xf32>
      %684 = math.log %683 : vector<1x2xf32>
      %685 = arith.addf %672, %684 : vector<1x2xf32>
      %686 = arith.subf %606, %685 : vector<1x2xf32>
      %687 = arith.subf %626, %685 : vector<1x2xf32>
      %688 = arith.subf %646, %685 : vector<1x2xf32>
      %689 = arith.subf %666, %685 : vector<1x2xf32>
      %690 = arith.maximumf %607, %627 : vector<1x2xf32>
      %691 = arith.maximumf %690, %647 : vector<1x2xf32>
      %692 = arith.maximumf %691, %667 : vector<1x2xf32>
      %693 = arith.subf %607, %692 : vector<1x2xf32>
      %694 = math.exp %693 : vector<1x2xf32>
      %695 = arith.subf %627, %692 : vector<1x2xf32>
      %696 = math.exp %695 : vector<1x2xf32>
      %697 = arith.addf %694, %696 : vector<1x2xf32>
      %698 = arith.subf %647, %692 : vector<1x2xf32>
      %699 = math.exp %698 : vector<1x2xf32>
      %700 = arith.addf %697, %699 : vector<1x2xf32>
      %701 = arith.subf %667, %692 : vector<1x2xf32>
      %702 = math.exp %701 : vector<1x2xf32>
      %703 = arith.addf %700, %702 : vector<1x2xf32>
      %704 = math.log %703 : vector<1x2xf32>
      %705 = arith.addf %692, %704 : vector<1x2xf32>
      %706 = arith.subf %607, %705 : vector<1x2xf32>
      %707 = arith.subf %627, %705 : vector<1x2xf32>
      %708 = arith.subf %647, %705 : vector<1x2xf32>
      %709 = arith.subf %667, %705 : vector<1x2xf32>
      %710 = arith.maximumf %608, %628 : vector<1x2xf32>
      %711 = arith.maximumf %710, %648 : vector<1x2xf32>
      %712 = arith.maximumf %711, %668 : vector<1x2xf32>
      %713 = arith.subf %608, %712 : vector<1x2xf32>
      %714 = math.exp %713 : vector<1x2xf32>
      %715 = arith.subf %628, %712 : vector<1x2xf32>
      %716 = math.exp %715 : vector<1x2xf32>
      %717 = arith.addf %714, %716 : vector<1x2xf32>
      %718 = arith.subf %648, %712 : vector<1x2xf32>
      %719 = math.exp %718 : vector<1x2xf32>
      %720 = arith.addf %717, %719 : vector<1x2xf32>
      %721 = arith.subf %668, %712 : vector<1x2xf32>
      %722 = math.exp %721 : vector<1x2xf32>
      %723 = arith.addf %720, %722 : vector<1x2xf32>
      %724 = math.log %723 : vector<1x2xf32>
      %725 = arith.addf %712, %724 : vector<1x2xf32>
      %726 = arith.subf %608, %725 : vector<1x2xf32>
      %727 = arith.subf %628, %725 : vector<1x2xf32>
      %728 = arith.subf %648, %725 : vector<1x2xf32>
      %729 = arith.subf %668, %725 : vector<1x2xf32>
      %730 = arith.maximumf %609, %629 : vector<1x2xf32>
      %731 = arith.maximumf %730, %649 : vector<1x2xf32>
      %732 = arith.maximumf %731, %669 : vector<1x2xf32>
      %733 = arith.subf %609, %732 : vector<1x2xf32>
      %734 = math.exp %733 : vector<1x2xf32>
      %735 = arith.subf %629, %732 : vector<1x2xf32>
      %736 = math.exp %735 : vector<1x2xf32>
      %737 = arith.addf %734, %736 : vector<1x2xf32>
      %738 = arith.subf %649, %732 : vector<1x2xf32>
      %739 = math.exp %738 : vector<1x2xf32>
      %740 = arith.addf %737, %739 : vector<1x2xf32>
      %741 = arith.subf %669, %732 : vector<1x2xf32>
      %742 = math.exp %741 : vector<1x2xf32>
      %743 = arith.addf %740, %742 : vector<1x2xf32>
      %744 = math.log %743 : vector<1x2xf32>
      %745 = arith.addf %732, %744 : vector<1x2xf32>
      %746 = arith.subf %609, %745 : vector<1x2xf32>
      %747 = arith.subf %629, %745 : vector<1x2xf32>
      %748 = arith.subf %649, %745 : vector<1x2xf32>
      %749 = arith.subf %669, %745 : vector<1x2xf32>
      %750 = arith.maximumf %686, %706 : vector<1x2xf32>
      %751 = arith.maximumf %750, %726 : vector<1x2xf32>
      %752 = arith.maximumf %751, %746 : vector<1x2xf32>
      %753 = arith.subf %686, %752 : vector<1x2xf32>
      %754 = math.exp %753 : vector<1x2xf32>
      %755 = arith.subf %706, %752 : vector<1x2xf32>
      %756 = math.exp %755 : vector<1x2xf32>
      %757 = arith.addf %754, %756 : vector<1x2xf32>
      %758 = arith.subf %726, %752 : vector<1x2xf32>
      %759 = math.exp %758 : vector<1x2xf32>
      %760 = arith.addf %757, %759 : vector<1x2xf32>
      %761 = arith.subf %746, %752 : vector<1x2xf32>
      %762 = math.exp %761 : vector<1x2xf32>
      %763 = arith.addf %760, %762 : vector<1x2xf32>
      %764 = math.log %763 : vector<1x2xf32>
      %765 = arith.addf %752, %764 : vector<1x2xf32>
      %766 = arith.subf %686, %765 : vector<1x2xf32>
      %767 = arith.subf %706, %765 : vector<1x2xf32>
      %768 = arith.subf %726, %765 : vector<1x2xf32>
      %769 = arith.subf %746, %765 : vector<1x2xf32>
      %770 = arith.maximumf %687, %707 : vector<1x2xf32>
      %771 = arith.maximumf %770, %727 : vector<1x2xf32>
      %772 = arith.maximumf %771, %747 : vector<1x2xf32>
      %773 = arith.subf %687, %772 : vector<1x2xf32>
      %774 = math.exp %773 : vector<1x2xf32>
      %775 = arith.subf %707, %772 : vector<1x2xf32>
      %776 = math.exp %775 : vector<1x2xf32>
      %777 = arith.addf %774, %776 : vector<1x2xf32>
      %778 = arith.subf %727, %772 : vector<1x2xf32>
      %779 = math.exp %778 : vector<1x2xf32>
      %780 = arith.addf %777, %779 : vector<1x2xf32>
      %781 = arith.subf %747, %772 : vector<1x2xf32>
      %782 = math.exp %781 : vector<1x2xf32>
      %783 = arith.addf %780, %782 : vector<1x2xf32>
      %784 = math.log %783 : vector<1x2xf32>
      %785 = arith.addf %772, %784 : vector<1x2xf32>
      %786 = arith.subf %687, %785 : vector<1x2xf32>
      %787 = arith.subf %707, %785 : vector<1x2xf32>
      %788 = arith.subf %727, %785 : vector<1x2xf32>
      %789 = arith.subf %747, %785 : vector<1x2xf32>
      %790 = arith.maximumf %688, %708 : vector<1x2xf32>
      %791 = arith.maximumf %790, %728 : vector<1x2xf32>
      %792 = arith.maximumf %791, %748 : vector<1x2xf32>
      %793 = arith.subf %688, %792 : vector<1x2xf32>
      %794 = math.exp %793 : vector<1x2xf32>
      %795 = arith.subf %708, %792 : vector<1x2xf32>
      %796 = math.exp %795 : vector<1x2xf32>
      %797 = arith.addf %794, %796 : vector<1x2xf32>
      %798 = arith.subf %728, %792 : vector<1x2xf32>
      %799 = math.exp %798 : vector<1x2xf32>
      %800 = arith.addf %797, %799 : vector<1x2xf32>
      %801 = arith.subf %748, %792 : vector<1x2xf32>
      %802 = math.exp %801 : vector<1x2xf32>
      %803 = arith.addf %800, %802 : vector<1x2xf32>
      %804 = math.log %803 : vector<1x2xf32>
      %805 = arith.addf %792, %804 : vector<1x2xf32>
      %806 = arith.subf %688, %805 : vector<1x2xf32>
      %807 = arith.subf %708, %805 : vector<1x2xf32>
      %808 = arith.subf %728, %805 : vector<1x2xf32>
      %809 = arith.subf %748, %805 : vector<1x2xf32>
      %810 = arith.maximumf %689, %709 : vector<1x2xf32>
      %811 = arith.maximumf %810, %729 : vector<1x2xf32>
      %812 = arith.maximumf %811, %749 : vector<1x2xf32>
      %813 = arith.subf %689, %812 : vector<1x2xf32>
      %814 = math.exp %813 : vector<1x2xf32>
      %815 = arith.subf %709, %812 : vector<1x2xf32>
      %816 = math.exp %815 : vector<1x2xf32>
      %817 = arith.addf %814, %816 : vector<1x2xf32>
      %818 = arith.subf %729, %812 : vector<1x2xf32>
      %819 = math.exp %818 : vector<1x2xf32>
      %820 = arith.addf %817, %819 : vector<1x2xf32>
      %821 = arith.subf %749, %812 : vector<1x2xf32>
      %822 = math.exp %821 : vector<1x2xf32>
      %823 = arith.addf %820, %822 : vector<1x2xf32>
      %824 = math.log %823 : vector<1x2xf32>
      %825 = arith.addf %812, %824 : vector<1x2xf32>
      %826 = arith.subf %689, %825 : vector<1x2xf32>
      %827 = arith.subf %709, %825 : vector<1x2xf32>
      %828 = arith.subf %729, %825 : vector<1x2xf32>
      %829 = arith.subf %749, %825 : vector<1x2xf32>
      %830 = arith.maximumf %766, %786 : vector<1x2xf32>
      %831 = arith.maximumf %830, %806 : vector<1x2xf32>
      %832 = arith.maximumf %831, %826 : vector<1x2xf32>
      %833 = arith.subf %766, %832 : vector<1x2xf32>
      %834 = math.exp %833 : vector<1x2xf32>
      %835 = arith.subf %786, %832 : vector<1x2xf32>
      %836 = math.exp %835 : vector<1x2xf32>
      %837 = arith.addf %834, %836 : vector<1x2xf32>
      %838 = arith.subf %806, %832 : vector<1x2xf32>
      %839 = math.exp %838 : vector<1x2xf32>
      %840 = arith.addf %837, %839 : vector<1x2xf32>
      %841 = arith.subf %826, %832 : vector<1x2xf32>
      %842 = math.exp %841 : vector<1x2xf32>
      %843 = arith.addf %840, %842 : vector<1x2xf32>
      %844 = math.log %843 : vector<1x2xf32>
      %845 = arith.addf %832, %844 : vector<1x2xf32>
      %846 = arith.subf %766, %845 : vector<1x2xf32>
      %847 = arith.subf %786, %845 : vector<1x2xf32>
      %848 = arith.subf %806, %845 : vector<1x2xf32>
      %849 = arith.subf %826, %845 : vector<1x2xf32>
      %850 = arith.maximumf %767, %787 : vector<1x2xf32>
      %851 = arith.maximumf %850, %807 : vector<1x2xf32>
      %852 = arith.maximumf %851, %827 : vector<1x2xf32>
      %853 = arith.subf %767, %852 : vector<1x2xf32>
      %854 = math.exp %853 : vector<1x2xf32>
      %855 = arith.subf %787, %852 : vector<1x2xf32>
      %856 = math.exp %855 : vector<1x2xf32>
      %857 = arith.addf %854, %856 : vector<1x2xf32>
      %858 = arith.subf %807, %852 : vector<1x2xf32>
      %859 = math.exp %858 : vector<1x2xf32>
      %860 = arith.addf %857, %859 : vector<1x2xf32>
      %861 = arith.subf %827, %852 : vector<1x2xf32>
      %862 = math.exp %861 : vector<1x2xf32>
      %863 = arith.addf %860, %862 : vector<1x2xf32>
      %864 = math.log %863 : vector<1x2xf32>
      %865 = arith.addf %852, %864 : vector<1x2xf32>
      %866 = arith.subf %767, %865 : vector<1x2xf32>
      %867 = arith.subf %787, %865 : vector<1x2xf32>
      %868 = arith.subf %807, %865 : vector<1x2xf32>
      %869 = arith.subf %827, %865 : vector<1x2xf32>
      %870 = arith.maximumf %768, %788 : vector<1x2xf32>
      %871 = arith.maximumf %870, %808 : vector<1x2xf32>
      %872 = arith.maximumf %871, %828 : vector<1x2xf32>
      %873 = arith.subf %768, %872 : vector<1x2xf32>
      %874 = math.exp %873 : vector<1x2xf32>
      %875 = arith.subf %788, %872 : vector<1x2xf32>
      %876 = math.exp %875 : vector<1x2xf32>
      %877 = arith.addf %874, %876 : vector<1x2xf32>
      %878 = arith.subf %808, %872 : vector<1x2xf32>
      %879 = math.exp %878 : vector<1x2xf32>
      %880 = arith.addf %877, %879 : vector<1x2xf32>
      %881 = arith.subf %828, %872 : vector<1x2xf32>
      %882 = math.exp %881 : vector<1x2xf32>
      %883 = arith.addf %880, %882 : vector<1x2xf32>
      %884 = math.log %883 : vector<1x2xf32>
      %885 = arith.addf %872, %884 : vector<1x2xf32>
      %886 = arith.subf %768, %885 : vector<1x2xf32>
      %887 = arith.subf %788, %885 : vector<1x2xf32>
      %888 = arith.subf %808, %885 : vector<1x2xf32>
      %889 = arith.subf %828, %885 : vector<1x2xf32>
      %890 = arith.maximumf %769, %789 : vector<1x2xf32>
      %891 = arith.maximumf %890, %809 : vector<1x2xf32>
      %892 = arith.maximumf %891, %829 : vector<1x2xf32>
      %893 = arith.subf %769, %892 : vector<1x2xf32>
      %894 = math.exp %893 : vector<1x2xf32>
      %895 = arith.subf %789, %892 : vector<1x2xf32>
      %896 = math.exp %895 : vector<1x2xf32>
      %897 = arith.addf %894, %896 : vector<1x2xf32>
      %898 = arith.subf %809, %892 : vector<1x2xf32>
      %899 = math.exp %898 : vector<1x2xf32>
      %900 = arith.addf %897, %899 : vector<1x2xf32>
      %901 = arith.subf %829, %892 : vector<1x2xf32>
      %902 = math.exp %901 : vector<1x2xf32>
      %903 = arith.addf %900, %902 : vector<1x2xf32>
      %904 = math.log %903 : vector<1x2xf32>
      %905 = arith.addf %892, %904 : vector<1x2xf32>
      %906 = arith.subf %769, %905 : vector<1x2xf32>
      %907 = arith.subf %789, %905 : vector<1x2xf32>
      %908 = arith.subf %809, %905 : vector<1x2xf32>
      %909 = arith.subf %829, %905 : vector<1x2xf32>
      %910 = arith.maximumf %846, %866 : vector<1x2xf32>
      %911 = arith.maximumf %910, %886 : vector<1x2xf32>
      %912 = arith.maximumf %911, %906 : vector<1x2xf32>
      %913 = arith.subf %846, %912 : vector<1x2xf32>
      %914 = math.exp %913 : vector<1x2xf32>
      %915 = arith.subf %866, %912 : vector<1x2xf32>
      %916 = math.exp %915 : vector<1x2xf32>
      %917 = arith.addf %914, %916 : vector<1x2xf32>
      %918 = arith.subf %886, %912 : vector<1x2xf32>
      %919 = math.exp %918 : vector<1x2xf32>
      %920 = arith.addf %917, %919 : vector<1x2xf32>
      %921 = arith.subf %906, %912 : vector<1x2xf32>
      %922 = math.exp %921 : vector<1x2xf32>
      %923 = arith.addf %920, %922 : vector<1x2xf32>
      %924 = math.log %923 : vector<1x2xf32>
      %925 = arith.addf %912, %924 : vector<1x2xf32>
      %926 = arith.subf %846, %925 : vector<1x2xf32>
      %927 = arith.subf %866, %925 : vector<1x2xf32>
      %928 = arith.subf %886, %925 : vector<1x2xf32>
      %929 = arith.subf %906, %925 : vector<1x2xf32>
      %930 = arith.maximumf %847, %867 : vector<1x2xf32>
      %931 = arith.maximumf %930, %887 : vector<1x2xf32>
      %932 = arith.maximumf %931, %907 : vector<1x2xf32>
      %933 = arith.subf %847, %932 : vector<1x2xf32>
      %934 = math.exp %933 : vector<1x2xf32>
      %935 = arith.subf %867, %932 : vector<1x2xf32>
      %936 = math.exp %935 : vector<1x2xf32>
      %937 = arith.addf %934, %936 : vector<1x2xf32>
      %938 = arith.subf %887, %932 : vector<1x2xf32>
      %939 = math.exp %938 : vector<1x2xf32>
      %940 = arith.addf %937, %939 : vector<1x2xf32>
      %941 = arith.subf %907, %932 : vector<1x2xf32>
      %942 = math.exp %941 : vector<1x2xf32>
      %943 = arith.addf %940, %942 : vector<1x2xf32>
      %944 = math.log %943 : vector<1x2xf32>
      %945 = arith.addf %932, %944 : vector<1x2xf32>
      %946 = arith.subf %847, %945 : vector<1x2xf32>
      %947 = arith.subf %867, %945 : vector<1x2xf32>
      %948 = arith.subf %887, %945 : vector<1x2xf32>
      %949 = arith.subf %907, %945 : vector<1x2xf32>
      %950 = arith.maximumf %848, %868 : vector<1x2xf32>
      %951 = arith.maximumf %950, %888 : vector<1x2xf32>
      %952 = arith.maximumf %951, %908 : vector<1x2xf32>
      %953 = arith.subf %848, %952 : vector<1x2xf32>
      %954 = math.exp %953 : vector<1x2xf32>
      %955 = arith.subf %868, %952 : vector<1x2xf32>
      %956 = math.exp %955 : vector<1x2xf32>
      %957 = arith.addf %954, %956 : vector<1x2xf32>
      %958 = arith.subf %888, %952 : vector<1x2xf32>
      %959 = math.exp %958 : vector<1x2xf32>
      %960 = arith.addf %957, %959 : vector<1x2xf32>
      %961 = arith.subf %908, %952 : vector<1x2xf32>
      %962 = math.exp %961 : vector<1x2xf32>
      %963 = arith.addf %960, %962 : vector<1x2xf32>
      %964 = math.log %963 : vector<1x2xf32>
      %965 = arith.addf %952, %964 : vector<1x2xf32>
      %966 = arith.subf %848, %965 : vector<1x2xf32>
      %967 = arith.subf %868, %965 : vector<1x2xf32>
      %968 = arith.subf %888, %965 : vector<1x2xf32>
      %969 = arith.subf %908, %965 : vector<1x2xf32>
      %970 = arith.maximumf %849, %869 : vector<1x2xf32>
      %971 = arith.maximumf %970, %889 : vector<1x2xf32>
      %972 = arith.maximumf %971, %909 : vector<1x2xf32>
      %973 = arith.subf %849, %972 : vector<1x2xf32>
      %974 = math.exp %973 : vector<1x2xf32>
      %975 = arith.subf %869, %972 : vector<1x2xf32>
      %976 = math.exp %975 : vector<1x2xf32>
      %977 = arith.addf %974, %976 : vector<1x2xf32>
      %978 = arith.subf %889, %972 : vector<1x2xf32>
      %979 = math.exp %978 : vector<1x2xf32>
      %980 = arith.addf %977, %979 : vector<1x2xf32>
      %981 = arith.subf %909, %972 : vector<1x2xf32>
      %982 = math.exp %981 : vector<1x2xf32>
      %983 = arith.addf %980, %982 : vector<1x2xf32>
      %984 = math.log %983 : vector<1x2xf32>
      %985 = arith.addf %972, %984 : vector<1x2xf32>
      %986 = arith.subf %849, %985 : vector<1x2xf32>
      %987 = arith.subf %869, %985 : vector<1x2xf32>
      %988 = arith.subf %889, %985 : vector<1x2xf32>
      %989 = arith.subf %909, %985 : vector<1x2xf32>
      %990 = arith.maximumf %926, %946 : vector<1x2xf32>
      %991 = arith.maximumf %990, %966 : vector<1x2xf32>
      %992 = arith.maximumf %991, %986 : vector<1x2xf32>
      %993 = arith.subf %926, %992 : vector<1x2xf32>
      %994 = math.exp %993 : vector<1x2xf32>
      %995 = arith.subf %946, %992 : vector<1x2xf32>
      %996 = math.exp %995 : vector<1x2xf32>
      %997 = arith.addf %994, %996 : vector<1x2xf32>
      %998 = arith.subf %966, %992 : vector<1x2xf32>
      %999 = math.exp %998 : vector<1x2xf32>
      %1000 = arith.addf %997, %999 : vector<1x2xf32>
      %1001 = arith.subf %986, %992 : vector<1x2xf32>
      %1002 = math.exp %1001 : vector<1x2xf32>
      %1003 = arith.addf %1000, %1002 : vector<1x2xf32>
      %1004 = math.log %1003 : vector<1x2xf32>
      %1005 = arith.addf %992, %1004 : vector<1x2xf32>
      %1006 = arith.subf %926, %1005 : vector<1x2xf32>
      %1007 = arith.subf %946, %1005 : vector<1x2xf32>
      %1008 = arith.subf %966, %1005 : vector<1x2xf32>
      %1009 = arith.subf %986, %1005 : vector<1x2xf32>
      %1010 = arith.maximumf %927, %947 : vector<1x2xf32>
      %1011 = arith.maximumf %1010, %967 : vector<1x2xf32>
      %1012 = arith.maximumf %1011, %987 : vector<1x2xf32>
      %1013 = arith.subf %927, %1012 : vector<1x2xf32>
      %1014 = math.exp %1013 : vector<1x2xf32>
      %1015 = arith.subf %947, %1012 : vector<1x2xf32>
      %1016 = math.exp %1015 : vector<1x2xf32>
      %1017 = arith.addf %1014, %1016 : vector<1x2xf32>
      %1018 = arith.subf %967, %1012 : vector<1x2xf32>
      %1019 = math.exp %1018 : vector<1x2xf32>
      %1020 = arith.addf %1017, %1019 : vector<1x2xf32>
      %1021 = arith.subf %987, %1012 : vector<1x2xf32>
      %1022 = math.exp %1021 : vector<1x2xf32>
      %1023 = arith.addf %1020, %1022 : vector<1x2xf32>
      %1024 = math.log %1023 : vector<1x2xf32>
      %1025 = arith.addf %1012, %1024 : vector<1x2xf32>
      %1026 = arith.subf %927, %1025 : vector<1x2xf32>
      %1027 = arith.subf %947, %1025 : vector<1x2xf32>
      %1028 = arith.subf %967, %1025 : vector<1x2xf32>
      %1029 = arith.subf %987, %1025 : vector<1x2xf32>
      %1030 = arith.maximumf %928, %948 : vector<1x2xf32>
      %1031 = arith.maximumf %1030, %968 : vector<1x2xf32>
      %1032 = arith.maximumf %1031, %988 : vector<1x2xf32>
      %1033 = arith.subf %928, %1032 : vector<1x2xf32>
      %1034 = math.exp %1033 : vector<1x2xf32>
      %1035 = arith.subf %948, %1032 : vector<1x2xf32>
      %1036 = math.exp %1035 : vector<1x2xf32>
      %1037 = arith.addf %1034, %1036 : vector<1x2xf32>
      %1038 = arith.subf %968, %1032 : vector<1x2xf32>
      %1039 = math.exp %1038 : vector<1x2xf32>
      %1040 = arith.addf %1037, %1039 : vector<1x2xf32>
      %1041 = arith.subf %988, %1032 : vector<1x2xf32>
      %1042 = math.exp %1041 : vector<1x2xf32>
      %1043 = arith.addf %1040, %1042 : vector<1x2xf32>
      %1044 = math.log %1043 : vector<1x2xf32>
      %1045 = arith.addf %1032, %1044 : vector<1x2xf32>
      %1046 = arith.subf %928, %1045 : vector<1x2xf32>
      %1047 = arith.subf %948, %1045 : vector<1x2xf32>
      %1048 = arith.subf %968, %1045 : vector<1x2xf32>
      %1049 = arith.subf %988, %1045 : vector<1x2xf32>
      %1050 = arith.maximumf %929, %949 : vector<1x2xf32>
      %1051 = arith.maximumf %1050, %969 : vector<1x2xf32>
      %1052 = arith.maximumf %1051, %989 : vector<1x2xf32>
      %1053 = arith.subf %929, %1052 : vector<1x2xf32>
      %1054 = math.exp %1053 : vector<1x2xf32>
      %1055 = arith.subf %949, %1052 : vector<1x2xf32>
      %1056 = math.exp %1055 : vector<1x2xf32>
      %1057 = arith.addf %1054, %1056 : vector<1x2xf32>
      %1058 = arith.subf %969, %1052 : vector<1x2xf32>
      %1059 = math.exp %1058 : vector<1x2xf32>
      %1060 = arith.addf %1057, %1059 : vector<1x2xf32>
      %1061 = arith.subf %989, %1052 : vector<1x2xf32>
      %1062 = math.exp %1061 : vector<1x2xf32>
      %1063 = arith.addf %1060, %1062 : vector<1x2xf32>
      %1064 = math.log %1063 : vector<1x2xf32>
      %1065 = arith.addf %1052, %1064 : vector<1x2xf32>
      %1066 = arith.subf %929, %1065 : vector<1x2xf32>
      %1067 = arith.subf %949, %1065 : vector<1x2xf32>
      %1068 = arith.subf %969, %1065 : vector<1x2xf32>
      %1069 = arith.subf %989, %1065 : vector<1x2xf32>
      %1070 = arith.maximumf %1006, %1026 : vector<1x2xf32>
      %1071 = arith.maximumf %1070, %1046 : vector<1x2xf32>
      %1072 = arith.maximumf %1071, %1066 : vector<1x2xf32>
      %1073 = arith.subf %1006, %1072 : vector<1x2xf32>
      %1074 = math.exp %1073 : vector<1x2xf32>
      %1075 = arith.subf %1026, %1072 : vector<1x2xf32>
      %1076 = math.exp %1075 : vector<1x2xf32>
      %1077 = arith.addf %1074, %1076 : vector<1x2xf32>
      %1078 = arith.subf %1046, %1072 : vector<1x2xf32>
      %1079 = math.exp %1078 : vector<1x2xf32>
      %1080 = arith.addf %1077, %1079 : vector<1x2xf32>
      %1081 = arith.subf %1066, %1072 : vector<1x2xf32>
      %1082 = math.exp %1081 : vector<1x2xf32>
      %1083 = arith.addf %1080, %1082 : vector<1x2xf32>
      %1084 = math.log %1083 : vector<1x2xf32>
      %1085 = arith.addf %1072, %1084 : vector<1x2xf32>
      %1086 = arith.subf %1006, %1085 : vector<1x2xf32>
      %1087 = arith.subf %1026, %1085 : vector<1x2xf32>
      %1088 = arith.subf %1046, %1085 : vector<1x2xf32>
      %1089 = arith.subf %1066, %1085 : vector<1x2xf32>
      %1090 = arith.maximumf %1007, %1027 : vector<1x2xf32>
      %1091 = arith.maximumf %1090, %1047 : vector<1x2xf32>
      %1092 = arith.maximumf %1091, %1067 : vector<1x2xf32>
      %1093 = arith.subf %1007, %1092 : vector<1x2xf32>
      %1094 = math.exp %1093 : vector<1x2xf32>
      %1095 = arith.subf %1027, %1092 : vector<1x2xf32>
      %1096 = math.exp %1095 : vector<1x2xf32>
      %1097 = arith.addf %1094, %1096 : vector<1x2xf32>
      %1098 = arith.subf %1047, %1092 : vector<1x2xf32>
      %1099 = math.exp %1098 : vector<1x2xf32>
      %1100 = arith.addf %1097, %1099 : vector<1x2xf32>
      %1101 = arith.subf %1067, %1092 : vector<1x2xf32>
      %1102 = math.exp %1101 : vector<1x2xf32>
      %1103 = arith.addf %1100, %1102 : vector<1x2xf32>
      %1104 = math.log %1103 : vector<1x2xf32>
      %1105 = arith.addf %1092, %1104 : vector<1x2xf32>
      %1106 = arith.subf %1007, %1105 : vector<1x2xf32>
      %1107 = arith.subf %1027, %1105 : vector<1x2xf32>
      %1108 = arith.subf %1047, %1105 : vector<1x2xf32>
      %1109 = arith.subf %1067, %1105 : vector<1x2xf32>
      %1110 = arith.maximumf %1008, %1028 : vector<1x2xf32>
      %1111 = arith.maximumf %1110, %1048 : vector<1x2xf32>
      %1112 = arith.maximumf %1111, %1068 : vector<1x2xf32>
      %1113 = arith.subf %1008, %1112 : vector<1x2xf32>
      %1114 = math.exp %1113 : vector<1x2xf32>
      %1115 = arith.subf %1028, %1112 : vector<1x2xf32>
      %1116 = math.exp %1115 : vector<1x2xf32>
      %1117 = arith.addf %1114, %1116 : vector<1x2xf32>
      %1118 = arith.subf %1048, %1112 : vector<1x2xf32>
      %1119 = math.exp %1118 : vector<1x2xf32>
      %1120 = arith.addf %1117, %1119 : vector<1x2xf32>
      %1121 = arith.subf %1068, %1112 : vector<1x2xf32>
      %1122 = math.exp %1121 : vector<1x2xf32>
      %1123 = arith.addf %1120, %1122 : vector<1x2xf32>
      %1124 = math.log %1123 : vector<1x2xf32>
      %1125 = arith.addf %1112, %1124 : vector<1x2xf32>
      %1126 = arith.subf %1008, %1125 : vector<1x2xf32>
      %1127 = arith.subf %1028, %1125 : vector<1x2xf32>
      %1128 = arith.subf %1048, %1125 : vector<1x2xf32>
      %1129 = arith.subf %1068, %1125 : vector<1x2xf32>
      %1130 = arith.maximumf %1009, %1029 : vector<1x2xf32>
      %1131 = arith.maximumf %1130, %1049 : vector<1x2xf32>
      %1132 = arith.maximumf %1131, %1069 : vector<1x2xf32>
      %1133 = arith.subf %1009, %1132 : vector<1x2xf32>
      %1134 = math.exp %1133 : vector<1x2xf32>
      %1135 = arith.subf %1029, %1132 : vector<1x2xf32>
      %1136 = math.exp %1135 : vector<1x2xf32>
      %1137 = arith.addf %1134, %1136 : vector<1x2xf32>
      %1138 = arith.subf %1049, %1132 : vector<1x2xf32>
      %1139 = math.exp %1138 : vector<1x2xf32>
      %1140 = arith.addf %1137, %1139 : vector<1x2xf32>
      %1141 = arith.subf %1069, %1132 : vector<1x2xf32>
      %1142 = math.exp %1141 : vector<1x2xf32>
      %1143 = arith.addf %1140, %1142 : vector<1x2xf32>
      %1144 = math.log %1143 : vector<1x2xf32>
      %1145 = arith.addf %1132, %1144 : vector<1x2xf32>
      %1146 = arith.subf %1009, %1145 : vector<1x2xf32>
      %1147 = arith.subf %1029, %1145 : vector<1x2xf32>
      %1148 = arith.subf %1049, %1145 : vector<1x2xf32>
      %1149 = arith.subf %1069, %1145 : vector<1x2xf32>
      %1150 = arith.maximumf %1086, %1106 : vector<1x2xf32>
      %1151 = arith.maximumf %1150, %1126 : vector<1x2xf32>
      %1152 = arith.maximumf %1151, %1146 : vector<1x2xf32>
      %1153 = arith.subf %1086, %1152 : vector<1x2xf32>
      %1154 = math.exp %1153 : vector<1x2xf32>
      %1155 = arith.subf %1106, %1152 : vector<1x2xf32>
      %1156 = math.exp %1155 : vector<1x2xf32>
      %1157 = arith.addf %1154, %1156 : vector<1x2xf32>
      %1158 = arith.subf %1126, %1152 : vector<1x2xf32>
      %1159 = math.exp %1158 : vector<1x2xf32>
      %1160 = arith.addf %1157, %1159 : vector<1x2xf32>
      %1161 = arith.subf %1146, %1152 : vector<1x2xf32>
      %1162 = math.exp %1161 : vector<1x2xf32>
      %1163 = arith.addf %1160, %1162 : vector<1x2xf32>
      %1164 = math.log %1163 : vector<1x2xf32>
      %1165 = arith.addf %1152, %1164 : vector<1x2xf32>
      %1166 = arith.subf %1086, %1165 : vector<1x2xf32>
      %1167 = arith.subf %1106, %1165 : vector<1x2xf32>
      %1168 = arith.subf %1126, %1165 : vector<1x2xf32>
      %1169 = arith.subf %1146, %1165 : vector<1x2xf32>
      %1170 = arith.maximumf %1087, %1107 : vector<1x2xf32>
      %1171 = arith.maximumf %1170, %1127 : vector<1x2xf32>
      %1172 = arith.maximumf %1171, %1147 : vector<1x2xf32>
      %1173 = arith.subf %1087, %1172 : vector<1x2xf32>
      %1174 = math.exp %1173 : vector<1x2xf32>
      %1175 = arith.subf %1107, %1172 : vector<1x2xf32>
      %1176 = math.exp %1175 : vector<1x2xf32>
      %1177 = arith.addf %1174, %1176 : vector<1x2xf32>
      %1178 = arith.subf %1127, %1172 : vector<1x2xf32>
      %1179 = math.exp %1178 : vector<1x2xf32>
      %1180 = arith.addf %1177, %1179 : vector<1x2xf32>
      %1181 = arith.subf %1147, %1172 : vector<1x2xf32>
      %1182 = math.exp %1181 : vector<1x2xf32>
      %1183 = arith.addf %1180, %1182 : vector<1x2xf32>
      %1184 = math.log %1183 : vector<1x2xf32>
      %1185 = arith.addf %1172, %1184 : vector<1x2xf32>
      %1186 = arith.subf %1087, %1185 : vector<1x2xf32>
      %1187 = arith.subf %1107, %1185 : vector<1x2xf32>
      %1188 = arith.subf %1127, %1185 : vector<1x2xf32>
      %1189 = arith.subf %1147, %1185 : vector<1x2xf32>
      %1190 = arith.maximumf %1088, %1108 : vector<1x2xf32>
      %1191 = arith.maximumf %1190, %1128 : vector<1x2xf32>
      %1192 = arith.maximumf %1191, %1148 : vector<1x2xf32>
      %1193 = arith.subf %1088, %1192 : vector<1x2xf32>
      %1194 = math.exp %1193 : vector<1x2xf32>
      %1195 = arith.subf %1108, %1192 : vector<1x2xf32>
      %1196 = math.exp %1195 : vector<1x2xf32>
      %1197 = arith.addf %1194, %1196 : vector<1x2xf32>
      %1198 = arith.subf %1128, %1192 : vector<1x2xf32>
      %1199 = math.exp %1198 : vector<1x2xf32>
      %1200 = arith.addf %1197, %1199 : vector<1x2xf32>
      %1201 = arith.subf %1148, %1192 : vector<1x2xf32>
      %1202 = math.exp %1201 : vector<1x2xf32>
      %1203 = arith.addf %1200, %1202 : vector<1x2xf32>
      %1204 = math.log %1203 : vector<1x2xf32>
      %1205 = arith.addf %1192, %1204 : vector<1x2xf32>
      %1206 = arith.subf %1088, %1205 : vector<1x2xf32>
      %1207 = arith.subf %1108, %1205 : vector<1x2xf32>
      %1208 = arith.subf %1128, %1205 : vector<1x2xf32>
      %1209 = arith.subf %1148, %1205 : vector<1x2xf32>
      %1210 = arith.maximumf %1089, %1109 : vector<1x2xf32>
      %1211 = arith.maximumf %1210, %1129 : vector<1x2xf32>
      %1212 = arith.maximumf %1211, %1149 : vector<1x2xf32>
      %1213 = arith.subf %1089, %1212 : vector<1x2xf32>
      %1214 = math.exp %1213 : vector<1x2xf32>
      %1215 = arith.subf %1109, %1212 : vector<1x2xf32>
      %1216 = math.exp %1215 : vector<1x2xf32>
      %1217 = arith.addf %1214, %1216 : vector<1x2xf32>
      %1218 = arith.subf %1129, %1212 : vector<1x2xf32>
      %1219 = math.exp %1218 : vector<1x2xf32>
      %1220 = arith.addf %1217, %1219 : vector<1x2xf32>
      %1221 = arith.subf %1149, %1212 : vector<1x2xf32>
      %1222 = math.exp %1221 : vector<1x2xf32>
      %1223 = arith.addf %1220, %1222 : vector<1x2xf32>
      %1224 = math.log %1223 : vector<1x2xf32>
      %1225 = arith.addf %1212, %1224 : vector<1x2xf32>
      %1226 = arith.subf %1089, %1225 : vector<1x2xf32>
      %1227 = arith.subf %1109, %1225 : vector<1x2xf32>
      %1228 = arith.subf %1129, %1225 : vector<1x2xf32>
      %1229 = arith.subf %1149, %1225 : vector<1x2xf32>
      %1230 = arith.maximumf %1166, %1186 : vector<1x2xf32>
      %1231 = arith.maximumf %1230, %1206 : vector<1x2xf32>
      %1232 = arith.maximumf %1231, %1226 : vector<1x2xf32>
      %1233 = arith.subf %1166, %1232 : vector<1x2xf32>
      %1234 = math.exp %1233 : vector<1x2xf32>
      %1235 = arith.subf %1186, %1232 : vector<1x2xf32>
      %1236 = math.exp %1235 : vector<1x2xf32>
      %1237 = arith.addf %1234, %1236 : vector<1x2xf32>
      %1238 = arith.subf %1206, %1232 : vector<1x2xf32>
      %1239 = math.exp %1238 : vector<1x2xf32>
      %1240 = arith.addf %1237, %1239 : vector<1x2xf32>
      %1241 = arith.subf %1226, %1232 : vector<1x2xf32>
      %1242 = math.exp %1241 : vector<1x2xf32>
      %1243 = arith.addf %1240, %1242 : vector<1x2xf32>
      %1244 = math.log %1243 : vector<1x2xf32>
      %1245 = arith.addf %1232, %1244 : vector<1x2xf32>
      %1246 = arith.subf %1166, %1245 : vector<1x2xf32>
      %1247 = arith.subf %1186, %1245 : vector<1x2xf32>
      %1248 = arith.subf %1206, %1245 : vector<1x2xf32>
      %1249 = arith.subf %1226, %1245 : vector<1x2xf32>
      %1250 = arith.maximumf %1167, %1187 : vector<1x2xf32>
      %1251 = arith.maximumf %1250, %1207 : vector<1x2xf32>
      %1252 = arith.maximumf %1251, %1227 : vector<1x2xf32>
      %1253 = arith.subf %1167, %1252 : vector<1x2xf32>
      %1254 = math.exp %1253 : vector<1x2xf32>
      %1255 = arith.subf %1187, %1252 : vector<1x2xf32>
      %1256 = math.exp %1255 : vector<1x2xf32>
      %1257 = arith.addf %1254, %1256 : vector<1x2xf32>
      %1258 = arith.subf %1207, %1252 : vector<1x2xf32>
      %1259 = math.exp %1258 : vector<1x2xf32>
      %1260 = arith.addf %1257, %1259 : vector<1x2xf32>
      %1261 = arith.subf %1227, %1252 : vector<1x2xf32>
      %1262 = math.exp %1261 : vector<1x2xf32>
      %1263 = arith.addf %1260, %1262 : vector<1x2xf32>
      %1264 = math.log %1263 : vector<1x2xf32>
      %1265 = arith.addf %1252, %1264 : vector<1x2xf32>
      %1266 = arith.subf %1167, %1265 : vector<1x2xf32>
      %1267 = arith.subf %1187, %1265 : vector<1x2xf32>
      %1268 = arith.subf %1207, %1265 : vector<1x2xf32>
      %1269 = arith.subf %1227, %1265 : vector<1x2xf32>
      %1270 = arith.maximumf %1168, %1188 : vector<1x2xf32>
      %1271 = arith.maximumf %1270, %1208 : vector<1x2xf32>
      %1272 = arith.maximumf %1271, %1228 : vector<1x2xf32>
      %1273 = arith.subf %1168, %1272 : vector<1x2xf32>
      %1274 = math.exp %1273 : vector<1x2xf32>
      %1275 = arith.subf %1188, %1272 : vector<1x2xf32>
      %1276 = math.exp %1275 : vector<1x2xf32>
      %1277 = arith.addf %1274, %1276 : vector<1x2xf32>
      %1278 = arith.subf %1208, %1272 : vector<1x2xf32>
      %1279 = math.exp %1278 : vector<1x2xf32>
      %1280 = arith.addf %1277, %1279 : vector<1x2xf32>
      %1281 = arith.subf %1228, %1272 : vector<1x2xf32>
      %1282 = math.exp %1281 : vector<1x2xf32>
      %1283 = arith.addf %1280, %1282 : vector<1x2xf32>
      %1284 = math.log %1283 : vector<1x2xf32>
      %1285 = arith.addf %1272, %1284 : vector<1x2xf32>
      %1286 = arith.subf %1168, %1285 : vector<1x2xf32>
      %1287 = arith.subf %1188, %1285 : vector<1x2xf32>
      %1288 = arith.subf %1208, %1285 : vector<1x2xf32>
      %1289 = arith.subf %1228, %1285 : vector<1x2xf32>
      %1290 = arith.maximumf %1169, %1189 : vector<1x2xf32>
      %1291 = arith.maximumf %1290, %1209 : vector<1x2xf32>
      %1292 = arith.maximumf %1291, %1229 : vector<1x2xf32>
      %1293 = arith.subf %1169, %1292 : vector<1x2xf32>
      %1294 = math.exp %1293 : vector<1x2xf32>
      %1295 = arith.subf %1189, %1292 : vector<1x2xf32>
      %1296 = math.exp %1295 : vector<1x2xf32>
      %1297 = arith.addf %1294, %1296 : vector<1x2xf32>
      %1298 = arith.subf %1209, %1292 : vector<1x2xf32>
      %1299 = math.exp %1298 : vector<1x2xf32>
      %1300 = arith.addf %1297, %1299 : vector<1x2xf32>
      %1301 = arith.subf %1229, %1292 : vector<1x2xf32>
      %1302 = math.exp %1301 : vector<1x2xf32>
      %1303 = arith.addf %1300, %1302 : vector<1x2xf32>
      %1304 = math.log %1303 : vector<1x2xf32>
      %1305 = arith.addf %1292, %1304 : vector<1x2xf32>
      %1306 = arith.subf %1169, %1305 : vector<1x2xf32>
      %1307 = arith.subf %1189, %1305 : vector<1x2xf32>
      %1308 = arith.subf %1209, %1305 : vector<1x2xf32>
      %1309 = arith.subf %1229, %1305 : vector<1x2xf32>
      %1310 = arith.maximumf %1246, %1266 : vector<1x2xf32>
      %1311 = arith.maximumf %1310, %1286 : vector<1x2xf32>
      %1312 = arith.maximumf %1311, %1306 : vector<1x2xf32>
      %1313 = arith.subf %1246, %1312 : vector<1x2xf32>
      %1314 = math.exp %1313 : vector<1x2xf32>
      %1315 = arith.subf %1266, %1312 : vector<1x2xf32>
      %1316 = math.exp %1315 : vector<1x2xf32>
      %1317 = arith.addf %1314, %1316 : vector<1x2xf32>
      %1318 = arith.subf %1286, %1312 : vector<1x2xf32>
      %1319 = math.exp %1318 : vector<1x2xf32>
      %1320 = arith.addf %1317, %1319 : vector<1x2xf32>
      %1321 = arith.subf %1306, %1312 : vector<1x2xf32>
      %1322 = math.exp %1321 : vector<1x2xf32>
      %1323 = arith.addf %1320, %1322 : vector<1x2xf32>
      %1324 = math.log %1323 : vector<1x2xf32>
      %1325 = arith.addf %1312, %1324 : vector<1x2xf32>
      %1326 = arith.subf %1246, %1325 : vector<1x2xf32>
      %1327 = arith.subf %1266, %1325 : vector<1x2xf32>
      %1328 = arith.subf %1286, %1325 : vector<1x2xf32>
      %1329 = arith.subf %1306, %1325 : vector<1x2xf32>
      %1330 = arith.maximumf %1247, %1267 : vector<1x2xf32>
      %1331 = arith.maximumf %1330, %1287 : vector<1x2xf32>
      %1332 = arith.maximumf %1331, %1307 : vector<1x2xf32>
      %1333 = arith.subf %1247, %1332 : vector<1x2xf32>
      %1334 = math.exp %1333 : vector<1x2xf32>
      %1335 = arith.subf %1267, %1332 : vector<1x2xf32>
      %1336 = math.exp %1335 : vector<1x2xf32>
      %1337 = arith.addf %1334, %1336 : vector<1x2xf32>
      %1338 = arith.subf %1287, %1332 : vector<1x2xf32>
      %1339 = math.exp %1338 : vector<1x2xf32>
      %1340 = arith.addf %1337, %1339 : vector<1x2xf32>
      %1341 = arith.subf %1307, %1332 : vector<1x2xf32>
      %1342 = math.exp %1341 : vector<1x2xf32>
      %1343 = arith.addf %1340, %1342 : vector<1x2xf32>
      %1344 = math.log %1343 : vector<1x2xf32>
      %1345 = arith.addf %1332, %1344 : vector<1x2xf32>
      %1346 = arith.subf %1247, %1345 : vector<1x2xf32>
      %1347 = arith.subf %1267, %1345 : vector<1x2xf32>
      %1348 = arith.subf %1287, %1345 : vector<1x2xf32>
      %1349 = arith.subf %1307, %1345 : vector<1x2xf32>
      %1350 = arith.maximumf %1248, %1268 : vector<1x2xf32>
      %1351 = arith.maximumf %1350, %1288 : vector<1x2xf32>
      %1352 = arith.maximumf %1351, %1308 : vector<1x2xf32>
      %1353 = arith.subf %1248, %1352 : vector<1x2xf32>
      %1354 = math.exp %1353 : vector<1x2xf32>
      %1355 = arith.subf %1268, %1352 : vector<1x2xf32>
      %1356 = math.exp %1355 : vector<1x2xf32>
      %1357 = arith.addf %1354, %1356 : vector<1x2xf32>
      %1358 = arith.subf %1288, %1352 : vector<1x2xf32>
      %1359 = math.exp %1358 : vector<1x2xf32>
      %1360 = arith.addf %1357, %1359 : vector<1x2xf32>
      %1361 = arith.subf %1308, %1352 : vector<1x2xf32>
      %1362 = math.exp %1361 : vector<1x2xf32>
      %1363 = arith.addf %1360, %1362 : vector<1x2xf32>
      %1364 = math.log %1363 : vector<1x2xf32>
      %1365 = arith.addf %1352, %1364 : vector<1x2xf32>
      %1366 = arith.subf %1248, %1365 : vector<1x2xf32>
      %1367 = arith.subf %1268, %1365 : vector<1x2xf32>
      %1368 = arith.subf %1288, %1365 : vector<1x2xf32>
      %1369 = arith.subf %1308, %1365 : vector<1x2xf32>
      %1370 = arith.maximumf %1249, %1269 : vector<1x2xf32>
      %1371 = arith.maximumf %1370, %1289 : vector<1x2xf32>
      %1372 = arith.maximumf %1371, %1309 : vector<1x2xf32>
      %1373 = arith.subf %1249, %1372 : vector<1x2xf32>
      %1374 = math.exp %1373 : vector<1x2xf32>
      %1375 = arith.subf %1269, %1372 : vector<1x2xf32>
      %1376 = math.exp %1375 : vector<1x2xf32>
      %1377 = arith.addf %1374, %1376 : vector<1x2xf32>
      %1378 = arith.subf %1289, %1372 : vector<1x2xf32>
      %1379 = math.exp %1378 : vector<1x2xf32>
      %1380 = arith.addf %1377, %1379 : vector<1x2xf32>
      %1381 = arith.subf %1309, %1372 : vector<1x2xf32>
      %1382 = math.exp %1381 : vector<1x2xf32>
      %1383 = arith.addf %1380, %1382 : vector<1x2xf32>
      %1384 = math.log %1383 : vector<1x2xf32>
      %1385 = arith.addf %1372, %1384 : vector<1x2xf32>
      %1386 = arith.subf %1249, %1385 : vector<1x2xf32>
      %1387 = arith.subf %1269, %1385 : vector<1x2xf32>
      %1388 = arith.subf %1289, %1385 : vector<1x2xf32>
      %1389 = arith.subf %1309, %1385 : vector<1x2xf32>
      %1390 = arith.maximumf %1326, %1346 : vector<1x2xf32>
      %1391 = arith.maximumf %1390, %1366 : vector<1x2xf32>
      %1392 = arith.maximumf %1391, %1386 : vector<1x2xf32>
      %1393 = arith.subf %1326, %1392 : vector<1x2xf32>
      %1394 = math.exp %1393 : vector<1x2xf32>
      %1395 = arith.subf %1346, %1392 : vector<1x2xf32>
      %1396 = math.exp %1395 : vector<1x2xf32>
      %1397 = arith.addf %1394, %1396 : vector<1x2xf32>
      %1398 = arith.subf %1366, %1392 : vector<1x2xf32>
      %1399 = math.exp %1398 : vector<1x2xf32>
      %1400 = arith.addf %1397, %1399 : vector<1x2xf32>
      %1401 = arith.subf %1386, %1392 : vector<1x2xf32>
      %1402 = math.exp %1401 : vector<1x2xf32>
      %1403 = arith.addf %1400, %1402 : vector<1x2xf32>
      %1404 = math.log %1403 : vector<1x2xf32>
      %1405 = arith.addf %1392, %1404 : vector<1x2xf32>
      %1406 = arith.subf %1326, %1405 : vector<1x2xf32>
      %1407 = arith.subf %1346, %1405 : vector<1x2xf32>
      %1408 = arith.subf %1366, %1405 : vector<1x2xf32>
      %1409 = arith.subf %1386, %1405 : vector<1x2xf32>
      %1410 = arith.maximumf %1327, %1347 : vector<1x2xf32>
      %1411 = arith.maximumf %1410, %1367 : vector<1x2xf32>
      %1412 = arith.maximumf %1411, %1387 : vector<1x2xf32>
      %1413 = arith.subf %1327, %1412 : vector<1x2xf32>
      %1414 = math.exp %1413 : vector<1x2xf32>
      %1415 = arith.subf %1347, %1412 : vector<1x2xf32>
      %1416 = math.exp %1415 : vector<1x2xf32>
      %1417 = arith.addf %1414, %1416 : vector<1x2xf32>
      %1418 = arith.subf %1367, %1412 : vector<1x2xf32>
      %1419 = math.exp %1418 : vector<1x2xf32>
      %1420 = arith.addf %1417, %1419 : vector<1x2xf32>
      %1421 = arith.subf %1387, %1412 : vector<1x2xf32>
      %1422 = math.exp %1421 : vector<1x2xf32>
      %1423 = arith.addf %1420, %1422 : vector<1x2xf32>
      %1424 = math.log %1423 : vector<1x2xf32>
      %1425 = arith.addf %1412, %1424 : vector<1x2xf32>
      %1426 = arith.subf %1327, %1425 : vector<1x2xf32>
      %1427 = arith.subf %1347, %1425 : vector<1x2xf32>
      %1428 = arith.subf %1367, %1425 : vector<1x2xf32>
      %1429 = arith.subf %1387, %1425 : vector<1x2xf32>
      %1430 = arith.maximumf %1328, %1348 : vector<1x2xf32>
      %1431 = arith.maximumf %1430, %1368 : vector<1x2xf32>
      %1432 = arith.maximumf %1431, %1388 : vector<1x2xf32>
      %1433 = arith.subf %1328, %1432 : vector<1x2xf32>
      %1434 = math.exp %1433 : vector<1x2xf32>
      %1435 = arith.subf %1348, %1432 : vector<1x2xf32>
      %1436 = math.exp %1435 : vector<1x2xf32>
      %1437 = arith.addf %1434, %1436 : vector<1x2xf32>
      %1438 = arith.subf %1368, %1432 : vector<1x2xf32>
      %1439 = math.exp %1438 : vector<1x2xf32>
      %1440 = arith.addf %1437, %1439 : vector<1x2xf32>
      %1441 = arith.subf %1388, %1432 : vector<1x2xf32>
      %1442 = math.exp %1441 : vector<1x2xf32>
      %1443 = arith.addf %1440, %1442 : vector<1x2xf32>
      %1444 = math.log %1443 : vector<1x2xf32>
      %1445 = arith.addf %1432, %1444 : vector<1x2xf32>
      %1446 = arith.subf %1328, %1445 : vector<1x2xf32>
      %1447 = arith.subf %1348, %1445 : vector<1x2xf32>
      %1448 = arith.subf %1368, %1445 : vector<1x2xf32>
      %1449 = arith.subf %1388, %1445 : vector<1x2xf32>
      %1450 = arith.maximumf %1329, %1349 : vector<1x2xf32>
      %1451 = arith.maximumf %1450, %1369 : vector<1x2xf32>
      %1452 = arith.maximumf %1451, %1389 : vector<1x2xf32>
      %1453 = arith.subf %1329, %1452 : vector<1x2xf32>
      %1454 = math.exp %1453 : vector<1x2xf32>
      %1455 = arith.subf %1349, %1452 : vector<1x2xf32>
      %1456 = math.exp %1455 : vector<1x2xf32>
      %1457 = arith.addf %1454, %1456 : vector<1x2xf32>
      %1458 = arith.subf %1369, %1452 : vector<1x2xf32>
      %1459 = math.exp %1458 : vector<1x2xf32>
      %1460 = arith.addf %1457, %1459 : vector<1x2xf32>
      %1461 = arith.subf %1389, %1452 : vector<1x2xf32>
      %1462 = math.exp %1461 : vector<1x2xf32>
      %1463 = arith.addf %1460, %1462 : vector<1x2xf32>
      %1464 = math.log %1463 : vector<1x2xf32>
      %1465 = arith.addf %1452, %1464 : vector<1x2xf32>
      %1466 = arith.subf %1329, %1465 : vector<1x2xf32>
      %1467 = arith.subf %1349, %1465 : vector<1x2xf32>
      %1468 = arith.subf %1369, %1465 : vector<1x2xf32>
      %1469 = arith.subf %1389, %1465 : vector<1x2xf32>
      %1470 = arith.maximumf %1406, %1426 : vector<1x2xf32>
      %1471 = arith.maximumf %1470, %1446 : vector<1x2xf32>
      %1472 = arith.maximumf %1471, %1466 : vector<1x2xf32>
      %1473 = arith.subf %1406, %1472 : vector<1x2xf32>
      %1474 = math.exp %1473 : vector<1x2xf32>
      %1475 = arith.subf %1426, %1472 : vector<1x2xf32>
      %1476 = math.exp %1475 : vector<1x2xf32>
      %1477 = arith.addf %1474, %1476 : vector<1x2xf32>
      %1478 = arith.subf %1446, %1472 : vector<1x2xf32>
      %1479 = math.exp %1478 : vector<1x2xf32>
      %1480 = arith.addf %1477, %1479 : vector<1x2xf32>
      %1481 = arith.subf %1466, %1472 : vector<1x2xf32>
      %1482 = math.exp %1481 : vector<1x2xf32>
      %1483 = arith.addf %1480, %1482 : vector<1x2xf32>
      %1484 = math.log %1483 : vector<1x2xf32>
      %1485 = arith.addf %1472, %1484 : vector<1x2xf32>
      %1486 = arith.subf %1406, %1485 : vector<1x2xf32>
      %1487 = arith.subf %1426, %1485 : vector<1x2xf32>
      %1488 = arith.subf %1446, %1485 : vector<1x2xf32>
      %1489 = arith.subf %1466, %1485 : vector<1x2xf32>
      %1490 = arith.maximumf %1407, %1427 : vector<1x2xf32>
      %1491 = arith.maximumf %1490, %1447 : vector<1x2xf32>
      %1492 = arith.maximumf %1491, %1467 : vector<1x2xf32>
      %1493 = arith.subf %1407, %1492 : vector<1x2xf32>
      %1494 = math.exp %1493 : vector<1x2xf32>
      %1495 = arith.subf %1427, %1492 : vector<1x2xf32>
      %1496 = math.exp %1495 : vector<1x2xf32>
      %1497 = arith.addf %1494, %1496 : vector<1x2xf32>
      %1498 = arith.subf %1447, %1492 : vector<1x2xf32>
      %1499 = math.exp %1498 : vector<1x2xf32>
      %1500 = arith.addf %1497, %1499 : vector<1x2xf32>
      %1501 = arith.subf %1467, %1492 : vector<1x2xf32>
      %1502 = math.exp %1501 : vector<1x2xf32>
      %1503 = arith.addf %1500, %1502 : vector<1x2xf32>
      %1504 = math.log %1503 : vector<1x2xf32>
      %1505 = arith.addf %1492, %1504 : vector<1x2xf32>
      %1506 = arith.subf %1407, %1505 : vector<1x2xf32>
      %1507 = arith.subf %1427, %1505 : vector<1x2xf32>
      %1508 = arith.subf %1447, %1505 : vector<1x2xf32>
      %1509 = arith.subf %1467, %1505 : vector<1x2xf32>
      %1510 = arith.maximumf %1408, %1428 : vector<1x2xf32>
      %1511 = arith.maximumf %1510, %1448 : vector<1x2xf32>
      %1512 = arith.maximumf %1511, %1468 : vector<1x2xf32>
      %1513 = arith.subf %1408, %1512 : vector<1x2xf32>
      %1514 = math.exp %1513 : vector<1x2xf32>
      %1515 = arith.subf %1428, %1512 : vector<1x2xf32>
      %1516 = math.exp %1515 : vector<1x2xf32>
      %1517 = arith.addf %1514, %1516 : vector<1x2xf32>
      %1518 = arith.subf %1448, %1512 : vector<1x2xf32>
      %1519 = math.exp %1518 : vector<1x2xf32>
      %1520 = arith.addf %1517, %1519 : vector<1x2xf32>
      %1521 = arith.subf %1468, %1512 : vector<1x2xf32>
      %1522 = math.exp %1521 : vector<1x2xf32>
      %1523 = arith.addf %1520, %1522 : vector<1x2xf32>
      %1524 = math.log %1523 : vector<1x2xf32>
      %1525 = arith.addf %1512, %1524 : vector<1x2xf32>
      %1526 = arith.subf %1408, %1525 : vector<1x2xf32>
      %1527 = arith.subf %1428, %1525 : vector<1x2xf32>
      %1528 = arith.subf %1448, %1525 : vector<1x2xf32>
      %1529 = arith.subf %1468, %1525 : vector<1x2xf32>
      %1530 = arith.maximumf %1409, %1429 : vector<1x2xf32>
      %1531 = arith.maximumf %1530, %1449 : vector<1x2xf32>
      %1532 = arith.maximumf %1531, %1469 : vector<1x2xf32>
      %1533 = arith.subf %1409, %1532 : vector<1x2xf32>
      %1534 = math.exp %1533 : vector<1x2xf32>
      %1535 = arith.subf %1429, %1532 : vector<1x2xf32>
      %1536 = math.exp %1535 : vector<1x2xf32>
      %1537 = arith.addf %1534, %1536 : vector<1x2xf32>
      %1538 = arith.subf %1449, %1532 : vector<1x2xf32>
      %1539 = math.exp %1538 : vector<1x2xf32>
      %1540 = arith.addf %1537, %1539 : vector<1x2xf32>
      %1541 = arith.subf %1469, %1532 : vector<1x2xf32>
      %1542 = math.exp %1541 : vector<1x2xf32>
      %1543 = arith.addf %1540, %1542 : vector<1x2xf32>
      %1544 = math.log %1543 : vector<1x2xf32>
      %1545 = arith.addf %1532, %1544 : vector<1x2xf32>
      %1546 = arith.subf %1409, %1545 : vector<1x2xf32>
      %1547 = arith.subf %1429, %1545 : vector<1x2xf32>
      %1548 = arith.subf %1449, %1545 : vector<1x2xf32>
      %1549 = arith.subf %1469, %1545 : vector<1x2xf32>
      %1550 = arith.maximumf %1486, %1506 : vector<1x2xf32>
      %1551 = arith.maximumf %1550, %1526 : vector<1x2xf32>
      %1552 = arith.maximumf %1551, %1546 : vector<1x2xf32>
      %1553 = arith.subf %1486, %1552 : vector<1x2xf32>
      %1554 = math.exp %1553 : vector<1x2xf32>
      %1555 = arith.subf %1506, %1552 : vector<1x2xf32>
      %1556 = math.exp %1555 : vector<1x2xf32>
      %1557 = arith.addf %1554, %1556 : vector<1x2xf32>
      %1558 = arith.subf %1526, %1552 : vector<1x2xf32>
      %1559 = math.exp %1558 : vector<1x2xf32>
      %1560 = arith.addf %1557, %1559 : vector<1x2xf32>
      %1561 = arith.subf %1546, %1552 : vector<1x2xf32>
      %1562 = math.exp %1561 : vector<1x2xf32>
      %1563 = arith.addf %1560, %1562 : vector<1x2xf32>
      %1564 = math.log %1563 : vector<1x2xf32>
      %1565 = arith.addf %1552, %1564 : vector<1x2xf32>
      %1566 = arith.subf %1486, %1565 : vector<1x2xf32>
      %1567 = arith.subf %1506, %1565 : vector<1x2xf32>
      %1568 = arith.subf %1526, %1565 : vector<1x2xf32>
      %1569 = arith.subf %1546, %1565 : vector<1x2xf32>
      %1570 = arith.maximumf %1487, %1507 : vector<1x2xf32>
      %1571 = arith.maximumf %1570, %1527 : vector<1x2xf32>
      %1572 = arith.maximumf %1571, %1547 : vector<1x2xf32>
      %1573 = arith.subf %1487, %1572 : vector<1x2xf32>
      %1574 = math.exp %1573 : vector<1x2xf32>
      %1575 = arith.subf %1507, %1572 : vector<1x2xf32>
      %1576 = math.exp %1575 : vector<1x2xf32>
      %1577 = arith.addf %1574, %1576 : vector<1x2xf32>
      %1578 = arith.subf %1527, %1572 : vector<1x2xf32>
      %1579 = math.exp %1578 : vector<1x2xf32>
      %1580 = arith.addf %1577, %1579 : vector<1x2xf32>
      %1581 = arith.subf %1547, %1572 : vector<1x2xf32>
      %1582 = math.exp %1581 : vector<1x2xf32>
      %1583 = arith.addf %1580, %1582 : vector<1x2xf32>
      %1584 = math.log %1583 : vector<1x2xf32>
      %1585 = arith.addf %1572, %1584 : vector<1x2xf32>
      %1586 = arith.subf %1487, %1585 : vector<1x2xf32>
      %1587 = arith.subf %1507, %1585 : vector<1x2xf32>
      %1588 = arith.subf %1527, %1585 : vector<1x2xf32>
      %1589 = arith.subf %1547, %1585 : vector<1x2xf32>
      %1590 = arith.maximumf %1488, %1508 : vector<1x2xf32>
      %1591 = arith.maximumf %1590, %1528 : vector<1x2xf32>
      %1592 = arith.maximumf %1591, %1548 : vector<1x2xf32>
      %1593 = arith.subf %1488, %1592 : vector<1x2xf32>
      %1594 = math.exp %1593 : vector<1x2xf32>
      %1595 = arith.subf %1508, %1592 : vector<1x2xf32>
      %1596 = math.exp %1595 : vector<1x2xf32>
      %1597 = arith.addf %1594, %1596 : vector<1x2xf32>
      %1598 = arith.subf %1528, %1592 : vector<1x2xf32>
      %1599 = math.exp %1598 : vector<1x2xf32>
      %1600 = arith.addf %1597, %1599 : vector<1x2xf32>
      %1601 = arith.subf %1548, %1592 : vector<1x2xf32>
      %1602 = math.exp %1601 : vector<1x2xf32>
      %1603 = arith.addf %1600, %1602 : vector<1x2xf32>
      %1604 = math.log %1603 : vector<1x2xf32>
      %1605 = arith.addf %1592, %1604 : vector<1x2xf32>
      %1606 = arith.subf %1488, %1605 : vector<1x2xf32>
      %1607 = arith.subf %1508, %1605 : vector<1x2xf32>
      %1608 = arith.subf %1528, %1605 : vector<1x2xf32>
      %1609 = arith.subf %1548, %1605 : vector<1x2xf32>
      %1610 = arith.maximumf %1489, %1509 : vector<1x2xf32>
      %1611 = arith.maximumf %1610, %1529 : vector<1x2xf32>
      %1612 = arith.maximumf %1611, %1549 : vector<1x2xf32>
      %1613 = arith.subf %1489, %1612 : vector<1x2xf32>
      %1614 = math.exp %1613 : vector<1x2xf32>
      %1615 = arith.subf %1509, %1612 : vector<1x2xf32>
      %1616 = math.exp %1615 : vector<1x2xf32>
      %1617 = arith.addf %1614, %1616 : vector<1x2xf32>
      %1618 = arith.subf %1529, %1612 : vector<1x2xf32>
      %1619 = math.exp %1618 : vector<1x2xf32>
      %1620 = arith.addf %1617, %1619 : vector<1x2xf32>
      %1621 = arith.subf %1549, %1612 : vector<1x2xf32>
      %1622 = math.exp %1621 : vector<1x2xf32>
      %1623 = arith.addf %1620, %1622 : vector<1x2xf32>
      %1624 = math.log %1623 : vector<1x2xf32>
      %1625 = arith.addf %1612, %1624 : vector<1x2xf32>
      %1626 = arith.subf %1489, %1625 : vector<1x2xf32>
      %1627 = arith.subf %1509, %1625 : vector<1x2xf32>
      %1628 = arith.subf %1529, %1625 : vector<1x2xf32>
      %1629 = arith.subf %1549, %1625 : vector<1x2xf32>
      %1630 = arith.maximumf %1566, %1586 : vector<1x2xf32>
      %1631 = arith.maximumf %1630, %1606 : vector<1x2xf32>
      %1632 = arith.maximumf %1631, %1626 : vector<1x2xf32>
      %1633 = arith.subf %1566, %1632 : vector<1x2xf32>
      %1634 = math.exp %1633 : vector<1x2xf32>
      %1635 = arith.subf %1586, %1632 : vector<1x2xf32>
      %1636 = math.exp %1635 : vector<1x2xf32>
      %1637 = arith.addf %1634, %1636 : vector<1x2xf32>
      %1638 = arith.subf %1606, %1632 : vector<1x2xf32>
      %1639 = math.exp %1638 : vector<1x2xf32>
      %1640 = arith.addf %1637, %1639 : vector<1x2xf32>
      %1641 = arith.subf %1626, %1632 : vector<1x2xf32>
      %1642 = math.exp %1641 : vector<1x2xf32>
      %1643 = arith.addf %1640, %1642 : vector<1x2xf32>
      %1644 = math.log %1643 : vector<1x2xf32>
      %1645 = arith.addf %1632, %1644 : vector<1x2xf32>
      %1646 = arith.subf %1566, %1645 : vector<1x2xf32>
      %1647 = arith.subf %1586, %1645 : vector<1x2xf32>
      %1648 = arith.subf %1606, %1645 : vector<1x2xf32>
      %1649 = arith.subf %1626, %1645 : vector<1x2xf32>
      %1650 = arith.maximumf %1567, %1587 : vector<1x2xf32>
      %1651 = arith.maximumf %1650, %1607 : vector<1x2xf32>
      %1652 = arith.maximumf %1651, %1627 : vector<1x2xf32>
      %1653 = arith.subf %1567, %1652 : vector<1x2xf32>
      %1654 = math.exp %1653 : vector<1x2xf32>
      %1655 = arith.subf %1587, %1652 : vector<1x2xf32>
      %1656 = math.exp %1655 : vector<1x2xf32>
      %1657 = arith.addf %1654, %1656 : vector<1x2xf32>
      %1658 = arith.subf %1607, %1652 : vector<1x2xf32>
      %1659 = math.exp %1658 : vector<1x2xf32>
      %1660 = arith.addf %1657, %1659 : vector<1x2xf32>
      %1661 = arith.subf %1627, %1652 : vector<1x2xf32>
      %1662 = math.exp %1661 : vector<1x2xf32>
      %1663 = arith.addf %1660, %1662 : vector<1x2xf32>
      %1664 = math.log %1663 : vector<1x2xf32>
      %1665 = arith.addf %1652, %1664 : vector<1x2xf32>
      %1666 = arith.subf %1567, %1665 : vector<1x2xf32>
      %1667 = arith.subf %1587, %1665 : vector<1x2xf32>
      %1668 = arith.subf %1607, %1665 : vector<1x2xf32>
      %1669 = arith.subf %1627, %1665 : vector<1x2xf32>
      %1670 = arith.maximumf %1568, %1588 : vector<1x2xf32>
      %1671 = arith.maximumf %1670, %1608 : vector<1x2xf32>
      %1672 = arith.maximumf %1671, %1628 : vector<1x2xf32>
      %1673 = arith.subf %1568, %1672 : vector<1x2xf32>
      %1674 = math.exp %1673 : vector<1x2xf32>
      %1675 = arith.subf %1588, %1672 : vector<1x2xf32>
      %1676 = math.exp %1675 : vector<1x2xf32>
      %1677 = arith.addf %1674, %1676 : vector<1x2xf32>
      %1678 = arith.subf %1608, %1672 : vector<1x2xf32>
      %1679 = math.exp %1678 : vector<1x2xf32>
      %1680 = arith.addf %1677, %1679 : vector<1x2xf32>
      %1681 = arith.subf %1628, %1672 : vector<1x2xf32>
      %1682 = math.exp %1681 : vector<1x2xf32>
      %1683 = arith.addf %1680, %1682 : vector<1x2xf32>
      %1684 = math.log %1683 : vector<1x2xf32>
      %1685 = arith.addf %1672, %1684 : vector<1x2xf32>
      %1686 = arith.subf %1568, %1685 : vector<1x2xf32>
      %1687 = arith.subf %1588, %1685 : vector<1x2xf32>
      %1688 = arith.subf %1608, %1685 : vector<1x2xf32>
      %1689 = arith.subf %1628, %1685 : vector<1x2xf32>
      %1690 = arith.maximumf %1569, %1589 : vector<1x2xf32>
      %1691 = arith.maximumf %1690, %1609 : vector<1x2xf32>
      %1692 = arith.maximumf %1691, %1629 : vector<1x2xf32>
      %1693 = arith.subf %1569, %1692 : vector<1x2xf32>
      %1694 = math.exp %1693 : vector<1x2xf32>
      %1695 = arith.subf %1589, %1692 : vector<1x2xf32>
      %1696 = math.exp %1695 : vector<1x2xf32>
      %1697 = arith.addf %1694, %1696 : vector<1x2xf32>
      %1698 = arith.subf %1609, %1692 : vector<1x2xf32>
      %1699 = math.exp %1698 : vector<1x2xf32>
      %1700 = arith.addf %1697, %1699 : vector<1x2xf32>
      %1701 = arith.subf %1629, %1692 : vector<1x2xf32>
      %1702 = math.exp %1701 : vector<1x2xf32>
      %1703 = arith.addf %1700, %1702 : vector<1x2xf32>
      %1704 = math.log %1703 : vector<1x2xf32>
      %1705 = arith.addf %1692, %1704 : vector<1x2xf32>
      %1706 = arith.subf %1569, %1705 : vector<1x2xf32>
      %1707 = arith.subf %1589, %1705 : vector<1x2xf32>
      %1708 = arith.subf %1609, %1705 : vector<1x2xf32>
      %1709 = arith.subf %1629, %1705 : vector<1x2xf32>
      %1710 = arith.maximumf %1646, %1666 : vector<1x2xf32>
      %1711 = arith.maximumf %1710, %1686 : vector<1x2xf32>
      %1712 = arith.maximumf %1711, %1706 : vector<1x2xf32>
      %1713 = arith.subf %1646, %1712 : vector<1x2xf32>
      %1714 = math.exp %1713 : vector<1x2xf32>
      %1715 = arith.subf %1666, %1712 : vector<1x2xf32>
      %1716 = math.exp %1715 : vector<1x2xf32>
      %1717 = arith.addf %1714, %1716 : vector<1x2xf32>
      %1718 = arith.subf %1686, %1712 : vector<1x2xf32>
      %1719 = math.exp %1718 : vector<1x2xf32>
      %1720 = arith.addf %1717, %1719 : vector<1x2xf32>
      %1721 = arith.subf %1706, %1712 : vector<1x2xf32>
      %1722 = math.exp %1721 : vector<1x2xf32>
      %1723 = arith.addf %1720, %1722 : vector<1x2xf32>
      %1724 = math.log %1723 : vector<1x2xf32>
      %1725 = arith.addf %1712, %1724 : vector<1x2xf32>
      %1726 = arith.subf %1646, %1725 : vector<1x2xf32>
      %1727 = arith.subf %1666, %1725 : vector<1x2xf32>
      %1728 = arith.subf %1686, %1725 : vector<1x2xf32>
      %1729 = arith.subf %1706, %1725 : vector<1x2xf32>
      %1730 = arith.maximumf %1647, %1667 : vector<1x2xf32>
      %1731 = arith.maximumf %1730, %1687 : vector<1x2xf32>
      %1732 = arith.maximumf %1731, %1707 : vector<1x2xf32>
      %1733 = arith.subf %1647, %1732 : vector<1x2xf32>
      %1734 = math.exp %1733 : vector<1x2xf32>
      %1735 = arith.subf %1667, %1732 : vector<1x2xf32>
      %1736 = math.exp %1735 : vector<1x2xf32>
      %1737 = arith.addf %1734, %1736 : vector<1x2xf32>
      %1738 = arith.subf %1687, %1732 : vector<1x2xf32>
      %1739 = math.exp %1738 : vector<1x2xf32>
      %1740 = arith.addf %1737, %1739 : vector<1x2xf32>
      %1741 = arith.subf %1707, %1732 : vector<1x2xf32>
      %1742 = math.exp %1741 : vector<1x2xf32>
      %1743 = arith.addf %1740, %1742 : vector<1x2xf32>
      %1744 = math.log %1743 : vector<1x2xf32>
      %1745 = arith.addf %1732, %1744 : vector<1x2xf32>
      %1746 = arith.subf %1647, %1745 : vector<1x2xf32>
      %1747 = arith.subf %1667, %1745 : vector<1x2xf32>
      %1748 = arith.subf %1687, %1745 : vector<1x2xf32>
      %1749 = arith.subf %1707, %1745 : vector<1x2xf32>
      %1750 = arith.maximumf %1648, %1668 : vector<1x2xf32>
      %1751 = arith.maximumf %1750, %1688 : vector<1x2xf32>
      %1752 = arith.maximumf %1751, %1708 : vector<1x2xf32>
      %1753 = arith.subf %1648, %1752 : vector<1x2xf32>
      %1754 = math.exp %1753 : vector<1x2xf32>
      %1755 = arith.subf %1668, %1752 : vector<1x2xf32>
      %1756 = math.exp %1755 : vector<1x2xf32>
      %1757 = arith.addf %1754, %1756 : vector<1x2xf32>
      %1758 = arith.subf %1688, %1752 : vector<1x2xf32>
      %1759 = math.exp %1758 : vector<1x2xf32>
      %1760 = arith.addf %1757, %1759 : vector<1x2xf32>
      %1761 = arith.subf %1708, %1752 : vector<1x2xf32>
      %1762 = math.exp %1761 : vector<1x2xf32>
      %1763 = arith.addf %1760, %1762 : vector<1x2xf32>
      %1764 = math.log %1763 : vector<1x2xf32>
      %1765 = arith.addf %1752, %1764 : vector<1x2xf32>
      %1766 = arith.subf %1648, %1765 : vector<1x2xf32>
      %1767 = arith.subf %1668, %1765 : vector<1x2xf32>
      %1768 = arith.subf %1688, %1765 : vector<1x2xf32>
      %1769 = arith.subf %1708, %1765 : vector<1x2xf32>
      %1770 = arith.maximumf %1649, %1669 : vector<1x2xf32>
      %1771 = arith.maximumf %1770, %1689 : vector<1x2xf32>
      %1772 = arith.maximumf %1771, %1709 : vector<1x2xf32>
      %1773 = arith.subf %1649, %1772 : vector<1x2xf32>
      %1774 = math.exp %1773 : vector<1x2xf32>
      %1775 = arith.subf %1669, %1772 : vector<1x2xf32>
      %1776 = math.exp %1775 : vector<1x2xf32>
      %1777 = arith.addf %1774, %1776 : vector<1x2xf32>
      %1778 = arith.subf %1689, %1772 : vector<1x2xf32>
      %1779 = math.exp %1778 : vector<1x2xf32>
      %1780 = arith.addf %1777, %1779 : vector<1x2xf32>
      %1781 = arith.subf %1709, %1772 : vector<1x2xf32>
      %1782 = math.exp %1781 : vector<1x2xf32>
      %1783 = arith.addf %1780, %1782 : vector<1x2xf32>
      %1784 = math.log %1783 : vector<1x2xf32>
      %1785 = arith.addf %1772, %1784 : vector<1x2xf32>
      %1786 = arith.subf %1649, %1785 : vector<1x2xf32>
      %1787 = arith.subf %1669, %1785 : vector<1x2xf32>
      %1788 = arith.subf %1689, %1785 : vector<1x2xf32>
      %1789 = arith.subf %1709, %1785 : vector<1x2xf32>
      %1790 = arith.maximumf %1726, %1746 : vector<1x2xf32>
      %1791 = arith.maximumf %1790, %1766 : vector<1x2xf32>
      %1792 = arith.maximumf %1791, %1786 : vector<1x2xf32>
      %1793 = arith.subf %1726, %1792 : vector<1x2xf32>
      %1794 = math.exp %1793 : vector<1x2xf32>
      %1795 = arith.subf %1746, %1792 : vector<1x2xf32>
      %1796 = math.exp %1795 : vector<1x2xf32>
      %1797 = arith.addf %1794, %1796 : vector<1x2xf32>
      %1798 = arith.subf %1766, %1792 : vector<1x2xf32>
      %1799 = math.exp %1798 : vector<1x2xf32>
      %1800 = arith.addf %1797, %1799 : vector<1x2xf32>
      %1801 = arith.subf %1786, %1792 : vector<1x2xf32>
      %1802 = math.exp %1801 : vector<1x2xf32>
      %1803 = arith.addf %1800, %1802 : vector<1x2xf32>
      %1804 = math.log %1803 : vector<1x2xf32>
      %1805 = arith.addf %1792, %1804 : vector<1x2xf32>
      %1806 = arith.subf %1726, %1805 : vector<1x2xf32>
      %1807 = arith.subf %1746, %1805 : vector<1x2xf32>
      %1808 = arith.subf %1766, %1805 : vector<1x2xf32>
      %1809 = arith.subf %1786, %1805 : vector<1x2xf32>
      %1810 = arith.maximumf %1727, %1747 : vector<1x2xf32>
      %1811 = arith.maximumf %1810, %1767 : vector<1x2xf32>
      %1812 = arith.maximumf %1811, %1787 : vector<1x2xf32>
      %1813 = arith.subf %1727, %1812 : vector<1x2xf32>
      %1814 = math.exp %1813 : vector<1x2xf32>
      %1815 = arith.subf %1747, %1812 : vector<1x2xf32>
      %1816 = math.exp %1815 : vector<1x2xf32>
      %1817 = arith.addf %1814, %1816 : vector<1x2xf32>
      %1818 = arith.subf %1767, %1812 : vector<1x2xf32>
      %1819 = math.exp %1818 : vector<1x2xf32>
      %1820 = arith.addf %1817, %1819 : vector<1x2xf32>
      %1821 = arith.subf %1787, %1812 : vector<1x2xf32>
      %1822 = math.exp %1821 : vector<1x2xf32>
      %1823 = arith.addf %1820, %1822 : vector<1x2xf32>
      %1824 = math.log %1823 : vector<1x2xf32>
      %1825 = arith.addf %1812, %1824 : vector<1x2xf32>
      %1826 = arith.subf %1727, %1825 : vector<1x2xf32>
      %1827 = arith.subf %1747, %1825 : vector<1x2xf32>
      %1828 = arith.subf %1767, %1825 : vector<1x2xf32>
      %1829 = arith.subf %1787, %1825 : vector<1x2xf32>
      %1830 = arith.maximumf %1728, %1748 : vector<1x2xf32>
      %1831 = arith.maximumf %1830, %1768 : vector<1x2xf32>
      %1832 = arith.maximumf %1831, %1788 : vector<1x2xf32>
      %1833 = arith.subf %1728, %1832 : vector<1x2xf32>
      %1834 = math.exp %1833 : vector<1x2xf32>
      %1835 = arith.subf %1748, %1832 : vector<1x2xf32>
      %1836 = math.exp %1835 : vector<1x2xf32>
      %1837 = arith.addf %1834, %1836 : vector<1x2xf32>
      %1838 = arith.subf %1768, %1832 : vector<1x2xf32>
      %1839 = math.exp %1838 : vector<1x2xf32>
      %1840 = arith.addf %1837, %1839 : vector<1x2xf32>
      %1841 = arith.subf %1788, %1832 : vector<1x2xf32>
      %1842 = math.exp %1841 : vector<1x2xf32>
      %1843 = arith.addf %1840, %1842 : vector<1x2xf32>
      %1844 = math.log %1843 : vector<1x2xf32>
      %1845 = arith.addf %1832, %1844 : vector<1x2xf32>
      %1846 = arith.subf %1728, %1845 : vector<1x2xf32>
      %1847 = arith.subf %1748, %1845 : vector<1x2xf32>
      %1848 = arith.subf %1768, %1845 : vector<1x2xf32>
      %1849 = arith.subf %1788, %1845 : vector<1x2xf32>
      %1850 = arith.maximumf %1729, %1749 : vector<1x2xf32>
      %1851 = arith.maximumf %1850, %1769 : vector<1x2xf32>
      %1852 = arith.maximumf %1851, %1789 : vector<1x2xf32>
      %1853 = arith.subf %1729, %1852 : vector<1x2xf32>
      %1854 = math.exp %1853 : vector<1x2xf32>
      %1855 = arith.subf %1749, %1852 : vector<1x2xf32>
      %1856 = math.exp %1855 : vector<1x2xf32>
      %1857 = arith.addf %1854, %1856 : vector<1x2xf32>
      %1858 = arith.subf %1769, %1852 : vector<1x2xf32>
      %1859 = math.exp %1858 : vector<1x2xf32>
      %1860 = arith.addf %1857, %1859 : vector<1x2xf32>
      %1861 = arith.subf %1789, %1852 : vector<1x2xf32>
      %1862 = math.exp %1861 : vector<1x2xf32>
      %1863 = arith.addf %1860, %1862 : vector<1x2xf32>
      %1864 = math.log %1863 : vector<1x2xf32>
      %1865 = arith.addf %1852, %1864 : vector<1x2xf32>
      %1866 = arith.subf %1729, %1865 : vector<1x2xf32>
      %1867 = arith.subf %1749, %1865 : vector<1x2xf32>
      %1868 = arith.subf %1769, %1865 : vector<1x2xf32>
      %1869 = arith.subf %1789, %1865 : vector<1x2xf32>
      %cst_194 = arith.constant 0.000000e+00 : f32
      %1870 = vector.broadcast %cst_194 : f32 to vector<1x2xf32>
      %1871 = math.exp %1806 : vector<1x2xf32>
      %c0_195 = arith.constant 0 : index
      %c0_196 = arith.constant 0 : index
      %1872 = vector.load %arg4[%c0_195, %c0_196] : memref<16x2xf32, #tpu.memory_space<vmem>>, vector<1x2xf32>
      tpu.vector_store %arg4[%c0_195, %c0_196], %1871 {strides = array<i32>} : memref<16x2xf32, #tpu.memory_space<vmem>>, vector<1x2xf32>,
      %cst_197 = arith.constant 1.000000e+00 : f32
      %1873 = vector.broadcast %cst_197 : f32 to vector<1x2xf32>
      %1874 = arith.mulf %1806, %1873 : vector<1x2xf32>
      %1875 = arith.addf %147, %1874 : vector<1x2xf32>
      %1876 = arith.mulf %1875, %1871 : vector<1x2xf32>
      %1877 = arith.addf %1870, %1876 : vector<1x2xf32>
      %1878 = math.exp %1807 : vector<1x2xf32>
      %c1_198 = arith.constant 1 : index
      %c0_199 = arith.constant 0 : index
      %1879 = vector.load %arg4[%c1_198, %c0_199] : memref<16x2xf32, #tpu.memory_space<vmem>>, vector<1x2xf32>
      tpu.vector_store %arg4[%c1_198, %c0_199], %1878 {strides = array<i32>} : memref<16x2xf32, #tpu.memory_space<vmem>>, vector<1x2xf32>,
      %cst_200 = arith.constant 1.000000e+00 : f32
      %1880 = vector.broadcast %cst_200 : f32 to vector<1x2xf32>
      %1881 = arith.mulf %1807, %1880 : vector<1x2xf32>
      %1882 = arith.addf %153, %1881 : vector<1x2xf32>
      %1883 = arith.mulf %1882, %1878 : vector<1x2xf32>
      %1884 = arith.addf %1877, %1883 : vector<1x2xf32>
      %1885 = math.exp %1808 : vector<1x2xf32>
      %c2_201 = arith.constant 2 : index
      %c0_202 = arith.constant 0 : index
      %1886 = vector.load %arg4[%c2_201, %c0_202] : memref<16x2xf32, #tpu.memory_space<vmem>>, vector<1x2xf32>
      tpu.vector_store %arg4[%c2_201, %c0_202], %1885 {strides = array<i32>} : memref<16x2xf32, #tpu.memory_space<vmem>>, vector<1x2xf32>,
      %cst_203 = arith.constant 1.000000e+00 : f32
      %1887 = vector.broadcast %cst_203 : f32 to vector<1x2xf32>
      %1888 = arith.mulf %1808, %1887 : vector<1x2xf32>
      %1889 = arith.addf %159, %1888 : vector<1x2xf32>
      %1890 = arith.mulf %1889, %1885 : vector<1x2xf32>
      %1891 = arith.addf %1884, %1890 : vector<1x2xf32>
      %1892 = math.exp %1809 : vector<1x2xf32>
      %c3_204 = arith.constant 3 : index
      %c0_205 = arith.constant 0 : index
      %1893 = vector.load %arg4[%c3_204, %c0_205] : memref<16x2xf32, #tpu.memory_space<vmem>>, vector<1x2xf32>
      tpu.vector_store %arg4[%c3_204, %c0_205], %1892 {strides = array<i32>} : memref<16x2xf32, #tpu.memory_space<vmem>>, vector<1x2xf32>,
      %cst_206 = arith.constant 1.000000e+00 : f32
      %1894 = vector.broadcast %cst_206 : f32 to vector<1x2xf32>
      %1895 = arith.mulf %1809, %1894 : vector<1x2xf32>
      %1896 = arith.addf %165, %1895 : vector<1x2xf32>
      %1897 = arith.mulf %1896, %1892 : vector<1x2xf32>
      %1898 = arith.addf %1891, %1897 : vector<1x2xf32>
      %1899 = math.exp %1826 : vector<1x2xf32>
      %c4_207 = arith.constant 4 : index
      %c0_208 = arith.constant 0 : index
      %1900 = vector.load %arg4[%c4_207, %c0_208] : memref<16x2xf32, #tpu.memory_space<vmem>>, vector<1x2xf32>
      tpu.vector_store %arg4[%c4_207, %c0_208], %1899 {strides = array<i32>} : memref<16x2xf32, #tpu.memory_space<vmem>>, vector<1x2xf32>,
      %cst_209 = arith.constant 1.000000e+00 : f32
      %1901 = vector.broadcast %cst_209 : f32 to vector<1x2xf32>
      %1902 = arith.mulf %1826, %1901 : vector<1x2xf32>
      %1903 = arith.addf %171, %1902 : vector<1x2xf32>
      %1904 = arith.mulf %1903, %1899 : vector<1x2xf32>
      %1905 = arith.addf %1898, %1904 : vector<1x2xf32>
      %1906 = math.exp %1827 : vector<1x2xf32>
      %c5_210 = arith.constant 5 : index
      %c0_211 = arith.constant 0 : index
      %1907 = vector.load %arg4[%c5_210, %c0_211] : memref<16x2xf32, #tpu.memory_space<vmem>>, vector<1x2xf32>
      tpu.vector_store %arg4[%c5_210, %c0_211], %1906 {strides = array<i32>} : memref<16x2xf32, #tpu.memory_space<vmem>>, vector<1x2xf32>,
      %cst_212 = arith.constant 1.000000e+00 : f32
      %1908 = vector.broadcast %cst_212 : f32 to vector<1x2xf32>
      %1909 = arith.mulf %1827, %1908 : vector<1x2xf32>
      %1910 = arith.addf %177, %1909 : vector<1x2xf32>
      %1911 = arith.mulf %1910, %1906 : vector<1x2xf32>
      %1912 = arith.addf %1905, %1911 : vector<1x2xf32>
      %1913 = math.exp %1828 : vector<1x2xf32>
      %c6_213 = arith.constant 6 : index
      %c0_214 = arith.constant 0 : index
      %1914 = vector.load %arg4[%c6_213, %c0_214] : memref<16x2xf32, #tpu.memory_space<vmem>>, vector<1x2xf32>
      tpu.vector_store %arg4[%c6_213, %c0_214], %1913 {strides = array<i32>} : memref<16x2xf32, #tpu.memory_space<vmem>>, vector<1x2xf32>,
      %cst_215 = arith.constant 1.000000e+00 : f32
      %1915 = vector.broadcast %cst_215 : f32 to vector<1x2xf32>
      %1916 = arith.mulf %1828, %1915 : vector<1x2xf32>
      %1917 = arith.addf %183, %1916 : vector<1x2xf32>
      %1918 = arith.mulf %1917, %1913 : vector<1x2xf32>
      %1919 = arith.addf %1912, %1918 : vector<1x2xf32>
      %1920 = math.exp %1829 : vector<1x2xf32>
      %c7_216 = arith.constant 7 : index
      %c0_217 = arith.constant 0 : index
      %1921 = vector.load %arg4[%c7_216, %c0_217] : memref<16x2xf32, #tpu.memory_space<vmem>>, vector<1x2xf32>
      tpu.vector_store %arg4[%c7_216, %c0_217], %1920 {strides = array<i32>} : memref<16x2xf32, #tpu.memory_space<vmem>>, vector<1x2xf32>,
      %cst_218 = arith.constant 1.000000e+00 : f32
      %1922 = vector.broadcast %cst_218 : f32 to vector<1x2xf32>
      %1923 = arith.mulf %1829, %1922 : vector<1x2xf32>
      %1924 = arith.addf %189, %1923 : vector<1x2xf32>
      %1925 = arith.mulf %1924, %1920 : vector<1x2xf32>
      %1926 = arith.addf %1919, %1925 : vector<1x2xf32>
      %1927 = math.exp %1846 : vector<1x2xf32>
      %c8_219 = arith.constant 8 : index
      %c0_220 = arith.constant 0 : index
      %1928 = vector.load %arg4[%c8_219, %c0_220] : memref<16x2xf32, #tpu.memory_space<vmem>>, vector<1x2xf32>
      tpu.vector_store %arg4[%c8_219, %c0_220], %1927 {strides = array<i32>} : memref<16x2xf32, #tpu.memory_space<vmem>>, vector<1x2xf32>,
      %cst_221 = arith.constant 1.000000e+00 : f32
      %1929 = vector.broadcast %cst_221 : f32 to vector<1x2xf32>
      %1930 = arith.mulf %1846, %1929 : vector<1x2xf32>
      %1931 = arith.addf %195, %1930 : vector<1x2xf32>
      %1932 = arith.mulf %1931, %1927 : vector<1x2xf32>
      %1933 = arith.addf %1926, %1932 : vector<1x2xf32>
      %1934 = math.exp %1847 : vector<1x2xf32>
      %c9_222 = arith.constant 9 : index
      %c0_223 = arith.constant 0 : index
      %1935 = vector.load %arg4[%c9_222, %c0_223] : memref<16x2xf32, #tpu.memory_space<vmem>>, vector<1x2xf32>
      tpu.vector_store %arg4[%c9_222, %c0_223], %1934 {strides = array<i32>} : memref<16x2xf32, #tpu.memory_space<vmem>>, vector<1x2xf32>,
      %cst_224 = arith.constant 1.000000e+00 : f32
      %1936 = vector.broadcast %cst_224 : f32 to vector<1x2xf32>
      %1937 = arith.mulf %1847, %1936 : vector<1x2xf32>
      %1938 = arith.addf %201, %1937 : vector<1x2xf32>
      %1939 = arith.mulf %1938, %1934 : vector<1x2xf32>
      %1940 = arith.addf %1933, %1939 : vector<1x2xf32>
      %1941 = math.exp %1848 : vector<1x2xf32>
      %c10_225 = arith.constant 10 : index
      %c0_226 = arith.constant 0 : index
      %1942 = vector.load %arg4[%c10_225, %c0_226] : memref<16x2xf32, #tpu.memory_space<vmem>>, vector<1x2xf32>
      tpu.vector_store %arg4[%c10_225, %c0_226], %1941 {strides = array<i32>} : memref<16x2xf32, #tpu.memory_space<vmem>>, vector<1x2xf32>,
      %cst_227 = arith.constant 1.000000e+00 : f32
      %1943 = vector.broadcast %cst_227 : f32 to vector<1x2xf32>
      %1944 = arith.mulf %1848, %1943 : vector<1x2xf32>
      %1945 = arith.addf %207, %1944 : vector<1x2xf32>
      %1946 = arith.mulf %1945, %1941 : vector<1x2xf32>
      %1947 = arith.addf %1940, %1946 : vector<1x2xf32>
      %1948 = math.exp %1849 : vector<1x2xf32>
      %c11_228 = arith.constant 11 : index
      %c0_229 = arith.constant 0 : index
      %1949 = vector.load %arg4[%c11_228, %c0_229] : memref<16x2xf32, #tpu.memory_space<vmem>>, vector<1x2xf32>
      tpu.vector_store %arg4[%c11_228, %c0_229], %1948 {strides = array<i32>} : memref<16x2xf32, #tpu.memory_space<vmem>>, vector<1x2xf32>,
      %cst_230 = arith.constant 1.000000e+00 : f32
      %1950 = vector.broadcast %cst_230 : f32 to vector<1x2xf32>
      %1951 = arith.mulf %1849, %1950 : vector<1x2xf32>
      %1952 = arith.addf %213, %1951 : vector<1x2xf32>
      %1953 = arith.mulf %1952, %1948 : vector<1x2xf32>
      %1954 = arith.addf %1947, %1953 : vector<1x2xf32>
      %1955 = math.exp %1866 : vector<1x2xf32>
      %c12_231 = arith.constant 12 : index
      %c0_232 = arith.constant 0 : index
      %1956 = vector.load %arg4[%c12_231, %c0_232] : memref<16x2xf32, #tpu.memory_space<vmem>>, vector<1x2xf32>
      tpu.vector_store %arg4[%c12_231, %c0_232], %1955 {strides = array<i32>} : memref<16x2xf32, #tpu.memory_space<vmem>>, vector<1x2xf32>,
      %cst_233 = arith.constant 1.000000e+00 : f32
      %1957 = vector.broadcast %cst_233 : f32 to vector<1x2xf32>
      %1958 = arith.mulf %1866, %1957 : vector<1x2xf32>
      %1959 = arith.addf %219, %1958 : vector<1x2xf32>
      %1960 = arith.mulf %1959, %1955 : vector<1x2xf32>
      %1961 = arith.addf %1954, %1960 : vector<1x2xf32>
      %1962 = math.exp %1867 : vector<1x2xf32>
      %c13_234 = arith.constant 13 : index
      %c0_235 = arith.constant 0 : index
      %1963 = vector.load %arg4[%c13_234, %c0_235] : memref<16x2xf32, #tpu.memory_space<vmem>>, vector<1x2xf32>
      tpu.vector_store %arg4[%c13_234, %c0_235], %1962 {strides = array<i32>} : memref<16x2xf32, #tpu.memory_space<vmem>>, vector<1x2xf32>,
      %cst_236 = arith.constant 1.000000e+00 : f32
      %1964 = vector.broadcast %cst_236 : f32 to vector<1x2xf32>
      %1965 = arith.mulf %1867, %1964 : vector<1x2xf32>
      %1966 = arith.addf %225, %1965 : vector<1x2xf32>
      %1967 = arith.mulf %1966, %1962 : vector<1x2xf32>
      %1968 = arith.addf %1961, %1967 : vector<1x2xf32>
      %1969 = math.exp %1868 : vector<1x2xf32>
      %c14_237 = arith.constant 14 : index
      %c0_238 = arith.constant 0 : index
      %1970 = vector.load %arg4[%c14_237, %c0_238] : memref<16x2xf32, #tpu.memory_space<vmem>>, vector<1x2xf32>
      tpu.vector_store %arg4[%c14_237, %c0_238], %1969 {strides = array<i32>} : memref<16x2xf32, #tpu.memory_space<vmem>>, vector<1x2xf32>,
      %cst_239 = arith.constant 1.000000e+00 : f32
      %1971 = vector.broadcast %cst_239 : f32 to vector<1x2xf32>
      %1972 = arith.mulf %1868, %1971 : vector<1x2xf32>
      %1973 = arith.addf %231, %1972 : vector<1x2xf32>
      %1974 = arith.mulf %1973, %1969 : vector<1x2xf32>
      %1975 = arith.addf %1968, %1974 : vector<1x2xf32>
      %1976 = math.exp %1869 : vector<1x2xf32>
      %c15_240 = arith.constant 15 : index
      %c0_241 = arith.constant 0 : index
      %1977 = vector.load %arg4[%c15_240, %c0_241] : memref<16x2xf32, #tpu.memory_space<vmem>>, vector<1x2xf32>
      tpu.vector_store %arg4[%c15_240, %c0_241], %1976 {strides = array<i32>} : memref<16x2xf32, #tpu.memory_space<vmem>>, vector<1x2xf32>,
      %cst_242 = arith.constant 1.000000e+00 : f32
      %1978 = vector.broadcast %cst_242 : f32 to vector<1x2xf32>
      %1979 = arith.mulf %1869, %1978 : vector<1x2xf32>
      %1980 = arith.addf %237, %1979 : vector<1x2xf32>
      %1981 = arith.mulf %1980, %1976 : vector<1x2xf32>
      %1982 = arith.addf %1975, %1981 : vector<1x2xf32>
      %c0_243 = arith.constant 0 : index
      %c0_244 = arith.constant 0 : index
      %1983 = vector.load %arg5[%c0_243, %c0_244] : memref<1x2xf32, #tpu.memory_space<vmem>>, vector<1x2xf32>
      tpu.vector_store %arg5[%c0_243, %c0_244], %1982 {strides = array<i32>} : memref<1x2xf32, #tpu.memory_space<vmem>>, vector<1x2xf32>,
    } else {
    }
    return
  }
  func.func @transform_0(%arg0: i32, %arg1: i32) -> (i32, i32) {
    %c0_i32 = arith.constant 0 : i32
    return %arg0, %arg1 : i32, i32
  }
  func.func @transform_1(%arg0: i32, %arg1: i32) -> (i32, i32) {
    %c0_i32 = arith.constant 0 : i32
    return %arg0, %arg1 : i32, i32
  }
  func.func @transform_2(%arg0: i32, %arg1: i32) -> (i32, i32) {
    %c0_i32 = arith.constant 0 : i32
    %c0_i32_0 = arith.constant 0 : i32
    return %c0_i32, %arg0 : i32, i32
  }
  func.func @transform_3(%arg0: i32, %arg1: i32) -> (i32, i32) {
    %c0_i32 = arith.constant 0 : i32
    %c0_i32_0 = arith.constant 0 : i32
    return %c0_i32, %arg0 : i32, i32
  }
}

</mosaic_0001>

<bundles_post_ra>
// kernel: tpu_custom_call.1
= control target key start
LH: loop header
LB: loop body
LE: loop exit
PB: predicated region body
PF: predicated region fallthrough
CT: control target
= control target key end

     0   :  { %9 = vsyncpa [#allocation4], 0  ;;  %s5833_s0 = inlined_call_operand.hbm [shape: f32[8,128], index: 0, kind: input, shape index: {}]   ;;  %s5834_s1 = inlined_call_operand.hbm [shape: f32[8,128], index: 1, kind: input, shape index: {}]   ;;  %s5835_s2 = inlined_call_operand.vmem [shape: f32[16,2], index: 2, kind: output, shape index: {0}]   ;;  %s5836_s3 = inlined_call_operand.hbm [shape: f32[1,2], index: 3, kind: output, shape index: {1}]  }
   0x1   :  { %10 = vsyncpa [#allocation7], 0 }
   0x2   :  { %11 = vsyncpa [#allocation5], 0  ;;  %s3397_s12 = smov [#allocation3]   ;;  %s3398_s14 = smov [#allocation6]  }
   0x3   :  { %s18_s13 = sshll.u32 %s3397_s12, 4  ;;  %s28_s15 = sshll.u32 %s3398_s14, 4  ;;  %s19_s13 = int_to_ptr.vmem [resolvable:$true] %s18_s13  ;;  %s29_s15 = int_to_ptr.vmem [resolvable:$true] %s28_s15 }
   0x4   :  { %s3325_s18 = scalar_lea.hbm %s5833_s0, 128 }
   0x5   :  { %p3326_p0 = scmp.ne.s32.totalorder %s5833_s0, %s3325_s18  ;;  %p3329_p1 = scmp.lt.u32.totalorder %s3325_s18, %s5833_s0 }
   0x7   :  { %p3331_p2 = pnand %p3329_p1, %p3326_p0 }
   0x9   :  { %3334 = shalt.err (!%p3331_p2)
}
   0xa   :  { %s3335_s23 = scalar_lea.vmem %s19_s13, 128  ;;  %p3340_p4 = scmp.lt.s32.totalorder %s19_s13, %s19_s13 }
   0xb   :  { %p3336_p3 = scmp.ne.s32.totalorder %s19_s13, %s3335_s23  ;;  %p3341_p5 = scmp.lt.s32.totalorder %s3335_s23, %s3335_s23 }
   0xd   :  { %p3342_p6 = por %p3341_p5, %p3340_p4 }
   0xf   :  { %p3343_p7 = pnand %p3342_p6, %p3336_p3 }
  0x11   :  { %3346 = shalt.err (!%p3343_p7)
}
  0x12   :  { %21 = dma.hbm_to_vmem [thread:$0]  %s5833_s0, 128, %s19_s13, [#allocation4]  }
  0x13   :  { %s3347_s28 = scalar_lea.hbm %s5834_s1, 128 }
  0x14   :  { %p3348_p8 = scmp.ne.s32.totalorder %s5834_s1, %s3347_s28  ;;  %p3351_p9 = scmp.lt.u32.totalorder %s3347_s28, %s5834_s1 }
  0x16   :  { %p3353_p10 = pnand %p3351_p9, %p3348_p8 }
  0x18   :  { %3356 = shalt.err (!%p3353_p10)
}
  0x19   :  { %s3357_s6 = scalar_lea.vmem %s29_s15, 128  ;;  %p3362_p12 = scmp.lt.s32.totalorder %s29_s15, %s29_s15 }
  0x1a   :  { %p3358_p11 = scmp.ne.s32.totalorder %s29_s15, %s3357_s6  ;;  %p3363_p13 = scmp.lt.s32.totalorder %s3357_s6, %s3357_s6 }
  0x1c   :  { %p3364_p0 = por %p3363_p13, %p3362_p12 }
  0x1e   :  { %p3365_p1 = pnand %p3364_p0, %p3358_p11 }
  0x20   :  { %3368 = shalt.err (!%p3365_p1)
}
  0x21   :  { %31 = dma.hbm_to_vmem [thread:$0]  %s5834_s1, 128, %s29_s15, [#allocation7]  }
  0x22   :  { %3391 = dma.done.wait [#allocation4], 128  }
  0x23   :  { %3392 = vsyncadd [#allocation4], 4294967168 }
  0x24   :  { %3393 = dma.done.wait [#allocation7], 128  }
  0x25   :  { %3394 = vsyncadd [#allocation7], 4294967168  ;;  %v3399_v0 = vmov 0.0   ;;  %v60_v1 = vld [vmem:[#allocation3 + $0x1] ss:$4 sm:$0x3] }
  0x26   :  { %46 = vst [vmem:[#allocation2 + $0x8] sm:$0x3] %v3399_v0  ;;  %42 = vst [vmem:[#allocation2] sm:$0x3] %v3399_v0  ;;  %vm171_vm0 = vcmask 1041408   ;;  %vm2277_vm1 = vcmask 8192  }
  0x27   :  { %43 = vst [vmem:[#allocation2 + $0x2] sm:$0x3] %v3399_v0  ;;  %44 = vst [vmem:[#allocation2 + $0x4] sm:$0x3] %v3399_v0 }
  0x28   :  { %45 = vst [vmem:[#allocation2 + $0x6] sm:$0x3] %v3399_v0  ;;  %47 = vst [vmem:[#allocation2 + $0xa] sm:$0x3] %v3399_v0 }
  0x29   :  { %48 = vst [vmem:[#allocation2 + $0xc] sm:$0x3] %v3399_v0  ;;  %49 = vst [vmem:[#allocation2 + $0xe] sm:$0x3] %v3399_v0 }
  0x2a   :  { %50 = vst [vmem:[#allocation2 + $0x10] sm:$0x3] %v3399_v0  ;;  %51 = vst [vmem:[#allocation2 + $0x12] sm:$0x3] %v3399_v0 }
  0x2b   :  { %52 = vst [vmem:[#allocation2 + $0x14] sm:$0x3] %v3399_v0  ;;  %53 = vst [vmem:[#allocation2 + $0x16] sm:$0x3] %v3399_v0 }
  0x2c   :  { %54 = vst [vmem:[#allocation2 + $0x18] sm:$0x3] %v3399_v0  ;;  %55 = vst [vmem:[#allocation2 + $0x1a] sm:$0x3] %v3399_v0 }
  0x2d   :  { %56 = vst [vmem:[#allocation2 + $0x1c] sm:$0x3] %v3399_v0  ;;  %57 = vst [vmem:[#allocation2 + $0x1e] sm:$0x3] %v3399_v0  ;;  %v120_v5 = vld [vmem:[#allocation2 + $0x8] sm:$0x3] }
  0x2e   :  { %v65_v2 = vld [vmem:[#allocation6] ss:$4 sm:$0x3]  ;;  %v58_v4 = vld [vmem:[#allocation3] ss:$4 sm:$0x3] }
  0x2f   :  { %v80_v3 = vsub.f32 %v60_v1, %v65_v2  ;;  %v72_v6 = vsub.f32 %v58_v4, %v65_v2  ;;  %v67_v7 = vld [vmem:[#allocation6 + $0x1] ss:$4 sm:$0x3]  ;;  %v104_v9 = vld [vmem:[#allocation2] sm:$0x3] }
  0x30   :  { %v82_v10 = vsub.f32 %v60_v1, %v67_v7  ;;  %v124_v11 = vld [vmem:[#allocation2 + $0xa] sm:$0x3]  ;;  %v74_v12 = vsub.f32 %v58_v4, %v67_v7  ;;  %v108_v14 = vld [vmem:[#allocation2 + $0x2] sm:$0x3]  ;;  %v128_v22 = vld [vmem:[#allocation2 + $0xc] sm:$0x3] }
  0x31   :  { %v81_v8 = vmul.f32 %v80_v3, %v80_v3  ;;  %v73_v13 = vmul.f32 %v72_v6, %v72_v6  ;;  %v69_v15 = vld [vmem:[#allocation6 + $0x2] ss:$4 sm:$0x3]  ;;  %v62_v20 = vld [vmem:[#allocation3 + $0x2] ss:$4 sm:$0x3] }
  0x32   :  { %v83_v17 = vmul.f32 %v82_v10, %v82_v10  ;;  %v75_v18 = vmul.f32 %v74_v12, %v74_v12  ;;  %v84_v19 = vsub.f32 %v60_v1, %v69_v15  ;;  %v76_v23 = vsub.f32 %v58_v4, %v69_v15  ;;  %v71_v26 = vld [vmem:[#allocation6 + $0x3] ss:$4 sm:$0x3]  ;;  %v112_v30 = vld [vmem:[#allocation2 + $0x4] sm:$0x3] }
  0x33   :  { %v121_v16 = vadd.f32 %v120_v5, %v81_v8  ;;  %v105_v21 = vadd.f32 %v104_v9, %v73_v13  ;;  %v90_v24 = vsub.f32 %v62_v20, %v67_v7  ;;  %v88_v25 = vsub.f32 %v62_v20, %v65_v2  ;;  %v140_v31 = vld [vmem:[#allocation2 + $0x12] sm:$0x3]  ;;  %v136_v32 = vld [vmem:[#allocation2 + $0x10] sm:$0x3]  ;;  %v132_v37 = vld [vmem:[#allocation2 + $0xe] sm:$0x3] }
  0x34   :  { %v125_v27 = vadd.f32 %v124_v11, %v83_v17  ;;  %v109_v28 = vadd.f32 %v108_v14, %v75_v18  ;;  %v85_v29 = vmul.f32 %v84_v19, %v84_v19  ;;  %v86_v33 = vsub.f32 %v60_v1, %v71_v26  ;;  %v64_v39 = vld [vmem:[#allocation3 + $0x3] ss:$4 sm:$0x3]  ;;  %v152_v49 = vld [vmem:[#allocation2 + $0x18] sm:$0x3] }
  0x35   :  { %122 = vst [vmem:[#allocation2 + $0x8] sm:$0x3] %v121_v16  ;;  %106 = vst [vmem:[#allocation2] sm:$0x3] %v105_v21  ;;  %v77_v34 = vmul.f32 %v76_v23, %v76_v23  ;;  %v91_v35 = vmul.f32 %v90_v24, %v90_v24  ;;  %v89_v36 = vmul.f32 %v88_v25, %v88_v25  ;;  %v116_v42 = vld [vmem:[#allocation2 + $0x6] sm:$0x3] }
  0x36   :  { %v78_v38 = vsub.f32 %v58_v4, %v71_v26  ;;  %126 = vst [vmem:[#allocation2 + $0xa] sm:$0x3] %v125_v27  ;;  %110 = vst [vmem:[#allocation2 + $0x2] sm:$0x3] %v109_v28  ;;  %v129_v40 = vadd.f32 %v128_v22, %v85_v29  ;;  %v87_v41 = vmul.f32 %v86_v33, %v86_v33  ;;  %v144_v50 = vld [vmem:[#allocation2 + $0x14] sm:$0x3] }
  0x37   :  { %v96_v43 = vsub.f32 %v64_v39, %v65_v2  ;;  %v92_v44 = vsub.f32 %v62_v20, %v69_v15  ;;  %v113_v45 = vadd.f32 %v112_v30, %v77_v34  ;;  %v141_v46 = vadd.f32 %v140_v31, %v91_v35  ;;  %v148_v56 = vld [vmem:[#allocation2 + $0x16] sm:$0x3]  ;;  %v156_v63 = vld [vmem:[#allocation2 + $0x1a] sm:$0x3]  ;;  %v164_v0 = vld [vmem:[#allocation2 + $0x1e] sm:$0x3] }
  0x38   :  { %v137_v47 = vadd.f32 %v136_v32, %v89_v36  ;;  %v79_v48 = vmul.f32 %v78_v38, %v78_v38  ;;  %130 = vst [vmem:[#allocation2 + $0xc] sm:$0x3] %v129_v40  ;;  %v133_v51 = vadd.f32 %v132_v37, %v87_v41  ;;  %v94_v54 = vsub.f32 %v62_v20, %v71_v26  ;;  %v160_v1 = vld [vmem:[#allocation2 + $0x1c] sm:$0x3] }
  0x39   :  { %v97_v52 = vmul.f32 %v96_v43, %v96_v43  ;;  %v93_v53 = vmul.f32 %v92_v44, %v92_v44  ;;  %114 = vst [vmem:[#allocation2 + $0x4] sm:$0x3] %v113_v45  ;;  %142 = vst [vmem:[#allocation2 + $0x12] sm:$0x3] %v141_v46  ;;  %v98_v57 = vsub.f32 %v64_v39, %v67_v7 }
  0x3a   :  { %138 = vst [vmem:[#allocation2 + $0x10] sm:$0x3] %v137_v47  ;;  %v117_v55 = vadd.f32 %v116_v42, %v79_v48  ;;  %v102_v58 = vsub.f32 %v64_v39, %v71_v26  ;;  %v100_v59 = vsub.f32 %v64_v39, %v69_v15  ;;  %134 = vst [vmem:[#allocation2 + $0xe] sm:$0x3] %v133_v51 }
  0x3b   :  { %v153_v60 = vadd.f32 %v152_v49, %v97_v52  ;;  %v145_v61 = vadd.f32 %v144_v50, %v93_v53  ;;  %v95_v62 = vmul.f32 %v94_v54, %v94_v54  ;;  %v99_v3 = vmul.f32 %v98_v57, %v98_v57 }
  0x3c   :  { %v191_v2 = vld [vmem:[#allocation2 + $0x8] sm:$0x3]  ;;  %118 = vst [vmem:[#allocation2 + $0x6] sm:$0x3] %v117_v55  ;;  %v103_v4 = vmul.f32 %v102_v58, %v102_v58  ;;  %v101_v5 = vmul.f32 %v100_v59, %v100_v59  ;;  %v170_v8 = vld [vmem:[#allocation2] sm:$0x3] }
  0x3d   :  { %v192_v6 = vsel %vm171_vm0, %v191_v2, 0.0  ;;  %154 = vst [vmem:[#allocation2 + $0x18] sm:$0x3] %v153_v60  ;;  %146 = vst [vmem:[#allocation2 + $0x14] sm:$0x3] %v145_v61  ;;  %v149_v7 = vadd.f32 %v148_v56, %v95_v62  ;;  %v172_v9 = vsel %vm171_vm0, %v170_v8, 0.0  ;;  %v157_v12 = vadd.f32 %v156_v63, %v99_v3 }
  0x3e   :  { %193 = vadd.xlane.f32.xlu1 %v192_v6  ;;  %v196_v10 = vld [vmem:[#allocation2 + $0xa] sm:$0x3]  ;;  %v176_v11 = vld [vmem:[#allocation2 + $0x2] sm:$0x3]  ;;  %v165_v13 = vadd.f32 %v164_v0, %v103_v4  ;;  %v161_v14 = vadd.f32 %v160_v1, %v101_v5  ;;  %173 = vadd.xlane.f32.xlu0 %v172_v9 }
  0x3f   :  { %v197_v15 = vsel %vm171_vm0, %v196_v10, 0.0  ;;  %150 = vst [vmem:[#allocation2 + $0x16] sm:$0x3] %v149_v7  ;;  %v177_v16 = vsel %vm171_vm0, %v176_v11, 0.0  ;;  %v201_v17 = vld [vmem:[#allocation2 + $0xc] sm:$0x3] }
  0x40   :  { %158 = vst [vmem:[#allocation2 + $0x1a] sm:$0x3] %v157_v12  ;;  %166 = vst [vmem:[#allocation2 + $0x1e] sm:$0x3] %v165_v13  ;;  %v181_v18 = vld [vmem:[#allocation2 + $0x4] sm:$0x3] }
  0x41   :  { %162 = vst [vmem:[#allocation2 + $0x1c] sm:$0x3] %v161_v14  ;;  %v202_v19 = vsel %vm171_vm0, %v201_v17, 0.0  ;;  %v182_v20 = vsel %vm171_vm0, %v181_v18, 0.0  ;;  %v216_v21 = vld [vmem:[#allocation2 + $0x12] sm:$0x3] }
  0x42   :  { %198 = vadd.xlane.f32.xlu1 %v197_v15  ;;  %178 = vadd.xlane.f32.xlu0 %v177_v16  ;;  %v211_v22 = vld [vmem:[#allocation2 + $0x10] sm:$0x3]  ;;  %v217_v23 = vsel %vm171_vm0, %v216_v21, 0.0  ;;  %v206_v25 = vld [vmem:[#allocation2 + $0xe] sm:$0x3] }
  0x43   :  { %v212_v24 = vsel %vm171_vm0, %v211_v22, 0.0  ;;  %v186_v26 = vld [vmem:[#allocation2 + $0x6] sm:$0x3]  ;;  %v207_v27 = vsel %vm171_vm0, %v206_v25, 0.0 }
  0x44   :  { %v187_v28 = vsel %vm171_vm0, %v186_v26, 0.0  ;;  %v231_v29 = vld [vmem:[#allocation2 + $0x18] sm:$0x3]  ;;  %v221_v30 = vld [vmem:[#allocation2 + $0x14] sm:$0x3] }
  0x45   :  { %v232_v31 = vsel %vm171_vm0, %v231_v29, 0.0  ;;  %v222_v32 = vsel %vm171_vm0, %v221_v30, 0.0 }
  0x46   :  { %203 = vadd.xlane.f32.xlu1 %v202_v19  ;;  %183 = vadd.xlane.f32.xlu0 %v182_v20  ;;  %v226_v33 = vld [vmem:[#allocation2 + $0x16] sm:$0x3] }
  0x47   :  { %v236_v34 = vld [vmem:[#allocation2 + $0x1a] sm:$0x3]  ;;  %v227_v35 = vsel %vm171_vm0, %v226_v33, 0.0  ;;  %v246_v37 = vld [vmem:[#allocation2 + $0x1e] sm:$0x3] }
  0x48   :  { %v237_v36 = vsel %vm171_vm0, %v236_v34, 0.0  ;;  %v241_v38 = vld [vmem:[#allocation2 + $0x1c] sm:$0x3]  ;;  %v247_v39 = vsel %vm171_vm0, %v246_v37, 0.0 }
  0x49   :  { %v242_v40 = vsel %vm171_vm0, %v241_v38, 0.0 }
  0x4a   :  { %218 = vadd.xlane.f32.xlu1 %v217_v23  ;;  %213 = vadd.xlane.f32.xlu0 %v212_v24 }
  0x4e   :  { %208 = vadd.xlane.f32.xlu1 %v207_v27  ;;  %188 = vadd.xlane.f32.xlu0 %v187_v28 }
  0x52   :  { %233 = vadd.xlane.f32.xlu1 %v232_v31  ;;  %223 = vadd.xlane.f32.xlu0 %v222_v32 }
  0x56   :  { %228 = vadd.xlane.f32.xlu1 %v227_v35  ;;  %238 = vadd.xlane.f32.xlu0 %v237_v36 }
  0x5a   :  { %248 = vadd.xlane.f32.xlu1 %v247_v39  ;;  %243 = vadd.xlane.f32.xlu0 %v242_v40 }
  0xcb   :  { %v194_v41 = vpop.xlane.xlu1 %193  ;;  %v174_v42 = vpop.xlane.xlu0 %173 }
  0xcc   :  { %v3461_v49 = vmul.f32 0.0078125, %v174_v42  ;;  %v3463_v50 = vmul.f32 0.0078125, %v194_v41 }
  0xce   :  { %v3468_v54 = vmul.f32 -1.0, %v3461_v49  ;;  %v3471_v55 = vmul.f32 -1.0, %v3463_v50 }
  0xcf   :  { %v199_v43 = vpop.xlane.xlu1 %198  ;;  %v179_v44 = vpop.xlane.xlu0 %178 }
  0xd0   :  { %v3473_v56 = vmul.f32 0.0078125, %v179_v44  ;;  %v3475_v57 = vmul.f32 0.0078125, %v199_v43  ;;  %v267_v3 = vmax.f32 %v3468_v54, %v3471_v55 }
  0xd2   :  { %v3497_v5 = vmul.f32 -1.0, %v3473_v56  ;;  %v3500_v6 = vmul.f32 -1.0, %v3475_v57 }
  0xd3   :  { %v204_v45 = vpop.xlane.xlu1 %203  ;;  %v184_v46 = vpop.xlane.xlu0 %183 }
  0xd4   :  { %v3480_v60 = vmul.f32 0.0078125, %v184_v46  ;;  %v3482_v61 = vmul.f32 0.0078125, %v204_v45  ;;  %v292_v20 = vmax.f32 %v3497_v5, %v3500_v6 }
  0xd6   :  { %v3507_v10 = vmul.f32 -1.0, %v3480_v60  ;;  %v3510_v11 = vmul.f32 -1.0, %v3482_v61 }
  0xd7   :  { %v219_v47 = vpop.xlane.xlu1 %218  ;;  %v214_v48 = vpop.xlane.xlu0 %213 }
  0xd8   :  { %v3465_v51 = vmul.f32 0.0078125, %v214_v48  ;;  %v3484_v62 = vmul.f32 0.0078125, %v219_v47  ;;  %v317_v29 = vmax.f32 %v3507_v10, %v3510_v11 }
  0xda   :  { %v3478_v58 = vmul.f32 -1.0, %v3465_v51  ;;  %v3513_v12 = vmul.f32 -1.0, %v3484_v62 }
  0xdb   :  { %v209_v52 = vpop.xlane.xlu1 %208  ;;  %v189_v53 = vpop.xlane.xlu0 %188 }
  0xdc   :  { %v3486_v0 = vmul.f32 0.0078125, %v189_v53  ;;  %v3488_v1 = vmul.f32 0.0078125, %v209_v52  ;;  %v268_v7 = vmax.f32 %v267_v3, %v3478_v58  ;;  %v293_v28 = vmax.f32 %v292_v20, %v3513_v12 }
  0xde   :  { %v3518_v15 = vmul.f32 -1.0, %v3486_v0  ;;  %v3521_v16 = vmul.f32 -1.0, %v3488_v1 }
  0xdf   :  { %v234_v59 = vpop.xlane.xlu1 %233  ;;  %v224_v63 = vpop.xlane.xlu0 %223 }
  0xe0   :  { %v3490_v2 = vmul.f32 0.0078125, %v234_v59  ;;  %v3494_v4 = vmul.f32 0.0078125, %v224_v63  ;;  %v342_v34 = vmax.f32 %v3518_v15, %v3521_v16 }
  0xe2   :  { %v3503_v8 = vmul.f32 -1.0, %v3490_v2  ;;  %v3529_v19 = vmul.f32 -1.0, %v3494_v4 }
  0xe3   :  { %v229_v9 = vpop.xlane.xlu1 %228  ;;  %v239_v13 = vpop.xlane.xlu0 %238 }
  0xe4   :  { %v3515_v14 = vmul.f32 0.0078125, %v229_v9  ;;  %v3524_v17 = vmax.f32 %v268_v7, %v3503_v8  ;;  %v3526_v18 = vmul.f32 0.0078125, %v239_v13  ;;  %v318_v38 = vmax.f32 %v317_v29, %v3529_v19 }
  0xe6   :  { %v3534_v21 = vmul.f32 -1.0, %v3515_v14  ;;  %v270_v22 = vsub.f32 %v3468_v54, %v3524_v17  ;;  %v273_v23 = vsub.f32 %v3471_v55, %v3524_v17  ;;  %v277_v24 = vsub.f32 %v3478_v58, %v3524_v17 }
  0xe7   :  { %v249_v25 = vpop.xlane.xlu1 %248  ;;  %v3543_v26 = vmul.f32 -1.0, %v3526_v18  ;;  %v281_v27 = vsub.f32 %v3503_v8, %v3524_v17  ;;  %v244_v30 = vpop.xlane.xlu0 %243 }
  0xe8   :  { %v3550_v31 = vmul.f32 0.0078125, %v249_v25  ;;  %v271_v32 = vmul.f32 1.442695, %v270_v22  ;;  %v274_v33 = vmul.f32 1.442695, %v273_v23  ;;  %v3554_v35 = vmul.f32 0.0078125, %v244_v30 }
  0xe9   :  { %v278_v36 = vmul.f32 1.442695, %v277_v24  ;;  %v3557_v37 = vmax.f32 %v293_v28, %v3543_v26  ;;  %v282_v40 = vmul.f32 1.442695, %v281_v27  ;;  %v343_v41 = vmax.f32 %v342_v34, %v3534_v21 }
  0xea   :  { %v3561_v39 = vmul.f32 -1.0, %v3550_v31  ;;  %2493 = vpow2.f32 %v271_v32  ;;  %v3565_v42 = vmul.f32 -1.0, %v3554_v35 }
  0xeb   :  { %2495 = vpow2.f32 %v274_v33  ;;  %v295_v43 = vsub.f32 %v3497_v5, %v3557_v37  ;;  %v298_v44 = vsub.f32 %v3500_v6, %v3557_v37  ;;  %v302_v45 = vsub.f32 %v3513_v12, %v3557_v37 }
  0xec   :  { %v306_v46 = vsub.f32 %v3543_v26, %v3557_v37  ;;  %v3576_v47 = vmax.f32 %v343_v41, %v3561_v39  ;;  %2497 = vpow2.f32 %v278_v36  ;;  %v3579_v53 = vmax.f32 %v318_v38, %v3565_v42 }
  0xed   :  { %v296_v48 = vmul.f32 1.442695, %v295_v43  ;;  %v299_v52 = vmul.f32 1.442695, %v298_v44  ;;  %2499 = vpow2.f32 %v282_v40  ;;  %v303_v59 = vmul.f32 1.442695, %v302_v45 }
  0xee   :  { %v307_v63 = vmul.f32 1.442695, %v306_v46  ;;  %v345_v3 = vsub.f32 %v3518_v15, %v3576_v47  ;;  %v320_v7 = vsub.f32 %v3507_v10, %v3579_v53  ;;  %v323_v9 = vsub.f32 %v3510_v11, %v3579_v53 }
  0xef   :  { %2501 = vpow2.f32 %v296_v48  ;;  %v327_v13 = vsub.f32 %v3529_v19, %v3579_v53  ;;  %v331_v20 = vsub.f32 %v3565_v42, %v3579_v53  ;;  %v348_v22 = vsub.f32 %v3521_v16, %v3576_v47 }
  0xf0   :  { %2503 = vpow2.f32 %v299_v52  ;;  %v321_v23 = vmul.f32 1.442695, %v320_v7  ;;  %v324_v24 = vmul.f32 1.442695, %v323_v9  ;;  %v352_v28 = vsub.f32 %v3534_v21, %v3576_v47 }
  0xf1   :  { %2505 = vpow2.f32 %v303_v59  ;;  %v328_v25 = vmul.f32 1.442695, %v327_v13  ;;  %v332_v27 = vmul.f32 1.442695, %v331_v20  ;;  %v346_v29 = vmul.f32 1.442695, %v345_v3 }
  0xf2   :  { %2507 = vpow2.f32 %v307_v63  ;;  %v349_v32 = vmul.f32 1.442695, %v348_v22  ;;  %v356_v33 = vsub.f32 %v3561_v39, %v3576_v47  ;;  %v353_v38 = vmul.f32 1.442695, %v352_v28 }
  0xf3   :  { %2509 = vpow2.f32 %v321_v23 }
  0xf4   :  { %v2494_v30 = vpop.eup %2493  ;;  %2511 = vpow2.f32 %v324_v24  ;;  %v357_v44 = vmul.f32 1.442695, %v356_v33 }
  0xf5   :  { %v2496_v34 = vpop.eup %2495  ;;  %2513 = vpow2.f32 %v328_v25 }
  0xf6   :  { %v276_v36 = vadd.f32 %v2496_v34, %v2494_v30  ;;  %2515 = vpow2.f32 %v332_v27  ;;  %v2498_v40 = vpop.eup %2497 }
  0xf7   :  { %2517 = vpow2.f32 %v346_v29  ;;  %v2500_v41 = vpop.eup %2499 }
  0xf8   :  { %v280_v43 = vadd.f32 %v2498_v40, %v276_v36  ;;  %2519 = vpow2.f32 %v349_v32 }
  0xf9   :  { %v2502_v45 = vpop.eup %2501  ;;  %2521 = vpow2.f32 %v353_v38 }
  0xfa   :  { %v2504_v46 = vpop.eup %2503  ;;  %v284_v48 = vadd.f32 %v2500_v41, %v280_v43  ;;  %2523 = vpow2.f32 %v357_v44 }
  0xfb   :  { %v2506_v52 = vpop.eup %2505  ;;  %v301_v59 = vadd.f32 %v2504_v46, %v2502_v45 }
  0xfc   :  { %v2508_v63 = vpop.eup %2507  ;;  %2525 = vlog2.f32 %v284_v48 }
  0xfd   :  { %v2510_v3 = vpop.eup %2509  ;;  %v305_v7 = vadd.f32 %v2506_v52, %v301_v59 }
  0xfe   :  { %v2512_v9 = vpop.eup %2511 }
  0xff   :  { %v2514_v13 = vpop.eup %2513  ;;  %v309_v20 = vadd.f32 %v2508_v63, %v305_v7  ;;  %v326_v22 = vadd.f32 %v2512_v9, %v2510_v3 }
 0x100   :  { %v2516_v23 = vpop.eup %2515 }
 0x101   :  { %v2518_v24 = vpop.eup %2517  ;;  %2527 = vlog2.f32 %v309_v20  ;;  %v330_v25 = vadd.f32 %v2514_v13, %v326_v22 }
 0x102   :  { %v2520_v27 = vpop.eup %2519 }
 0x103   :  { %v334_v28 = vadd.f32 %v2516_v23, %v330_v25  ;;  %v351_v29 = vadd.f32 %v2520_v27, %v2518_v24  ;;  %v2522_v30 = vpop.eup %2521 }
 0x104   :  { %v2524_v33 = vpop.eup %2523 }
 0x105   :  { %2529 = vlog2.f32 %v334_v28  ;;  %v355_v32 = vadd.f32 %v2522_v30, %v351_v29 }
 0x106   :  { %v2526_v34 = vpop.eup %2525 }
 0x107   :  { %v359_v36 = vadd.f32 %v2524_v33, %v355_v32  ;;  %v286_v38 = vmul.f32 0.6931472, %v2526_v34 }
 0x109   :  { %2531 = vlog2.f32 %v359_v36  ;;  %v287_v43 = vadd.f32 %v286_v38, %v3524_v17 }
 0x10b   :  { %v2528_v40 = vpop.eup %2527  ;;  %v3609_v63 = vsub.f32 %v3468_v54, %v287_v43  ;;  %v3612_v3 = vsub.f32 %v3471_v55, %v287_v43 }
 0x10c   :  { %v311_v41 = vmul.f32 0.6931472, %v2528_v40 }
 0x10e   :  { %v312_v44 = vadd.f32 %v311_v41, %v3557_v37  ;;  %v3615_v37 = vsub.f32 %v3478_v58, %v287_v43 }
 0x10f   :  { %v2530_v45 = vpop.eup %2529 }
 0x110   :  { %v3600_v46 = vsub.f32 %v3497_v5, %v312_v44  ;;  %v3603_v48 = vsub.f32 %v3500_v6, %v312_v44  ;;  %v3606_v52 = vsub.f32 %v3513_v12, %v312_v44  ;;  %v336_v59 = vmul.f32 0.6931472, %v2530_v45 }
 0x111   :  { %v3619_v7 = vsub.f32 %v3543_v26, %v312_v44 }
 0x112   :  { %v337_v5 = vadd.f32 %v336_v59, %v3579_v53  ;;  %v367_v12 = vmax.f32 %v3609_v63, %v3600_v46  ;;  %v392_v54 = vmax.f32 %v3612_v3, %v3603_v48  ;;  %v417_v26 = vmax.f32 %v3615_v37, %v3606_v52 }
 0x113   :  { %v2532_v17 = vpop.eup %2531  ;;  %v3637_v53 = vsub.f32 %v3503_v8, %v287_v43 }
 0x114   :  { %v361_v6 = vmul.f32 0.6931472, %v2532_v17  ;;  %v3626_v9 = vsub.f32 %v3507_v10, %v337_v5  ;;  %v3629_v55 = vsub.f32 %v3510_v11, %v337_v5  ;;  %v3632_v58 = vsub.f32 %v3529_v19, %v337_v5 }
 0x115   :  { %v3641_v20 = vsub.f32 %v3565_v42, %v337_v5 }
 0x116   :  { %v362_v13 = vadd.f32 %v361_v6, %v3576_v47  ;;  %v368_v10 = vmax.f32 %v367_v12, %v3626_v9  ;;  %v393_v22 = vmax.f32 %v392_v54, %v3629_v55  ;;  %v418_v11 = vmax.f32 %v417_v26, %v3632_v58 }
 0x117   :  { %v442_v47 = vmax.f32 %v3637_v53, %v3619_v7 }
 0x118   :  { %v3647_v19 = vsub.f32 %v3518_v15, %v362_v13  ;;  %v3650_v23 = vsub.f32 %v3521_v16, %v362_v13  ;;  %v3653_v8 = vsub.f32 %v3534_v21, %v362_v13  ;;  %v3676_v29 = vsub.f32 %v3561_v39, %v362_v13 }
 0x119   :  { %v443_v15 = vmax.f32 %v442_v47, %v3641_v20 }
 0x11a   :  { %v3658_v42 = vmax.f32 %v368_v10, %v3647_v19  ;;  %v3661_v24 = vmax.f32 %v393_v22, %v3650_v23  ;;  %v3664_v25 = vmax.f32 %v418_v11, %v3653_v8 }
 0x11b   :  { %v3689_v44 = vmax.f32 %v443_v15, %v3676_v29 }
 0x11c   :  { %v370_v16 = vsub.f32 %v3609_v63, %v3658_v42  ;;  %v373_v21 = vsub.f32 %v3600_v46, %v3658_v42  ;;  %v377_v27 = vsub.f32 %v3626_v9, %v3658_v42  ;;  %v381_v28 = vsub.f32 %v3647_v19, %v3658_v42 }
 0x11d   :  { %v395_v30 = vsub.f32 %v3612_v3, %v3661_v24  ;;  %v398_v32 = vsub.f32 %v3603_v48, %v3661_v24  ;;  %v402_v38 = vsub.f32 %v3629_v55, %v3661_v24  ;;  %v406_v41 = vsub.f32 %v3650_v23, %v3661_v24 }
 0x11e   :  { %v371_v33 = vmul.f32 1.442695, %v370_v16  ;;  %v374_v34 = vmul.f32 1.442695, %v373_v21  ;;  %v378_v36 = vmul.f32 1.442695, %v377_v27  ;;  %v420_v39 = vsub.f32 %v3615_v37, %v3664_v25 }
 0x11f   :  { %v382_v40 = vmul.f32 1.442695, %v381_v28  ;;  %v396_v43 = vmul.f32 1.442695, %v395_v30  ;;  %v399_v45 = vmul.f32 1.442695, %v398_v32  ;;  %v423_v59 = vsub.f32 %v3606_v52, %v3664_v25 }
 0x120   :  { %2533 = vpow2.f32 %v371_v33  ;;  %v403_v17 = vmul.f32 1.442695, %v402_v38  ;;  %v427_v5 = vsub.f32 %v3632_v58, %v3664_v25  ;;  %v407_v6 = vmul.f32 1.442695, %v406_v41 }
 0x121   :  { %2535 = vpow2.f32 %v374_v34  ;;  %v431_v12 = vsub.f32 %v3653_v8, %v3664_v25  ;;  %v421_v54 = vmul.f32 1.442695, %v420_v39  ;;  %v445_v26 = vsub.f32 %v3637_v53, %v3689_v44 }
 0x122   :  { %2537 = vpow2.f32 %v378_v36  ;;  %v424_v13 = vmul.f32 1.442695, %v423_v59  ;;  %v448_v10 = vsub.f32 %v3619_v7, %v3689_v44  ;;  %v428_v22 = vmul.f32 1.442695, %v427_v5 }
 0x123   :  { %2539 = vpow2.f32 %v382_v40  ;;  %v432_v11 = vmul.f32 1.442695, %v431_v12  ;;  %v452_v47 = vsub.f32 %v3641_v20, %v3689_v44  ;;  %v446_v15 = vmul.f32 1.442695, %v445_v26 }
 0x124   :  { %2541 = vpow2.f32 %v396_v43  ;;  %v449_v16 = vmul.f32 1.442695, %v448_v10  ;;  %v456_v21 = vsub.f32 %v3676_v29, %v3689_v44 }
 0x125   :  { %2543 = vpow2.f32 %v399_v45  ;;  %v453_v30 = vmul.f32 1.442695, %v452_v47 }
 0x126   :  { %2545 = vpow2.f32 %v403_v17  ;;  %v457_v36 = vmul.f32 1.442695, %v456_v21 }
 0x127   :  { %2547 = vpow2.f32 %v407_v6 }
 0x128   :  { %2549 = vpow2.f32 %v421_v54 }
 0x129   :  { %2551 = vpow2.f32 %v424_v13 }
 0x12a   :  { %v2534_v27 = vpop.eup %2533  ;;  %2553 = vpow2.f32 %v428_v22 }
 0x12b   :  { %v2536_v28 = vpop.eup %2535  ;;  %2555 = vpow2.f32 %v432_v11 }
 0x12c   :  { %v2538_v32 = vpop.eup %2537  ;;  %v376_v33 = vadd.f32 %v2536_v28, %v2534_v27  ;;  %2557 = vpow2.f32 %v446_v15 }
 0x12d   :  { %v2540_v34 = vpop.eup %2539  ;;  %2559 = vpow2.f32 %v449_v16 }
 0x12e   :  { %v2542_v38 = vpop.eup %2541  ;;  %v380_v40 = vadd.f32 %v2538_v32, %v376_v33  ;;  %2561 = vpow2.f32 %v453_v30 }
 0x12f   :  { %v2544_v41 = vpop.eup %2543  ;;  %2563 = vpow2.f32 %v457_v36 }
 0x130   :  { %v2546_v43 = vpop.eup %2545  ;;  %v384_v39 = vadd.f32 %v2540_v34, %v380_v40  ;;  %v401_v45 = vadd.f32 %v2544_v41, %v2542_v38 }
 0x131   :  { %v2548_v59 = vpop.eup %2547 }
 0x132   :  { %v2550_v17 = vpop.eup %2549  ;;  %2565 = vlog2.f32 %v384_v39  ;;  %v405_v5 = vadd.f32 %v2546_v43, %v401_v45 }
 0x133   :  { %v2552_v6 = vpop.eup %2551 }
 0x134   :  { %v2554_v12 = vpop.eup %2553  ;;  %v409_v54 = vadd.f32 %v2548_v59, %v405_v5  ;;  %v426_v26 = vadd.f32 %v2552_v6, %v2550_v17 }
 0x135   :  { %v2556_v13 = vpop.eup %2555 }
 0x136   :  { %v2558_v10 = vpop.eup %2557  ;;  %2567 = vlog2.f32 %v409_v54  ;;  %v430_v22 = vadd.f32 %v2554_v12, %v426_v26 }
 0x137   :  { %v2560_v11 = vpop.eup %2559 }
 0x138   :  { %v434_v47 = vadd.f32 %v2556_v13, %v430_v22  ;;  %v451_v15 = vadd.f32 %v2560_v11, %v2558_v10  ;;  %v2562_v16 = vpop.eup %2561 }
 0x139   :  { %v2564_v27 = vpop.eup %2563 }
 0x13a   :  { %2569 = vlog2.f32 %v434_v47  ;;  %v455_v21 = vadd.f32 %v2562_v16, %v451_v15 }
 0x13c   :  { %v2566_v28 = vpop.eup %2565  ;;  %v459_v30 = vadd.f32 %v2564_v27, %v455_v21 }
 0x13d   :  { %v386_v32 = vmul.f32 0.6931472, %v2566_v28 }
 0x13e   :  { %2571 = vlog2.f32 %v459_v30 }
 0x13f   :  { %v387_v34 = vadd.f32 %v386_v32, %v3658_v42 }
 0x140   :  { %v2568_v33 = vpop.eup %2567 }
 0x141   :  { %v411_v36 = vmul.f32 0.6931472, %v2568_v33  ;;  %v3707_v40 = vsub.f32 %v3609_v63, %v387_v34  ;;  %v3710_v41 = vsub.f32 %v3600_v46, %v387_v34  ;;  %v3714_v39 = vsub.f32 %v3626_v9, %v387_v34 }
 0x143   :  { %v412_v43 = vadd.f32 %v411_v36, %v3661_v24  ;;  %v3731_v24 = vsub.f32 %v3647_v19, %v387_v34 }
 0x144   :  { %v2570_v38 = vpop.eup %2569 }
 0x145   :  { %v436_v45 = vmul.f32 0.6931472, %v2570_v38  ;;  %v3717_v59 = vsub.f32 %v3612_v3, %v412_v43  ;;  %v3720_v17 = vsub.f32 %v3603_v48, %v412_v43  ;;  %v3723_v42 = vsub.f32 %v3629_v55, %v412_v43 }
 0x146   :  { %v3734_v3 = vsub.f32 %v3650_v23, %v412_v43 }
 0x147   :  { %v437_v63 = vadd.f32 %v436_v45, %v3664_v25  ;;  %v467_v46 = vmax.f32 %v3707_v40, %v3717_v59  ;;  %v492_v9 = vmax.f32 %v3710_v41, %v3720_v17  ;;  %v517_v48 = vmax.f32 %v3714_v39, %v3723_v42 }
 0x148   :  { %v2572_v5 = vpop.eup %2571  ;;  %v542_v13 = vmax.f32 %v3731_v24, %v3734_v3 }
 0x149   :  { %v3739_v55 = vsub.f32 %v3615_v37, %v437_v63  ;;  %v3742_v25 = vsub.f32 %v3606_v52, %v437_v63  ;;  %v461_v6 = vmul.f32 0.6931472, %v2572_v5  ;;  %v3745_v12 = vsub.f32 %v3632_v58, %v437_v63 }
 0x14a   :  { %v3760_v58 = vsub.f32 %v3653_v8, %v437_v63 }
 0x14b   :  { %v462_v54 = vadd.f32 %v461_v6, %v3689_v44  ;;  %v468_v19 = vmax.f32 %v467_v46, %v3739_v55  ;;  %v493_v23 = vmax.f32 %v492_v9, %v3742_v25  ;;  %v518_v26 = vmax.f32 %v517_v48, %v3745_v12 }
 0x14d   :  { %v3754_v37 = vsub.f32 %v3637_v53, %v462_v54  ;;  %v3757_v52 = vsub.f32 %v3619_v7, %v462_v54  ;;  %v3763_v44 = vsub.f32 %v3641_v20, %v462_v54  ;;  %v543_v53 = vmax.f32 %v542_v13, %v3760_v58 }
 0x14e   :  { %v3784_v15 = vsub.f32 %v3676_v29, %v462_v54 }
 0x14f   :  { %v3766_v10 = vmax.f32 %v468_v19, %v3754_v37  ;;  %v3769_v22 = vmax.f32 %v493_v23, %v3757_v52  ;;  %v3772_v11 = vmax.f32 %v518_v26, %v3763_v44 }
 0x150   :  { %v3797_v38 = vmax.f32 %v543_v53, %v3784_v15 }
 0x151   :  { %v470_v7 = vsub.f32 %v3707_v40, %v3766_v10  ;;  %v473_v8 = vsub.f32 %v3717_v59, %v3766_v10  ;;  %v477_v20 = vsub.f32 %v3739_v55, %v3766_v10  ;;  %v481_v47 = vsub.f32 %v3754_v37, %v3766_v10 }
 0x152   :  { %v495_v16 = vsub.f32 %v3710_v41, %v3769_v22  ;;  %v498_v21 = vsub.f32 %v3720_v17, %v3769_v22  ;;  %v502_v32 = vsub.f32 %v3742_v25, %v3769_v22  ;;  %v506_v34 = vsub.f32 %v3757_v52, %v3769_v22 }
 0x153   :  { %v471_v27 = vmul.f32 1.442695, %v470_v7  ;;  %v474_v28 = vmul.f32 1.442695, %v473_v8  ;;  %v478_v30 = vmul.f32 1.442695, %v477_v20  ;;  %v520_v29 = vsub.f32 %v3714_v39, %v3772_v11 }
 0x154   :  { %v482_v33 = vmul.f32 1.442695, %v481_v47  ;;  %v496_v36 = vmul.f32 1.442695, %v495_v16  ;;  %v499_v43 = vmul.f32 1.442695, %v498_v21  ;;  %v523_v45 = vsub.f32 %v3723_v42, %v3772_v11 }
 0x155   :  { %2573 = vpow2.f32 %v471_v27  ;;  %v503_v63 = vmul.f32 1.442695, %v502_v32  ;;  %v527_v5 = vsub.f32 %v3745_v12, %v3772_v11  ;;  %v507_v46 = vmul.f32 1.442695, %v506_v34 }
 0x156   :  { %2575 = vpow2.f32 %v474_v28  ;;  %v531_v9 = vsub.f32 %v3763_v44, %v3772_v11  ;;  %v521_v48 = vmul.f32 1.442695, %v520_v29  ;;  %v545_v6 = vsub.f32 %v3731_v24, %v3797_v38 }
 0x157   :  { %2577 = vpow2.f32 %v478_v30  ;;  %v524_v54 = vmul.f32 1.442695, %v523_v45  ;;  %v548_v19 = vsub.f32 %v3734_v3, %v3797_v38  ;;  %v528_v23 = vmul.f32 1.442695, %v527_v5 }
 0x158   :  { %2579 = vpow2.f32 %v482_v33  ;;  %v532_v26 = vmul.f32 1.442695, %v531_v9  ;;  %v552_v13 = vsub.f32 %v3760_v58, %v3797_v38  ;;  %v546_v53 = vmul.f32 1.442695, %v545_v6 }
 0x159   :  { %2581 = vpow2.f32 %v496_v36  ;;  %v549_v7 = vmul.f32 1.442695, %v548_v19  ;;  %v556_v8 = vsub.f32 %v3784_v15, %v3797_v38 }
 0x15a   :  { %2583 = vpow2.f32 %v499_v43  ;;  %v553_v16 = vmul.f32 1.442695, %v552_v13 }
 0x15b   :  { %2585 = vpow2.f32 %v503_v63  ;;  %v557_v30 = vmul.f32 1.442695, %v556_v8 }
 0x15c   :  { %2587 = vpow2.f32 %v507_v46 }
 0x15d   :  { %2589 = vpow2.f32 %v521_v48 }
 0x15e   :  { %2591 = vpow2.f32 %v524_v54 }
 0x15f   :  { %v2574_v20 = vpop.eup %2573  ;;  %2593 = vpow2.f32 %v528_v23 }
 0x160   :  { %v2576_v47 = vpop.eup %2575  ;;  %2595 = vpow2.f32 %v532_v26 }
 0x161   :  { %v2578_v21 = vpop.eup %2577  ;;  %v476_v27 = vadd.f32 %v2576_v47, %v2574_v20  ;;  %2597 = vpow2.f32 %v546_v53 }
 0x162   :  { %v2580_v28 = vpop.eup %2579  ;;  %2599 = vpow2.f32 %v549_v7 }
 0x163   :  { %v2582_v32 = vpop.eup %2581  ;;  %v480_v33 = vadd.f32 %v2578_v21, %v476_v27  ;;  %2601 = vpow2.f32 %v553_v16 }
 0x164   :  { %v2584_v34 = vpop.eup %2583  ;;  %2603 = vpow2.f32 %v557_v30 }
 0x165   :  { %v2586_v36 = vpop.eup %2585  ;;  %v484_v29 = vadd.f32 %v2580_v28, %v480_v33  ;;  %v501_v43 = vadd.f32 %v2584_v34, %v2582_v32 }
 0x166   :  { %v2588_v45 = vpop.eup %2587 }
 0x167   :  { %v2590_v63 = vpop.eup %2589  ;;  %2605 = vlog2.f32 %v484_v29  ;;  %v505_v5 = vadd.f32 %v2586_v36, %v501_v43 }
 0x168   :  { %v2592_v46 = vpop.eup %2591 }
 0x169   :  { %v2594_v9 = vpop.eup %2593  ;;  %v509_v48 = vadd.f32 %v2588_v45, %v505_v5  ;;  %v526_v6 = vadd.f32 %v2592_v46, %v2590_v63 }
 0x16a   :  { %v2596_v54 = vpop.eup %2595 }
 0x16b   :  { %v2598_v19 = vpop.eup %2597  ;;  %2607 = vlog2.f32 %v509_v48  ;;  %v530_v23 = vadd.f32 %v2594_v9, %v526_v6 }
 0x16c   :  { %v2600_v26 = vpop.eup %2599 }
 0x16d   :  { %v534_v13 = vadd.f32 %v2596_v54, %v530_v23  ;;  %v551_v53 = vadd.f32 %v2600_v26, %v2598_v19  ;;  %v2602_v7 = vpop.eup %2601 }
 0x16e   :  { %v2604_v20 = vpop.eup %2603 }
 0x16f   :  { %2609 = vlog2.f32 %v534_v13  ;;  %v555_v8 = vadd.f32 %v2602_v7, %v551_v53 }
 0x171   :  { %v2606_v47 = vpop.eup %2605  ;;  %v559_v16 = vadd.f32 %v2604_v20, %v555_v8 }
 0x172   :  { %v486_v21 = vmul.f32 0.6931472, %v2606_v47 }
 0x173   :  { %2611 = vlog2.f32 %v559_v16 }
 0x174   :  { %v487_v28 = vadd.f32 %v486_v21, %v3766_v10 }
 0x175   :  { %v2608_v27 = vpop.eup %2607 }
 0x176   :  { %v511_v30 = vmul.f32 0.6931472, %v2608_v27  ;;  %v3815_v33 = vsub.f32 %v3707_v40, %v487_v28  ;;  %v3818_v34 = vsub.f32 %v3717_v59, %v487_v28  ;;  %v3822_v29 = vsub.f32 %v3739_v55, %v487_v28 }
 0x178   :  { %v512_v36 = vadd.f32 %v511_v30, %v3769_v22  ;;  %v3839_v22 = vsub.f32 %v3754_v37, %v487_v28 }
 0x179   :  { %v2610_v32 = vpop.eup %2609 }
 0x17a   :  { %v536_v43 = vmul.f32 0.6931472, %v2610_v32  ;;  %v3825_v45 = vsub.f32 %v3710_v41, %v512_v36  ;;  %v3828_v63 = vsub.f32 %v3720_v17, %v512_v36  ;;  %v3831_v10 = vsub.f32 %v3742_v25, %v512_v36 }
 0x17b   :  { %v3842_v41 = vsub.f32 %v3757_v52, %v512_v36 }
 0x17c   :  { %v537_v40 = vadd.f32 %v536_v43, %v3772_v11  ;;  %v567_v59 = vmax.f32 %v3815_v33, %v3825_v45  ;;  %v592_v55 = vmax.f32 %v3818_v34, %v3828_v63  ;;  %v617_v17 = vmax.f32 %v3822_v29, %v3831_v10 }
 0x17d   :  { %v2612_v5 = vpop.eup %2611  ;;  %v642_v54 = vmax.f32 %v3839_v22, %v3842_v41 }
 0x17e   :  { %v3847_v25 = vsub.f32 %v3714_v39, %v537_v40  ;;  %v3850_v11 = vsub.f32 %v3723_v42, %v537_v40  ;;  %v561_v46 = vmul.f32 0.6931472, %v2612_v5  ;;  %v3853_v9 = vsub.f32 %v3745_v12, %v537_v40 }
 0x17f   :  { %v3868_v12 = vsub.f32 %v3763_v44, %v537_v40 }
 0x180   :  { %v562_v48 = vadd.f32 %v561_v46, %v3797_v38  ;;  %v568_v37 = vmax.f32 %v567_v59, %v3847_v25  ;;  %v593_v52 = vmax.f32 %v592_v55, %v3850_v11  ;;  %v618_v6 = vmax.f32 %v617_v17, %v3853_v9 }
 0x182   :  { %v3862_v39 = vsub.f32 %v3731_v24, %v562_v48  ;;  %v3865_v42 = vsub.f32 %v3734_v3, %v562_v48  ;;  %v3871_v38 = vsub.f32 %v3760_v58, %v562_v48  ;;  %v643_v24 = vmax.f32 %v642_v54, %v3868_v12 }
 0x183   :  { %v3892_v53 = vsub.f32 %v3784_v15, %v562_v48 }
 0x184   :  { %v3874_v19 = vmax.f32 %v568_v37, %v3862_v39  ;;  %v3877_v23 = vmax.f32 %v593_v52, %v3865_v42  ;;  %v3880_v26 = vmax.f32 %v618_v6, %v3871_v38 }
 0x185   :  { %v3905_v32 = vmax.f32 %v643_v24, %v3892_v53 }
 0x186   :  { %v570_v3 = vsub.f32 %v3815_v33, %v3874_v19  ;;  %v573_v44 = vsub.f32 %v3825_v45, %v3874_v19  ;;  %v577_v58 = vsub.f32 %v3847_v25, %v3874_v19  ;;  %v581_v13 = vsub.f32 %v3862_v39, %v3874_v19 }
 0x187   :  { %v595_v7 = vsub.f32 %v3818_v34, %v3877_v23  ;;  %v598_v8 = vsub.f32 %v3828_v63, %v3877_v23  ;;  %v602_v21 = vsub.f32 %v3850_v11, %v3877_v23  ;;  %v606_v28 = vsub.f32 %v3865_v42, %v3877_v23 }
 0x188   :  { %v571_v20 = vmul.f32 1.442695, %v570_v3  ;;  %v574_v47 = vmul.f32 1.442695, %v573_v44  ;;  %v578_v16 = vmul.f32 1.442695, %v577_v58  ;;  %v620_v15 = vsub.f32 %v3822_v29, %v3880_v26 }
 0x189   :  { %v582_v27 = vmul.f32 1.442695, %v581_v13  ;;  %v596_v30 = vmul.f32 1.442695, %v595_v7  ;;  %v599_v36 = vmul.f32 1.442695, %v598_v8  ;;  %v623_v43 = vsub.f32 %v3831_v10, %v3880_v26 }
 0x18a   :  { %2613 = vpow2.f32 %v571_v20  ;;  %v603_v40 = vmul.f32 1.442695, %v602_v21  ;;  %v627_v5 = vsub.f32 %v3853_v9, %v3880_v26  ;;  %v607_v59 = vmul.f32 1.442695, %v606_v28 }
 0x18b   :  { %2615 = vpow2.f32 %v574_v47  ;;  %v631_v55 = vsub.f32 %v3871_v38, %v3880_v26  ;;  %v621_v17 = vmul.f32 1.442695, %v620_v15  ;;  %v645_v46 = vsub.f32 %v3839_v22, %v3905_v32 }
 0x18c   :  { %2617 = vpow2.f32 %v578_v16  ;;  %v624_v48 = vmul.f32 1.442695, %v623_v43  ;;  %v648_v37 = vsub.f32 %v3842_v41, %v3905_v32  ;;  %v628_v52 = vmul.f32 1.442695, %v627_v5 }
 0x18d   :  { %2619 = vpow2.f32 %v582_v27  ;;  %v632_v6 = vmul.f32 1.442695, %v631_v55  ;;  %v652_v54 = vsub.f32 %v3868_v12, %v3905_v32  ;;  %v646_v24 = vmul.f32 1.442695, %v645_v46 }
 0x18e   :  { %2621 = vpow2.f32 %v596_v30  ;;  %v649_v3 = vmul.f32 1.442695, %v648_v37  ;;  %v656_v44 = vsub.f32 %v3892_v53, %v3905_v32 }
 0x18f   :  { %2623 = vpow2.f32 %v599_v36  ;;  %v653_v7 = vmul.f32 1.442695, %v652_v54 }
 0x190   :  { %2625 = vpow2.f32 %v603_v40  ;;  %v657_v16 = vmul.f32 1.442695, %v656_v44 }
 0x191   :  { %2627 = vpow2.f32 %v607_v59 }
 0x192   :  { %2629 = vpow2.f32 %v621_v17 }
 0x193   :  { %2631 = vpow2.f32 %v624_v48 }
 0x194   :  { %v2614_v58 = vpop.eup %2613  ;;  %2633 = vpow2.f32 %v628_v52 }
 0x195   :  { %v2616_v13 = vpop.eup %2615  ;;  %2635 = vpow2.f32 %v632_v6 }
 0x196   :  { %v2618_v8 = vpop.eup %2617  ;;  %v576_v20 = vadd.f32 %v2616_v13, %v2614_v58  ;;  %2637 = vpow2.f32 %v646_v24 }
 0x197   :  { %v2620_v47 = vpop.eup %2619  ;;  %2639 = vpow2.f32 %v649_v3 }
 0x198   :  { %v2622_v21 = vpop.eup %2621  ;;  %v580_v27 = vadd.f32 %v2618_v8, %v576_v20  ;;  %2641 = vpow2.f32 %v653_v7 }
 0x199   :  { %v2624_v28 = vpop.eup %2623  ;;  %2643 = vpow2.f32 %v657_v16 }
 0x19a   :  { %v2626_v30 = vpop.eup %2625  ;;  %v584_v15 = vadd.f32 %v2620_v47, %v580_v27  ;;  %v601_v36 = vadd.f32 %v2624_v28, %v2622_v21 }
 0x19b   :  { %v2628_v43 = vpop.eup %2627 }
 0x19c   :  { %v2630_v40 = vpop.eup %2629  ;;  %2645 = vlog2.f32 %v584_v15  ;;  %v605_v5 = vadd.f32 %v2626_v30, %v601_v36 }
 0x19d   :  { %v2632_v59 = vpop.eup %2631 }
 0x19e   :  { %v2634_v55 = vpop.eup %2633  ;;  %v609_v17 = vadd.f32 %v2628_v43, %v605_v5  ;;  %v626_v46 = vadd.f32 %v2632_v59, %v2630_v40 }
 0x19f   :  { %v2636_v48 = vpop.eup %2635 }
 0x1a0   :  { %v2638_v37 = vpop.eup %2637  ;;  %2647 = vlog2.f32 %v609_v17  ;;  %v630_v52 = vadd.f32 %v2634_v55, %v626_v46 }
 0x1a1   :  { %v2640_v6 = vpop.eup %2639 }
 0x1a2   :  { %v634_v54 = vadd.f32 %v2636_v48, %v630_v52  ;;  %v651_v24 = vadd.f32 %v2640_v6, %v2638_v37  ;;  %v2642_v3 = vpop.eup %2641 }
 0x1a3   :  { %v2644_v58 = vpop.eup %2643 }
 0x1a4   :  { %2649 = vlog2.f32 %v634_v54  ;;  %v655_v44 = vadd.f32 %v2642_v3, %v651_v24 }
 0x1a6   :  { %v2646_v13 = vpop.eup %2645  ;;  %v659_v7 = vadd.f32 %v2644_v58, %v655_v44 }
 0x1a7   :  { %v586_v8 = vmul.f32 0.6931472, %v2646_v13 }
 0x1a8   :  { %2651 = vlog2.f32 %v659_v7 }
 0x1a9   :  { %v587_v47 = vadd.f32 %v586_v8, %v3874_v19 }
 0x1aa   :  { %v2648_v20 = vpop.eup %2647 }
 0x1ab   :  { %v611_v16 = vmul.f32 0.6931472, %v2648_v20  ;;  %v3923_v27 = vsub.f32 %v3815_v33, %v587_v47  ;;  %v3926_v28 = vsub.f32 %v3825_v45, %v587_v47  ;;  %v3930_v15 = vsub.f32 %v3847_v25, %v587_v47 }
 0x1ad   :  { %v612_v30 = vadd.f32 %v611_v16, %v3877_v23  ;;  %v3947_v23 = vsub.f32 %v3862_v39, %v587_v47 }
 0x1ae   :  { %v2650_v21 = vpop.eup %2649 }
 0x1af   :  { %v636_v36 = vmul.f32 0.6931472, %v2650_v21  ;;  %v3933_v43 = vsub.f32 %v3818_v34, %v612_v30  ;;  %v3936_v40 = vsub.f32 %v3828_v63, %v612_v30  ;;  %v3939_v19 = vsub.f32 %v3850_v11, %v612_v30 }
 0x1b0   :  { %v3950_v34 = vsub.f32 %v3865_v42, %v612_v30 }
 0x1b1   :  { %v637_v33 = vadd.f32 %v636_v36, %v3880_v26  ;;  %v667_v45 = vmax.f32 %v3923_v27, %v3933_v43  ;;  %v692_v25 = vmax.f32 %v3926_v28, %v3936_v40  ;;  %v717_v63 = vmax.f32 %v3930_v15, %v3939_v19 }
 0x1b2   :  { %v2652_v5 = vpop.eup %2651  ;;  %v742_v48 = vmax.f32 %v3947_v23, %v3950_v34 }
 0x1b3   :  { %v3955_v11 = vsub.f32 %v3822_v29, %v637_v33  ;;  %v3958_v26 = vsub.f32 %v3831_v10, %v637_v33  ;;  %v661_v59 = vmul.f32 0.6931472, %v2652_v5  ;;  %v3961_v55 = vsub.f32 %v3853_v9, %v637_v33 }
 0x1b4   :  { %v3976_v9 = vsub.f32 %v3871_v38, %v637_v33 }
 0x1b5   :  { %v662_v17 = vadd.f32 %v661_v59, %v3905_v32  ;;  %v668_v39 = vmax.f32 %v667_v45, %v3955_v11  ;;  %v693_v42 = vmax.f32 %v692_v25, %v3958_v26  ;;  %v718_v46 = vmax.f32 %v717_v63, %v3961_v55 }
 0x1b7   :  { %v3970_v29 = vsub.f32 %v3839_v22, %v662_v17  ;;  %v3973_v10 = vsub.f32 %v3842_v41, %v662_v17  ;;  %v3979_v32 = vsub.f32 %v3868_v12, %v662_v17  ;;  %v743_v22 = vmax.f32 %v742_v48, %v3976_v9 }
 0x1b8   :  { %v4000_v24 = vsub.f32 %v3892_v53, %v662_v17 }
 0x1b9   :  { %v3982_v37 = vmax.f32 %v668_v39, %v3970_v29  ;;  %v3985_v52 = vmax.f32 %v693_v42, %v3973_v10  ;;  %v3988_v6 = vmax.f32 %v718_v46, %v3979_v32 }
 0x1ba   :  { %v4013_v21 = vmax.f32 %v743_v22, %v4000_v24 }
 0x1bb   :  { %v670_v41 = vsub.f32 %v3923_v27, %v3982_v37  ;;  %v673_v38 = vsub.f32 %v3933_v43, %v3982_v37  ;;  %v677_v12 = vsub.f32 %v3955_v11, %v3982_v37  ;;  %v681_v54 = vsub.f32 %v3970_v29, %v3982_v37 }
 0x1bc   :  { %v695_v3 = vsub.f32 %v3926_v28, %v3985_v52  ;;  %v698_v44 = vsub.f32 %v3936_v40, %v3985_v52  ;;  %v702_v8 = vsub.f32 %v3958_v26, %v3985_v52  ;;  %v706_v47 = vsub.f32 %v3973_v10, %v3985_v52 }
 0x1bd   :  { %v671_v58 = vmul.f32 1.442695, %v670_v41  ;;  %v674_v13 = vmul.f32 1.442695, %v673_v38  ;;  %v678_v7 = vmul.f32 1.442695, %v677_v12  ;;  %v720_v53 = vsub.f32 %v3930_v15, %v3988_v6 }
 0x1be   :  { %v682_v20 = vmul.f32 1.442695, %v681_v54  ;;  %v696_v16 = vmul.f32 1.442695, %v695_v3  ;;  %v699_v30 = vmul.f32 1.442695, %v698_v44  ;;  %v723_v36 = vsub.f32 %v3939_v19, %v3988_v6 }
 0x1bf   :  { %2653 = vpow2.f32 %v671_v58  ;;  %v703_v33 = vmul.f32 1.442695, %v702_v8  ;;  %v727_v5 = vsub.f32 %v3961_v55, %v3988_v6  ;;  %v707_v45 = vmul.f32 1.442695, %v706_v47 }
 0x1c0   :  { %2655 = vpow2.f32 %v674_v13  ;;  %v731_v25 = vsub.f32 %v3979_v32, %v3988_v6  ;;  %v721_v63 = vmul.f32 1.442695, %v720_v53  ;;  %v745_v59 = vsub.f32 %v3947_v23, %v4013_v21 }
 0x1c1   :  { %2657 = vpow2.f32 %v678_v7  ;;  %v724_v17 = vmul.f32 1.442695, %v723_v36  ;;  %v748_v39 = vsub.f32 %v3950_v34, %v4013_v21  ;;  %v728_v42 = vmul.f32 1.442695, %v727_v5 }
 0x1c2   :  { %2659 = vpow2.f32 %v682_v20  ;;  %v732_v46 = vmul.f32 1.442695, %v731_v25  ;;  %v752_v48 = vsub.f32 %v3976_v9, %v4013_v21  ;;  %v746_v22 = vmul.f32 1.442695, %v745_v59 }
 0x1c3   :  { %2661 = vpow2.f32 %v696_v16  ;;  %v749_v41 = vmul.f32 1.442695, %v748_v39  ;;  %v756_v38 = vsub.f32 %v4000_v24, %v4013_v21 }
 0x1c4   :  { %2663 = vpow2.f32 %v699_v30  ;;  %v753_v3 = vmul.f32 1.442695, %v752_v48 }
 0x1c5   :  { %2665 = vpow2.f32 %v703_v33  ;;  %v757_v7 = vmul.f32 1.442695, %v756_v38 }
 0x1c6   :  { %2667 = vpow2.f32 %v707_v45 }
 0x1c7   :  { %2669 = vpow2.f32 %v721_v63 }
 0x1c8   :  { %2671 = vpow2.f32 %v724_v17 }
 0x1c9   :  { %v2654_v12 = vpop.eup %2653  ;;  %2673 = vpow2.f32 %v728_v42 }
 0x1ca   :  { %v2656_v54 = vpop.eup %2655  ;;  %2675 = vpow2.f32 %v732_v46 }
 0x1cb   :  { %v2658_v44 = vpop.eup %2657  ;;  %v676_v58 = vadd.f32 %v2656_v54, %v2654_v12  ;;  %2677 = vpow2.f32 %v746_v22 }
 0x1cc   :  { %v2660_v13 = vpop.eup %2659  ;;  %2679 = vpow2.f32 %v749_v41 }
 0x1cd   :  { %v2662_v8 = vpop.eup %2661  ;;  %v680_v20 = vadd.f32 %v2658_v44, %v676_v58  ;;  %2681 = vpow2.f32 %v753_v3 }
 0x1ce   :  { %v2664_v47 = vpop.eup %2663  ;;  %2683 = vpow2.f32 %v757_v7 }
 0x1cf   :  { %v2666_v16 = vpop.eup %2665  ;;  %v684_v53 = vadd.f32 %v2660_v13, %v680_v20  ;;  %v701_v30 = vadd.f32 %v2664_v47, %v2662_v8 }
 0x1d0   :  { %v2668_v36 = vpop.eup %2667 }
 0x1d1   :  { %v2670_v33 = vpop.eup %2669  ;;  %2685 = vlog2.f32 %v684_v53  ;;  %v705_v5 = vadd.f32 %v2666_v16, %v701_v30 }
 0x1d2   :  { %v2672_v45 = vpop.eup %2671 }
 0x1d3   :  { %v2674_v25 = vpop.eup %2673  ;;  %v709_v63 = vadd.f32 %v2668_v36, %v705_v5  ;;  %v726_v59 = vadd.f32 %v2672_v45, %v2670_v33 }
 0x1d4   :  { %v2676_v17 = vpop.eup %2675 }
 0x1d5   :  { %v2678_v39 = vpop.eup %2677  ;;  %2687 = vlog2.f32 %v709_v63  ;;  %v730_v42 = vadd.f32 %v2674_v25, %v726_v59 }
 0x1d6   :  { %v2680_v46 = vpop.eup %2679 }
 0x1d7   :  { %v734_v48 = vadd.f32 %v2676_v17, %v730_v42  ;;  %v751_v22 = vadd.f32 %v2680_v46, %v2678_v39  ;;  %v2682_v41 = vpop.eup %2681 }
 0x1d8   :  { %v2684_v12 = vpop.eup %2683 }
 0x1d9   :  { %2689 = vlog2.f32 %v734_v48  ;;  %v755_v38 = vadd.f32 %v2682_v41, %v751_v22 }
 0x1db   :  { %v2686_v54 = vpop.eup %2685  ;;  %v759_v3 = vadd.f32 %v2684_v12, %v755_v38 }
 0x1dc   :  { %v686_v44 = vmul.f32 0.6931472, %v2686_v54 }
 0x1dd   :  { %2691 = vlog2.f32 %v759_v3 }
 0x1de   :  { %v687_v13 = vadd.f32 %v686_v44, %v3982_v37 }
 0x1df   :  { %v2688_v58 = vpop.eup %2687 }
 0x1e0   :  { %v711_v7 = vmul.f32 0.6931472, %v2688_v58  ;;  %v4031_v20 = vsub.f32 %v3923_v27, %v687_v13  ;;  %v4034_v47 = vsub.f32 %v3933_v43, %v687_v13  ;;  %v4038_v53 = vsub.f32 %v3955_v11, %v687_v13 }
 0x1e2   :  { %v712_v16 = vadd.f32 %v711_v7, %v3985_v52  ;;  %v4055_v52 = vsub.f32 %v3970_v29, %v687_v13 }
 0x1e3   :  { %v2690_v8 = vpop.eup %2689 }
 0x1e4   :  { %v736_v30 = vmul.f32 0.6931472, %v2690_v8  ;;  %v4041_v36 = vsub.f32 %v3926_v28, %v712_v16  ;;  %v4044_v33 = vsub.f32 %v3936_v40, %v712_v16  ;;  %v4047_v37 = vsub.f32 %v3958_v26, %v712_v16 }
 0x1e5   :  { %v4058_v28 = vsub.f32 %v3973_v10, %v712_v16 }
 0x1e6   :  { %v737_v27 = vadd.f32 %v736_v30, %v3988_v6  ;;  %v767_v43 = vmax.f32 %v4031_v20, %v4041_v36  ;;  %v792_v11 = vmax.f32 %v4034_v47, %v4044_v33  ;;  %v817_v40 = vmax.f32 %v4038_v53, %v4047_v37 }
 0x1e7   :  { %v2692_v5 = vpop.eup %2691  ;;  %v842_v17 = vmax.f32 %v4055_v52, %v4058_v28 }
 0x1e8   :  { %v4063_v26 = vsub.f32 %v3930_v15, %v737_v27  ;;  %v4066_v6 = vsub.f32 %v3939_v19, %v737_v27  ;;  %v761_v45 = vmul.f32 0.6931472, %v2692_v5  ;;  %v4069_v25 = vsub.f32 %v3961_v55, %v737_v27 }
 0x1e9   :  { %v4084_v55 = vsub.f32 %v3979_v32, %v737_v27 }
 0x1ea   :  { %v762_v63 = vadd.f32 %v761_v45, %v4013_v21  ;;  %v768_v29 = vmax.f32 %v767_v43, %v4063_v26  ;;  %v793_v10 = vmax.f32 %v792_v11, %v4066_v6  ;;  %v818_v59 = vmax.f32 %v817_v40, %v4069_v25 }
 0x1ec   :  { %v4078_v15 = vsub.f32 %v3947_v23, %v762_v63  ;;  %v4081_v19 = vsub.f32 %v3950_v34, %v762_v63  ;;  %v4087_v21 = vsub.f32 %v3976_v9, %v762_v63  ;;  %v843_v23 = vmax.f32 %v842_v17, %v4084_v55 }
 0x1ed   :  { %v4108_v22 = vsub.f32 %v4000_v24, %v762_v63 }
 0x1ee   :  { %v4090_v39 = vmax.f32 %v768_v29, %v4078_v15  ;;  %v4093_v42 = vmax.f32 %v793_v10, %v4081_v19  ;;  %v4096_v46 = vmax.f32 %v818_v59, %v4087_v21 }
 0x1ef   :  { %v4121_v8 = vmax.f32 %v843_v23, %v4108_v22 }
 0x1f0   :  { %v770_v34 = vsub.f32 %v4031_v20, %v4090_v39  ;;  %v773_v32 = vsub.f32 %v4041_v36, %v4090_v39  ;;  %v777_v9 = vsub.f32 %v4063_v26, %v4090_v39  ;;  %v781_v48 = vsub.f32 %v4078_v15, %v4090_v39 }
 0x1f1   :  { %v795_v41 = vsub.f32 %v4034_v47, %v4093_v42  ;;  %v798_v38 = vsub.f32 %v4044_v33, %v4093_v42  ;;  %v802_v44 = vsub.f32 %v4066_v6, %v4093_v42  ;;  %v806_v13 = vsub.f32 %v4081_v19, %v4093_v42 }
 0x1f2   :  { %v771_v12 = vmul.f32 1.442695, %v770_v34  ;;  %v774_v54 = vmul.f32 1.442695, %v773_v32  ;;  %v778_v3 = vmul.f32 1.442695, %v777_v9  ;;  %v820_v24 = vsub.f32 %v4038_v53, %v4096_v46 }
 0x1f3   :  { %v782_v58 = vmul.f32 1.442695, %v781_v48  ;;  %v796_v7 = vmul.f32 1.442695, %v795_v41  ;;  %v799_v16 = vmul.f32 1.442695, %v798_v38  ;;  %v823_v30 = vsub.f32 %v4047_v37, %v4096_v46 }
 0x1f4   :  { %2693 = vpow2.f32 %v771_v12  ;;  %v803_v27 = vmul.f32 1.442695, %v802_v44  ;;  %v827_v5 = vsub.f32 %v4069_v25, %v4096_v46  ;;  %v807_v43 = vmul.f32 1.442695, %v806_v13 }
 0x1f5   :  { %2695 = vpow2.f32 %v774_v54  ;;  %v831_v11 = vsub.f32 %v4087_v21, %v4096_v46  ;;  %v821_v40 = vmul.f32 1.442695, %v820_v24  ;;  %v845_v45 = vsub.f32 %v4055_v52, %v4121_v8 }
 0x1f6   :  { %2697 = vpow2.f32 %v778_v3  ;;  %v824_v63 = vmul.f32 1.442695, %v823_v30  ;;  %v848_v29 = vsub.f32 %v4058_v28, %v4121_v8  ;;  %v828_v10 = vmul.f32 1.442695, %v827_v5 }
 0x1f7   :  { %2699 = vpow2.f32 %v782_v58  ;;  %v832_v59 = vmul.f32 1.442695, %v831_v11  ;;  %v852_v17 = vsub.f32 %v4084_v55, %v4121_v8  ;;  %v846_v23 = vmul.f32 1.442695, %v845_v45 }
 0x1f8   :  { %2701 = vpow2.f32 %v796_v7  ;;  %v849_v34 = vmul.f32 1.442695, %v848_v29  ;;  %v856_v32 = vsub.f32 %v4108_v22, %v4121_v8 }
 0x1f9   :  { %2703 = vpow2.f32 %v799_v16  ;;  %v853_v41 = vmul.f32 1.442695, %v852_v17 }
 0x1fa   :  { %2705 = vpow2.f32 %v803_v27  ;;  %v857_v3 = vmul.f32 1.442695, %v856_v32 }
 0x1fb   :  { %2707 = vpow2.f32 %v807_v43 }
 0x1fc   :  { %2709 = vpow2.f32 %v821_v40 }
 0x1fd   :  { %2711 = vpow2.f32 %v824_v63 }
 0x1fe   :  { %v2694_v9 = vpop.eup %2693  ;;  %2713 = vpow2.f32 %v828_v10 }
 0x1ff   :  { %v2696_v48 = vpop.eup %2695  ;;  %2715 = vpow2.f32 %v832_v59 }
 0x200   :  { %v2698_v38 = vpop.eup %2697  ;;  %v776_v12 = vadd.f32 %v2696_v48, %v2694_v9  ;;  %2717 = vpow2.f32 %v846_v23 }
 0x201   :  { %v2700_v54 = vpop.eup %2699  ;;  %2719 = vpow2.f32 %v849_v34 }
 0x202   :  { %v2702_v44 = vpop.eup %2701  ;;  %v780_v58 = vadd.f32 %v2698_v38, %v776_v12  ;;  %2721 = vpow2.f32 %v853_v41 }
 0x203   :  { %v2704_v13 = vpop.eup %2703  ;;  %2723 = vpow2.f32 %v857_v3 }
 0x204   :  { %v2706_v7 = vpop.eup %2705  ;;  %v784_v24 = vadd.f32 %v2700_v54, %v780_v58  ;;  %v801_v16 = vadd.f32 %v2704_v13, %v2702_v44 }
 0x205   :  { %v2708_v30 = vpop.eup %2707 }
 0x206   :  { %v2710_v27 = vpop.eup %2709  ;;  %2725 = vlog2.f32 %v784_v24  ;;  %v805_v5 = vadd.f32 %v2706_v7, %v801_v16 }
 0x207   :  { %v2712_v43 = vpop.eup %2711 }
 0x208   :  { %v2714_v11 = vpop.eup %2713  ;;  %v809_v40 = vadd.f32 %v2708_v30, %v805_v5  ;;  %v826_v45 = vadd.f32 %v2712_v43, %v2710_v27 }
 0x209   :  { %v2716_v63 = vpop.eup %2715 }
 0x20a   :  { %v2718_v29 = vpop.eup %2717  ;;  %2727 = vlog2.f32 %v809_v40  ;;  %v830_v10 = vadd.f32 %v2714_v11, %v826_v45 }
 0x20b   :  { %v2720_v59 = vpop.eup %2719 }
 0x20c   :  { %v834_v17 = vadd.f32 %v2716_v63, %v830_v10  ;;  %v851_v23 = vadd.f32 %v2720_v59, %v2718_v29  ;;  %v2722_v34 = vpop.eup %2721 }
 0x20d   :  { %v2724_v9 = vpop.eup %2723 }
 0x20e   :  { %2729 = vlog2.f32 %v834_v17  ;;  %v855_v32 = vadd.f32 %v2722_v34, %v851_v23 }
 0x210   :  { %v2726_v48 = vpop.eup %2725  ;;  %v859_v41 = vadd.f32 %v2724_v9, %v855_v32 }
 0x211   :  { %v786_v38 = vmul.f32 0.6931472, %v2726_v48 }
 0x212   :  { %2731 = vlog2.f32 %v859_v41 }
 0x213   :  { %v787_v54 = vadd.f32 %v786_v38, %v4090_v39 }
 0x214   :  { %v2728_v12 = vpop.eup %2727 }
 0x215   :  { %v811_v3 = vmul.f32 0.6931472, %v2728_v12  ;;  %v4139_v58 = vsub.f32 %v4031_v20, %v787_v54  ;;  %v4142_v13 = vsub.f32 %v4041_v36, %v787_v54  ;;  %v4146_v24 = vsub.f32 %v4063_v26, %v787_v54 }
 0x217   :  { %v812_v7 = vadd.f32 %v811_v3, %v4093_v42  ;;  %v4163_v42 = vsub.f32 %v4078_v15, %v787_v54 }
 0x218   :  { %v2730_v44 = vpop.eup %2729 }
 0x219   :  { %v836_v16 = vmul.f32 0.6931472, %v2730_v44  ;;  %v4149_v30 = vsub.f32 %v4034_v47, %v812_v7  ;;  %v4152_v27 = vsub.f32 %v4044_v33, %v812_v7  ;;  %v4155_v39 = vsub.f32 %v4066_v6, %v812_v7 }
 0x21a   :  { %v4166_v47 = vsub.f32 %v4081_v19, %v812_v7 }
 0x21b   :  { %v837_v20 = vadd.f32 %v836_v16, %v4096_v46  ;;  %v867_v36 = vmax.f32 %v4139_v58, %v4149_v30  ;;  %v892_v26 = vmax.f32 %v4142_v13, %v4152_v27  ;;  %v917_v33 = vmax.f32 %v4146_v24, %v4155_v39 }
 0x21c   :  { %v2732_v5 = vpop.eup %2731  ;;  %v942_v63 = vmax.f32 %v4163_v42, %v4166_v47 }
 0x21d   :  { %v4171_v6 = vsub.f32 %v4038_v53, %v837_v20  ;;  %v4174_v46 = vsub.f32 %v4047_v37, %v837_v20  ;;  %v861_v43 = vmul.f32 0.6931472, %v2732_v5  ;;  %v4177_v11 = vsub.f32 %v4069_v25, %v837_v20 }
 0x21e   :  { %v4192_v25 = vsub.f32 %v4087_v21, %v837_v20 }
 0x21f   :  { %v862_v40 = vadd.f32 %v861_v43, %v4121_v8  ;;  %v868_v15 = vmax.f32 %v867_v36, %v4171_v6  ;;  %v893_v19 = vmax.f32 %v892_v26, %v4174_v46  ;;  %v918_v45 = vmax.f32 %v917_v33, %v4177_v11 }
 0x221   :  { %v4186_v53 = vsub.f32 %v4055_v52, %v862_v40  ;;  %v4189_v37 = vsub.f32 %v4058_v28, %v862_v40  ;;  %v4195_v8 = vsub.f32 %v4084_v55, %v862_v40  ;;  %v943_v52 = vmax.f32 %v942_v63, %v4192_v25 }
 0x222   :  { %v4216_v23 = vsub.f32 %v4108_v22, %v862_v40 }
 0x223   :  { %v4198_v29 = vmax.f32 %v868_v15, %v4186_v53  ;;  %v4201_v10 = vmax.f32 %v893_v19, %v4189_v37  ;;  %v4204_v59 = vmax.f32 %v918_v45, %v4195_v8 }
 0x224   :  { %v4229_v44 = vmax.f32 %v943_v52, %v4216_v23 }
 0x225   :  { %v870_v28 = vsub.f32 %v4139_v58, %v4198_v29  ;;  %v873_v21 = vsub.f32 %v4149_v30, %v4198_v29  ;;  %v877_v55 = vsub.f32 %v4171_v6, %v4198_v29  ;;  %v881_v17 = vsub.f32 %v4186_v53, %v4198_v29 }
 0x226   :  { %v895_v34 = vsub.f32 %v4142_v13, %v4201_v10  ;;  %v898_v32 = vsub.f32 %v4152_v27, %v4201_v10  ;;  %v902_v38 = vsub.f32 %v4174_v46, %v4201_v10  ;;  %v906_v54 = vsub.f32 %v4189_v37, %v4201_v10 }
 0x227   :  { %v871_v9 = vmul.f32 1.442695, %v870_v28  ;;  %v874_v48 = vmul.f32 1.442695, %v873_v21  ;;  %v878_v41 = vmul.f32 1.442695, %v877_v55  ;;  %v920_v22 = vsub.f32 %v4146_v24, %v4204_v59 }
 0x228   :  { %v882_v12 = vmul.f32 1.442695, %v881_v17  ;;  %v896_v3 = vmul.f32 1.442695, %v895_v34  ;;  %v899_v7 = vmul.f32 1.442695, %v898_v32  ;;  %v923_v16 = vsub.f32 %v4155_v39, %v4204_v59 }
 0x229   :  { %2733 = vpow2.f32 %v871_v9  ;;  %v903_v20 = vmul.f32 1.442695, %v902_v38  ;;  %v927_v5 = vsub.f32 %v4177_v11, %v4204_v59  ;;  %v907_v36 = vmul.f32 1.442695, %v906_v54 }
 0x22a   :  { %2735 = vpow2.f32 %v874_v48  ;;  %v931_v26 = vsub.f32 %v4195_v8, %v4204_v59  ;;  %v921_v33 = vmul.f32 1.442695, %v920_v22  ;;  %v945_v43 = vsub.f32 %v4163_v42, %v4229_v44 }
 0x22b   :  { %2737 = vpow2.f32 %v878_v41  ;;  %v924_v40 = vmul.f32 1.442695, %v923_v16  ;;  %v948_v15 = vsub.f32 %v4166_v47, %v4229_v44  ;;  %v928_v19 = vmul.f32 1.442695, %v927_v5 }
 0x22c   :  { %2739 = vpow2.f32 %v882_v12  ;;  %v932_v45 = vmul.f32 1.442695, %v931_v26  ;;  %v952_v63 = vsub.f32 %v4192_v25, %v4229_v44  ;;  %v946_v52 = vmul.f32 1.442695, %v945_v43 }
 0x22d   :  { %2741 = vpow2.f32 %v896_v3  ;;  %v949_v28 = vmul.f32 1.442695, %v948_v15  ;;  %v956_v21 = vsub.f32 %v4216_v23, %v4229_v44 }
 0x22e   :  { %2743 = vpow2.f32 %v899_v7  ;;  %v953_v34 = vmul.f32 1.442695, %v952_v63 }
 0x22f   :  { %2745 = vpow2.f32 %v903_v20  ;;  %v957_v41 = vmul.f32 1.442695, %v956_v21 }
 0x230   :  { %2747 = vpow2.f32 %v907_v36 }
 0x231   :  { %2749 = vpow2.f32 %v921_v33 }
 0x232   :  { %2751 = vpow2.f32 %v924_v40 }
 0x233   :  { %v2734_v55 = vpop.eup %2733  ;;  %2753 = vpow2.f32 %v928_v19 }
 0x234   :  { %v2736_v17 = vpop.eup %2735  ;;  %2755 = vpow2.f32 %v932_v45 }
 0x235   :  { %v2738_v32 = vpop.eup %2737  ;;  %v876_v9 = vadd.f32 %v2736_v17, %v2734_v55  ;;  %2757 = vpow2.f32 %v946_v52 }
 0x236   :  { %v2740_v48 = vpop.eup %2739  ;;  %2759 = vpow2.f32 %v949_v28 }
 0x237   :  { %v2742_v38 = vpop.eup %2741  ;;  %v880_v12 = vadd.f32 %v2738_v32, %v876_v9  ;;  %2761 = vpow2.f32 %v953_v34 }
 0x238   :  { %v2744_v54 = vpop.eup %2743  ;;  %2763 = vpow2.f32 %v957_v41 }
 0x239   :  { %v2746_v3 = vpop.eup %2745  ;;  %v884_v22 = vadd.f32 %v2740_v48, %v880_v12  ;;  %v901_v7 = vadd.f32 %v2744_v54, %v2742_v38 }
 0x23a   :  { %v2748_v16 = vpop.eup %2747 }
 0x23b   :  { %v2750_v20 = vpop.eup %2749  ;;  %2765 = vlog2.f32 %v884_v22  ;;  %v905_v5 = vadd.f32 %v2746_v3, %v901_v7 }
 0x23c   :  { %v2752_v36 = vpop.eup %2751 }
 0x23d   :  { %v2754_v26 = vpop.eup %2753  ;;  %v909_v33 = vadd.f32 %v2748_v16, %v905_v5  ;;  %v926_v43 = vadd.f32 %v2752_v36, %v2750_v20 }
 0x23e   :  { %v2756_v40 = vpop.eup %2755 }
 0x23f   :  { %v2758_v15 = vpop.eup %2757  ;;  %2767 = vlog2.f32 %v909_v33  ;;  %v930_v19 = vadd.f32 %v2754_v26, %v926_v43 }
 0x240   :  { %v2760_v45 = vpop.eup %2759 }
 0x241   :  { %v934_v63 = vadd.f32 %v2756_v40, %v930_v19  ;;  %v951_v52 = vadd.f32 %v2760_v45, %v2758_v15  ;;  %v2762_v28 = vpop.eup %2761 }
 0x242   :  { %v2764_v55 = vpop.eup %2763 }
 0x243   :  { %2769 = vlog2.f32 %v934_v63  ;;  %v955_v21 = vadd.f32 %v2762_v28, %v951_v52 }
 0x245   :  { %v2766_v17 = vpop.eup %2765  ;;  %v959_v34 = vadd.f32 %v2764_v55, %v955_v21 }
 0x246   :  { %v886_v32 = vmul.f32 0.6931472, %v2766_v17 }
 0x247   :  { %2771 = vlog2.f32 %v959_v34 }
 0x248   :  { %v887_v48 = vadd.f32 %v886_v32, %v4198_v29 }
 0x249   :  { %v2768_v9 = vpop.eup %2767 }
 0x24a   :  { %v911_v41 = vmul.f32 0.6931472, %v2768_v9  ;;  %v4247_v12 = vsub.f32 %v4139_v58, %v887_v48  ;;  %v4250_v54 = vsub.f32 %v4149_v30, %v887_v48  ;;  %v4254_v22 = vsub.f32 %v4171_v6, %v887_v48 }
 0x24c   :  { %v912_v3 = vadd.f32 %v911_v41, %v4201_v10  ;;  %v4271_v10 = vsub.f32 %v4186_v53, %v887_v48 }
 0x24d   :  { %v2770_v38 = vpop.eup %2769 }
 0x24e   :  { %v936_v7 = vmul.f32 0.6931472, %v2770_v38  ;;  %v4257_v16 = vsub.f32 %v4142_v13, %v912_v3  ;;  %v4260_v20 = vsub.f32 %v4152_v27, %v912_v3  ;;  %v4263_v29 = vsub.f32 %v4174_v46, %v912_v3 }
 0x24f   :  { %v4274_v13 = vsub.f32 %v4189_v37, %v912_v3 }
 0x250   :  { %v937_v58 = vadd.f32 %v936_v7, %v4204_v59  ;;  %v967_v30 = vmax.f32 %v4247_v12, %v4257_v16  ;;  %v992_v6 = vmax.f32 %v4250_v54, %v4260_v20  ;;  %v1017_v27 = vmax.f32 %v4254_v22, %v4263_v29 }
 0x251   :  { %v2772_v5 = vpop.eup %2771  ;;  %v1042_v40 = vmax.f32 %v4271_v10, %v4274_v13 }
 0x252   :  { %v4279_v46 = vsub.f32 %v4146_v24, %v937_v58  ;;  %v4282_v59 = vsub.f32 %v4155_v39, %v937_v58  ;;  %v961_v36 = vmul.f32 0.6931472, %v2772_v5  ;;  %v4285_v26 = vsub.f32 %v4177_v11, %v937_v58 }
 0x253   :  { %v4300_v11 = vsub.f32 %v4195_v8, %v937_v58 }
 0x254   :  { %v962_v33 = vadd.f32 %v961_v36, %v4229_v44  ;;  %v968_v53 = vmax.f32 %v967_v30, %v4279_v46  ;;  %v993_v37 = vmax.f32 %v992_v6, %v4282_v59  ;;  %v1018_v43 = vmax.f32 %v1017_v27, %v4285_v26 }
 0x256   :  { %v4294_v24 = vsub.f32 %v4163_v42, %v962_v33  ;;  %v4297_v39 = vsub.f32 %v4166_v47, %v962_v33  ;;  %v4303_v44 = vsub.f32 %v4192_v25, %v962_v33  ;;  %v1043_v42 = vmax.f32 %v1042_v40, %v4300_v11 }
 0x257   :  { %v4324_v52 = vsub.f32 %v4216_v23, %v962_v33 }
 0x258   :  { %v4306_v15 = vmax.f32 %v968_v53, %v4294_v24  ;;  %v4309_v19 = vmax.f32 %v993_v37, %v4297_v39  ;;  %v4312_v45 = vmax.f32 %v1018_v43, %v4303_v44 }
 0x259   :  { %v4337_v38 = vmax.f32 %v1043_v42, %v4324_v52 }
 0x25a   :  { %v970_v47 = vsub.f32 %v4247_v12, %v4306_v15  ;;  %v973_v8 = vsub.f32 %v4257_v16, %v4306_v15  ;;  %v977_v25 = vsub.f32 %v4279_v46, %v4306_v15  ;;  %v981_v63 = vsub.f32 %v4294_v24, %v4306_v15 }
 0x25b   :  { %v995_v28 = vsub.f32 %v4250_v54, %v4309_v19  ;;  %v998_v21 = vsub.f32 %v4260_v20, %v4309_v19  ;;  %v1002_v32 = vsub.f32 %v4282_v59, %v4309_v19  ;;  %v1006_v48 = vsub.f32 %v4297_v39, %v4309_v19 }
 0x25c   :  { %v971_v55 = vmul.f32 1.442695, %v970_v47  ;;  %v974_v17 = vmul.f32 1.442695, %v973_v8  ;;  %v978_v34 = vmul.f32 1.442695, %v977_v25  ;;  %v1020_v23 = vsub.f32 %v4254_v22, %v4312_v45 }
 0x25d   :  { %v982_v9 = vmul.f32 1.442695, %v981_v63  ;;  %v996_v41 = vmul.f32 1.442695, %v995_v28  ;;  %v999_v3 = vmul.f32 1.442695, %v998_v21  ;;  %v1023_v7 = vsub.f32 %v4263_v29, %v4312_v45 }
 0x25e   :  { %2773 = vpow2.f32 %v971_v55  ;;  %v1003_v58 = vmul.f32 1.442695, %v1002_v32  ;;  %v1027_v5 = vsub.f32 %v4285_v26, %v4312_v45  ;;  %v1007_v30 = vmul.f32 1.442695, %v1006_v48 }
 0x25f   :  { %2775 = vpow2.f32 %v974_v17  ;;  %v1031_v6 = vsub.f32 %v4303_v44, %v4312_v45  ;;  %v1021_v27 = vmul.f32 1.442695, %v1020_v23  ;;  %v1045_v36 = vsub.f32 %v4271_v10, %v4337_v38 }
 0x260   :  { %2777 = vpow2.f32 %v978_v34  ;;  %v1024_v33 = vmul.f32 1.442695, %v1023_v7  ;;  %v1048_v53 = vsub.f32 %v4274_v13, %v4337_v38  ;;  %v1028_v37 = vmul.f32 1.442695, %v1027_v5 }
 0x261   :  { %2779 = vpow2.f32 %v982_v9  ;;  %v1032_v43 = vmul.f32 1.442695, %v1031_v6  ;;  %v1052_v40 = vsub.f32 %v4300_v11, %v4337_v38  ;;  %v1046_v42 = vmul.f32 1.442695, %v1045_v36 }
 0x262   :  { %2781 = vpow2.f32 %v996_v41  ;;  %v1049_v47 = vmul.f32 1.442695, %v1048_v53  ;;  %v1056_v8 = vsub.f32 %v4324_v52, %v4337_v38 }
 0x263   :  { %2783 = vpow2.f32 %v999_v3  ;;  %v1053_v28 = vmul.f32 1.442695, %v1052_v40 }
 0x264   :  { %2785 = vpow2.f32 %v1003_v58  ;;  %v1057_v34 = vmul.f32 1.442695, %v1056_v8 }
 0x265   :  { %2787 = vpow2.f32 %v1007_v30 }
 0x266   :  { %2789 = vpow2.f32 %v1021_v27 }
 0x267   :  { %2791 = vpow2.f32 %v1024_v33 }
 0x268   :  { %v2774_v25 = vpop.eup %2773  ;;  %2793 = vpow2.f32 %v1028_v37 }
 0x269   :  { %v2776_v63 = vpop.eup %2775  ;;  %2795 = vpow2.f32 %v1032_v43 }
 0x26a   :  { %v2778_v21 = vpop.eup %2777  ;;  %v976_v55 = vadd.f32 %v2776_v63, %v2774_v25  ;;  %2797 = vpow2.f32 %v1046_v42 }
 0x26b   :  { %v2780_v17 = vpop.eup %2779  ;;  %2799 = vpow2.f32 %v1049_v47 }
 0x26c   :  { %v2782_v32 = vpop.eup %2781  ;;  %v980_v9 = vadd.f32 %v2778_v21, %v976_v55  ;;  %2801 = vpow2.f32 %v1053_v28 }
 0x26d   :  { %v2784_v48 = vpop.eup %2783  ;;  %2803 = vpow2.f32 %v1057_v34 }
 0x26e   :  { %v2786_v41 = vpop.eup %2785  ;;  %v984_v23 = vadd.f32 %v2780_v17, %v980_v9  ;;  %v1001_v3 = vadd.f32 %v2784_v48, %v2782_v32 }
 0x26f   :  { %v2788_v7 = vpop.eup %2787 }
 0x270   :  { %v2790_v58 = vpop.eup %2789  ;;  %2805 = vlog2.f32 %v984_v23  ;;  %v1005_v5 = vadd.f32 %v2786_v41, %v1001_v3 }
 0x271   :  { %v2792_v30 = vpop.eup %2791 }
 0x272   :  { %v2794_v6 = vpop.eup %2793  ;;  %v1009_v27 = vadd.f32 %v2788_v7, %v1005_v5  ;;  %v1026_v36 = vadd.f32 %v2792_v30, %v2790_v58 }
 0x273   :  { %v2796_v33 = vpop.eup %2795 }
 0x274   :  { %v2798_v53 = vpop.eup %2797  ;;  %2807 = vlog2.f32 %v1009_v27  ;;  %v1030_v37 = vadd.f32 %v2794_v6, %v1026_v36 }
 0x275   :  { %v2800_v43 = vpop.eup %2799 }
 0x276   :  { %v1034_v40 = vadd.f32 %v2796_v33, %v1030_v37  ;;  %v1051_v42 = vadd.f32 %v2800_v43, %v2798_v53  ;;  %v2802_v47 = vpop.eup %2801 }
 0x277   :  { %v2804_v25 = vpop.eup %2803 }
 0x278   :  { %2809 = vlog2.f32 %v1034_v40  ;;  %v1055_v8 = vadd.f32 %v2802_v47, %v1051_v42 }
 0x27a   :  { %v2806_v63 = vpop.eup %2805  ;;  %v1059_v28 = vadd.f32 %v2804_v25, %v1055_v8 }
 0x27b   :  { %v986_v21 = vmul.f32 0.6931472, %v2806_v63 }
 0x27c   :  { %2811 = vlog2.f32 %v1059_v28 }
 0x27d   :  { %v987_v17 = vadd.f32 %v986_v21, %v4306_v15 }
 0x27e   :  { %v2808_v55 = vpop.eup %2807 }
 0x27f   :  { %v1011_v34 = vmul.f32 0.6931472, %v2808_v55  ;;  %v4355_v9 = vsub.f32 %v4247_v12, %v987_v17  ;;  %v4358_v48 = vsub.f32 %v4257_v16, %v987_v17  ;;  %v4362_v23 = vsub.f32 %v4279_v46, %v987_v17 }
 0x281   :  { %v1012_v41 = vadd.f32 %v1011_v34, %v4309_v19  ;;  %v4379_v19 = vsub.f32 %v4294_v24, %v987_v17 }
 0x282   :  { %v2810_v32 = vpop.eup %2809 }
 0x283   :  { %v1036_v3 = vmul.f32 0.6931472, %v2810_v32  ;;  %v4365_v7 = vsub.f32 %v4250_v54, %v1012_v41  ;;  %v4368_v58 = vsub.f32 %v4260_v20, %v1012_v41  ;;  %v4371_v15 = vsub.f32 %v4282_v59, %v1012_v41 }
 0x284   :  { %v4382_v54 = vsub.f32 %v4297_v39, %v1012_v41 }
 0x285   :  { %v1037_v12 = vadd.f32 %v1036_v3, %v4312_v45  ;;  %v1067_v16 = vmax.f32 %v4355_v9, %v4365_v7  ;;  %v1092_v46 = vmax.f32 %v4358_v48, %v4368_v58  ;;  %v1117_v20 = vmax.f32 %v4362_v23, %v4371_v15 }
 0x286   :  { %v2812_v5 = vpop.eup %2811  ;;  %v1142_v33 = vmax.f32 %v4379_v19, %v4382_v54 }
 0x287   :  { %v4387_v59 = vsub.f32 %v4254_v22, %v1037_v12  ;;  %v4390_v45 = vsub.f32 %v4263_v29, %v1037_v12  ;;  %v1061_v30 = vmul.f32 0.6931472, %v2812_v5  ;;  %v4393_v6 = vsub.f32 %v4285_v26, %v1037_v12 }
 0x288   :  { %v4408_v26 = vsub.f32 %v4303_v44, %v1037_v12 }
 0x289   :  { %v1062_v27 = vadd.f32 %v1061_v30, %v4337_v38  ;;  %v1068_v24 = vmax.f32 %v1067_v16, %v4387_v59  ;;  %v1093_v39 = vmax.f32 %v1092_v46, %v4390_v45  ;;  %v1118_v36 = vmax.f32 %v1117_v20, %v4393_v6 }
 0x28b   :  { %v4402_v22 = vsub.f32 %v4271_v10, %v1062_v27  ;;  %v4405_v29 = vsub.f32 %v4274_v13, %v1062_v27  ;;  %v4411_v38 = vsub.f32 %v4300_v11, %v1062_v27  ;;  %v1143_v10 = vmax.f32 %v1142_v33, %v4408_v26 }
 0x28c   :  { %v4432_v42 = vsub.f32 %v4324_v52, %v1062_v27 }
 0x28d   :  { %v4414_v53 = vmax.f32 %v1068_v24, %v4402_v22  ;;  %v4417_v37 = vmax.f32 %v1093_v39, %v4405_v29  ;;  %v4420_v43 = vmax.f32 %v1118_v36, %v4411_v38 }
 0x28e   :  { %v4445_v32 = vmax.f32 %v1143_v10, %v4432_v42 }
 0x28f   :  { %v1070_v13 = vsub.f32 %v4355_v9, %v4414_v53  ;;  %v1073_v44 = vsub.f32 %v4365_v7, %v4414_v53  ;;  %v1077_v11 = vsub.f32 %v4387_v59, %v4414_v53  ;;  %v1081_v40 = vsub.f32 %v4402_v22, %v4414_v53 }
 0x290   :  { %v1095_v47 = vsub.f32 %v4358_v48, %v4417_v37  ;;  %v1098_v8 = vsub.f32 %v4368_v58, %v4417_v37  ;;  %v1102_v21 = vsub.f32 %v4390_v45, %v4417_v37  ;;  %v1106_v17 = vsub.f32 %v4405_v29, %v4417_v37 }
 0x291   :  { %v1071_v25 = vmul.f32 1.442695, %v1070_v13  ;;  %v1074_v63 = vmul.f32 1.442695, %v1073_v44  ;;  %v1078_v28 = vmul.f32 1.442695, %v1077_v11  ;;  %v1120_v52 = vsub.f32 %v4362_v23, %v4420_v43 }
 0x292   :  { %v1082_v55 = vmul.f32 1.442695, %v1081_v40  ;;  %v1096_v34 = vmul.f32 1.442695, %v1095_v47  ;;  %v1099_v41 = vmul.f32 1.442695, %v1098_v8  ;;  %v1123_v3 = vsub.f32 %v4371_v15, %v4420_v43 }
 0x293   :  { %2813 = vpow2.f32 %v1071_v25  ;;  %v1103_v12 = vmul.f32 1.442695, %v1102_v21  ;;  %v1127_v5 = vsub.f32 %v4393_v6, %v4420_v43  ;;  %v1107_v16 = vmul.f32 1.442695, %v1106_v17 }
 0x294   :  { %2815 = vpow2.f32 %v1074_v63  ;;  %v1131_v46 = vsub.f32 %v4411_v38, %v4420_v43  ;;  %v1121_v20 = vmul.f32 1.442695, %v1120_v52  ;;  %v1145_v30 = vsub.f32 %v4379_v19, %v4445_v32 }
 0x295   :  { %2817 = vpow2.f32 %v1078_v28  ;;  %v1124_v27 = vmul.f32 1.442695, %v1123_v3  ;;  %v1148_v24 = vsub.f32 %v4382_v54, %v4445_v32  ;;  %v1128_v39 = vmul.f32 1.442695, %v1127_v5 }
 0x296   :  { %2819 = vpow2.f32 %v1082_v55  ;;  %v1132_v36 = vmul.f32 1.442695, %v1131_v46  ;;  %v1152_v33 = vsub.f32 %v4408_v26, %v4445_v32  ;;  %v1146_v10 = vmul.f32 1.442695, %v1145_v30 }
 0x297   :  { %2821 = vpow2.f32 %v1096_v34  ;;  %v1149_v13 = vmul.f32 1.442695, %v1148_v24  ;;  %v1156_v44 = vsub.f32 %v4432_v42, %v4445_v32 }
 0x298   :  { %2823 = vpow2.f32 %v1099_v41  ;;  %v1153_v47 = vmul.f32 1.442695, %v1152_v33 }
 0x299   :  { %2825 = vpow2.f32 %v1103_v12  ;;  %v1157_v28 = vmul.f32 1.442695, %v1156_v44 }
 0x29a   :  { %2827 = vpow2.f32 %v1107_v16 }
 0x29b   :  { %2829 = vpow2.f32 %v1121_v20 }
 0x29c   :  { %2831 = vpow2.f32 %v1124_v27 }
 0x29d   :  { %v2814_v11 = vpop.eup %2813  ;;  %2833 = vpow2.f32 %v1128_v39 }
 0x29e   :  { %v2816_v40 = vpop.eup %2815  ;;  %2835 = vpow2.f32 %v1132_v36 }
 0x29f   :  { %v2818_v8 = vpop.eup %2817  ;;  %v1076_v25 = vadd.f32 %v2816_v40, %v2814_v11  ;;  %2837 = vpow2.f32 %v1146_v10 }
 0x2a0   :  { %v2820_v63 = vpop.eup %2819  ;;  %2839 = vpow2.f32 %v1149_v13 }
 0x2a1   :  { %v2822_v21 = vpop.eup %2821  ;;  %v1080_v55 = vadd.f32 %v2818_v8, %v1076_v25  ;;  %2841 = vpow2.f32 %v1153_v47 }
 0x2a2   :  { %v2824_v17 = vpop.eup %2823  ;;  %2843 = vpow2.f32 %v1157_v28 }
 0x2a3   :  { %v2826_v34 = vpop.eup %2825  ;;  %v1084_v52 = vadd.f32 %v2820_v63, %v1080_v55  ;;  %v1101_v41 = vadd.f32 %v2824_v17, %v2822_v21 }
 0x2a4   :  { %v2828_v3 = vpop.eup %2827 }
 0x2a5   :  { %v2830_v12 = vpop.eup %2829  ;;  %2845 = vlog2.f32 %v1084_v52  ;;  %v1105_v5 = vadd.f32 %v2826_v34, %v1101_v41 }
 0x2a6   :  { %v2832_v16 = vpop.eup %2831 }
 0x2a7   :  { %v2834_v46 = vpop.eup %2833  ;;  %v1109_v20 = vadd.f32 %v2828_v3, %v1105_v5  ;;  %v1126_v30 = vadd.f32 %v2832_v16, %v2830_v12 }
 0x2a8   :  { %v2836_v27 = vpop.eup %2835 }
 0x2a9   :  { %v2838_v24 = vpop.eup %2837  ;;  %2847 = vlog2.f32 %v1109_v20  ;;  %v1130_v39 = vadd.f32 %v2834_v46, %v1126_v30 }
 0x2aa   :  { %v2840_v36 = vpop.eup %2839 }
 0x2ab   :  { %v1134_v33 = vadd.f32 %v2836_v27, %v1130_v39  ;;  %v1151_v10 = vadd.f32 %v2840_v36, %v2838_v24  ;;  %v2842_v13 = vpop.eup %2841 }
 0x2ac   :  { %v2844_v11 = vpop.eup %2843 }
 0x2ad   :  { %2849 = vlog2.f32 %v1134_v33  ;;  %v1155_v44 = vadd.f32 %v2842_v13, %v1151_v10 }
 0x2af   :  { %v2846_v40 = vpop.eup %2845  ;;  %v1159_v47 = vadd.f32 %v2844_v11, %v1155_v44 }
 0x2b0   :  { %v1086_v8 = vmul.f32 0.6931472, %v2846_v40 }
 0x2b1   :  { %2851 = vlog2.f32 %v1159_v47 }
 0x2b2   :  { %v1087_v63 = vadd.f32 %v1086_v8, %v4414_v53 }
 0x2b3   :  { %v2848_v25 = vpop.eup %2847 }
 0x2b4   :  { %v1111_v28 = vmul.f32 0.6931472, %v2848_v25  ;;  %v4463_v55 = vsub.f32 %v4355_v9, %v1087_v63  ;;  %v4466_v17 = vsub.f32 %v4365_v7, %v1087_v63  ;;  %v4470_v52 = vsub.f32 %v4387_v59, %v1087_v63 }
 0x2b6   :  { %v1112_v34 = vadd.f32 %v1111_v28, %v4417_v37  ;;  %v4487_v37 = vsub.f32 %v4402_v22, %v1087_v63 }
 0x2b7   :  { %v2850_v21 = vpop.eup %2849 }
 0x2b8   :  { %v1136_v41 = vmul.f32 0.6931472, %v2850_v21  ;;  %v4473_v3 = vsub.f32 %v4358_v48, %v1112_v34  ;;  %v4476_v12 = vsub.f32 %v4368_v58, %v1112_v34  ;;  %v4479_v53 = vsub.f32 %v4390_v45, %v1112_v34 }
 0x2b9   :  { %v4490_v48 = vsub.f32 %v4405_v29, %v1112_v34 }
 0x2ba   :  { %v1137_v9 = vadd.f32 %v1136_v41, %v4420_v43  ;;  %v1167_v7 = vmax.f32 %v4463_v55, %v4473_v3  ;;  %v1192_v59 = vmax.f32 %v4466_v17, %v4476_v12  ;;  %v1217_v58 = vmax.f32 %v4470_v52, %v4479_v53 }
 0x2bb   :  { %v2852_v5 = vpop.eup %2851  ;;  %v1242_v27 = vmax.f32 %v4487_v37, %v4490_v48 }
 0x2bc   :  { %v4495_v45 = vsub.f32 %v4362_v23, %v1137_v9  ;;  %v4498_v43 = vsub.f32 %v4371_v15, %v1137_v9  ;;  %v1161_v16 = vmul.f32 0.6931472, %v2852_v5  ;;  %v4501_v46 = vsub.f32 %v4393_v6, %v1137_v9 }
 0x2bd   :  { %v4516_v6 = vsub.f32 %v4411_v38, %v1137_v9 }
 0x2be   :  { %v1162_v20 = vadd.f32 %v1161_v16, %v4445_v32  ;;  %v1168_v22 = vmax.f32 %v1167_v7, %v4495_v45  ;;  %v1193_v29 = vmax.f32 %v1192_v59, %v4498_v43  ;;  %v1218_v30 = vmax.f32 %v1217_v58, %v4501_v46 }
 0x2c0   :  { %v4510_v23 = vsub.f32 %v4379_v19, %v1162_v20  ;;  %v4513_v15 = vsub.f32 %v4382_v54, %v1162_v20  ;;  %v4519_v32 = vsub.f32 %v4408_v26, %v1162_v20  ;;  %v1243_v19 = vmax.f32 %v1242_v27, %v4516_v6 }
 0x2c1   :  { %v4540_v10 = vsub.f32 %v4432_v42, %v1162_v20 }
 0x2c2   :  { %v4522_v24 = vmax.f32 %v1168_v22, %v4510_v23  ;;  %v4525_v39 = vmax.f32 %v1193_v29, %v4513_v15  ;;  %v4528_v36 = vmax.f32 %v1218_v30, %v4519_v32 }
 0x2c3   :  { %v4553_v21 = vmax.f32 %v1243_v19, %v4540_v10 }
 0x2c4   :  { %v1170_v54 = vsub.f32 %v4463_v55, %v4522_v24  ;;  %v1173_v38 = vsub.f32 %v4473_v3, %v4522_v24  ;;  %v1177_v26 = vsub.f32 %v4495_v45, %v4522_v24  ;;  %v1181_v33 = vsub.f32 %v4510_v23, %v4522_v24 }
 0x2c5   :  { %v1195_v13 = vsub.f32 %v4466_v17, %v4525_v39  ;;  %v1198_v44 = vsub.f32 %v4476_v12, %v4525_v39  ;;  %v1202_v8 = vsub.f32 %v4498_v43, %v4525_v39  ;;  %v1206_v63 = vsub.f32 %v4513_v15, %v4525_v39 }
 0x2c6   :  { %v1171_v11 = vmul.f32 1.442695, %v1170_v54  ;;  %v1174_v40 = vmul.f32 1.442695, %v1173_v38  ;;  %v1178_v47 = vmul.f32 1.442695, %v1177_v26  ;;  %v1220_v42 = vsub.f32 %v4470_v52, %v4528_v36 }
 0x2c7   :  { %v1182_v25 = vmul.f32 1.442695, %v1181_v33  ;;  %v1196_v28 = vmul.f32 1.442695, %v1195_v13  ;;  %v1199_v34 = vmul.f32 1.442695, %v1198_v44  ;;  %v1223_v41 = vsub.f32 %v4479_v53, %v4528_v36 }
 0x2c8   :  { %2853 = vpow2.f32 %v1171_v11  ;;  %v1203_v9 = vmul.f32 1.442695, %v1202_v8  ;;  %v1227_v5 = vsub.f32 %v4501_v46, %v4528_v36  ;;  %v1207_v7 = vmul.f32 1.442695, %v1206_v63 }
 0x2c9   :  { %2855 = vpow2.f32 %v1174_v40  ;;  %v1231_v59 = vsub.f32 %v4519_v32, %v4528_v36  ;;  %v1221_v58 = vmul.f32 1.442695, %v1220_v42  ;;  %v1245_v16 = vsub.f32 %v4487_v37, %v4553_v21 }
 0x2ca   :  { %2857 = vpow2.f32 %v1178_v47  ;;  %v1224_v20 = vmul.f32 1.442695, %v1223_v41  ;;  %v1248_v22 = vsub.f32 %v4490_v48, %v4553_v21  ;;  %v1228_v29 = vmul.f32 1.442695, %v1227_v5 }
 0x2cb   :  { %2859 = vpow2.f32 %v1182_v25  ;;  %v1232_v30 = vmul.f32 1.442695, %v1231_v59  ;;  %v1252_v27 = vsub.f32 %v4516_v6, %v4553_v21  ;;  %v1246_v19 = vmul.f32 1.442695, %v1245_v16 }
 0x2cc   :  { %2861 = vpow2.f32 %v1196_v28  ;;  %v1249_v54 = vmul.f32 1.442695, %v1248_v22  ;;  %v1256_v38 = vsub.f32 %v4540_v10, %v4553_v21 }
 0x2cd   :  { %2863 = vpow2.f32 %v1199_v34  ;;  %v1253_v13 = vmul.f32 1.442695, %v1252_v27 }
 0x2ce   :  { %2865 = vpow2.f32 %v1203_v9  ;;  %v1257_v47 = vmul.f32 1.442695, %v1256_v38 }
 0x2cf   :  { %2867 = vpow2.f32 %v1207_v7 }
 0x2d0   :  { %2869 = vpow2.f32 %v1221_v58 }
 0x2d1   :  { %2871 = vpow2.f32 %v1224_v20 }
 0x2d2   :  { %v2854_v26 = vpop.eup %2853  ;;  %2873 = vpow2.f32 %v1228_v29 }
 0x2d3   :  { %v2856_v33 = vpop.eup %2855  ;;  %2875 = vpow2.f32 %v1232_v30 }
 0x2d4   :  { %v2858_v44 = vpop.eup %2857  ;;  %v1176_v11 = vadd.f32 %v2856_v33, %v2854_v26  ;;  %2877 = vpow2.f32 %v1246_v19 }
 0x2d5   :  { %v2860_v40 = vpop.eup %2859  ;;  %2879 = vpow2.f32 %v1249_v54 }
 0x2d6   :  { %v2862_v8 = vpop.eup %2861  ;;  %v1180_v25 = vadd.f32 %v2858_v44, %v1176_v11  ;;  %2881 = vpow2.f32 %v1253_v13 }
 0x2d7   :  { %v2864_v63 = vpop.eup %2863  ;;  %2883 = vpow2.f32 %v1257_v47 }
 0x2d8   :  { %v2866_v28 = vpop.eup %2865  ;;  %v1184_v42 = vadd.f32 %v2860_v40, %v1180_v25  ;;  %v1201_v34 = vadd.f32 %v2864_v63, %v2862_v8 }
 0x2d9   :  { %v2868_v41 = vpop.eup %2867 }
 0x2da   :  { %v2870_v9 = vpop.eup %2869  ;;  %2885 = vlog2.f32 %v1184_v42  ;;  %v1205_v5 = vadd.f32 %v2866_v28, %v1201_v34 }
 0x2db   :  { %v2872_v7 = vpop.eup %2871 }
 0x2dc   :  { %v2874_v59 = vpop.eup %2873  ;;  %v1209_v58 = vadd.f32 %v2868_v41, %v1205_v5  ;;  %v1226_v16 = vadd.f32 %v2872_v7, %v2870_v9 }
 0x2dd   :  { %v2876_v20 = vpop.eup %2875 }
 0x2de   :  { %v2878_v22 = vpop.eup %2877  ;;  %2887 = vlog2.f32 %v1209_v58  ;;  %v1230_v29 = vadd.f32 %v2874_v59, %v1226_v16 }
 0x2df   :  { %v2880_v30 = vpop.eup %2879 }
 0x2e0   :  { %v1234_v27 = vadd.f32 %v2876_v20, %v1230_v29  ;;  %v1251_v19 = vadd.f32 %v2880_v30, %v2878_v22  ;;  %v2882_v54 = vpop.eup %2881 }
 0x2e1   :  { %v2884_v26 = vpop.eup %2883 }
 0x2e2   :  { %2889 = vlog2.f32 %v1234_v27  ;;  %v1255_v38 = vadd.f32 %v2882_v54, %v1251_v19 }
 0x2e4   :  { %v2886_v33 = vpop.eup %2885  ;;  %v1259_v13 = vadd.f32 %v2884_v26, %v1255_v38 }
 0x2e5   :  { %v1186_v44 = vmul.f32 0.6931472, %v2886_v33 }
 0x2e6   :  { %2891 = vlog2.f32 %v1259_v13 }
 0x2e7   :  { %v1187_v40 = vadd.f32 %v1186_v44, %v4522_v24 }
 0x2e8   :  { %v2888_v11 = vpop.eup %2887 }
 0x2e9   :  { %v1211_v47 = vmul.f32 0.6931472, %v2888_v11  ;;  %v4571_v25 = vsub.f32 %v4463_v55, %v1187_v40  ;;  %v4574_v63 = vsub.f32 %v4473_v3, %v1187_v40  ;;  %v4578_v42 = vsub.f32 %v4495_v45, %v1187_v40 }
 0x2eb   :  { %v1212_v28 = vadd.f32 %v1211_v47, %v4525_v39  ;;  %v4595_v39 = vsub.f32 %v4510_v23, %v1187_v40 }
 0x2ec   :  { %v2890_v8 = vpop.eup %2889 }
 0x2ed   :  { %v1236_v34 = vmul.f32 0.6931472, %v2890_v8  ;;  %v4581_v41 = vsub.f32 %v4466_v17, %v1212_v28  ;;  %v4584_v9 = vsub.f32 %v4476_v12, %v1212_v28  ;;  %v4587_v24 = vsub.f32 %v4498_v43, %v1212_v28 }
 0x2ee   :  { %v4598_v17 = vsub.f32 %v4513_v15, %v1212_v28 }
 0x2ef   :  { %v1237_v55 = vadd.f32 %v1236_v34, %v4528_v36  ;;  %v1267_v3 = vmax.f32 %v4571_v25, %v4581_v41  ;;  %v1292_v45 = vmax.f32 %v4574_v63, %v4584_v9  ;;  %v1317_v12 = vmax.f32 %v4578_v42, %v4587_v24 }
 0x2f0   :  { %v2892_v5 = vpop.eup %2891  ;;  %v1342_v20 = vmax.f32 %v4595_v39, %v4598_v17 }
 0x2f1   :  { %v4603_v43 = vsub.f32 %v4470_v52, %v1237_v55  ;;  %v4606_v36 = vsub.f32 %v4479_v53, %v1237_v55  ;;  %v1261_v7 = vmul.f32 0.6931472, %v2892_v5  ;;  %v4609_v59 = vsub.f32 %v4501_v46, %v1237_v55 }
 0x2f2   :  { %v4624_v46 = vsub.f32 %v4519_v32, %v1237_v55 }
 0x2f3   :  { %v1262_v58 = vadd.f32 %v1261_v7, %v4553_v21  ;;  %v1268_v23 = vmax.f32 %v1267_v3, %v4603_v43  ;;  %v1293_v15 = vmax.f32 %v1292_v45, %v4606_v36  ;;  %v1318_v16 = vmax.f32 %v1317_v12, %v4609_v59 }
 0x2f5   :  { %v4618_v52 = vsub.f32 %v4487_v37, %v1262_v58  ;;  %v4621_v53 = vsub.f32 %v4490_v48, %v1262_v58  ;;  %v4627_v21 = vsub.f32 %v4516_v6, %v1262_v58  ;;  %v1343_v37 = vmax.f32 %v1342_v20, %v4624_v46 }
 0x2f6   :  { %v4648_v19 = vsub.f32 %v4540_v10, %v1262_v58 }
 0x2f7   :  { %v4630_v22 = vmax.f32 %v1268_v23, %v4618_v52  ;;  %v4633_v29 = vmax.f32 %v1293_v15, %v4621_v53  ;;  %v4636_v30 = vmax.f32 %v1318_v16, %v4627_v21 }
 0x2f8   :  { %v4661_v8 = vmax.f32 %v1343_v37, %v4648_v19 }
 0x2f9   :  { %v1270_v48 = vsub.f32 %v4571_v25, %v4630_v22  ;;  %v1273_v32 = vsub.f32 %v4581_v41, %v4630_v22  ;;  %v1277_v6 = vsub.f32 %v4603_v43, %v4630_v22  ;;  %v1281_v27 = vsub.f32 %v4618_v52, %v4630_v22 }
 0x2fa   :  { %v1295_v54 = vsub.f32 %v4574_v63, %v4633_v29  ;;  %v1298_v38 = vsub.f32 %v4584_v9, %v4633_v29  ;;  %v1302_v44 = vsub.f32 %v4606_v36, %v4633_v29  ;;  %v1306_v40 = vsub.f32 %v4621_v53, %v4633_v29 }
 0x2fb   :  { %v1271_v26 = vmul.f32 1.442695, %v1270_v48  ;;  %v1274_v33 = vmul.f32 1.442695, %v1273_v32  ;;  %v1278_v13 = vmul.f32 1.442695, %v1277_v6  ;;  %v1320_v10 = vsub.f32 %v4578_v42, %v4636_v30 }
 0x2fc   :  { %v1282_v11 = vmul.f32 1.442695, %v1281_v27  ;;  %v1296_v47 = vmul.f32 1.442695, %v1295_v54  ;;  %v1299_v28 = vmul.f32 1.442695, %v1298_v38  ;;  %v1323_v34 = vsub.f32 %v4587_v24, %v4636_v30 }
 0x2fd   :  { %2893 = vpow2.f32 %v1271_v26  ;;  %v1303_v55 = vmul.f32 1.442695, %v1302_v44  ;;  %v1327_v5 = vsub.f32 %v4609_v59, %v4636_v30  ;;  %v1307_v3 = vmul.f32 1.442695, %v1306_v40 }
 0x2fe   :  { %2895 = vpow2.f32 %v1274_v33  ;;  %v1331_v45 = vsub.f32 %v4627_v21, %v4636_v30  ;;  %v1321_v12 = vmul.f32 1.442695, %v1320_v10  ;;  %v1345_v7 = vsub.f32 %v4595_v39, %v4661_v8 }
 0x2ff   :  { %2897 = vpow2.f32 %v1278_v13  ;;  %v1324_v58 = vmul.f32 1.442695, %v1323_v34  ;;  %v1348_v23 = vsub.f32 %v4598_v17, %v4661_v8  ;;  %v1328_v15 = vmul.f32 1.442695, %v1327_v5 }
 0x300   :  { %2899 = vpow2.f32 %v1282_v11  ;;  %v1332_v16 = vmul.f32 1.442695, %v1331_v45  ;;  %v1352_v20 = vsub.f32 %v4624_v46, %v4661_v8  ;;  %v1346_v37 = vmul.f32 1.442695, %v1345_v7 }
 0x301   :  { %2901 = vpow2.f32 %v1296_v47  ;;  %v1349_v48 = vmul.f32 1.442695, %v1348_v23  ;;  %v1356_v32 = vsub.f32 %v4648_v19, %v4661_v8 }
 0x302   :  { %2903 = vpow2.f32 %v1299_v28  ;;  %v1353_v54 = vmul.f32 1.442695, %v1352_v20 }
 0x303   :  { %2905 = vpow2.f32 %v1303_v55  ;;  %v1357_v13 = vmul.f32 1.442695, %v1356_v32 }
 0x304   :  { %2907 = vpow2.f32 %v1307_v3 }
 0x305   :  { %2909 = vpow2.f32 %v1321_v12 }
 0x306   :  { %2911 = vpow2.f32 %v1324_v58 }
 0x307   :  { %v2894_v6 = vpop.eup %2893  ;;  %2913 = vpow2.f32 %v1328_v15 }
 0x308   :  { %v2896_v27 = vpop.eup %2895  ;;  %2915 = vpow2.f32 %v1332_v16 }
 0x309   :  { %v2898_v38 = vpop.eup %2897  ;;  %v1276_v26 = vadd.f32 %v2896_v27, %v2894_v6  ;;  %2917 = vpow2.f32 %v1346_v37 }
 0x30a   :  { %v2900_v33 = vpop.eup %2899  ;;  %2919 = vpow2.f32 %v1349_v48 }
 0x30b   :  { %v2902_v44 = vpop.eup %2901  ;;  %v1280_v11 = vadd.f32 %v2898_v38, %v1276_v26  ;;  %2921 = vpow2.f32 %v1353_v54 }
 0x30c   :  { %v2904_v40 = vpop.eup %2903  ;;  %2923 = vpow2.f32 %v1357_v13 }
 0x30d   :  { %v2906_v47 = vpop.eup %2905  ;;  %v1284_v10 = vadd.f32 %v2900_v33, %v1280_v11  ;;  %v1301_v28 = vadd.f32 %v2904_v40, %v2902_v44 }
 0x30e   :  { %v2908_v34 = vpop.eup %2907 }
 0x30f   :  { %v2910_v55 = vpop.eup %2909  ;;  %2925 = vlog2.f32 %v1284_v10  ;;  %v1305_v5 = vadd.f32 %v2906_v47, %v1301_v28 }
 0x310   :  { %v2912_v3 = vpop.eup %2911 }
 0x311   :  { %v2914_v45 = vpop.eup %2913  ;;  %v1309_v12 = vadd.f32 %v2908_v34, %v1305_v5  ;;  %v1326_v7 = vadd.f32 %v2912_v3, %v2910_v55 }
 0x312   :  { %v2916_v58 = vpop.eup %2915 }
 0x313   :  { %v2918_v23 = vpop.eup %2917  ;;  %2927 = vlog2.f32 %v1309_v12  ;;  %v1330_v15 = vadd.f32 %v2914_v45, %v1326_v7 }
 0x314   :  { %v2920_v16 = vpop.eup %2919 }
 0x315   :  { %v1334_v20 = vadd.f32 %v2916_v58, %v1330_v15  ;;  %v1351_v37 = vadd.f32 %v2920_v16, %v2918_v23  ;;  %v2922_v48 = vpop.eup %2921 }
 0x316   :  { %v2924_v6 = vpop.eup %2923 }
 0x317   :  { %2929 = vlog2.f32 %v1334_v20  ;;  %v1355_v32 = vadd.f32 %v2922_v48, %v1351_v37 }
 0x319   :  { %v2926_v27 = vpop.eup %2925  ;;  %v1359_v54 = vadd.f32 %v2924_v6, %v1355_v32 }
 0x31a   :  { %v1286_v38 = vmul.f32 0.6931472, %v2926_v27 }
 0x31b   :  { %2931 = vlog2.f32 %v1359_v54 }
 0x31c   :  { %v1287_v33 = vadd.f32 %v1286_v38, %v4630_v22 }
 0x31d   :  { %v2928_v26 = vpop.eup %2927 }
 0x31e   :  { %v1311_v13 = vmul.f32 0.6931472, %v2928_v26  ;;  %v4679_v11 = vsub.f32 %v4571_v25, %v1287_v33  ;;  %v4682_v40 = vsub.f32 %v4581_v41, %v1287_v33  ;;  %v4686_v10 = vsub.f32 %v4603_v43, %v1287_v33 }
 0x320   :  { %v1312_v47 = vadd.f32 %v1311_v13, %v4633_v29  ;;  %v4703_v29 = vsub.f32 %v4618_v52, %v1287_v33 }
 0x321   :  { %v2930_v44 = vpop.eup %2929 }
 0x322   :  { %v1336_v28 = vmul.f32 0.6931472, %v2930_v44  ;;  %v4689_v34 = vsub.f32 %v4574_v63, %v1312_v47  ;;  %v4692_v55 = vsub.f32 %v4584_v9, %v1312_v47  ;;  %v4695_v22 = vsub.f32 %v4606_v36, %v1312_v47 }
 0x323   :  { %v4706_v63 = vsub.f32 %v4621_v53, %v1312_v47 }
 0x324   :  { %v1337_v25 = vadd.f32 %v1336_v28, %v4636_v30  ;;  %v1367_v41 = vmax.f32 %v4679_v11, %v4689_v34  ;;  %v1392_v43 = vmax.f32 %v4682_v40, %v4692_v55  ;;  %v1417_v9 = vmax.f32 %v4686_v10, %v4695_v22 }
 0x325   :  { %v2932_v5 = vpop.eup %2931  ;;  %v1442_v58 = vmax.f32 %v4703_v29, %v4706_v63 }
 0x326   :  { %v4711_v36 = vsub.f32 %v4578_v42, %v1337_v25  ;;  %v4714_v30 = vsub.f32 %v4587_v24, %v1337_v25  ;;  %v1361_v3 = vmul.f32 0.6931472, %v2932_v5  ;;  %v4717_v45 = vsub.f32 %v4609_v59, %v1337_v25 }
 0x327   :  { %v4732_v59 = vsub.f32 %v4627_v21, %v1337_v25 }
 0x328   :  { %v1362_v12 = vadd.f32 %v1361_v3, %v4661_v8  ;;  %v1368_v52 = vmax.f32 %v1367_v41, %v4711_v36  ;;  %v1393_v53 = vmax.f32 %v1392_v43, %v4714_v30  ;;  %v1418_v7 = vmax.f32 %v1417_v9, %v4717_v45 }
 0x32a   :  { %v4726_v42 = vsub.f32 %v4595_v39, %v1362_v12  ;;  %v4729_v24 = vsub.f32 %v4598_v17, %v1362_v12  ;;  %v4735_v8 = vsub.f32 %v4624_v46, %v1362_v12  ;;  %v1443_v39 = vmax.f32 %v1442_v58, %v4732_v59 }
 0x32b   :  { %v4756_v37 = vsub.f32 %v4648_v19, %v1362_v12 }
 0x32c   :  { %v4738_v23 = vmax.f32 %v1368_v52, %v4726_v42  ;;  %v4741_v15 = vmax.f32 %v1393_v53, %v4729_v24  ;;  %v4744_v16 = vmax.f32 %v1418_v7, %v4735_v8 }
 0x32d   :  { %v4769_v44 = vmax.f32 %v1443_v39, %v4756_v37 }
 0x32e   :  { %v1370_v17 = vsub.f32 %v4679_v11, %v4738_v23  ;;  %v1373_v21 = vsub.f32 %v4689_v34, %v4738_v23  ;;  %v1377_v46 = vsub.f32 %v4711_v36, %v4738_v23  ;;  %v1381_v20 = vsub.f32 %v4726_v42, %v4738_v23 }
 0x32f   :  { %v1395_v48 = vsub.f32 %v4682_v40, %v4741_v15  ;;  %v1398_v32 = vsub.f32 %v4692_v55, %v4741_v15  ;;  %v1402_v38 = vsub.f32 %v4714_v30, %v4741_v15  ;;  %v1406_v33 = vsub.f32 %v4729_v24, %v4741_v15 }
 0x330   :  { %v1371_v6 = vmul.f32 1.442695, %v1370_v17  ;;  %v1374_v27 = vmul.f32 1.442695, %v1373_v21  ;;  %v1378_v54 = vmul.f32 1.442695, %v1377_v46  ;;  %v1420_v19 = vsub.f32 %v4686_v10, %v4744_v16 }
 0x331   :  { %v1382_v26 = vmul.f32 1.442695, %v1381_v20  ;;  %v1396_v13 = vmul.f32 1.442695, %v1395_v48  ;;  %v1399_v47 = vmul.f32 1.442695, %v1398_v32  ;;  %v1423_v28 = vsub.f32 %v4695_v22, %v4744_v16 }
 0x332   :  { %2933 = vpow2.f32 %v1371_v6  ;;  %v1403_v25 = vmul.f32 1.442695, %v1402_v38  ;;  %v1427_v5 = vsub.f32 %v4717_v45, %v4744_v16  ;;  %v1407_v41 = vmul.f32 1.442695, %v1406_v33 }
 0x333   :  { %2935 = vpow2.f32 %v1374_v27  ;;  %v1431_v43 = vsub.f32 %v4735_v8, %v4744_v16  ;;  %v1421_v9 = vmul.f32 1.442695, %v1420_v19  ;;  %v1445_v3 = vsub.f32 %v4703_v29, %v4769_v44 }
 0x334   :  { %2937 = vpow2.f32 %v1378_v54  ;;  %v1424_v12 = vmul.f32 1.442695, %v1423_v28  ;;  %v1448_v52 = vsub.f32 %v4706_v63, %v4769_v44  ;;  %v1428_v53 = vmul.f32 1.442695, %v1427_v5 }
 0x335   :  { %2939 = vpow2.f32 %v1382_v26  ;;  %v1432_v7 = vmul.f32 1.442695, %v1431_v43  ;;  %v1452_v58 = vsub.f32 %v4732_v59, %v4769_v44  ;;  %v1446_v39 = vmul.f32 1.442695, %v1445_v3 }
 0x336   :  { %2941 = vpow2.f32 %v1396_v13  ;;  %v1449_v17 = vmul.f32 1.442695, %v1448_v52  ;;  %v1456_v21 = vsub.f32 %v4756_v37, %v4769_v44 }
 0x337   :  { %2943 = vpow2.f32 %v1399_v47  ;;  %v1453_v48 = vmul.f32 1.442695, %v1452_v58 }
 0x338   :  { %2945 = vpow2.f32 %v1403_v25  ;;  %v1457_v54 = vmul.f32 1.442695, %v1456_v21 }
 0x339   :  { %2947 = vpow2.f32 %v1407_v41 }
 0x33a   :  { %2949 = vpow2.f32 %v1421_v9 }
 0x33b   :  { %2951 = vpow2.f32 %v1424_v12 }
 0x33c   :  { %v2934_v46 = vpop.eup %2933  ;;  %2953 = vpow2.f32 %v1428_v53 }
 0x33d   :  { %v2936_v20 = vpop.eup %2935  ;;  %2955 = vpow2.f32 %v1432_v7 }
 0x33e   :  { %v2938_v32 = vpop.eup %2937  ;;  %v1376_v6 = vadd.f32 %v2936_v20, %v2934_v46  ;;  %2957 = vpow2.f32 %v1446_v39 }
 0x33f   :  { %v2940_v27 = vpop.eup %2939  ;;  %2959 = vpow2.f32 %v1449_v17 }
 0x340   :  { %v2942_v38 = vpop.eup %2941  ;;  %v1380_v26 = vadd.f32 %v2938_v32, %v1376_v6  ;;  %2961 = vpow2.f32 %v1453_v48 }
 0x341   :  { %v2944_v33 = vpop.eup %2943  ;;  %2963 = vpow2.f32 %v1457_v54 }
 0x342   :  { %v2946_v13 = vpop.eup %2945  ;;  %v1384_v19 = vadd.f32 %v2940_v27, %v1380_v26  ;;  %v1401_v47 = vadd.f32 %v2944_v33, %v2942_v38 }
 0x343   :  { %v2948_v28 = vpop.eup %2947 }
 0x344   :  { %v2950_v25 = vpop.eup %2949  ;;  %2965 = vlog2.f32 %v1384_v19  ;;  %v1405_v5 = vadd.f32 %v2946_v13, %v1401_v47 }
 0x345   :  { %v2952_v41 = vpop.eup %2951 }
 0x346   :  { %v2954_v43 = vpop.eup %2953  ;;  %v1409_v9 = vadd.f32 %v2948_v28, %v1405_v5  ;;  %v1426_v3 = vadd.f32 %v2952_v41, %v2950_v25 }
 0x347   :  { %v2956_v12 = vpop.eup %2955 }
 0x348   :  { %v2958_v52 = vpop.eup %2957  ;;  %2967 = vlog2.f32 %v1409_v9  ;;  %v1430_v53 = vadd.f32 %v2954_v43, %v1426_v3 }
 0x349   :  { %v2960_v7 = vpop.eup %2959 }
 0x34a   :  { %v1434_v58 = vadd.f32 %v2956_v12, %v1430_v53  ;;  %v1451_v39 = vadd.f32 %v2960_v7, %v2958_v52  ;;  %v2962_v17 = vpop.eup %2961 }
 0x34b   :  { %v2964_v46 = vpop.eup %2963 }
 0x34c   :  { %2969 = vlog2.f32 %v1434_v58  ;;  %v1455_v21 = vadd.f32 %v2962_v17, %v1451_v39 }
 0x34e   :  { %v2966_v20 = vpop.eup %2965  ;;  %v1459_v48 = vadd.f32 %v2964_v46, %v1455_v21 }
 0x34f   :  { %v1386_v32 = vmul.f32 0.6931472, %v2966_v20 }
 0x350   :  { %2971 = vlog2.f32 %v1459_v48 }
 0x351   :  { %v1387_v27 = vadd.f32 %v1386_v32, %v4738_v23 }
 0x352   :  { %v2968_v6 = vpop.eup %2967 }
 0x353   :  { %v1411_v54 = vmul.f32 0.6931472, %v2968_v6  ;;  %v4787_v26 = vsub.f32 %v4679_v11, %v1387_v27  ;;  %v4790_v33 = vsub.f32 %v4689_v34, %v1387_v27  ;;  %v4794_v19 = vsub.f32 %v4711_v36, %v1387_v27 }
 0x355   :  { %v1412_v13 = vadd.f32 %v1411_v54, %v4741_v15  ;;  %v4811_v15 = vsub.f32 %v4726_v42, %v1387_v27 }
 0x356   :  { %v2970_v38 = vpop.eup %2969 }
 0x357   :  { %v1436_v47 = vmul.f32 0.6931472, %v2970_v38  ;;  %v4797_v28 = vsub.f32 %v4682_v40, %v1412_v13  ;;  %v4800_v25 = vsub.f32 %v4692_v55, %v1412_v13  ;;  %v4803_v23 = vsub.f32 %v4714_v30, %v1412_v13 }
 0x358   :  { %v4814_v40 = vsub.f32 %v4729_v24, %v1412_v13 }
 0x359   :  { %v1437_v11 = vadd.f32 %v1436_v47, %v4744_v16  ;;  %v1467_v34 = vmax.f32 %v4787_v26, %v4797_v28  ;;  %v1492_v36 = vmax.f32 %v4790_v33, %v4800_v25  ;;  %v1517_v55 = vmax.f32 %v4794_v19, %v4803_v23 }
 0x35a   :  { %v2972_v5 = vpop.eup %2971  ;;  %v1542_v12 = vmax.f32 %v4811_v15, %v4814_v40 }
 0x35b   :  { %v4819_v30 = vsub.f32 %v4686_v10, %v1437_v11  ;;  %v4822_v16 = vsub.f32 %v4695_v22, %v1437_v11  ;;  %v1461_v41 = vmul.f32 0.6931472, %v2972_v5  ;;  %v4825_v43 = vsub.f32 %v4717_v45, %v1437_v11 }
 0x35c   :  { %v4840_v45 = vsub.f32 %v4735_v8, %v1437_v11 }
 0x35d   :  { %v1462_v9 = vadd.f32 %v1461_v41, %v4769_v44  ;;  %v1468_v42 = vmax.f32 %v1467_v34, %v4819_v30  ;;  %v1493_v24 = vmax.f32 %v1492_v36, %v4822_v16  ;;  %v1518_v3 = vmax.f32 %v1517_v55, %v4825_v43 }
 0x35f   :  { %v4834_v10 = vsub.f32 %v4703_v29, %v1462_v9  ;;  %v4837_v22 = vsub.f32 %v4706_v63, %v1462_v9  ;;  %v4843_v44 = vsub.f32 %v4732_v59, %v1462_v9  ;;  %v1543_v29 = vmax.f32 %v1542_v12, %v4840_v45 }
 0x360   :  { %v4864_v39 = vsub.f32 %v4756_v37, %v1462_v9 }
 0x361   :  { %v4846_v52 = vmax.f32 %v1468_v42, %v4834_v10  ;;  %v4849_v53 = vmax.f32 %v1493_v24, %v4837_v22  ;;  %v4852_v7 = vmax.f32 %v1518_v3, %v4843_v44 }
 0x362   :  { %v4877_v38 = vmax.f32 %v1543_v29, %v4864_v39 }
 0x363   :  { %v1470_v63 = vsub.f32 %v4787_v26, %v4846_v52  ;;  %v1473_v8 = vsub.f32 %v4797_v28, %v4846_v52  ;;  %v1477_v59 = vsub.f32 %v4819_v30, %v4846_v52  ;;  %v1481_v58 = vsub.f32 %v4834_v10, %v4846_v52 }
 0x364   :  { %v1495_v17 = vsub.f32 %v4790_v33, %v4849_v53  ;;  %v1498_v21 = vsub.f32 %v4800_v25, %v4849_v53  ;;  %v1502_v32 = vsub.f32 %v4822_v16, %v4849_v53  ;;  %v1506_v27 = vsub.f32 %v4837_v22, %v4849_v53 }
 0x365   :  { %v1471_v46 = vmul.f32 1.442695, %v1470_v63  ;;  %v1474_v20 = vmul.f32 1.442695, %v1473_v8  ;;  %v1478_v48 = vmul.f32 1.442695, %v1477_v59  ;;  %v1520_v37 = vsub.f32 %v4794_v19, %v4852_v7 }
 0x366   :  { %v1482_v6 = vmul.f32 1.442695, %v1481_v58  ;;  %v1496_v54 = vmul.f32 1.442695, %v1495_v17  ;;  %v1499_v13 = vmul.f32 1.442695, %v1498_v21  ;;  %v1523_v47 = vsub.f32 %v4803_v23, %v4852_v7 }
 0x367   :  { %2973 = vpow2.f32 %v1471_v46  ;;  %v1503_v11 = vmul.f32 1.442695, %v1502_v32  ;;  %v1527_v5 = vsub.f32 %v4825_v43, %v4852_v7  ;;  %v1507_v34 = vmul.f32 1.442695, %v1506_v27 }
 0x368   :  { %2975 = vpow2.f32 %v1474_v20  ;;  %v1531_v36 = vsub.f32 %v4843_v44, %v4852_v7  ;;  %v1521_v55 = vmul.f32 1.442695, %v1520_v37  ;;  %v1545_v41 = vsub.f32 %v4811_v15, %v4877_v38 }
 0x369   :  { %2977 = vpow2.f32 %v1478_v48  ;;  %v1524_v9 = vmul.f32 1.442695, %v1523_v47  ;;  %v1548_v42 = vsub.f32 %v4814_v40, %v4877_v38  ;;  %v1528_v24 = vmul.f32 1.442695, %v1527_v5 }
 0x36a   :  { %2979 = vpow2.f32 %v1482_v6  ;;  %v1532_v3 = vmul.f32 1.442695, %v1531_v36  ;;  %v1552_v12 = vsub.f32 %v4840_v45, %v4877_v38  ;;  %v1546_v29 = vmul.f32 1.442695, %v1545_v41 }
 0x36b   :  { %2981 = vpow2.f32 %v1496_v54  ;;  %v1549_v63 = vmul.f32 1.442695, %v1548_v42  ;;  %v1556_v8 = vsub.f32 %v4864_v39, %v4877_v38 }
 0x36c   :  { %2983 = vpow2.f32 %v1499_v13  ;;  %v1553_v17 = vmul.f32 1.442695, %v1552_v12 }
 0x36d   :  { %2985 = vpow2.f32 %v1503_v11  ;;  %v1557_v48 = vmul.f32 1.442695, %v1556_v8 }
 0x36e   :  { %2987 = vpow2.f32 %v1507_v34 }
 0x36f   :  { %2989 = vpow2.f32 %v1521_v55 }
 0x370   :  { %2991 = vpow2.f32 %v1524_v9 }
 0x371   :  { %v2974_v59 = vpop.eup %2973  ;;  %2993 = vpow2.f32 %v1528_v24 }
 0x372   :  { %v2976_v58 = vpop.eup %2975  ;;  %2995 = vpow2.f32 %v1532_v3 }
 0x373   :  { %v2978_v21 = vpop.eup %2977  ;;  %v1476_v46 = vadd.f32 %v2976_v58, %v2974_v59  ;;  %2997 = vpow2.f32 %v1546_v29 }
 0x374   :  { %v2980_v20 = vpop.eup %2979  ;;  %2999 = vpow2.f32 %v1549_v63 }
 0x375   :  { %v2982_v32 = vpop.eup %2981  ;;  %v1480_v6 = vadd.f32 %v2978_v21, %v1476_v46  ;;  %3001 = vpow2.f32 %v1553_v17 }
 0x376   :  { %v2984_v27 = vpop.eup %2983  ;;  %3003 = vpow2.f32 %v1557_v48 }
 0x377   :  { %v2986_v54 = vpop.eup %2985  ;;  %v1484_v37 = vadd.f32 %v2980_v20, %v1480_v6  ;;  %v1501_v13 = vadd.f32 %v2984_v27, %v2982_v32 }
 0x378   :  { %v2988_v47 = vpop.eup %2987 }
 0x379   :  { %v2990_v11 = vpop.eup %2989  ;;  %3005 = vlog2.f32 %v1484_v37  ;;  %v1505_v5 = vadd.f32 %v2986_v54, %v1501_v13 }
 0x37a   :  { %v2992_v34 = vpop.eup %2991 }
 0x37b   :  { %v2994_v36 = vpop.eup %2993  ;;  %v1509_v55 = vadd.f32 %v2988_v47, %v1505_v5  ;;  %v1526_v41 = vadd.f32 %v2992_v34, %v2990_v11 }
 0x37c   :  { %v2996_v9 = vpop.eup %2995 }
 0x37d   :  { %v2998_v42 = vpop.eup %2997  ;;  %3007 = vlog2.f32 %v1509_v55  ;;  %v1530_v24 = vadd.f32 %v2994_v36, %v1526_v41 }
 0x37e   :  { %v3000_v3 = vpop.eup %2999 }
 0x37f   :  { %v1534_v12 = vadd.f32 %v2996_v9, %v1530_v24  ;;  %v1551_v29 = vadd.f32 %v3000_v3, %v2998_v42  ;;  %v3002_v63 = vpop.eup %3001 }
 0x380   :  { %v3004_v59 = vpop.eup %3003 }
 0x381   :  { %3009 = vlog2.f32 %v1534_v12  ;;  %v1555_v8 = vadd.f32 %v3002_v63, %v1551_v29 }
 0x383   :  { %v3006_v58 = vpop.eup %3005  ;;  %v1559_v17 = vadd.f32 %v3004_v59, %v1555_v8 }
 0x384   :  { %v1486_v21 = vmul.f32 0.6931472, %v3006_v58 }
 0x385   :  { %3011 = vlog2.f32 %v1559_v17 }
 0x386   :  { %v1487_v20 = vadd.f32 %v1486_v21, %v4846_v52 }
 0x387   :  { %v3008_v46 = vpop.eup %3007 }
 0x388   :  { %v1511_v48 = vmul.f32 0.6931472, %v3008_v46  ;;  %v4895_v6 = vsub.f32 %v4787_v26, %v1487_v20  ;;  %v4898_v27 = vsub.f32 %v4797_v28, %v1487_v20  ;;  %v4902_v37 = vsub.f32 %v4819_v30, %v1487_v20 }
 0x38a   :  { %v1512_v54 = vadd.f32 %v1511_v48, %v4849_v53  ;;  %v4919_v53 = vsub.f32 %v4834_v10, %v1487_v20 }
 0x38b   :  { %v3010_v32 = vpop.eup %3009 }
 0x38c   :  { %v1536_v13 = vmul.f32 0.6931472, %v3010_v32  ;;  %v4905_v47 = vsub.f32 %v4790_v33, %v1512_v54  ;;  %v4908_v11 = vsub.f32 %v4800_v25, %v1512_v54  ;;  %v4911_v52 = vsub.f32 %v4822_v16, %v1512_v54 }
 0x38d   :  { %v4922_v33 = vsub.f32 %v4837_v22, %v1512_v54 }
 0x38e   :  { %v1537_v26 = vadd.f32 %v1536_v13, %v4852_v7  ;;  %v1567_v28 = vmax.f32 %v4895_v6, %v4905_v47  ;;  %v1592_v30 = vmax.f32 %v4898_v27, %v4908_v11  ;;  %v1617_v25 = vmax.f32 %v4902_v37, %v4911_v52 }
 0x38f   :  { %v3012_v5 = vpop.eup %3011  ;;  %v1642_v9 = vmax.f32 %v4919_v53, %v4922_v33 }
 0x390   :  { %v4927_v16 = vsub.f32 %v4794_v19, %v1537_v26  ;;  %v4930_v7 = vsub.f32 %v4803_v23, %v1537_v26  ;;  %v1561_v34 = vmul.f32 0.6931472, %v3012_v5  ;;  %v4933_v36 = vsub.f32 %v4825_v43, %v1537_v26 }
 0x391   :  { %v4948_v43 = vsub.f32 %v4843_v44, %v1537_v26 }
 0x392   :  { %v1562_v55 = vadd.f32 %v1561_v34, %v4877_v38  ;;  %v1568_v10 = vmax.f32 %v1567_v28, %v4927_v16  ;;  %v1593_v22 = vmax.f32 %v1592_v30, %v4930_v7  ;;  %v1618_v41 = vmax.f32 %v1617_v25, %v4933_v36 }
 0x394   :  { %v4942_v19 = vsub.f32 %v4811_v15, %v1562_v55  ;;  %v4945_v23 = vsub.f32 %v4814_v40, %v1562_v55  ;;  %v4951_v38 = vsub.f32 %v4840_v45, %v1562_v55  ;;  %v1643_v15 = vmax.f32 %v1642_v9, %v4948_v43 }
 0x395   :  { %v4972_v29 = vsub.f32 %v4864_v39, %v1562_v55 }
 0x396   :  { %v4954_v42 = vmax.f32 %v1568_v10, %v4942_v19  ;;  %v4957_v24 = vmax.f32 %v1593_v22, %v4945_v23  ;;  %v4960_v3 = vmax.f32 %v1618_v41, %v4951_v38 }
 0x397   :  { %v4985_v32 = vmax.f32 %v1643_v15, %v4972_v29 }
 0x398   :  { %v1570_v40 = vsub.f32 %v4895_v6, %v4954_v42  ;;  %v1573_v44 = vsub.f32 %v4905_v47, %v4954_v42  ;;  %v1577_v45 = vsub.f32 %v4927_v16, %v4954_v42  ;;  %v1581_v12 = vsub.f32 %v4942_v19, %v4954_v42 }
 0x399   :  { %v1595_v63 = vsub.f32 %v4898_v27, %v4957_v24  ;;  %v1598_v8 = vsub.f32 %v4908_v11, %v4957_v24  ;;  %v1602_v21 = vsub.f32 %v4930_v7, %v4957_v24  ;;  %v1606_v20 = vsub.f32 %v4945_v23, %v4957_v24 }
 0x39a   :  { %v1571_v59 = vmul.f32 1.442695, %v1570_v40  ;;  %v1574_v58 = vmul.f32 1.442695, %v1573_v44  ;;  %v1578_v17 = vmul.f32 1.442695, %v1577_v45  ;;  %v1620_v39 = vsub.f32 %v4902_v37, %v4960_v3 }
 0x39b   :  { %v1582_v46 = vmul.f32 1.442695, %v1581_v12  ;;  %v1596_v48 = vmul.f32 1.442695, %v1595_v63  ;;  %v1599_v54 = vmul.f32 1.442695, %v1598_v8  ;;  %v1623_v13 = vsub.f32 %v4911_v52, %v4960_v3 }
 0x39c   :  { %3013 = vpow2.f32 %v1571_v59  ;;  %v1603_v26 = vmul.f32 1.442695, %v1602_v21  ;;  %v1627_v5 = vsub.f32 %v4933_v36, %v4960_v3  ;;  %v1607_v28 = vmul.f32 1.442695, %v1606_v20 }
 0x39d   :  { %3015 = vpow2.f32 %v1574_v58  ;;  %v1631_v30 = vsub.f32 %v4951_v38, %v4960_v3  ;;  %v1621_v25 = vmul.f32 1.442695, %v1620_v39  ;;  %v1645_v34 = vsub.f32 %v4919_v53, %v4985_v32 }
 0x39e   :  { %3017 = vpow2.f32 %v1578_v17  ;;  %v1624_v55 = vmul.f32 1.442695, %v1623_v13  ;;  %v1648_v10 = vsub.f32 %v4922_v33, %v4985_v32  ;;  %v1628_v22 = vmul.f32 1.442695, %v1627_v5 }
 0x39f   :  { %3019 = vpow2.f32 %v1582_v46  ;;  %v1632_v41 = vmul.f32 1.442695, %v1631_v30  ;;  %v1652_v9 = vsub.f32 %v4948_v43, %v4985_v32  ;;  %v1646_v15 = vmul.f32 1.442695, %v1645_v34 }
 0x3a0   :  { %3021 = vpow2.f32 %v1596_v48  ;;  %v1649_v40 = vmul.f32 1.442695, %v1648_v10  ;;  %v1656_v44 = vsub.f32 %v4972_v29, %v4985_v32 }
 0x3a1   :  { %3023 = vpow2.f32 %v1599_v54  ;;  %v1653_v63 = vmul.f32 1.442695, %v1652_v9 }
 0x3a2   :  { %3025 = vpow2.f32 %v1603_v26  ;;  %v1657_v17 = vmul.f32 1.442695, %v1656_v44 }
 0x3a3   :  { %3027 = vpow2.f32 %v1607_v28 }
 0x3a4   :  { %3029 = vpow2.f32 %v1621_v25 }
 0x3a5   :  { %3031 = vpow2.f32 %v1624_v55 }
 0x3a6   :  { %v3014_v45 = vpop.eup %3013  ;;  %3033 = vpow2.f32 %v1628_v22 }
 0x3a7   :  { %v3016_v12 = vpop.eup %3015  ;;  %3035 = vpow2.f32 %v1632_v41 }
 0x3a8   :  { %v3018_v8 = vpop.eup %3017  ;;  %v1576_v59 = vadd.f32 %v3016_v12, %v3014_v45  ;;  %3037 = vpow2.f32 %v1646_v15 }
 0x3a9   :  { %v3020_v58 = vpop.eup %3019  ;;  %3039 = vpow2.f32 %v1649_v40 }
 0x3aa   :  { %v3022_v21 = vpop.eup %3021  ;;  %v1580_v46 = vadd.f32 %v3018_v8, %v1576_v59  ;;  %3041 = vpow2.f32 %v1653_v63 }
 0x3ab   :  { %v3024_v20 = vpop.eup %3023  ;;  %3043 = vpow2.f32 %v1657_v17 }
 0x3ac   :  { %v3026_v48 = vpop.eup %3025  ;;  %v1584_v39 = vadd.f32 %v3020_v58, %v1580_v46  ;;  %v1601_v54 = vadd.f32 %v3024_v20, %v3022_v21 }
 0x3ad   :  { %v3028_v13 = vpop.eup %3027 }
 0x3ae   :  { %v3030_v26 = vpop.eup %3029  ;;  %3045 = vlog2.f32 %v1584_v39  ;;  %v1605_v5 = vadd.f32 %v3026_v48, %v1601_v54 }
 0x3af   :  { %v3032_v28 = vpop.eup %3031 }
 0x3b0   :  { %v3034_v30 = vpop.eup %3033  ;;  %v1609_v25 = vadd.f32 %v3028_v13, %v1605_v5  ;;  %v1626_v34 = vadd.f32 %v3032_v28, %v3030_v26 }
 0x3b1   :  { %v3036_v55 = vpop.eup %3035 }
 0x3b2   :  { %v3038_v10 = vpop.eup %3037  ;;  %3047 = vlog2.f32 %v1609_v25  ;;  %v1630_v22 = vadd.f32 %v3034_v30, %v1626_v34 }
 0x3b3   :  { %v3040_v41 = vpop.eup %3039 }
 0x3b4   :  { %v1634_v9 = vadd.f32 %v3036_v55, %v1630_v22  ;;  %v1651_v15 = vadd.f32 %v3040_v41, %v3038_v10  ;;  %v3042_v40 = vpop.eup %3041 }
 0x3b5   :  { %v3044_v45 = vpop.eup %3043 }
 0x3b6   :  { %3049 = vlog2.f32 %v1634_v9  ;;  %v1655_v44 = vadd.f32 %v3042_v40, %v1651_v15 }
 0x3b8   :  { %v3046_v12 = vpop.eup %3045  ;;  %v1659_v63 = vadd.f32 %v3044_v45, %v1655_v44 }
 0x3b9   :  { %v1586_v8 = vmul.f32 0.6931472, %v3046_v12 }
 0x3ba   :  { %3051 = vlog2.f32 %v1659_v63 }
 0x3bb   :  { %v1587_v58 = vadd.f32 %v1586_v8, %v4954_v42 }
 0x3bc   :  { %v3048_v59 = vpop.eup %3047 }
 0x3bd   :  { %v1611_v17 = vmul.f32 0.6931472, %v3048_v59  ;;  %v5003_v46 = vsub.f32 %v4895_v6, %v1587_v58  ;;  %v5006_v20 = vsub.f32 %v4905_v47, %v1587_v58  ;;  %v5010_v39 = vsub.f32 %v4927_v16, %v1587_v58 }
 0x3bf   :  { %v1612_v48 = vadd.f32 %v1611_v17, %v4957_v24  ;;  %v5027_v24 = vsub.f32 %v4942_v19, %v1587_v58 }
 0x3c0   :  { %v3050_v21 = vpop.eup %3049 }
 0x3c1   :  { %v1636_v54 = vmul.f32 0.6931472, %v3050_v21  ;;  %v5013_v13 = vsub.f32 %v4898_v27, %v1612_v48  ;;  %v5016_v26 = vsub.f32 %v4908_v11, %v1612_v48  ;;  %v5019_v42 = vsub.f32 %v4930_v7, %v1612_v48 }
 0x3c2   :  { %v5030_v27 = vsub.f32 %v4945_v23, %v1612_v48 }
 0x3c3   :  { %v1637_v6 = vadd.f32 %v1636_v54, %v4960_v3  ;;  %v1667_v47 = vmax.f32 %v5003_v46, %v5013_v13  ;;  %v1692_v16 = vmax.f32 %v5006_v20, %v5016_v26  ;;  %v1717_v11 = vmax.f32 %v5010_v39, %v5019_v42 }
 0x3c4   :  { %v3052_v5 = vpop.eup %3051  ;;  %v1742_v55 = vmax.f32 %v5027_v24, %v5030_v27 }
 0x3c5   :  { %v5035_v7 = vsub.f32 %v4902_v37, %v1637_v6  ;;  %v5038_v3 = vsub.f32 %v4911_v52, %v1637_v6  ;;  %v1661_v28 = vmul.f32 0.6931472, %v3052_v5  ;;  %v5041_v30 = vsub.f32 %v4933_v36, %v1637_v6 }
 0x3c6   :  { %v5056_v36 = vsub.f32 %v4951_v38, %v1637_v6 }
 0x3c7   :  { %v1662_v25 = vadd.f32 %v1661_v28, %v4985_v32  ;;  %v1668_v19 = vmax.f32 %v1667_v47, %v5035_v7  ;;  %v1693_v23 = vmax.f32 %v1692_v16, %v5038_v3  ;;  %v1718_v34 = vmax.f32 %v1717_v11, %v5041_v30 }
 0x3c9   :  { %v5050_v37 = vsub.f32 %v4919_v53, %v1662_v25  ;;  %v5053_v52 = vsub.f32 %v4922_v33, %v1662_v25  ;;  %v5059_v32 = vsub.f32 %v4948_v43, %v1662_v25  ;;  %v1743_v53 = vmax.f32 %v1742_v55, %v5056_v36 }
 0x3ca   :  { %v5080_v15 = vsub.f32 %v4972_v29, %v1662_v25 }
 0x3cb   :  { %v5062_v10 = vmax.f32 %v1668_v19, %v5050_v37  ;;  %v5065_v22 = vmax.f32 %v1693_v23, %v5053_v52  ;;  %v5068_v41 = vmax.f32 %v1718_v34, %v5059_v32 }
 0x3cc   :  { %v5093_v21 = vmax.f32 %v1743_v53, %v5080_v15 }
 0x3cd   :  { %v1670_v33 = vsub.f32 %v5003_v46, %v5062_v10  ;;  %v1673_v38 = vsub.f32 %v5013_v13, %v5062_v10  ;;  %v1677_v43 = vsub.f32 %v5035_v7, %v5062_v10  ;;  %v1681_v9 = vsub.f32 %v5050_v37, %v5062_v10 }
 0x3ce   :  { %v1695_v40 = vsub.f32 %v5006_v20, %v5065_v22  ;;  %v1698_v44 = vsub.f32 %v5016_v26, %v5065_v22  ;;  %v1702_v8 = vsub.f32 %v5038_v3, %v5065_v22  ;;  %v1706_v58 = vsub.f32 %v5053_v52, %v5065_v22 }
 0x3cf   :  { %v1671_v45 = vmul.f32 1.442695, %v1670_v33  ;;  %v1674_v12 = vmul.f32 1.442695, %v1673_v38  ;;  %v1678_v63 = vmul.f32 1.442695, %v1677_v43  ;;  %v1720_v29 = vsub.f32 %v5010_v39, %v5068_v41 }
 0x3d0   :  { %v1682_v59 = vmul.f32 1.442695, %v1681_v9  ;;  %v1696_v17 = vmul.f32 1.442695, %v1695_v40  ;;  %v1699_v48 = vmul.f32 1.442695, %v1698_v44  ;;  %v1723_v54 = vsub.f32 %v5019_v42, %v5068_v41 }
 0x3d1   :  { %3053 = vpow2.f32 %v1671_v45  ;;  %v1703_v6 = vmul.f32 1.442695, %v1702_v8  ;;  %v1727_v5 = vsub.f32 %v5041_v30, %v5068_v41  ;;  %v1707_v47 = vmul.f32 1.442695, %v1706_v58 }
 0x3d2   :  { %3055 = vpow2.f32 %v1674_v12  ;;  %v1731_v16 = vsub.f32 %v5059_v32, %v5068_v41  ;;  %v1721_v11 = vmul.f32 1.442695, %v1720_v29  ;;  %v1745_v28 = vsub.f32 %v5027_v24, %v5093_v21 }
 0x3d3   :  { %3057 = vpow2.f32 %v1678_v63  ;;  %v1724_v25 = vmul.f32 1.442695, %v1723_v54  ;;  %v1748_v19 = vsub.f32 %v5030_v27, %v5093_v21  ;;  %v1728_v23 = vmul.f32 1.442695, %v1727_v5 }
 0x3d4   :  { %3059 = vpow2.f32 %v1682_v59  ;;  %v1732_v34 = vmul.f32 1.442695, %v1731_v16  ;;  %v1752_v55 = vsub.f32 %v5056_v36, %v5093_v21  ;;  %v1746_v53 = vmul.f32 1.442695, %v1745_v28 }
 0x3d5   :  { %3061 = vpow2.f32 %v1696_v17  ;;  %v1749_v33 = vmul.f32 1.442695, %v1748_v19  ;;  %v1756_v38 = vsub.f32 %v5080_v15, %v5093_v21 }
 0x3d6   :  { %3063 = vpow2.f32 %v1699_v48  ;;  %v1753_v40 = vmul.f32 1.442695, %v1752_v55 }
 0x3d7   :  { %3065 = vpow2.f32 %v1703_v6  ;;  %v1757_v63 = vmul.f32 1.442695, %v1756_v38 }
 0x3d8   :  { %3067 = vpow2.f32 %v1707_v47 }
 0x3d9   :  { %3069 = vpow2.f32 %v1721_v11 }
 0x3da   :  { %3071 = vpow2.f32 %v1724_v25 }
 0x3db   :  { %v3054_v43 = vpop.eup %3053  ;;  %3073 = vpow2.f32 %v1728_v23 }
 0x3dc   :  { %v3056_v9 = vpop.eup %3055  ;;  %3075 = vpow2.f32 %v1732_v34 }
 0x3dd   :  { %v3058_v44 = vpop.eup %3057  ;;  %v1676_v45 = vadd.f32 %v3056_v9, %v3054_v43  ;;  %3077 = vpow2.f32 %v1746_v53 }
 0x3de   :  { %v3060_v12 = vpop.eup %3059  ;;  %3079 = vpow2.f32 %v1749_v33 }
 0x3df   :  { %v3062_v8 = vpop.eup %3061  ;;  %v1680_v59 = vadd.f32 %v3058_v44, %v1676_v45  ;;  %3081 = vpow2.f32 %v1753_v40 }
 0x3e0   :  { %v3064_v58 = vpop.eup %3063  ;;  %3083 = vpow2.f32 %v1757_v63 }
 0x3e1   :  { %v3066_v17 = vpop.eup %3065  ;;  %v1684_v29 = vadd.f32 %v3060_v12, %v1680_v59  ;;  %v1701_v48 = vadd.f32 %v3064_v58, %v3062_v8 }
 0x3e2   :  { %v3068_v54 = vpop.eup %3067 }
 0x3e3   :  { %v3070_v6 = vpop.eup %3069  ;;  %3085 = vlog2.f32 %v1684_v29  ;;  %v1705_v5 = vadd.f32 %v3066_v17, %v1701_v48 }
 0x3e4   :  { %v3072_v47 = vpop.eup %3071 }
 0x3e5   :  { %v3074_v16 = vpop.eup %3073  ;;  %v1709_v11 = vadd.f32 %v3068_v54, %v1705_v5  ;;  %v1726_v28 = vadd.f32 %v3072_v47, %v3070_v6 }
 0x3e6   :  { %v3076_v25 = vpop.eup %3075 }
 0x3e7   :  { %v3078_v19 = vpop.eup %3077  ;;  %3087 = vlog2.f32 %v1709_v11  ;;  %v1730_v23 = vadd.f32 %v3074_v16, %v1726_v28 }
 0x3e8   :  { %v3080_v34 = vpop.eup %3079 }
 0x3e9   :  { %v1734_v55 = vadd.f32 %v3076_v25, %v1730_v23  ;;  %v1751_v53 = vadd.f32 %v3080_v34, %v3078_v19  ;;  %v3082_v33 = vpop.eup %3081 }
 0x3ea   :  { %v3084_v43 = vpop.eup %3083 }
 0x3eb   :  { %3089 = vlog2.f32 %v1734_v55  ;;  %v1755_v38 = vadd.f32 %v3082_v33, %v1751_v53 }
 0x3ed   :  { %v3086_v9 = vpop.eup %3085  ;;  %v1759_v40 = vadd.f32 %v3084_v43, %v1755_v38 }
 0x3ee   :  { %v1686_v44 = vmul.f32 0.6931472, %v3086_v9 }
 0x3ef   :  { %3091 = vlog2.f32 %v1759_v40 }
 0x3f0   :  { %v1687_v12 = vadd.f32 %v1686_v44, %v5062_v10 }
 0x3f1   :  { %v3088_v45 = vpop.eup %3087 }
 0x3f2   :  { %v1711_v63 = vmul.f32 0.6931472, %v3088_v45  ;;  %v5111_v59 = vsub.f32 %v5003_v46, %v1687_v12  ;;  %v5114_v58 = vsub.f32 %v5013_v13, %v1687_v12  ;;  %v5118_v29 = vsub.f32 %v5035_v7, %v1687_v12 }
 0x3f4   :  { %v1712_v17 = vadd.f32 %v1711_v63, %v5065_v22  ;;  %v5135_v22 = vsub.f32 %v5050_v37, %v1687_v12 }
 0x3f5   :  { %v3090_v8 = vpop.eup %3089 }
 0x3f6   :  { %v1736_v48 = vmul.f32 0.6931472, %v3090_v8  ;;  %v5121_v54 = vsub.f32 %v5006_v20, %v1712_v17  ;;  %v5124_v6 = vsub.f32 %v5016_v26, %v1712_v17  ;;  %v5127_v10 = vsub.f32 %v5038_v3, %v1712_v17 }
 0x3f7   :  { %v5138_v20 = vsub.f32 %v5053_v52, %v1712_v17 }
 0x3f8   :  { %v1737_v46 = vadd.f32 %v1736_v48, %v5068_v41  ;;  %v1767_v13 = vmax.f32 %v5111_v59, %v5121_v54  ;;  %v1792_v7 = vmax.f32 %v5114_v58, %v5124_v6  ;;  %v1817_v26 = vmax.f32 %v5118_v29, %v5127_v10 }
 0x3f9   :  { %v3092_v5 = vpop.eup %3091  ;;  %v1842_v25 = vmax.f32 %v5135_v22, %v5138_v20 }
 0x3fa   :  { %v5143_v3 = vsub.f32 %v5010_v39, %v1737_v46  ;;  %v5146_v41 = vsub.f32 %v5019_v42, %v1737_v46  ;;  %v1761_v47 = vmul.f32 0.6931472, %v3092_v5  ;;  %v5149_v16 = vsub.f32 %v5041_v30, %v1737_v46 }
 0x3fb   :  { %v5164_v30 = vsub.f32 %v5059_v32, %v1737_v46 }
 0x3fc   :  { %v1762_v11 = vadd.f32 %v1761_v47, %v5093_v21  ;;  %v1768_v37 = vmax.f32 %v1767_v13, %v5143_v3  ;;  %v1793_v52 = vmax.f32 %v1792_v7, %v5146_v41  ;;  %v1818_v28 = vmax.f32 %v1817_v26, %v5149_v16 }
 0x3fe   :  { %v5158_v39 = vsub.f32 %v5027_v24, %v1762_v11  ;;  %v5161_v42 = vsub.f32 %v5030_v27, %v1762_v11  ;;  %v5167_v21 = vsub.f32 %v5056_v36, %v1762_v11  ;;  %v1843_v24 = vmax.f32 %v1842_v25, %v5164_v30 }
 0x3ff   :  { %v5188_v53 = vsub.f32 %v5080_v15, %v1762_v11 }
 0x400   :  { %v5170_v19 = vmax.f32 %v1768_v37, %v5158_v39  ;;  %v5173_v23 = vmax.f32 %v1793_v52, %v5161_v42  ;;  %v5176_v34 = vmax.f32 %v1818_v28, %v5167_v21 }
 0x401   :  { %v5201_v8 = vmax.f32 %v1843_v24, %v5188_v53 }
 0x402   :  { %v1770_v27 = vsub.f32 %v5111_v59, %v5170_v19  ;;  %v1773_v32 = vsub.f32 %v5121_v54, %v5170_v19  ;;  %v1777_v36 = vsub.f32 %v5143_v3, %v5170_v19  ;;  %v1781_v55 = vsub.f32 %v5158_v39, %v5170_v19 }
 0x403   :  { %v1795_v33 = vsub.f32 %v5114_v58, %v5173_v23  ;;  %v1798_v38 = vsub.f32 %v5124_v6, %v5173_v23  ;;  %v1802_v44 = vsub.f32 %v5146_v41, %v5173_v23  ;;  %v1806_v12 = vsub.f32 %v5161_v42, %v5173_v23 }
 0x404   :  { %v1771_v43 = vmul.f32 1.442695, %v1770_v27  ;;  %v1774_v9 = vmul.f32 1.442695, %v1773_v32  ;;  %v1778_v40 = vmul.f32 1.442695, %v1777_v36  ;;  %v1820_v15 = vsub.f32 %v5118_v29, %v5176_v34 }
 0x405   :  { %v1782_v45 = vmul.f32 1.442695, %v1781_v55  ;;  %v1796_v63 = vmul.f32 1.442695, %v1795_v33  ;;  %v1799_v17 = vmul.f32 1.442695, %v1798_v38  ;;  %v1823_v48 = vsub.f32 %v5127_v10, %v5176_v34 }
 0x406   :  { %3093 = vpow2.f32 %v1771_v43  ;;  %v1803_v46 = vmul.f32 1.442695, %v1802_v44  ;;  %v1827_v5 = vsub.f32 %v5149_v16, %v5176_v34  ;;  %v1807_v13 = vmul.f32 1.442695, %v1806_v12 }
 0x407   :  { %3095 = vpow2.f32 %v1774_v9  ;;  %v1831_v7 = vsub.f32 %v5167_v21, %v5176_v34  ;;  %v1821_v26 = vmul.f32 1.442695, %v1820_v15  ;;  %v1845_v47 = vsub.f32 %v5135_v22, %v5201_v8 }
 0x408   :  { %3097 = vpow2.f32 %v1778_v40  ;;  %v1824_v11 = vmul.f32 1.442695, %v1823_v48  ;;  %v1848_v37 = vsub.f32 %v5138_v20, %v5201_v8  ;;  %v1828_v52 = vmul.f32 1.442695, %v1827_v5 }
 0x409   :  { %3099 = vpow2.f32 %v1782_v45  ;;  %v1832_v28 = vmul.f32 1.442695, %v1831_v7  ;;  %v1852_v25 = vsub.f32 %v5164_v30, %v5201_v8  ;;  %v1846_v24 = vmul.f32 1.442695, %v1845_v47 }
 0x40a   :  { %3101 = vpow2.f32 %v1796_v63  ;;  %v1849_v27 = vmul.f32 1.442695, %v1848_v37  ;;  %v1856_v32 = vsub.f32 %v5188_v53, %v5201_v8 }
 0x40b   :  { %3103 = vpow2.f32 %v1799_v17  ;;  %v1853_v33 = vmul.f32 1.442695, %v1852_v25 }
 0x40c   :  { %3105 = vpow2.f32 %v1803_v46  ;;  %v1857_v40 = vmul.f32 1.442695, %v1856_v32 }
 0x40d   :  { %3107 = vpow2.f32 %v1807_v13 }
 0x40e   :  { %3109 = vpow2.f32 %v1821_v26 }
 0x40f   :  { %3111 = vpow2.f32 %v1824_v11 }
 0x410   :  { %v3094_v36 = vpop.eup %3093  ;;  %3113 = vpow2.f32 %v1828_v52 }
 0x411   :  { %v3096_v55 = vpop.eup %3095  ;;  %3115 = vpow2.f32 %v1832_v28 }
 0x412   :  { %v3098_v38 = vpop.eup %3097  ;;  %v1776_v43 = vadd.f32 %v3096_v55, %v3094_v36  ;;  %3117 = vpow2.f32 %v1846_v24 }
 0x413   :  { %v3100_v9 = vpop.eup %3099  ;;  %3119 = vpow2.f32 %v1849_v27 }
 0x414   :  { %v3102_v44 = vpop.eup %3101  ;;  %v1780_v45 = vadd.f32 %v3098_v38, %v1776_v43  ;;  %3121 = vpow2.f32 %v1853_v33 }
 0x415   :  { %v3104_v12 = vpop.eup %3103  ;;  %3123 = vpow2.f32 %v1857_v40 }
 0x416   :  { %v3106_v63 = vpop.eup %3105  ;;  %v1784_v15 = vadd.f32 %v3100_v9, %v1780_v45  ;;  %v1801_v17 = vadd.f32 %v3104_v12, %v3102_v44 }
 0x417   :  { %v3108_v48 = vpop.eup %3107 }
 0x418   :  { %v3110_v46 = vpop.eup %3109  ;;  %3125 = vlog2.f32 %v1784_v15  ;;  %v1805_v5 = vadd.f32 %v3106_v63, %v1801_v17 }
 0x419   :  { %v3112_v13 = vpop.eup %3111 }
 0x41a   :  { %v3114_v7 = vpop.eup %3113  ;;  %v1809_v26 = vadd.f32 %v3108_v48, %v1805_v5  ;;  %v1826_v47 = vadd.f32 %v3112_v13, %v3110_v46 }
 0x41b   :  { %v3116_v11 = vpop.eup %3115 }
 0x41c   :  { %v3118_v37 = vpop.eup %3117  ;;  %3127 = vlog2.f32 %v1809_v26  ;;  %v1830_v52 = vadd.f32 %v3114_v7, %v1826_v47 }
 0x41d   :  { %v3120_v28 = vpop.eup %3119 }
 0x41e   :  { %v1834_v25 = vadd.f32 %v3116_v11, %v1830_v52  ;;  %v1851_v24 = vadd.f32 %v3120_v28, %v3118_v37  ;;  %v3122_v27 = vpop.eup %3121 }
 0x41f   :  { %v3124_v36 = vpop.eup %3123 }
 0x420   :  { %3129 = vlog2.f32 %v1834_v25  ;;  %v1855_v32 = vadd.f32 %v3122_v27, %v1851_v24 }
 0x422   :  { %v3126_v55 = vpop.eup %3125  ;;  %v1859_v33 = vadd.f32 %v3124_v36, %v1855_v32 }
 0x423   :  { %v1786_v38 = vmul.f32 0.6931472, %v3126_v55 }
 0x424   :  { %3131 = vlog2.f32 %v1859_v33 }
 0x425   :  { %v1787_v9 = vadd.f32 %v1786_v38, %v5170_v19 }
 0x426   :  { %v3128_v43 = vpop.eup %3127 }
 0x427   :  { %v1811_v40 = vmul.f32 0.6931472, %v3128_v43  ;;  %v5219_v45 = vsub.f32 %v5111_v59, %v1787_v9  ;;  %v5222_v12 = vsub.f32 %v5121_v54, %v1787_v9  ;;  %v5226_v15 = vsub.f32 %v5143_v3, %v1787_v9 }
 0x429   :  { %v1812_v63 = vadd.f32 %v1811_v40, %v5173_v23  ;;  %v5243_v23 = vsub.f32 %v5158_v39, %v1787_v9 }
 0x42a   :  { %v3130_v44 = vpop.eup %3129 }
 0x42b   :  { %v1836_v17 = vmul.f32 0.6931472, %v3130_v44  ;;  %v5229_v48 = vsub.f32 %v5114_v58, %v1812_v63  ;;  %v5232_v46 = vsub.f32 %v5124_v6, %v1812_v63  ;;  %v5235_v19 = vsub.f32 %v5146_v41, %v1812_v63 }
 0x42c   :  { %v5246_v58 = vsub.f32 %v5161_v42, %v1812_v63 }
 0x42d   :  { %v1837_v59 = vadd.f32 %v1836_v17, %v5176_v34  ;;  %v1867_v54 = vmax.f32 %v5219_v45, %v5229_v48  ;;  %v1892_v3 = vmax.f32 %v5222_v12, %v5232_v46  ;;  %v1917_v6 = vmax.f32 %v5226_v15, %v5235_v19 }
 0x42e   :  { %v3132_v5 = vpop.eup %3131  ;;  %v1942_v11 = vmax.f32 %v5243_v23, %v5246_v58 }
 0x42f   :  { %v5251_v41 = vsub.f32 %v5118_v29, %v1837_v59  ;;  %v5254_v34 = vsub.f32 %v5127_v10, %v1837_v59  ;;  %v1861_v13 = vmul.f32 0.6931472, %v3132_v5  ;;  %v5257_v7 = vsub.f32 %v5149_v16, %v1837_v59 }
 0x430   :  { %v5272_v16 = vsub.f32 %v5167_v21, %v1837_v59 }
 0x431   :  { %v1862_v26 = vadd.f32 %v1861_v13, %v5201_v8  ;;  %v1868_v39 = vmax.f32 %v1867_v54, %v5251_v41  ;;  %v1893_v42 = vmax.f32 %v1892_v3, %v5254_v34  ;;  %v1918_v47 = vmax.f32 %v1917_v6, %v5257_v7 }
 0x433   :  { %v5266_v29 = vsub.f32 %v5135_v22, %v1862_v26  ;;  %v5269_v10 = vsub.f32 %v5138_v20, %v1862_v26  ;;  %v5275_v8 = vsub.f32 %v5164_v30, %v1862_v26  ;;  %v1943_v22 = vmax.f32 %v1942_v11, %v5272_v16 }
 0x434   :  { %v5296_v24 = vsub.f32 %v5188_v53, %v1862_v26 }
 0x435   :  { %v5278_v37 = vmax.f32 %v1868_v39, %v5266_v29  ;;  %v5281_v52 = vmax.f32 %v1893_v42, %v5269_v10  ;;  %v5284_v28 = vmax.f32 %v1918_v47, %v5275_v8 }
 0x436   :  { %v5309_v44 = vmax.f32 %v1943_v22, %v5296_v24 }
 0x437   :  { %v1870_v20 = vsub.f32 %v5219_v45, %v5278_v37  ;;  %v1873_v21 = vsub.f32 %v5229_v48, %v5278_v37  ;;  %v1877_v30 = vsub.f32 %v5251_v41, %v5278_v37  ;;  %v1881_v25 = vsub.f32 %v5266_v29, %v5278_v37 }
 0x438   :  { %v1895_v27 = vsub.f32 %v5222_v12, %v5281_v52  ;;  %v1898_v32 = vsub.f32 %v5232_v46, %v5281_v52  ;;  %v1902_v38 = vsub.f32 %v5254_v34, %v5281_v52  ;;  %v1906_v9 = vsub.f32 %v5269_v10, %v5281_v52 }
 0x439   :  { %v1871_v36 = vmul.f32 1.442695, %v1870_v20  ;;  %v1874_v55 = vmul.f32 1.442695, %v1873_v21  ;;  %v1878_v33 = vmul.f32 1.442695, %v1877_v30  ;;  %v1920_v53 = vsub.f32 %v5226_v15, %v5284_v28 }
 0x43a   :  { %v1882_v43 = vmul.f32 1.442695, %v1881_v25  ;;  %v1896_v40 = vmul.f32 1.442695, %v1895_v27  ;;  %v1899_v63 = vmul.f32 1.442695, %v1898_v32  ;;  %v1923_v17 = vsub.f32 %v5235_v19, %v5284_v28 }
 0x43b   :  { %3133 = vpow2.f32 %v1871_v36  ;;  %v1903_v59 = vmul.f32 1.442695, %v1902_v38  ;;  %v1927_v5 = vsub.f32 %v5257_v7, %v5284_v28  ;;  %v1907_v54 = vmul.f32 1.442695, %v1906_v9 }
 0x43c   :  { %3135 = vpow2.f32 %v1874_v55  ;;  %v1931_v3 = vsub.f32 %v5275_v8, %v5284_v28  ;;  %v1921_v6 = vmul.f32 1.442695, %v1920_v53  ;;  %v1945_v13 = vsub.f32 %v5243_v23, %v5309_v44 }
 0x43d   :  { %3137 = vpow2.f32 %v1878_v33  ;;  %v1924_v26 = vmul.f32 1.442695, %v1923_v17  ;;  %v1948_v39 = vsub.f32 %v5246_v58, %v5309_v44  ;;  %v1928_v42 = vmul.f32 1.442695, %v1927_v5 }
 0x43e   :  { %3139 = vpow2.f32 %v1882_v43  ;;  %v1932_v47 = vmul.f32 1.442695, %v1931_v3  ;;  %v1952_v11 = vsub.f32 %v5272_v16, %v5309_v44  ;;  %v1946_v22 = vmul.f32 1.442695, %v1945_v13 }
 0x43f   :  { %3141 = vpow2.f32 %v1896_v40  ;;  %v1949_v20 = vmul.f32 1.442695, %v1948_v39  ;;  %v1956_v21 = vsub.f32 %v5296_v24, %v5309_v44 }
 0x440   :  { %3143 = vpow2.f32 %v1899_v63  ;;  %v1953_v27 = vmul.f32 1.442695, %v1952_v11 }
 0x441   :  { %3145 = vpow2.f32 %v1903_v59  ;;  %v1957_v33 = vmul.f32 1.442695, %v1956_v21 }
 0x442   :  { %3147 = vpow2.f32 %v1907_v54 }
 0x443   :  { %3149 = vpow2.f32 %v1921_v6 }
 0x444   :  { %3151 = vpow2.f32 %v1924_v26 }
 0x445   :  { %v3134_v30 = vpop.eup %3133  ;;  %3153 = vpow2.f32 %v1928_v42 }
 0x446   :  { %v3136_v25 = vpop.eup %3135  ;;  %3155 = vpow2.f32 %v1932_v47 }
 0x447   :  { %v3138_v32 = vpop.eup %3137  ;;  %v1876_v36 = vadd.f32 %v3136_v25, %v3134_v30  ;;  %3157 = vpow2.f32 %v1946_v22 }
 0x448   :  { %v3140_v55 = vpop.eup %3139  ;;  %3159 = vpow2.f32 %v1949_v20 }
 0x449   :  { %v3142_v38 = vpop.eup %3141  ;;  %v1880_v43 = vadd.f32 %v3138_v32, %v1876_v36  ;;  %3161 = vpow2.f32 %v1953_v27 }
 0x44a   :  { %v3144_v9 = vpop.eup %3143  ;;  %3163 = vpow2.f32 %v1957_v33 }
 0x44b   :  { %v3146_v40 = vpop.eup %3145  ;;  %v1884_v53 = vadd.f32 %v3140_v55, %v1880_v43  ;;  %v1901_v63 = vadd.f32 %v3144_v9, %v3142_v38 }
 0x44c   :  { %v3148_v17 = vpop.eup %3147 }
 0x44d   :  { %v3150_v59 = vpop.eup %3149  ;;  %3165 = vlog2.f32 %v1884_v53  ;;  %v1905_v5 = vadd.f32 %v3146_v40, %v1901_v63 }
 0x44e   :  { %v3152_v54 = vpop.eup %3151 }
 0x44f   :  { %v3154_v3 = vpop.eup %3153  ;;  %v1909_v6 = vadd.f32 %v3148_v17, %v1905_v5  ;;  %v1926_v13 = vadd.f32 %v3152_v54, %v3150_v59 }
 0x450   :  { %v3156_v26 = vpop.eup %3155 }
 0x451   :  { %v3158_v39 = vpop.eup %3157  ;;  %3167 = vlog2.f32 %v1909_v6  ;;  %v1930_v42 = vadd.f32 %v3154_v3, %v1926_v13 }
 0x452   :  { %v3160_v47 = vpop.eup %3159 }
 0x453   :  { %v1934_v11 = vadd.f32 %v3156_v26, %v1930_v42  ;;  %v1951_v22 = vadd.f32 %v3160_v47, %v3158_v39  ;;  %v3162_v20 = vpop.eup %3161 }
 0x454   :  { %v3164_v30 = vpop.eup %3163 }
 0x455   :  { %3169 = vlog2.f32 %v1934_v11  ;;  %v1955_v21 = vadd.f32 %v3162_v20, %v1951_v22 }
 0x457   :  { %v3166_v25 = vpop.eup %3165  ;;  %v1959_v27 = vadd.f32 %v3164_v30, %v1955_v21 }
 0x458   :  { %v1886_v32 = vmul.f32 0.6931472, %v3166_v25 }
 0x459   :  { %3171 = vlog2.f32 %v1959_v27 }
 0x45a   :  { %v1887_v55 = vadd.f32 %v1886_v32, %v5278_v37 }
 0x45b   :  { %v3168_v36 = vpop.eup %3167 }
 0x45c   :  { %v1911_v33 = vmul.f32 0.6931472, %v3168_v36  ;;  %v5327_v43 = vsub.f32 %v5219_v45, %v1887_v55  ;;  %v5330_v9 = vsub.f32 %v5229_v48, %v1887_v55  ;;  %v5334_v53 = vsub.f32 %v5251_v41, %v1887_v55 }
 0x45e   :  { %v1912_v40 = vadd.f32 %v1911_v33, %v5281_v52  ;;  %v5351_v52 = vsub.f32 %v5266_v29, %v1887_v55 }
 0x45f   :  { %v3170_v38 = vpop.eup %3169 }
 0x460   :  { %v1936_v63 = vmul.f32 0.6931472, %v3170_v38  ;;  %v5337_v17 = vsub.f32 %v5222_v12, %v1912_v40  ;;  %v5340_v59 = vsub.f32 %v5232_v46, %v1912_v40  ;;  %v5343_v37 = vsub.f32 %v5254_v34, %v1912_v40 }
 0x461   :  { %v5354_v12 = vsub.f32 %v5269_v10, %v1912_v40 }
 0x462   :  { %v1937_v45 = vadd.f32 %v1936_v63, %v5284_v28  ;;  %v1967_v48 = vmax.f32 %v5327_v43, %v5337_v17  ;;  %v1992_v41 = vmax.f32 %v5330_v9, %v5340_v59  ;;  %v2017_v46 = vmax.f32 %v5334_v53, %v5343_v37 }
 0x463   :  { %v3172_v5 = vpop.eup %3171  ;;  %v2042_v26 = vmax.f32 %v5351_v52, %v5354_v12 }
 0x464   :  { %v5359_v34 = vsub.f32 %v5226_v15, %v1937_v45  ;;  %v5362_v28 = vsub.f32 %v5235_v19, %v1937_v45  ;;  %v1961_v54 = vmul.f32 0.6931472, %v3172_v5  ;;  %v5365_v3 = vsub.f32 %v5257_v7, %v1937_v45 }
 0x465   :  { %v5380_v7 = vsub.f32 %v5275_v8, %v1937_v45 }
 0x466   :  { %v1962_v6 = vadd.f32 %v1961_v54, %v5309_v44  ;;  %v1968_v29 = vmax.f32 %v1967_v48, %v5359_v34  ;;  %v1993_v10 = vmax.f32 %v1992_v41, %v5362_v28  ;;  %v2018_v13 = vmax.f32 %v2017_v46, %v5365_v3 }
 0x468   :  { %v5374_v15 = vsub.f32 %v5243_v23, %v1962_v6  ;;  %v5377_v19 = vsub.f32 %v5246_v58, %v1962_v6  ;;  %v5383_v44 = vsub.f32 %v5272_v16, %v1962_v6  ;;  %v2043_v23 = vmax.f32 %v2042_v26, %v5380_v7 }
 0x469   :  { %v5404_v22 = vsub.f32 %v5296_v24, %v1962_v6 }
 0x46a   :  { %v5386_v39 = vmax.f32 %v1968_v29, %v5374_v15  ;;  %v5389_v42 = vmax.f32 %v1993_v10, %v5377_v19  ;;  %v5392_v47 = vmax.f32 %v2018_v13, %v5383_v44 }
 0x46b   :  { %v5417_v38 = vmax.f32 %v2043_v23, %v5404_v22 }
 0x46c   :  { %v1970_v58 = vsub.f32 %v5327_v43, %v5386_v39  ;;  %v1973_v8 = vsub.f32 %v5337_v17, %v5386_v39  ;;  %v1977_v16 = vsub.f32 %v5359_v34, %v5386_v39  ;;  %v1981_v11 = vsub.f32 %v5374_v15, %v5386_v39 }
 0x46d   :  { %v1995_v20 = vsub.f32 %v5330_v9, %v5389_v42  ;;  %v1998_v21 = vsub.f32 %v5340_v59, %v5389_v42  ;;  %v2002_v32 = vsub.f32 %v5362_v28, %v5389_v42  ;;  %v2006_v55 = vsub.f32 %v5377_v19, %v5389_v42 }
 0x46e   :  { %v1971_v30 = vmul.f32 1.442695, %v1970_v58  ;;  %v1974_v25 = vmul.f32 1.442695, %v1973_v8  ;;  %v1978_v27 = vmul.f32 1.442695, %v1977_v16  ;;  %v2020_v24 = vsub.f32 %v5334_v53, %v5392_v47 }
 0x46f   :  { %v1982_v36 = vmul.f32 1.442695, %v1981_v11  ;;  %v1996_v33 = vmul.f32 1.442695, %v1995_v20  ;;  %v1999_v40 = vmul.f32 1.442695, %v1998_v21  ;;  %v2023_v63 = vsub.f32 %v5343_v37, %v5392_v47 }
 0x470   :  { %3173 = vpow2.f32 %v1971_v30  ;;  %v2003_v45 = vmul.f32 1.442695, %v2002_v32  ;;  %v2027_v5 = vsub.f32 %v5365_v3, %v5392_v47  ;;  %v2007_v48 = vmul.f32 1.442695, %v2006_v55 }
 0x471   :  { %3175 = vpow2.f32 %v1974_v25  ;;  %v2031_v41 = vsub.f32 %v5383_v44, %v5392_v47  ;;  %v2021_v46 = vmul.f32 1.442695, %v2020_v24  ;;  %v2045_v54 = vsub.f32 %v5351_v52, %v5417_v38 }
 0x472   :  { %3177 = vpow2.f32 %v1978_v27  ;;  %v2024_v6 = vmul.f32 1.442695, %v2023_v63  ;;  %v2048_v29 = vsub.f32 %v5354_v12, %v5417_v38  ;;  %v2028_v10 = vmul.f32 1.442695, %v2027_v5 }
 0x473   :  { %3179 = vpow2.f32 %v1982_v36  ;;  %v2032_v13 = vmul.f32 1.442695, %v2031_v41  ;;  %v2052_v26 = vsub.f32 %v5380_v7, %v5417_v38  ;;  %v2046_v23 = vmul.f32 1.442695, %v2045_v54 }
 0x474   :  { %3181 = vpow2.f32 %v1996_v33  ;;  %v2049_v58 = vmul.f32 1.442695, %v2048_v29  ;;  %v2056_v8 = vsub.f32 %v5404_v22, %v5417_v38 }
 0x475   :  { %3183 = vpow2.f32 %v1999_v40  ;;  %v2053_v20 = vmul.f32 1.442695, %v2052_v26 }
 0x476   :  { %3185 = vpow2.f32 %v2003_v45  ;;  %v2057_v27 = vmul.f32 1.442695, %v2056_v8 }
 0x477   :  { %3187 = vpow2.f32 %v2007_v48 }
 0x478   :  { %3189 = vpow2.f32 %v2021_v46 }
 0x479   :  { %3191 = vpow2.f32 %v2024_v6 }
 0x47a   :  { %v3174_v16 = vpop.eup %3173  ;;  %3193 = vpow2.f32 %v2028_v10 }
 0x47b   :  { %v3176_v11 = vpop.eup %3175  ;;  %3195 = vpow2.f32 %v2032_v13 }
 0x47c   :  { %v3178_v21 = vpop.eup %3177  ;;  %v1976_v30 = vadd.f32 %v3176_v11, %v3174_v16  ;;  %3197 = vpow2.f32 %v2046_v23 }
 0x47d   :  { %v3180_v25 = vpop.eup %3179  ;;  %3199 = vpow2.f32 %v2049_v58 }
 0x47e   :  { %v3182_v32 = vpop.eup %3181  ;;  %v1980_v36 = vadd.f32 %v3178_v21, %v1976_v30  ;;  %3201 = vpow2.f32 %v2053_v20 }
 0x47f   :  { %v3184_v55 = vpop.eup %3183  ;;  %3203 = vpow2.f32 %v2057_v27 }
 0x480   :  { %v3186_v33 = vpop.eup %3185  ;;  %v1984_v24 = vadd.f32 %v3180_v25, %v1980_v36  ;;  %v2001_v40 = vadd.f32 %v3184_v55, %v3182_v32 }
 0x481   :  { %v3188_v63 = vpop.eup %3187 }
 0x482   :  { %v3190_v45 = vpop.eup %3189  ;;  %3205 = vlog2.f32 %v1984_v24  ;;  %v2005_v5 = vadd.f32 %v3186_v33, %v2001_v40 }
 0x483   :  { %v3192_v48 = vpop.eup %3191 }
 0x484   :  { %v3194_v41 = vpop.eup %3193  ;;  %v2009_v46 = vadd.f32 %v3188_v63, %v2005_v5  ;;  %v2026_v54 = vadd.f32 %v3192_v48, %v3190_v45 }
 0x485   :  { %v3196_v6 = vpop.eup %3195 }
 0x486   :  { %v3198_v29 = vpop.eup %3197  ;;  %3207 = vlog2.f32 %v2009_v46  ;;  %v2030_v10 = vadd.f32 %v3194_v41, %v2026_v54 }
 0x487   :  { %v3200_v13 = vpop.eup %3199 }
 0x488   :  { %v2034_v26 = vadd.f32 %v3196_v6, %v2030_v10  ;;  %v2051_v23 = vadd.f32 %v3200_v13, %v3198_v29  ;;  %v3202_v58 = vpop.eup %3201 }
 0x489   :  { %v3204_v16 = vpop.eup %3203 }
 0x48a   :  { %3209 = vlog2.f32 %v2034_v26  ;;  %v2055_v8 = vadd.f32 %v3202_v58, %v2051_v23 }
 0x48c   :  { %v3206_v11 = vpop.eup %3205  ;;  %v2059_v20 = vadd.f32 %v3204_v16, %v2055_v8 }
 0x48d   :  { %v1986_v21 = vmul.f32 0.6931472, %v3206_v11 }
 0x48e   :  { %3211 = vlog2.f32 %v2059_v20 }
 0x48f   :  { %v1987_v25 = vadd.f32 %v1986_v21, %v5386_v39 }
 0x490   :  { %v3208_v30 = vpop.eup %3207 }
 0x491   :  { %v2011_v27 = vmul.f32 0.6931472, %v3208_v30  ;;  %v5435_v36 = vsub.f32 %v5327_v43, %v1987_v25  ;;  %v5438_v55 = vsub.f32 %v5337_v17, %v1987_v25  ;;  %v5442_v24 = vsub.f32 %v5359_v34, %v1987_v25 }
 0x493   :  { %v2012_v33 = vadd.f32 %v2011_v27, %v5389_v42  ;;  %v5459_v42 = vsub.f32 %v5374_v15, %v1987_v25 }
 0x494   :  { %v3210_v32 = vpop.eup %3209 }
 0x495   :  { %v2036_v40 = vmul.f32 0.6931472, %v3210_v32  ;;  %v5445_v63 = vsub.f32 %v5330_v9, %v2012_v33  ;;  %v5448_v45 = vsub.f32 %v5340_v59, %v2012_v33  ;;  %v5451_v39 = vsub.f32 %v5362_v28, %v2012_v33 }
 0x496   :  { %v5462_v9 = vsub.f32 %v5377_v19, %v2012_v33 }
 0x497   :  { %v2037_v43 = vadd.f32 %v2036_v40, %v5392_v47  ;;  %v2067_v17 = vmax.f32 %v5435_v36, %v5445_v63  ;;  %v2092_v34 = vmax.f32 %v5438_v55, %v5448_v45  ;;  %v2117_v59 = vmax.f32 %v5442_v24, %v5451_v39 }
 0x498   :  { %v3212_v5 = vpop.eup %3211  ;;  %v2142_v6 = vmax.f32 %v5459_v42, %v5462_v9 }
 0x499   :  { %v5467_v28 = vsub.f32 %v5334_v53, %v2037_v43  ;;  %v5470_v47 = vsub.f32 %v5343_v37, %v2037_v43  ;;  %v2061_v48 = vmul.f32 0.6931472, %v3212_v5  ;;  %v5473_v41 = vsub.f32 %v5365_v3, %v2037_v43 }
 0x49a   :  { %v5488_v3 = vsub.f32 %v5383_v44, %v2037_v43 }
 0x49b   :  { %v2062_v46 = vadd.f32 %v2061_v48, %v5417_v38  ;;  %v2068_v15 = vmax.f32 %v2067_v17, %v5467_v28  ;;  %v2093_v19 = vmax.f32 %v2092_v34, %v5470_v47  ;;  %v2118_v54 = vmax.f32 %v2117_v59, %v5473_v41 }
 0x49d   :  { %v5482_v53 = vsub.f32 %v5351_v52, %v2062_v46  ;;  %v5485_v37 = vsub.f32 %v5354_v12, %v2062_v46  ;;  %v5491_v38 = vsub.f32 %v5380_v7, %v2062_v46  ;;  %v2143_v52 = vmax.f32 %v2142_v6, %v5488_v3 }
 0x49e   :  { %v5512_v23 = vsub.f32 %v5404_v22, %v2062_v46 }
 0x49f   :  { %v5494_v29 = vmax.f32 %v2068_v15, %v5482_v53  ;;  %v5497_v10 = vmax.f32 %v2093_v19, %v5485_v37  ;;  %v5500_v13 = vmax.f32 %v2118_v54, %v5491_v38 }
 0x4a0   :  { %v5525_v32 = vmax.f32 %v2143_v52, %v5512_v23 }
 0x4a1   :  { %v2070_v12 = vsub.f32 %v5435_v36, %v5494_v29  ;;  %v2073_v44 = vsub.f32 %v5445_v63, %v5494_v29  ;;  %v2077_v7 = vsub.f32 %v5467_v28, %v5494_v29  ;;  %v2081_v26 = vsub.f32 %v5482_v53, %v5494_v29 }
 0x4a2   :  { %v2095_v58 = vsub.f32 %v5438_v55, %v5497_v10  ;;  %v2098_v8 = vsub.f32 %v5448_v45, %v5497_v10  ;;  %v2102_v21 = vsub.f32 %v5470_v47, %v5497_v10  ;;  %v2106_v25 = vsub.f32 %v5485_v37, %v5497_v10 }
 0x4a3   :  { %v2071_v16 = vmul.f32 1.442695, %v2070_v12  ;;  %v2074_v11 = vmul.f32 1.442695, %v2073_v44  ;;  %v2078_v20 = vmul.f32 1.442695, %v2077_v7  ;;  %v2120_v22 = vsub.f32 %v5442_v24, %v5500_v13 }
 0x4a4   :  { %v2082_v30 = vmul.f32 1.442695, %v2081_v26  ;;  %v2096_v27 = vmul.f32 1.442695, %v2095_v58  ;;  %v2099_v33 = vmul.f32 1.442695, %v2098_v8  ;;  %v2123_v40 = vsub.f32 %v5451_v39, %v5500_v13 }
 0x4a5   :  { %3213 = vpow2.f32 %v2071_v16  ;;  %v2103_v43 = vmul.f32 1.442695, %v2102_v21  ;;  %v2127_v5 = vsub.f32 %v5473_v41, %v5500_v13  ;;  %v2107_v17 = vmul.f32 1.442695, %v2106_v25 }
 0x4a6   :  { %3215 = vpow2.f32 %v2074_v11  ;;  %v2131_v34 = vsub.f32 %v5491_v38, %v5500_v13  ;;  %v2121_v59 = vmul.f32 1.442695, %v2120_v22  ;;  %v2145_v48 = vsub.f32 %v5459_v42, %v5525_v32 }
 0x4a7   :  { %3217 = vpow2.f32 %v2078_v20  ;;  %v2124_v46 = vmul.f32 1.442695, %v2123_v40  ;;  %v2148_v15 = vsub.f32 %v5462_v9, %v5525_v32  ;;  %v2128_v19 = vmul.f32 1.442695, %v2127_v5 }
 0x4a8   :  { %3219 = vpow2.f32 %v2082_v30  ;;  %v2132_v54 = vmul.f32 1.442695, %v2131_v34  ;;  %v2152_v6 = vsub.f32 %v5488_v3, %v5525_v32  ;;  %v2146_v52 = vmul.f32 1.442695, %v2145_v48 }
 0x4a9   :  { %3221 = vpow2.f32 %v2096_v27  ;;  %v2149_v12 = vmul.f32 1.442695, %v2148_v15  ;;  %v2156_v44 = vsub.f32 %v5512_v23, %v5525_v32 }
 0x4aa   :  { %3223 = vpow2.f32 %v2099_v33  ;;  %v2153_v58 = vmul.f32 1.442695, %v2152_v6 }
 0x4ab   :  { %3225 = vpow2.f32 %v2103_v43  ;;  %v2157_v20 = vmul.f32 1.442695, %v2156_v44 }
 0x4ac   :  { %3227 = vpow2.f32 %v2107_v17 }
 0x4ad   :  { %3229 = vpow2.f32 %v2121_v59 }
 0x4ae   :  { %3231 = vpow2.f32 %v2124_v46 }
 0x4af   :  { %v3214_v7 = vpop.eup %3213  ;;  %3233 = vpow2.f32 %v2128_v19 }
 0x4b0   :  { %v3216_v26 = vpop.eup %3215  ;;  %3235 = vpow2.f32 %v2132_v54 }
 0x4b1   :  { %v3218_v8 = vpop.eup %3217  ;;  %v2076_v16 = vadd.f32 %v3216_v26, %v3214_v7  ;;  %3237 = vpow2.f32 %v2146_v52 }
 0x4b2   :  { %v3220_v11 = vpop.eup %3219  ;;  %3239 = vpow2.f32 %v2149_v12 }
 0x4b3   :  { %v3222_v21 = vpop.eup %3221  ;;  %v2080_v30 = vadd.f32 %v3218_v8, %v2076_v16  ;;  %3241 = vpow2.f32 %v2153_v58 }
 0x4b4   :  { %v3224_v25 = vpop.eup %3223  ;;  %3243 = vpow2.f32 %v2157_v20 }
 0x4b5   :  { %v3226_v27 = vpop.eup %3225  ;;  %v2084_v22 = vadd.f32 %v3220_v11, %v2080_v30  ;;  %v2101_v33 = vadd.f32 %v3224_v25, %v3222_v21 }
 0x4b6   :  { %v3228_v40 = vpop.eup %3227 }
 0x4b7   :  { %v3230_v43 = vpop.eup %3229  ;;  %3245 = vlog2.f32 %v2084_v22  ;;  %v2105_v5 = vadd.f32 %v3226_v27, %v2101_v33 }
 0x4b8   :  { %v3232_v17 = vpop.eup %3231 }
 0x4b9   :  { %v3234_v34 = vpop.eup %3233  ;;  %v2109_v59 = vadd.f32 %v3228_v40, %v2105_v5  ;;  %v2126_v48 = vadd.f32 %v3232_v17, %v3230_v43 }
 0x4ba   :  { %v3236_v46 = vpop.eup %3235 }
 0x4bb   :  { %v3238_v15 = vpop.eup %3237  ;;  %3247 = vlog2.f32 %v2109_v59  ;;  %v2130_v19 = vadd.f32 %v3234_v34, %v2126_v48 }
 0x4bc   :  { %v3240_v54 = vpop.eup %3239 }
 0x4bd   :  { %v2134_v6 = vadd.f32 %v3236_v46, %v2130_v19  ;;  %v2151_v52 = vadd.f32 %v3240_v54, %v3238_v15  ;;  %v3242_v12 = vpop.eup %3241 }
 0x4be   :  { %v3244_v7 = vpop.eup %3243 }
 0x4bf   :  { %3249 = vlog2.f32 %v2134_v6  ;;  %v2155_v44 = vadd.f32 %v3242_v12, %v2151_v52 }
 0x4c1   :  { %v3246_v26 = vpop.eup %3245  ;;  %v2159_v58 = vadd.f32 %v3244_v7, %v2155_v44 }
 0x4c2   :  { %v2086_v8 = vmul.f32 0.6931472, %v3246_v26 }
 0x4c3   :  { %3251 = vlog2.f32 %v2159_v58 }
 0x4c4   :  { %v2087_v11 = vadd.f32 %v2086_v8, %v5494_v29 }
 0x4c5   :  { %v3248_v16 = vpop.eup %3247 }
 0x4c6   :  { %v2111_v20 = vmul.f32 0.6931472, %v3248_v16  ;;  %v5543_v30 = vsub.f32 %v5435_v36, %v2087_v11  ;;  %v5546_v25 = vsub.f32 %v5445_v63, %v2087_v11  ;;  %v5550_v22 = vsub.f32 %v5467_v28, %v2087_v11 }
 0x4c8   :  { %v2112_v27 = vadd.f32 %v2111_v20, %v5497_v10  ;;  %v5567_v10 = vsub.f32 %v5482_v53, %v2087_v11 }
 0x4c9   :  { %v3250_v21 = vpop.eup %3249 }
 0x4ca   :  { %v2136_v33 = vmul.f32 0.6931472, %v3250_v21  ;;  %v5553_v40 = vsub.f32 %v5438_v55, %v2112_v27  ;;  %v5556_v43 = vsub.f32 %v5448_v45, %v2112_v27  ;;  %v5559_v29 = vsub.f32 %v5470_v47, %v2112_v27 }
 0x4cb   :  { %v5570_v55 = vsub.f32 %v5485_v37, %v2112_v27 }
 0x4cc   :  { %v2137_v36 = vadd.f32 %v2136_v33, %v5500_v13  ;;  %v2167_v63 = vmax.f32 %v5543_v30, %v5553_v40  ;;  %v2192_v28 = vmax.f32 %v5546_v25, %v5556_v43  ;;  %v2217_v45 = vmax.f32 %v5550_v22, %v5559_v29 }
 0x4cd   :  { %v3252_v5 = vpop.eup %3251  ;;  %v2242_v46 = vmax.f32 %v5567_v10, %v5570_v55 }
 0x4ce   :  { %v5575_v47 = vsub.f32 %v5442_v24, %v2137_v36  ;;  %v5578_v13 = vsub.f32 %v5451_v39, %v2137_v36  ;;  %v2161_v17 = vmul.f32 0.6931472, %v3252_v5  ;;  %v5581_v34 = vsub.f32 %v5473_v41, %v2137_v36 }
 0x4cf   :  { %v5596_v41 = vsub.f32 %v5491_v38, %v2137_v36 }
 0x4d0   :  { %v2162_v59 = vadd.f32 %v2161_v17, %v5525_v32  ;;  %v2168_v53 = vmax.f32 %v2167_v63, %v5575_v47  ;;  %v2193_v37 = vmax.f32 %v2192_v28, %v5578_v13  ;;  %v2218_v48 = vmax.f32 %v2217_v45, %v5581_v34 }
 0x4d2   :  { %v5590_v24 = vsub.f32 %v5459_v42, %v2162_v59  ;;  %v5593_v39 = vsub.f32 %v5462_v9, %v2162_v59  ;;  %v5599_v32 = vsub.f32 %v5488_v3, %v2162_v59  ;;  %v2243_v42 = vmax.f32 %v2242_v46, %v5596_v41 }
 0x4d3   :  { %v5620_v52 = vsub.f32 %v5512_v23, %v2162_v59 }
 0x4d4   :  { %v5602_v15 = vmax.f32 %v2168_v53, %v5590_v24  ;;  %v5605_v19 = vmax.f32 %v2193_v37, %v5593_v39  ;;  %v5608_v54 = vmax.f32 %v2218_v48, %v5599_v32 }
 0x4d5   :  { %v5633_v21 = vmax.f32 %v2243_v42, %v5620_v52 }
 0x4d6   :  { %v2170_v9 = vsub.f32 %v5543_v30, %v5602_v15  ;;  %v2173_v38 = vsub.f32 %v5553_v40, %v5602_v15  ;;  %v2177_v3 = vsub.f32 %v5575_v47, %v5602_v15  ;;  %v2181_v6 = vsub.f32 %v5590_v24, %v5602_v15 }
 0x4d7   :  { %v2195_v12 = vsub.f32 %v5546_v25, %v5605_v19  ;;  %v2198_v44 = vsub.f32 %v5556_v43, %v5605_v19  ;;  %v2202_v8 = vsub.f32 %v5578_v13, %v5605_v19  ;;  %v2206_v11 = vsub.f32 %v5593_v39, %v5605_v19 }
 0x4d8   :  { %v2171_v7 = vmul.f32 1.442695, %v2170_v9  ;;  %v2174_v26 = vmul.f32 1.442695, %v2173_v38  ;;  %v2178_v58 = vmul.f32 1.442695, %v2177_v3  ;;  %v2220_v23 = vsub.f32 %v5550_v22, %v5608_v54 }
 0x4d9   :  { %v2182_v16 = vmul.f32 1.442695, %v2181_v6  ;;  %v2196_v20 = vmul.f32 1.442695, %v2195_v12  ;;  %v2199_v27 = vmul.f32 1.442695, %v2198_v44  ;;  %v2223_v33 = vsub.f32 %v5559_v29, %v5608_v54 }
 0x4da   :  { %3253 = vpow2.f32 %v2171_v7  ;;  %v2203_v36 = vmul.f32 1.442695, %v2202_v8  ;;  %v2227_v5 = vsub.f32 %v5581_v34, %v5608_v54  ;;  %v2207_v63 = vmul.f32 1.442695, %v2206_v11 }
 0x4db   :  { %3255 = vpow2.f32 %v2174_v26  ;;  %v2231_v28 = vsub.f32 %v5599_v32, %v5608_v54  ;;  %v2221_v45 = vmul.f32 1.442695, %v2220_v23  ;;  %v2245_v17 = vsub.f32 %v5567_v10, %v5633_v21 }
 0x4dc   :  { %3257 = vpow2.f32 %v2178_v58  ;;  %v2224_v59 = vmul.f32 1.442695, %v2223_v33  ;;  %v2248_v53 = vsub.f32 %v5570_v55, %v5633_v21  ;;  %v2228_v37 = vmul.f32 1.442695, %v2227_v5 }
 0x4dd   :  { %3259 = vpow2.f32 %v2182_v16  ;;  %v2232_v48 = vmul.f32 1.442695, %v2231_v28  ;;  %v2252_v46 = vsub.f32 %v5596_v41, %v5633_v21  ;;  %v2246_v42 = vmul.f32 1.442695, %v2245_v17 }
 0x4de   :  { %3261 = vpow2.f32 %v2196_v20  ;;  %v2249_v9 = vmul.f32 1.442695, %v2248_v53  ;;  %v2256_v38 = vsub.f32 %v5620_v52, %v5633_v21 }
 0x4df   :  { %3263 = vpow2.f32 %v2199_v27  ;;  %v2253_v12 = vmul.f32 1.442695, %v2252_v46 }
 0x4e0   :  { %3265 = vpow2.f32 %v2203_v36  ;;  %v2257_v58 = vmul.f32 1.442695, %v2256_v38 }
 0x4e1   :  { %3267 = vpow2.f32 %v2207_v63 }
 0x4e2   :  { %3269 = vpow2.f32 %v2221_v45 }
 0x4e3   :  { %3271 = vpow2.f32 %v2224_v59 }
 0x4e4   :  { %v3254_v3 = vpop.eup %3253  ;;  %3273 = vpow2.f32 %v2228_v37 }
 0x4e5   :  { %v3256_v6 = vpop.eup %3255  ;;  %3275 = vpow2.f32 %v2232_v48 }
 0x4e6   :  { %v3258_v44 = vpop.eup %3257  ;;  %v2176_v7 = vadd.f32 %v3256_v6, %v3254_v3  ;;  %3277 = vpow2.f32 %v2246_v42 }
 0x4e7   :  { %v3260_v26 = vpop.eup %3259  ;;  %3279 = vpow2.f32 %v2249_v9 }
 0x4e8   :  { %v3262_v8 = vpop.eup %3261  ;;  %v2180_v16 = vadd.f32 %v3258_v44, %v2176_v7  ;;  %3281 = vpow2.f32 %v2253_v12 }
 0x4e9   :  { %v3264_v11 = vpop.eup %3263  ;;  %3283 = vpow2.f32 %v2257_v58 }
 0x4ea   :  { %v3266_v20 = vpop.eup %3265  ;;  %v2184_v23 = vadd.f32 %v3260_v26, %v2180_v16  ;;  %v2201_v27 = vadd.f32 %v3264_v11, %v3262_v8 }
 0x4eb   :  { %v3268_v33 = vpop.eup %3267 }
 0x4ec   :  { %v3270_v36 = vpop.eup %3269  ;;  %3285 = vlog2.f32 %v2184_v23  ;;  %v2205_v5 = vadd.f32 %v3266_v20, %v2201_v27  ;;  %v2270_v27 = vlaneseq }
 0x4ed   :  { %v3272_v63 = vpop.eup %3271 }
 0x4ee   :  { %v3274_v28 = vpop.eup %3273  ;;  %v2209_v45 = vadd.f32 %v3268_v33, %v2205_v5  ;;  %v2226_v17 = vadd.f32 %v3272_v63, %v3270_v36 }
 0x4ef   :  { %v3276_v59 = vpop.eup %3275 }
 0x4f0   :  { %v3278_v53 = vpop.eup %3277  ;;  %3287 = vlog2.f32 %v2209_v45  ;;  %v2230_v37 = vadd.f32 %v3274_v28, %v2226_v17 }
 0x4f1   :  { %v3280_v48 = vpop.eup %3279 }
 0x4f2   :  { %v2234_v46 = vadd.f32 %v3276_v59, %v2230_v37  ;;  %v2251_v42 = vadd.f32 %v3280_v48, %v3278_v53  ;;  %v3282_v9 = vpop.eup %3281  ;;  %v2273_v59 = vshrl.u32 %v2270_v27, 7 }
 0x4f3   :  { %v3284_v3 = vpop.eup %3283 }
 0x4f4   :  { %3289 = vlog2.f32 %v2234_v46  ;;  %v2255_v38 = vadd.f32 %v3282_v9, %v2251_v42 }
 0x4f6   :  { %v3286_v6 = vpop.eup %3285  ;;  %v2259_v12 = vadd.f32 %v3284_v3, %v2255_v38 }
 0x4f7   :  { %v2186_v44 = vmul.f32 0.6931472, %v3286_v6 }
 0x4f8   :  { %3291 = vlog2.f32 %v2259_v12 }
 0x4f9   :  { %v2187_v7 = vadd.f32 %v2186_v44, %v5602_v15 }
 0x4fa   :  { %v3288_v26 = vpop.eup %3287 }
 0x4fb   :  { %v2188_v58 = vsub.f32 %v5543_v30, %v2187_v7  ;;  %v2189_v8 = vsub.f32 %v5553_v40, %v2187_v7  ;;  %v2190_v16 = vsub.f32 %v5575_v47, %v2187_v7  ;;  %v5654_v11 = vsub.f32 %v5590_v24, %v2187_v7 }
 0x4fc   :  { %v2211_v20 = vmul.f32 0.6931472, %v3288_v26 }
 0x4fd   :  { %v2267_v23 = vmul.f32 1.442695, %v2188_v58  ;;  %v2282_v33 = vmul.f32 1.442695, %v2189_v8  ;;  %v2294_v63 = vmul.f32 1.442695, %v2190_v16 }
 0x4fe   :  { %v3290_v36 = vpop.eup %3289  ;;  %v2212_v5 = vadd.f32 %v2211_v20, %v5605_v19  ;;  %v2306_v47 = vmul.f32 1.442695, %v5654_v11  ;;  %v2271_v19 = vand.u32 127, %v2270_v27 }
 0x4ff   :  { %v2236_v28 = vmul.f32 0.6931472, %v3290_v36  ;;  %3293 = vpow2.f32 %v2267_v23 }
 0x500   :  { %v5658_v15 = vsub.f32 %v5546_v25, %v2212_v5  ;;  %v5661_v30 = vsub.f32 %v5556_v43, %v2212_v5  ;;  %v5664_v40 = vsub.f32 %v5578_v13, %v2212_v5  ;;  %v5668_v24 = vsub.f32 %v5593_v39, %v2212_v5 }
 0x501   :  { %v2237_v45 = vadd.f32 %v2236_v28, %v5608_v54  ;;  %3295 = vpow2.f32 %v2282_v33 }
 0x502   :  { %v3292_v17 = vpop.eup %3291  ;;  %3297 = vpow2.f32 %v2294_v63  ;;  %v2318_v25 = vmul.f32 1.442695, %v5658_v15  ;;  %v2330_v43 = vmul.f32 1.442695, %v5661_v30  ;;  %v2342_v54 = vmul.f32 1.442695, %v5664_v40 }
 0x503   :  { %v5674_v53 = vsub.f32 %v5550_v22, %v2237_v45  ;;  %v5677_v13 = vsub.f32 %v5559_v29, %v2237_v45  ;;  %v5680_v39 = vsub.f32 %v5581_v34, %v2237_v45  ;;  %v2261_v37 = vmul.f32 0.6931472, %v3292_v17 }
 0x504   :  { %3299 = vpow2.f32 %v2306_v47  ;;  %v5684_v48 = vsub.f32 %v5599_v32, %v2237_v45  ;;  %v2354_v46 = vmul.f32 1.442695, %v5668_v24  ;;  %v5688_v22 = vsub.s32 %v2271_v19, %v2273_v59 }
 0x505   :  { %3301 = vpow2.f32 %v2318_v25  ;;  %v2262_v42 = vadd.f32 %v2261_v37, %v5633_v21  ;;  %v2366_v29 = vmul.f32 1.442695, %v5674_v53  ;;  %v2279_v34 = vadd.f32 %v2188_v58, %v3461_v49 }
 0x506   :  { %3303 = vpow2.f32 %v2330_v43  ;;  %v2378_v9 = vmul.f32 1.442695, %v5677_v13  ;;  %v2390_v21 = vmul.f32 1.442695, %v5680_v39  ;;  %v2291_v49 = vadd.f32 %v2189_v8, %v3473_v56 }
 0x507   :  { %3305 = vpow2.f32 %v2342_v54  ;;  %v5694_v38 = vsub.f32 %v5567_v10, %v2262_v42  ;;  %v5697_v32 = vsub.f32 %v5570_v55, %v2262_v42  ;;  %v5700_v3 = vsub.f32 %v5596_v41, %v2262_v42 }
 0x508   :  { %v5704_v12 = vsub.f32 %v5620_v52, %v2262_v42  ;;  %3307 = vpow2.f32 %v2354_v46  ;;  %v2402_v44 = vmul.f32 1.442695, %v5684_v48  ;;  %v2303_v41 = vadd.f32 %v2190_v16, %v3480_v60 }
 0x509   :  { %v3294_v6 = vpop.eup %3293  ;;  %3309 = vpow2.f32 %v2366_v29  ;;  %v2414_v55 = vmul.f32 1.442695, %v5694_v38  ;;  %v2426_v58 = vmul.f32 1.442695, %v5697_v32  ;;  %v2438_v8 = vmul.f32 1.442695, %v5700_v3 }
 0x50a   :  { %v2275_v10 = vrot.slane %v3294_v6, %v5688_v22  ;;  %v2280_v7 = vmul.f32 %v3294_v6, %v2279_v34  ;;  %3311 = vpow2.f32 %v2378_v9  ;;  %v2315_v60 = vadd.f32 %v5654_v11, %v3486_v0 }
 0x50b   :  { %v3296_v26 = vpop.eup %3295  ;;  %3313 = vpow2.f32 %v2390_v21  ;;  %v2450_v36 = vmul.f32 1.442695, %v5704_v12  ;;  %v2327_v11 = vadd.f32 %v5658_v15, %v3463_v50  ;;  %v2339_v15 = vadd.f32 %v5661_v30, %v3475_v57 }
 0x50c   :  { %v3298_v20 = vpop.eup %3297  ;;  %2278 = vst.msk [vmem:[%s5835_s2] sm:$0x1] %vm2277_vm1, %v2275_v10  ;;  %v2288_v56 = vrot.slane %v3296_v26, %v5688_v22  ;;  %v2292_v52 = vmul.f32 %v3296_v26, %v2291_v49  ;;  %3315 = vpow2.f32 %v2402_v44  ;;  %v2351_v42 = vadd.f32 %v5664_v40, %v3482_v61 }
 0x50d   :  { %v2300_v23 = vrot.slane %v3298_v20, %v5688_v22  ;;  %v2304_v33 = vmul.f32 %v3298_v20, %v2303_v41  ;;  %3317 = vpow2.f32 %v2414_v55  ;;  %v2363_v6 = vadd.f32 %v5668_v24, %v3488_v1 }
 0x50e   :  { %v3300_v16 = vpop.eup %3299  ;;  %2290 = vst.msk [vmem:[%s5835_s2 + $0x1] sm:$0x1] %vm2277_vm1, %v2288_v56  ;;  %v2293_v27 = vadd.f32 %v2292_v52, %v2280_v7  ;;  %3319 = vpow2.f32 %v2426_v58  ;;  %v2375_v55 = vadd.f32 %v5674_v53, %v3465_v51  ;;  %v2387_v51 = vadd.f32 %v5677_v13, %v3484_v62 }
 0x50f   :  { %v3302_v5 = vpop.eup %3301  ;;  %2302 = vst.msk [vmem:[%s5835_s2 + $0x2] sm:$0x1] %vm2277_vm1, %v2300_v23  ;;  %v2312_v0 = vrot.slane %v3300_v16, %v5688_v22  ;;  %v2316_v47 = vmul.f32 %v3300_v16, %v2315_v60  ;;  %3321 = vpow2.f32 %v2438_v8  ;;  %v2399_v62 = vadd.f32 %v5680_v39, %v3494_v4 }
 0x510   :  { %v3304_v63 = vpop.eup %3303  ;;  %v2305_v28 = vadd.f32 %v2304_v33, %v2293_v27  ;;  %v2324_v45 = vrot.slane %v3302_v5, %v5688_v22  ;;  %3323 = vpow2.f32 %v2450_v36  ;;  %v2328_v50 = vmul.f32 %v3302_v5, %v2327_v11 }
 0x511   :  { %v3306_v19 = vpop.eup %3305  ;;  %2314 = vst.msk [vmem:[%s5835_s2 + $0x3] sm:$0x1] %vm2277_vm1, %v2312_v0  ;;  %v2336_v17 = vrot.slane %v3304_v63, %v5688_v22  ;;  %v2340_v46 = vmul.f32 %v3304_v63, %v2339_v15  ;;  %v2411_v27 = vadd.f32 %v5684_v48, %v3515_v14  ;;  %v2423_v33 = vadd.f32 %v5694_v38, %v3490_v2 }
 0x512   :  { %v2317_v59 = vadd.f32 %v2316_v47, %v2305_v28  ;;  %2326 = vst.msk [vmem:[%s5835_s2 + $0x4] sm:$0x1] %vm2277_vm1, %v2324_v45  ;;  %v2348_v25 = vrot.slane %v3306_v19, %v5688_v22  ;;  %v3308_v43 = vpop.eup %3307  ;;  %v2352_v21 = vmul.f32 %v3306_v19, %v2351_v42  ;;  %v2435_v0 = vadd.f32 %v5697_v32, %v3526_v18 }
 0x513   :  { %2338 = vst.msk [vmem:[%s5835_s2 + $0x5] sm:$0x1] %vm2277_vm1, %v2336_v17  ;;  %v3310_v37 = vpop.eup %3309  ;;  %v2360_v57 = vrot.slane %v3308_v43, %v5688_v22  ;;  %v2364_v7 = vmul.f32 %v3308_v43, %v2363_v6  ;;  %v2447_v14 = vadd.f32 %v5700_v3, %v3554_v35  ;;  %v2459_v47 = vadd.f32 %v5704_v12, %v3550_v31 }
 0x514   :  { %v2329_v54 = vadd.f32 %v2328_v50, %v2317_v59  ;;  %2350 = vst.msk [vmem:[%s5835_s2 + $0x6] sm:$0x1] %vm2277_vm1, %v2348_v25  ;;  %v3312_v30 = vpop.eup %3311  ;;  %v2372_v29 = vrot.slane %v3310_v37, %v5688_v22  ;;  %v2376_v20 = vmul.f32 %v3310_v37, %v2375_v55 }
 0x515   :  { %v3314_v34 = vpop.eup %3313  ;;  %2362 = vst.msk [vmem:[%s5835_s2 + $0x7] sm:$0x1] %vm2277_vm1, %v2360_v57  ;;  %v2384_v49 = vrot.slane %v3312_v30, %v5688_v22  ;;  %v2388_v23 = vmul.f32 %v3312_v30, %v2387_v51 }
 0x516   :  { %v2341_v9 = vadd.f32 %v2340_v46, %v2329_v54  ;;  %v3316_v44 = vpop.eup %3315  ;;  %2374 = vst.msk [vmem:[%s5835_s2 + $0x8] sm:$0x1] %vm2277_vm1, %v2372_v29  ;;  %v2396_v61 = vrot.slane %v3314_v34, %v5688_v22  ;;  %v2400_v16 = vmul.f32 %v3314_v34, %v2399_v62 }
 0x517   :  { %v3318_v40 = vpop.eup %3317  ;;  %2386 = vst.msk [vmem:[%s5835_s2 + $0x9] sm:$0x1] %vm2277_vm1, %v2384_v49  ;;  %v2408_v1 = vrot.slane %v3316_v44, %v5688_v22  ;;  %v2412_v39 = vmul.f32 %v3316_v44, %v2411_v27 }
 0x518   :  { %v2353_v10 = vadd.f32 %v2352_v21, %v2341_v9  ;;  %v3320_v24 = vpop.eup %3319  ;;  %2398 = vst.msk [vmem:[%s5835_s2 + $0xa] sm:$0x1] %vm2277_vm1, %v2396_v61  ;;  %v2420_v26 = vrot.slane %v3318_v40, %v5688_v22  ;;  %v2424_v5 = vmul.f32 %v3318_v40, %v2423_v33 }
 0x519   :  { %v3322_v41 = vpop.eup %3321  ;;  %2410 = vst.msk [vmem:[%s5835_s2 + $0xb] sm:$0x1] %vm2277_vm1, %v2408_v1  ;;  %v2432_v53 = vrot.slane %v3320_v24, %v5688_v22  ;;  %v2436_v63 = vmul.f32 %v3320_v24, %v2435_v0 }
 0x51a   :  { %v2365_v58 = vadd.f32 %v2364_v7, %v2353_v10  ;;  %v3324_v56 = vpop.eup %3323  ;;  %2422 = vst.msk [vmem:[%s5835_s2 + $0xc] sm:$0x1] %vm2277_vm1, %v2420_v26  ;;  %v2444_v52 = vrot.slane %v3322_v41, %v5688_v22  ;;  %v2448_v28 = vmul.f32 %v3322_v41, %v2447_v14 }
 0x51b   :  { %2434 = vst.msk [vmem:[%s5835_s2 + $0xd] sm:$0x1] %vm2277_vm1, %v2432_v53  ;;  %v2456_v13 = vrot.slane %v3324_v56, %v5688_v22  ;;  %v2460_v19 = vmul.f32 %v3324_v56, %v2459_v47 }
 0x51c   :  { %v2377_v8 = vadd.f32 %v2376_v20, %v2365_v58  ;;  %2446 = vst.msk [vmem:[%s5835_s2 + $0xe] sm:$0x1] %vm2277_vm1, %v2444_v52 }
 0x51d   :  { %2458 = vst.msk [vmem:[%s5835_s2 + $0xf] sm:$0x1] %vm2277_vm1, %v2456_v13  ;;  %s3400_s2 = smov [#allocation8]  }
 0x51e   :  { %v2389_v60 = vadd.f32 %v2388_v23, %v2377_v8  ;;  %s2477_s10 = sshll.u32 %s3400_s2, 4  ;;  %s2478_s10 = int_to_ptr.vmem [resolvable:$true] %s2477_s10 }
 0x51f   :  { %s3369_s11 = scalar_lea.vmem %s2478_s10, 16  ;;  %s3373_s12 = scalar_lea.vmem %s2478_s10, 32 }
 0x520   :  { %v2401_v4 = vadd.f32 %v2400_v16, %v2389_v60  ;;  %p3370_p2 = scmp.ne.s32.totalorder %s2478_s10, %s3369_s11  ;;  %p3374_p3 = scmp.lt.s32.totalorder %s2478_s10, %s2478_s10 }
 0x521   :  { %p3375_p4 = scmp.lt.s32.totalorder %s3373_s12, %s3369_s11 }
 0x522   :  { %v2413_v36 = vadd.f32 %v2412_v39, %v2401_v4 }
 0x523   :  { %p3376_p5 = por %p3375_p4, %p3374_p3 }
 0x524   :  { %v2425_v11 = vadd.f32 %v2424_v5, %v2413_v36 }
 0x525   :  { %p3377_p6 = pnand %p3376_p5, %p3370_p2 }
 0x526   :  { %v2437_v48 = vadd.f32 %v2436_v63, %v2425_v11 }
 0x528   :  { %v2449_v45 = vadd.f32 %v2448_v28, %v2437_v48 }
 0x52a   :  { %v2461_v2 = vadd.f32 %v2460_v19, %v2449_v45 }
 0x52c   :  { %v2466_v38 = vrot.slane %v2461_v2, %v5688_v22 }
 0x52e   :  { %2468 = vst.msk [vmem:[#allocation8] sm:$0x1] %vm2277_vm1, %v2466_v38 }
 0x52f   :  { %3380 = shalt.err (!%p3377_p6)
}
 0x530   :  { %s3381_s15 = scalar_lea.hbm %s5836_s3, 16 }
 0x531   :  { %p3382_p7 = scmp.ne.s32.totalorder %s5836_s3, %s3381_s15  ;;  %p3385_p8 = scmp.lt.u32.totalorder %s3381_s15, %s5836_s3 }
 0x533   :  { %p3387_p9 = pnand %p3385_p8, %p3382_p7 }
 0x535   :  { %3390 = shalt.err (!%p3387_p9)
}
 0x536   :  { %2480 = dma.vmem_to_hbm [thread:$0]  %s2478_s10, 16, %s5836_s3, [#allocation5]  }
 0x537   :  { %3395 = dma.done.wait [#allocation5], 16  }
 0x538   :  { %3396 = vsyncadd [#allocation5], 4294967280 }
 0x539   :  { %2486 = vsyncpa [#allocation4], 1 }
 0x53a   :  { %2487 = vsyncpa [#allocation7], 1 }
 0x53b   :  { %2488 = vsyncpa [#allocation5], 1 }

</bundles_post_ra>
